<compile_context>
chip_gen: v5e
topology: v5e:2x2
jax: 0.10.0
libtpu: 0.0.40
codegen_flags: <defaults>
</compile_context>

<pallas_src>
import numpy as np
import jax
import jax.numpy as jnp
from jax.experimental import pallas as pl
from jax.experimental.pallas import tpu as pltpu


# ----------------------------------------------------------------------------
# Kernel: per ring-row construction from static slices (no matmul, no gather op)
# ----------------------------------------------------------------------------
def _make_sqrl_kernel(H, Hh, lmid):
    W = H

    def kernel(x_ref, xf_ref, xt_ref, xtf_ref, o_ref):
        # x_ref   : (tm, H, W)  image
        # xf_ref  : (tm, H, W)  image with columns reversed   (x[..., ::-1])
        # xt_ref  : (tm, W, H)  transposed image              (x.swap(H, W))
        # xtf_ref : (tm, W, H)  transposed image, cols revd   (xt[..., ::-1])
        # o_ref   : (tm, Hh, 4H)
        for dif in range(Hh):          # static unroll (trace time)
            i = lmid - dif
            el = 2 * dif + 1           # even-H branch (asserted in wrapper)
            segs = []

            def corner(ref, r, c, width):
                if width > 0:
                    v = ref[:, r, c:c + 1]               # (tm, 1)
                    segs.append(jnp.broadcast_to(v, (v.shape[0], width)))

            # seg 1: i copies of corner (i, i)
            corner(x_ref, i, i, i)
            # seg 2: top edge  img[i, i:i+el]
            segs.append(x_ref[:, i, i:i + el])
            # seg 3: 2i copies of corner (i, W-1-i)
            corner(x_ref, i, W - 1 - i, 2 * i)
            # seg 4: right edge img[i:i+el, W-1-i]  (read as a row of xt)
            segs.append(xt_ref[:, W - 1 - i, i:i + el])
            # seg 5: 2i copies of corner (i+el, i+el)
            corner(x_ref, i + el, i + el, 2 * i)
            # seg 6: bottom edge reversed  img[i+el, i+el .. i+1]  (row of xf)
            segs.append(xf_ref[:, i + el, W - 1 - i - el:W - 1 - i])
            # seg 7: 2i copies of corner (i+el, i)
            corner(x_ref, i + el, i, 2 * i)
            # seg 8: left edge reversed  img[i+el .. i+1, i]  (row of xtf)
            segs.append(xtf_ref[:, i, W - 1 - i - el:W - 1 - i])
            # seg 9: i copies of corner (i, i)
            corner(x_ref, i, i, i)

            row = jnp.concatenate(segs, axis=-1)                 # (tm, 4H-4)
            full = jnp.concatenate([row, row[:, 0:4]], axis=-1)  # wrap-around
            o_ref[:, dif, :] = full

    return kernel


def _sqrl_pallas(x, xf, xt, xtf, Hh, Wout):
    BC, H, W = x.shape
    # Tile the BC (M) axis: small tiles keep VMEM bounded (important on v7x's
    # 64 MiB VMEM) and give the pipeline / megacore more grid steps.
    tm = BC
    for cand in (128, 64, 32, 16, 8):
        if BC % cand == 0:
            tm = cand
            break
    grid = (BC // tm,)

    kernel = _make_sqrl_kernel(H, Hh, (H - 1) // 2)
    itemsize = np.dtype(x.dtype).itemsize
    in_spec = pl.BlockSpec((tm, H, W), lambda m: (m, 0, 0))

    return pl.pallas_call(
        kernel,
        out_shape=jax.ShapeDtypeStruct((BC, Hh, Wout), x.dtype),
        grid_spec=pltpu.PrefetchScalarGridSpec(
            num_scalar_prefetch=0,
            grid=grid,
            in_specs=[in_spec, in_spec, in_spec, in_spec],
            out_specs=pl.BlockSpec((tm, Hh, Wout), lambda m: (m, 0, 0)),
        ),
        compiler_params=pltpu.CompilerParams(
            dimension_semantics=("parallel",),
        ),
        cost_estimate=pl.CostEstimate(
            flops=0,
            transcendentals=0,
            bytes_accessed=(4 * BC * H * W + BC * Hh * Wout) * itemsize,
        ),
    )(x, xf, xt, xtf)


# ----------------------------------------------------------------------------
# Wrapper reproducing SqRL.forward (jitted so all index math is trace-time)
# ----------------------------------------------------------------------------
@jax.jit
def sqrl_forward(img):
    B, C, h, w = img.shape
    assert h % 2 == 0 and h == w
    if h < 32:
        pad = (32 - h) // 2
        img = jnp.pad(img, ((0, 0), (0, 0), (pad, pad), (pad, pad)),
                      mode="symmetric")
    H = img.shape[2]
    Hh = -(-H // 2)
    Wout = 4 * H

    x = img.reshape(B * C, H, H)            # keep input dtype (no f32 upcast)
    xf = x[:, :, ::-1]                      # columns reversed
    xt = jnp.transpose(x, (0, 2, 1))        # transposed (column slices -> rows)
    xtf = xt[:, :, ::-1]                    # transposed, reversed

    out = _sqrl_pallas(x, xf, xt, xtf, Hh, Wout)
    return out.reshape(B, C, Hh, Wout)


# ----------------------------------------------------------------------------
# Pure-numpy reference mirroring the PyTorch code (validation only)
# ----------------------------------------------------------------------------
def sqrl_reference_np(x):
    img = np.asarray(x)
    h = img.shape[2]
    assert h % 2 == 0
    if h < 32:
        pad = (32 - h) // 2
        img = np.pad(img, ((0, 0), (0, 0), (pad, pad), (pad, pad)),
                     mode="symmetric")
    B, C, H, W = img.shape
    res = np.zeros((B, C, int(np.ceil(H / 2)), H * 4), dtype=img.dtype)
    lmid = int(np.floor((H - 1) / 2))
    for i in range(lmid, -1, -1):
        dif = lmid - i
        el = 2 * dif if H % 2 == 1 else 2 * dif + 1
        res[:, :, dif, 0:i] = img[:, :, i, i].repeat(i).reshape(B, C, i)
        res[:, :, dif, i:i + el] = img[:, :, i, i:i + el]
        res[:, :, dif, i + el:3 * i + el] = img[:, :, i, W - i - 1].repeat(2 * i).reshape(B, C, 2 * i)
        res[:, :, dif, 3 * i + el:3 * i + 2 * el] = img[:, :, i:i + el, W - i - 1]
        res[:, :, dif, 3 * i + 2 * el:5 * i + 2 * el] = img[:, :, i + el, i + el].repeat(2 * i).reshape(B, C, 2 * i)
        if el != 0:
            res[:, :, dif, 5 * i + 2 * el:5 * i + 3 * el] = np.fliplr(
                img[:, :, i + el, i + 1:i + 1 + el].transpose(0, 2, 1)).transpose(0, 2, 1)
        res[:, :, dif, 5 * i + 3 * el:7 * i + 3 * el] = img[:, :, i + el, i].repeat(2 * i).reshape(B, C, 2 * i)
        if el != 0:
            res[:, :, dif, 7 * i + 3 * el:7 * i + 4 * el] = np.fliplr(
                img[:, :, i + 1:i + 1 + el, i].transpose(0, 2, 1)).transpose(0, 2, 1)
        res[:, :, dif, 7 * i + 4 * el:8 * i + 4 * el] = img[:, :, i, i].repeat(i).reshape(B, C, i)
    res[:, :, :, (H - 1) * 4:H * 4] = res[:, :, :, 0:4]
    return res


if __name__ == "__main__":
    key = jax.random.PRNGKey(0)
    x = jax.random.normal(key, (2, 4, 16, 16), dtype=jnp.float32)

    out = sqrl_forward(x)
    out = jax.block_until_ready(out)

    ref = sqrl_reference_np(np.asarray(x))
    assert out.shape == ref.shape, (out.shape, ref.shape)
    np.testing.assert_allclose(np.asarray(out), ref, rtol=1e-6, atol=1e-6)

    print("KERNEL_OK")
</pallas_src>

<mosaic_0001>
module attributes {stable_mosaic.version = 11 : i64} {
  func.func @kernel(%arg0: i32, %arg1: memref<8x32x32xf32, #tpu.memory_space<vmem>>, %arg2: memref<8x32x32xf32, #tpu.memory_space<vmem>>, %arg3: memref<8x32x32xf32, #tpu.memory_space<vmem>>, %arg4: memref<8x32x32xf32, #tpu.memory_space<vmem>>, %arg5: memref<8x16x128xf32, #tpu.memory_space<vmem>>) attributes {dimension_semantics = [#tpu.dimension_semantics<parallel>], iteration_bounds = array<i64: 1>, scalar_prefetch = 0 : i64, scratch_operands = 0 : i64, tpu.core_type = #tpu.core_type<tc>, window_params = [{transform_indices = @transform_0, window_bounds = array<i64: 8, 32, 32>}, {transform_indices = @transform_1, window_bounds = array<i64: 8, 32, 32>}, {transform_indices = @transform_2, window_bounds = array<i64: 8, 32, 32>}, {transform_indices = @transform_3, window_bounds = array<i64: 8, 32, 32>}, {transform_indices = @transform_4, window_bounds = array<i64: 8, 16, 128>}]} {
    %c0 = arith.constant 0 : index
    %c15 = arith.constant 15 : index
    %c15_0 = arith.constant 15 : index
    %0 = vector.load %arg1[%c0, %c15, %c15_0] : memref<8x32x32xf32, #tpu.memory_space<vmem>>, vector<8x1x1xf32>
    %1 = vector.shape_cast %0 : vector<8x1x1xf32> to vector<8x1xf32>
    %2 = vector.shape_cast %1 : vector<8x1xf32> to vector<8x1xf32>
    %3 = vector.broadcast %2 : vector<8x1xf32> to vector<8x15xf32>
    %c0_1 = arith.constant 0 : index
    %c15_2 = arith.constant 15 : index
    %c15_3 = arith.constant 15 : index
    %4 = vector.load %arg1[%c0_1, %c15_2, %c15_3] : memref<8x32x32xf32, #tpu.memory_space<vmem>>, vector<8x1x1xf32>
    %5 = vector.shape_cast %4 : vector<8x1x1xf32> to vector<8x1xf32>
    %c0_4 = arith.constant 0 : index
    %c15_5 = arith.constant 15 : index
    %c16 = arith.constant 16 : index
    %6 = vector.load %arg1[%c0_4, %c15_5, %c16] : memref<8x32x32xf32, #tpu.memory_space<vmem>>, vector<8x1x1xf32>
    %7 = vector.shape_cast %6 : vector<8x1x1xf32> to vector<8x1xf32>
    %8 = vector.shape_cast %7 : vector<8x1xf32> to vector<8x1xf32>
    %9 = vector.broadcast %8 : vector<8x1xf32> to vector<8x30xf32>
    %c0_6 = arith.constant 0 : index
    %c16_7 = arith.constant 16 : index
    %c15_8 = arith.constant 15 : index
    %10 = vector.load %arg3[%c0_6, %c16_7, %c15_8] : memref<8x32x32xf32, #tpu.memory_space<vmem>>, vector<8x1x1xf32>
    %11 = vector.shape_cast %10 : vector<8x1x1xf32> to vector<8x1xf32>
    %c0_9 = arith.constant 0 : index
    %c16_10 = arith.constant 16 : index
    %c16_11 = arith.constant 16 : index
    %12 = vector.load %arg1[%c0_9, %c16_10, %c16_11] : memref<8x32x32xf32, #tpu.memory_space<vmem>>, vector<8x1x1xf32>
    %13 = vector.shape_cast %12 : vector<8x1x1xf32> to vector<8x1xf32>
    %14 = vector.shape_cast %13 : vector<8x1xf32> to vector<8x1xf32>
    %15 = vector.broadcast %14 : vector<8x1xf32> to vector<8x30xf32>
    %c0_12 = arith.constant 0 : index
    %c16_13 = arith.constant 16 : index
    %c15_14 = arith.constant 15 : index
    %16 = vector.load %arg2[%c0_12, %c16_13, %c15_14] : memref<8x32x32xf32, #tpu.memory_space<vmem>>, vector<8x1x1xf32>
    %17 = vector.shape_cast %16 : vector<8x1x1xf32> to vector<8x1xf32>
    %c0_15 = arith.constant 0 : index
    %c16_16 = arith.constant 16 : index
    %c15_17 = arith.constant 15 : index
    %18 = vector.load %arg1[%c0_15, %c16_16, %c15_17] : memref<8x32x32xf32, #tpu.memory_space<vmem>>, vector<8x1x1xf32>
    %19 = vector.shape_cast %18 : vector<8x1x1xf32> to vector<8x1xf32>
    %20 = vector.shape_cast %19 : vector<8x1xf32> to vector<8x1xf32>
    %21 = vector.broadcast %20 : vector<8x1xf32> to vector<8x30xf32>
    %c0_18 = arith.constant 0 : index
    %c15_19 = arith.constant 15 : index
    %c15_20 = arith.constant 15 : index
    %22 = vector.load %arg4[%c0_18, %c15_19, %c15_20] : memref<8x32x32xf32, #tpu.memory_space<vmem>>, vector<8x1x1xf32>
    %23 = vector.shape_cast %22 : vector<8x1x1xf32> to vector<8x1xf32>
    %c0_21 = arith.constant 0 : index
    %c15_22 = arith.constant 15 : index
    %c15_23 = arith.constant 15 : index
    %24 = vector.load %arg1[%c0_21, %c15_22, %c15_23] : memref<8x32x32xf32, #tpu.memory_space<vmem>>, vector<8x1x1xf32>
    %25 = vector.shape_cast %24 : vector<8x1x1xf32> to vector<8x1xf32>
    %26 = vector.shape_cast %25 : vector<8x1xf32> to vector<8x1xf32>
    %27 = vector.broadcast %26 : vector<8x1xf32> to vector<8x15xf32>
    %28 = tpu.concatenate %3, %5, %9, %11, %15, %17, %21, %23, %27 in 1 : vector<8x15xf32>, vector<8x1xf32>, vector<8x30xf32>, vector<8x1xf32>, vector<8x30xf32>, vector<8x1xf32>, vector<8x30xf32>, vector<8x1xf32>, vector<8x15xf32> -> vector<8x124xf32>
    %29 = vector.extract_strided_slice %28 {offsets = [0, 0], sizes = [8, 4], strides = [1, 1]} : vector<8x124xf32> to vector<8x4xf32>
    %30 = tpu.concatenate %28, %29 in 1 : vector<8x124xf32>, vector<8x4xf32> -> vector<8x128xf32>
    %c0_24 = arith.constant 0 : index
    %c0_25 = arith.constant 0 : index
    %c0_26 = arith.constant 0 : index
    %31 = vector.load %arg5[%c0_24, %c0_25, %c0_26] : memref<8x16x128xf32, #tpu.memory_space<vmem>>, vector<8x1x128xf32>
    %32 = vector.shape_cast %31 : vector<8x1x128xf32> to vector<8x128xf32>
    %33 = vector.shape_cast %30 : vector<8x128xf32> to vector<8x1x128xf32>
    tpu.vector_store %arg5[%c0_24, %c0_25, %c0_26], %33 {strides = array<i32>} : memref<8x16x128xf32, #tpu.memory_space<vmem>>, vector<8x1x128xf32>,
    %c0_27 = arith.constant 0 : index
    %c14 = arith.constant 14 : index
    %c14_28 = arith.constant 14 : index
    %34 = vector.load %arg1[%c0_27, %c14, %c14_28] : memref<8x32x32xf32, #tpu.memory_space<vmem>>, vector<8x1x1xf32>
    %35 = vector.shape_cast %34 : vector<8x1x1xf32> to vector<8x1xf32>
    %36 = vector.shape_cast %35 : vector<8x1xf32> to vector<8x1xf32>
    %37 = vector.broadcast %36 : vector<8x1xf32> to vector<8x14xf32>
    %c0_29 = arith.constant 0 : index
    %c14_30 = arith.constant 14 : index
    %c14_31 = arith.constant 14 : index
    %38 = vector.load %arg1[%c0_29, %c14_30, %c14_31] : memref<8x32x32xf32, #tpu.memory_space<vmem>>, vector<8x1x3xf32>
    %39 = vector.shape_cast %38 : vector<8x1x3xf32> to vector<8x3xf32>
    %c0_32 = arith.constant 0 : index
    %c14_33 = arith.constant 14 : index
    %c17 = arith.constant 17 : index
    %40 = vector.load %arg1[%c0_32, %c14_33, %c17] : memref<8x32x32xf32, #tpu.memory_space<vmem>>, vector<8x1x1xf32>
    %41 = vector.shape_cast %40 : vector<8x1x1xf32> to vector<8x1xf32>
    %42 = vector.shape_cast %41 : vector<8x1xf32> to vector<8x1xf32>
    %43 = vector.broadcast %42 : vector<8x1xf32> to vector<8x28xf32>
    %c0_34 = arith.constant 0 : index
    %c17_35 = arith.constant 17 : index
    %c14_36 = arith.constant 14 : index
    %44 = vector.load %arg3[%c0_34, %c17_35, %c14_36] : memref<8x32x32xf32, #tpu.memory_space<vmem>>, vector<8x1x3xf32>
    %45 = vector.shape_cast %44 : vector<8x1x3xf32> to vector<8x3xf32>
    %c0_37 = arith.constant 0 : index
    %c17_38 = arith.constant 17 : index
    %c17_39 = arith.constant 17 : index
    %46 = vector.load %arg1[%c0_37, %c17_38, %c17_39] : memref<8x32x32xf32, #tpu.memory_space<vmem>>, vector<8x1x1xf32>
    %47 = vector.shape_cast %46 : vector<8x1x1xf32> to vector<8x1xf32>
    %48 = vector.shape_cast %47 : vector<8x1xf32> to vector<8x1xf32>
    %49 = vector.broadcast %48 : vector<8x1xf32> to vector<8x28xf32>
    %c0_40 = arith.constant 0 : index
    %c17_41 = arith.constant 17 : index
    %c14_42 = arith.constant 14 : index
    %50 = vector.load %arg2[%c0_40, %c17_41, %c14_42] : memref<8x32x32xf32, #tpu.memory_space<vmem>>, vector<8x1x3xf32>
    %51 = vector.shape_cast %50 : vector<8x1x3xf32> to vector<8x3xf32>
    %c0_43 = arith.constant 0 : index
    %c17_44 = arith.constant 17 : index
    %c14_45 = arith.constant 14 : index
    %52 = vector.load %arg1[%c0_43, %c17_44, %c14_45] : memref<8x32x32xf32, #tpu.memory_space<vmem>>, vector<8x1x1xf32>
    %53 = vector.shape_cast %52 : vector<8x1x1xf32> to vector<8x1xf32>
    %54 = vector.shape_cast %53 : vector<8x1xf32> to vector<8x1xf32>
    %55 = vector.broadcast %54 : vector<8x1xf32> to vector<8x28xf32>
    %c0_46 = arith.constant 0 : index
    %c14_47 = arith.constant 14 : index
    %c14_48 = arith.constant 14 : index
    %56 = vector.load %arg4[%c0_46, %c14_47, %c14_48] : memref<8x32x32xf32, #tpu.memory_space<vmem>>, vector<8x1x3xf32>
    %57 = vector.shape_cast %56 : vector<8x1x3xf32> to vector<8x3xf32>
    %c0_49 = arith.constant 0 : index
    %c14_50 = arith.constant 14 : index
    %c14_51 = arith.constant 14 : index
    %58 = vector.load %arg1[%c0_49, %c14_50, %c14_51] : memref<8x32x32xf32, #tpu.memory_space<vmem>>, vector<8x1x1xf32>
    %59 = vector.shape_cast %58 : vector<8x1x1xf32> to vector<8x1xf32>
    %60 = vector.shape_cast %59 : vector<8x1xf32> to vector<8x1xf32>
    %61 = vector.broadcast %60 : vector<8x1xf32> to vector<8x14xf32>
    %62 = tpu.concatenate %37, %39, %43, %45, %49, %51, %55, %57, %61 in 1 : vector<8x14xf32>, vector<8x3xf32>, vector<8x28xf32>, vector<8x3xf32>, vector<8x28xf32>, vector<8x3xf32>, vector<8x28xf32>, vector<8x3xf32>, vector<8x14xf32> -> vector<8x124xf32>
    %63 = vector.extract_strided_slice %62 {offsets = [0, 0], sizes = [8, 4], strides = [1, 1]} : vector<8x124xf32> to vector<8x4xf32>
    %64 = tpu.concatenate %62, %63 in 1 : vector<8x124xf32>, vector<8x4xf32> -> vector<8x128xf32>
    %c0_52 = arith.constant 0 : index
    %c1 = arith.constant 1 : index
    %c0_53 = arith.constant 0 : index
    %65 = vector.load %arg5[%c0_52, %c1, %c0_53] : memref<8x16x128xf32, #tpu.memory_space<vmem>>, vector<8x1x128xf32>
    %66 = vector.shape_cast %65 : vector<8x1x128xf32> to vector<8x128xf32>
    %67 = vector.shape_cast %64 : vector<8x128xf32> to vector<8x1x128xf32>
    tpu.vector_store %arg5[%c0_52, %c1, %c0_53], %67 {strides = array<i32>} : memref<8x16x128xf32, #tpu.memory_space<vmem>>, vector<8x1x128xf32>,
    %c0_54 = arith.constant 0 : index
    %c13 = arith.constant 13 : index
    %c13_55 = arith.constant 13 : index
    %68 = vector.load %arg1[%c0_54, %c13, %c13_55] : memref<8x32x32xf32, #tpu.memory_space<vmem>>, vector<8x1x1xf32>
    %69 = vector.shape_cast %68 : vector<8x1x1xf32> to vector<8x1xf32>
    %70 = vector.shape_cast %69 : vector<8x1xf32> to vector<8x1xf32>
    %71 = vector.broadcast %70 : vector<8x1xf32> to vector<8x13xf32>
    %c0_56 = arith.constant 0 : index
    %c13_57 = arith.constant 13 : index
    %c13_58 = arith.constant 13 : index
    %72 = vector.load %arg1[%c0_56, %c13_57, %c13_58] : memref<8x32x32xf32, #tpu.memory_space<vmem>>, vector<8x1x5xf32>
    %73 = vector.shape_cast %72 : vector<8x1x5xf32> to vector<8x5xf32>
    %c0_59 = arith.constant 0 : index
    %c13_60 = arith.constant 13 : index
    %c18 = arith.constant 18 : index
    %74 = vector.load %arg1[%c0_59, %c13_60, %c18] : memref<8x32x32xf32, #tpu.memory_space<vmem>>, vector<8x1x1xf32>
    %75 = vector.shape_cast %74 : vector<8x1x1xf32> to vector<8x1xf32>
    %76 = vector.shape_cast %75 : vector<8x1xf32> to vector<8x1xf32>
    %77 = vector.broadcast %76 : vector<8x1xf32> to vector<8x26xf32>
    %c0_61 = arith.constant 0 : index
    %c18_62 = arith.constant 18 : index
    %c13_63 = arith.constant 13 : index
    %78 = vector.load %arg3[%c0_61, %c18_62, %c13_63] : memref<8x32x32xf32, #tpu.memory_space<vmem>>, vector<8x1x5xf32>
    %79 = vector.shape_cast %78 : vector<8x1x5xf32> to vector<8x5xf32>
    %c0_64 = arith.constant 0 : index
    %c18_65 = arith.constant 18 : index
    %c18_66 = arith.constant 18 : index
    %80 = vector.load %arg1[%c0_64, %c18_65, %c18_66] : memref<8x32x32xf32, #tpu.memory_space<vmem>>, vector<8x1x1xf32>
    %81 = vector.shape_cast %80 : vector<8x1x1xf32> to vector<8x1xf32>
    %82 = vector.shape_cast %81 : vector<8x1xf32> to vector<8x1xf32>
    %83 = vector.broadcast %82 : vector<8x1xf32> to vector<8x26xf32>
    %c0_67 = arith.constant 0 : index
    %c18_68 = arith.constant 18 : index
    %c13_69 = arith.constant 13 : index
    %84 = vector.load %arg2[%c0_67, %c18_68, %c13_69] : memref<8x32x32xf32, #tpu.memory_space<vmem>>, vector<8x1x5xf32>
    %85 = vector.shape_cast %84 : vector<8x1x5xf32> to vector<8x5xf32>
    %c0_70 = arith.constant 0 : index
    %c18_71 = arith.constant 18 : index
    %c13_72 = arith.constant 13 : index
    %86 = vector.load %arg1[%c0_70, %c18_71, %c13_72] : memref<8x32x32xf32, #tpu.memory_space<vmem>>, vector<8x1x1xf32>
    %87 = vector.shape_cast %86 : vector<8x1x1xf32> to vector<8x1xf32>
    %88 = vector.shape_cast %87 : vector<8x1xf32> to vector<8x1xf32>
    %89 = vector.broadcast %88 : vector<8x1xf32> to vector<8x26xf32>
    %c0_73 = arith.constant 0 : index
    %c13_74 = arith.constant 13 : index
    %c13_75 = arith.constant 13 : index
    %90 = vector.load %arg4[%c0_73, %c13_74, %c13_75] : memref<8x32x32xf32, #tpu.memory_space<vmem>>, vector<8x1x5xf32>
    %91 = vector.shape_cast %90 : vector<8x1x5xf32> to vector<8x5xf32>
    %c0_76 = arith.constant 0 : index
    %c13_77 = arith.constant 13 : index
    %c13_78 = arith.constant 13 : index
    %92 = vector.load %arg1[%c0_76, %c13_77, %c13_78] : memref<8x32x32xf32, #tpu.memory_space<vmem>>, vector<8x1x1xf32>
    %93 = vector.shape_cast %92 : vector<8x1x1xf32> to vector<8x1xf32>
    %94 = vector.shape_cast %93 : vector<8x1xf32> to vector<8x1xf32>
    %95 = vector.broadcast %94 : vector<8x1xf32> to vector<8x13xf32>
    %96 = tpu.concatenate %71, %73, %77, %79, %83, %85, %89, %91, %95 in 1 : vector<8x13xf32>, vector<8x5xf32>, vector<8x26xf32>, vector<8x5xf32>, vector<8x26xf32>, vector<8x5xf32>, vector<8x26xf32>, vector<8x5xf32>, vector<8x13xf32> -> vector<8x124xf32>
    %97 = vector.extract_strided_slice %96 {offsets = [0, 0], sizes = [8, 4], strides = [1, 1]} : vector<8x124xf32> to vector<8x4xf32>
    %98 = tpu.concatenate %96, %97 in 1 : vector<8x124xf32>, vector<8x4xf32> -> vector<8x128xf32>
    %c0_79 = arith.constant 0 : index
    %c2 = arith.constant 2 : index
    %c0_80 = arith.constant 0 : index
    %99 = vector.load %arg5[%c0_79, %c2, %c0_80] : memref<8x16x128xf32, #tpu.memory_space<vmem>>, vector<8x1x128xf32>
    %100 = vector.shape_cast %99 : vector<8x1x128xf32> to vector<8x128xf32>
    %101 = vector.shape_cast %98 : vector<8x128xf32> to vector<8x1x128xf32>
    tpu.vector_store %arg5[%c0_79, %c2, %c0_80], %101 {strides = array<i32>} : memref<8x16x128xf32, #tpu.memory_space<vmem>>, vector<8x1x128xf32>,
    %c0_81 = arith.constant 0 : index
    %c12 = arith.constant 12 : index
    %c12_82 = arith.constant 12 : index
    %102 = vector.load %arg1[%c0_81, %c12, %c12_82] : memref<8x32x32xf32, #tpu.memory_space<vmem>>, vector<8x1x1xf32>
    %103 = vector.shape_cast %102 : vector<8x1x1xf32> to vector<8x1xf32>
    %104 = vector.shape_cast %103 : vector<8x1xf32> to vector<8x1xf32>
    %105 = vector.broadcast %104 : vector<8x1xf32> to vector<8x12xf32>
    %c0_83 = arith.constant 0 : index
    %c12_84 = arith.constant 12 : index
    %c12_85 = arith.constant 12 : index
    %106 = vector.load %arg1[%c0_83, %c12_84, %c12_85] : memref<8x32x32xf32, #tpu.memory_space<vmem>>, vector<8x1x7xf32>
    %107 = vector.shape_cast %106 : vector<8x1x7xf32> to vector<8x7xf32>
    %c0_86 = arith.constant 0 : index
    %c12_87 = arith.constant 12 : index
    %c19 = arith.constant 19 : index
    %108 = vector.load %arg1[%c0_86, %c12_87, %c19] : memref<8x32x32xf32, #tpu.memory_space<vmem>>, vector<8x1x1xf32>
    %109 = vector.shape_cast %108 : vector<8x1x1xf32> to vector<8x1xf32>
    %110 = vector.shape_cast %109 : vector<8x1xf32> to vector<8x1xf32>
    %111 = vector.broadcast %110 : vector<8x1xf32> to vector<8x24xf32>
    %c0_88 = arith.constant 0 : index
    %c19_89 = arith.constant 19 : index
    %c12_90 = arith.constant 12 : index
    %112 = vector.load %arg3[%c0_88, %c19_89, %c12_90] : memref<8x32x32xf32, #tpu.memory_space<vmem>>, vector<8x1x7xf32>
    %113 = vector.shape_cast %112 : vector<8x1x7xf32> to vector<8x7xf32>
    %c0_91 = arith.constant 0 : index
    %c19_92 = arith.constant 19 : index
    %c19_93 = arith.constant 19 : index
    %114 = vector.load %arg1[%c0_91, %c19_92, %c19_93] : memref<8x32x32xf32, #tpu.memory_space<vmem>>, vector<8x1x1xf32>
    %115 = vector.shape_cast %114 : vector<8x1x1xf32> to vector<8x1xf32>
    %116 = vector.shape_cast %115 : vector<8x1xf32> to vector<8x1xf32>
    %117 = vector.broadcast %116 : vector<8x1xf32> to vector<8x24xf32>
    %c0_94 = arith.constant 0 : index
    %c19_95 = arith.constant 19 : index
    %c12_96 = arith.constant 12 : index
    %118 = vector.load %arg2[%c0_94, %c19_95, %c12_96] : memref<8x32x32xf32, #tpu.memory_space<vmem>>, vector<8x1x7xf32>
    %119 = vector.shape_cast %118 : vector<8x1x7xf32> to vector<8x7xf32>
    %c0_97 = arith.constant 0 : index
    %c19_98 = arith.constant 19 : index
    %c12_99 = arith.constant 12 : index
    %120 = vector.load %arg1[%c0_97, %c19_98, %c12_99] : memref<8x32x32xf32, #tpu.memory_space<vmem>>, vector<8x1x1xf32>
    %121 = vector.shape_cast %120 : vector<8x1x1xf32> to vector<8x1xf32>
    %122 = vector.shape_cast %121 : vector<8x1xf32> to vector<8x1xf32>
    %123 = vector.broadcast %122 : vector<8x1xf32> to vector<8x24xf32>
    %c0_100 = arith.constant 0 : index
    %c12_101 = arith.constant 12 : index
    %c12_102 = arith.constant 12 : index
    %124 = vector.load %arg4[%c0_100, %c12_101, %c12_102] : memref<8x32x32xf32, #tpu.memory_space<vmem>>, vector<8x1x7xf32>
    %125 = vector.shape_cast %124 : vector<8x1x7xf32> to vector<8x7xf32>
    %c0_103 = arith.constant 0 : index
    %c12_104 = arith.constant 12 : index
    %c12_105 = arith.constant 12 : index
    %126 = vector.load %arg1[%c0_103, %c12_104, %c12_105] : memref<8x32x32xf32, #tpu.memory_space<vmem>>, vector<8x1x1xf32>
    %127 = vector.shape_cast %126 : vector<8x1x1xf32> to vector<8x1xf32>
    %128 = vector.shape_cast %127 : vector<8x1xf32> to vector<8x1xf32>
    %129 = vector.broadcast %128 : vector<8x1xf32> to vector<8x12xf32>
    %130 = tpu.concatenate %105, %107, %111, %113, %117, %119, %123, %125, %129 in 1 : vector<8x12xf32>, vector<8x7xf32>, vector<8x24xf32>, vector<8x7xf32>, vector<8x24xf32>, vector<8x7xf32>, vector<8x24xf32>, vector<8x7xf32>, vector<8x12xf32> -> vector<8x124xf32>
    %131 = vector.extract_strided_slice %130 {offsets = [0, 0], sizes = [8, 4], strides = [1, 1]} : vector<8x124xf32> to vector<8x4xf32>
    %132 = tpu.concatenate %130, %131 in 1 : vector<8x124xf32>, vector<8x4xf32> -> vector<8x128xf32>
    %c0_106 = arith.constant 0 : index
    %c3 = arith.constant 3 : index
    %c0_107 = arith.constant 0 : index
    %133 = vector.load %arg5[%c0_106, %c3, %c0_107] : memref<8x16x128xf32, #tpu.memory_space<vmem>>, vector<8x1x128xf32>
    %134 = vector.shape_cast %133 : vector<8x1x128xf32> to vector<8x128xf32>
    %135 = vector.shape_cast %132 : vector<8x128xf32> to vector<8x1x128xf32>
    tpu.vector_store %arg5[%c0_106, %c3, %c0_107], %135 {strides = array<i32>} : memref<8x16x128xf32, #tpu.memory_space<vmem>>, vector<8x1x128xf32>,
    %c0_108 = arith.constant 0 : index
    %c11 = arith.constant 11 : index
    %c11_109 = arith.constant 11 : index
    %136 = vector.load %arg1[%c0_108, %c11, %c11_109] : memref<8x32x32xf32, #tpu.memory_space<vmem>>, vector<8x1x1xf32>
    %137 = vector.shape_cast %136 : vector<8x1x1xf32> to vector<8x1xf32>
    %138 = vector.shape_cast %137 : vector<8x1xf32> to vector<8x1xf32>
    %139 = vector.broadcast %138 : vector<8x1xf32> to vector<8x11xf32>
    %c0_110 = arith.constant 0 : index
    %c11_111 = arith.constant 11 : index
    %c11_112 = arith.constant 11 : index
    %140 = vector.load %arg1[%c0_110, %c11_111, %c11_112] : memref<8x32x32xf32, #tpu.memory_space<vmem>>, vector<8x1x9xf32>
    %141 = vector.shape_cast %140 : vector<8x1x9xf32> to vector<8x9xf32>
    %c0_113 = arith.constant 0 : index
    %c11_114 = arith.constant 11 : index
    %c20 = arith.constant 20 : index
    %142 = vector.load %arg1[%c0_113, %c11_114, %c20] : memref<8x32x32xf32, #tpu.memory_space<vmem>>, vector<8x1x1xf32>
    %143 = vector.shape_cast %142 : vector<8x1x1xf32> to vector<8x1xf32>
    %144 = vector.shape_cast %143 : vector<8x1xf32> to vector<8x1xf32>
    %145 = vector.broadcast %144 : vector<8x1xf32> to vector<8x22xf32>
    %c0_115 = arith.constant 0 : index
    %c20_116 = arith.constant 20 : index
    %c11_117 = arith.constant 11 : index
    %146 = vector.load %arg3[%c0_115, %c20_116, %c11_117] : memref<8x32x32xf32, #tpu.memory_space<vmem>>, vector<8x1x9xf32>
    %147 = vector.shape_cast %146 : vector<8x1x9xf32> to vector<8x9xf32>
    %c0_118 = arith.constant 0 : index
    %c20_119 = arith.constant 20 : index
    %c20_120 = arith.constant 20 : index
    %148 = vector.load %arg1[%c0_118, %c20_119, %c20_120] : memref<8x32x32xf32, #tpu.memory_space<vmem>>, vector<8x1x1xf32>
    %149 = vector.shape_cast %148 : vector<8x1x1xf32> to vector<8x1xf32>
    %150 = vector.shape_cast %149 : vector<8x1xf32> to vector<8x1xf32>
    %151 = vector.broadcast %150 : vector<8x1xf32> to vector<8x22xf32>
    %c0_121 = arith.constant 0 : index
    %c20_122 = arith.constant 20 : index
    %c11_123 = arith.constant 11 : index
    %152 = vector.load %arg2[%c0_121, %c20_122, %c11_123] : memref<8x32x32xf32, #tpu.memory_space<vmem>>, vector<8x1x9xf32>
    %153 = vector.shape_cast %152 : vector<8x1x9xf32> to vector<8x9xf32>
    %c0_124 = arith.constant 0 : index
    %c20_125 = arith.constant 20 : index
    %c11_126 = arith.constant 11 : index
    %154 = vector.load %arg1[%c0_124, %c20_125, %c11_126] : memref<8x32x32xf32, #tpu.memory_space<vmem>>, vector<8x1x1xf32>
    %155 = vector.shape_cast %154 : vector<8x1x1xf32> to vector<8x1xf32>
    %156 = vector.shape_cast %155 : vector<8x1xf32> to vector<8x1xf32>
    %157 = vector.broadcast %156 : vector<8x1xf32> to vector<8x22xf32>
    %c0_127 = arith.constant 0 : index
    %c11_128 = arith.constant 11 : index
    %c11_129 = arith.constant 11 : index
    %158 = vector.load %arg4[%c0_127, %c11_128, %c11_129] : memref<8x32x32xf32, #tpu.memory_space<vmem>>, vector<8x1x9xf32>
    %159 = vector.shape_cast %158 : vector<8x1x9xf32> to vector<8x9xf32>
    %c0_130 = arith.constant 0 : index
    %c11_131 = arith.constant 11 : index
    %c11_132 = arith.constant 11 : index
    %160 = vector.load %arg1[%c0_130, %c11_131, %c11_132] : memref<8x32x32xf32, #tpu.memory_space<vmem>>, vector<8x1x1xf32>
    %161 = vector.shape_cast %160 : vector<8x1x1xf32> to vector<8x1xf32>
    %162 = vector.shape_cast %161 : vector<8x1xf32> to vector<8x1xf32>
    %163 = vector.broadcast %162 : vector<8x1xf32> to vector<8x11xf32>
    %164 = tpu.concatenate %139, %141, %145, %147, %151, %153, %157, %159, %163 in 1 : vector<8x11xf32>, vector<8x9xf32>, vector<8x22xf32>, vector<8x9xf32>, vector<8x22xf32>, vector<8x9xf32>, vector<8x22xf32>, vector<8x9xf32>, vector<8x11xf32> -> vector<8x124xf32>
    %165 = vector.extract_strided_slice %164 {offsets = [0, 0], sizes = [8, 4], strides = [1, 1]} : vector<8x124xf32> to vector<8x4xf32>
    %166 = tpu.concatenate %164, %165 in 1 : vector<8x124xf32>, vector<8x4xf32> -> vector<8x128xf32>
    %c0_133 = arith.constant 0 : index
    %c4 = arith.constant 4 : index
    %c0_134 = arith.constant 0 : index
    %167 = vector.load %arg5[%c0_133, %c4, %c0_134] : memref<8x16x128xf32, #tpu.memory_space<vmem>>, vector<8x1x128xf32>
    %168 = vector.shape_cast %167 : vector<8x1x128xf32> to vector<8x128xf32>
    %169 = vector.shape_cast %166 : vector<8x128xf32> to vector<8x1x128xf32>
    tpu.vector_store %arg5[%c0_133, %c4, %c0_134], %169 {strides = array<i32>} : memref<8x16x128xf32, #tpu.memory_space<vmem>>, vector<8x1x128xf32>,
    %c0_135 = arith.constant 0 : index
    %c10 = arith.constant 10 : index
    %c10_136 = arith.constant 10 : index
    %170 = vector.load %arg1[%c0_135, %c10, %c10_136] : memref<8x32x32xf32, #tpu.memory_space<vmem>>, vector<8x1x1xf32>
    %171 = vector.shape_cast %170 : vector<8x1x1xf32> to vector<8x1xf32>
    %172 = vector.shape_cast %171 : vector<8x1xf32> to vector<8x1xf32>
    %173 = vector.broadcast %172 : vector<8x1xf32> to vector<8x10xf32>
    %c0_137 = arith.constant 0 : index
    %c10_138 = arith.constant 10 : index
    %c10_139 = arith.constant 10 : index
    %174 = vector.load %arg1[%c0_137, %c10_138, %c10_139] : memref<8x32x32xf32, #tpu.memory_space<vmem>>, vector<8x1x11xf32>
    %175 = vector.shape_cast %174 : vector<8x1x11xf32> to vector<8x11xf32>
    %c0_140 = arith.constant 0 : index
    %c10_141 = arith.constant 10 : index
    %c21 = arith.constant 21 : index
    %176 = vector.load %arg1[%c0_140, %c10_141, %c21] : memref<8x32x32xf32, #tpu.memory_space<vmem>>, vector<8x1x1xf32>
    %177 = vector.shape_cast %176 : vector<8x1x1xf32> to vector<8x1xf32>
    %178 = vector.shape_cast %177 : vector<8x1xf32> to vector<8x1xf32>
    %179 = vector.broadcast %178 : vector<8x1xf32> to vector<8x20xf32>
    %c0_142 = arith.constant 0 : index
    %c21_143 = arith.constant 21 : index
    %c10_144 = arith.constant 10 : index
    %180 = vector.load %arg3[%c0_142, %c21_143, %c10_144] : memref<8x32x32xf32, #tpu.memory_space<vmem>>, vector<8x1x11xf32>
    %181 = vector.shape_cast %180 : vector<8x1x11xf32> to vector<8x11xf32>
    %c0_145 = arith.constant 0 : index
    %c21_146 = arith.constant 21 : index
    %c21_147 = arith.constant 21 : index
    %182 = vector.load %arg1[%c0_145, %c21_146, %c21_147] : memref<8x32x32xf32, #tpu.memory_space<vmem>>, vector<8x1x1xf32>
    %183 = vector.shape_cast %182 : vector<8x1x1xf32> to vector<8x1xf32>
    %184 = vector.shape_cast %183 : vector<8x1xf32> to vector<8x1xf32>
    %185 = vector.broadcast %184 : vector<8x1xf32> to vector<8x20xf32>
    %c0_148 = arith.constant 0 : index
    %c21_149 = arith.constant 21 : index
    %c10_150 = arith.constant 10 : index
    %186 = vector.load %arg2[%c0_148, %c21_149, %c10_150] : memref<8x32x32xf32, #tpu.memory_space<vmem>>, vector<8x1x11xf32>
    %187 = vector.shape_cast %186 : vector<8x1x11xf32> to vector<8x11xf32>
    %c0_151 = arith.constant 0 : index
    %c21_152 = arith.constant 21 : index
    %c10_153 = arith.constant 10 : index
    %188 = vector.load %arg1[%c0_151, %c21_152, %c10_153] : memref<8x32x32xf32, #tpu.memory_space<vmem>>, vector<8x1x1xf32>
    %189 = vector.shape_cast %188 : vector<8x1x1xf32> to vector<8x1xf32>
    %190 = vector.shape_cast %189 : vector<8x1xf32> to vector<8x1xf32>
    %191 = vector.broadcast %190 : vector<8x1xf32> to vector<8x20xf32>
    %c0_154 = arith.constant 0 : index
    %c10_155 = arith.constant 10 : index
    %c10_156 = arith.constant 10 : index
    %192 = vector.load %arg4[%c0_154, %c10_155, %c10_156] : memref<8x32x32xf32, #tpu.memory_space<vmem>>, vector<8x1x11xf32>
    %193 = vector.shape_cast %192 : vector<8x1x11xf32> to vector<8x11xf32>
    %c0_157 = arith.constant 0 : index
    %c10_158 = arith.constant 10 : index
    %c10_159 = arith.constant 10 : index
    %194 = vector.load %arg1[%c0_157, %c10_158, %c10_159] : memref<8x32x32xf32, #tpu.memory_space<vmem>>, vector<8x1x1xf32>
    %195 = vector.shape_cast %194 : vector<8x1x1xf32> to vector<8x1xf32>
    %196 = vector.shape_cast %195 : vector<8x1xf32> to vector<8x1xf32>
    %197 = vector.broadcast %196 : vector<8x1xf32> to vector<8x10xf32>
    %198 = tpu.concatenate %173, %175, %179, %181, %185, %187, %191, %193, %197 in 1 : vector<8x10xf32>, vector<8x11xf32>, vector<8x20xf32>, vector<8x11xf32>, vector<8x20xf32>, vector<8x11xf32>, vector<8x20xf32>, vector<8x11xf32>, vector<8x10xf32> -> vector<8x124xf32>
    %199 = vector.extract_strided_slice %198 {offsets = [0, 0], sizes = [8, 4], strides = [1, 1]} : vector<8x124xf32> to vector<8x4xf32>
    %200 = tpu.concatenate %198, %199 in 1 : vector<8x124xf32>, vector<8x4xf32> -> vector<8x128xf32>
    %c0_160 = arith.constant 0 : index
    %c5 = arith.constant 5 : index
    %c0_161 = arith.constant 0 : index
    %201 = vector.load %arg5[%c0_160, %c5, %c0_161] : memref<8x16x128xf32, #tpu.memory_space<vmem>>, vector<8x1x128xf32>
    %202 = vector.shape_cast %201 : vector<8x1x128xf32> to vector<8x128xf32>
    %203 = vector.shape_cast %200 : vector<8x128xf32> to vector<8x1x128xf32>
    tpu.vector_store %arg5[%c0_160, %c5, %c0_161], %203 {strides = array<i32>} : memref<8x16x128xf32, #tpu.memory_space<vmem>>, vector<8x1x128xf32>,
    %c0_162 = arith.constant 0 : index
    %c9 = arith.constant 9 : index
    %c9_163 = arith.constant 9 : index
    %204 = vector.load %arg1[%c0_162, %c9, %c9_163] : memref<8x32x32xf32, #tpu.memory_space<vmem>>, vector<8x1x1xf32>
    %205 = vector.shape_cast %204 : vector<8x1x1xf32> to vector<8x1xf32>
    %206 = vector.shape_cast %205 : vector<8x1xf32> to vector<8x1xf32>
    %207 = vector.broadcast %206 : vector<8x1xf32> to vector<8x9xf32>
    %c0_164 = arith.constant 0 : index
    %c9_165 = arith.constant 9 : index
    %c9_166 = arith.constant 9 : index
    %208 = vector.load %arg1[%c0_164, %c9_165, %c9_166] : memref<8x32x32xf32, #tpu.memory_space<vmem>>, vector<8x1x13xf32>
    %209 = vector.shape_cast %208 : vector<8x1x13xf32> to vector<8x13xf32>
    %c0_167 = arith.constant 0 : index
    %c9_168 = arith.constant 9 : index
    %c22 = arith.constant 22 : index
    %210 = vector.load %arg1[%c0_167, %c9_168, %c22] : memref<8x32x32xf32, #tpu.memory_space<vmem>>, vector<8x1x1xf32>
    %211 = vector.shape_cast %210 : vector<8x1x1xf32> to vector<8x1xf32>
    %212 = vector.shape_cast %211 : vector<8x1xf32> to vector<8x1xf32>
    %213 = vector.broadcast %212 : vector<8x1xf32> to vector<8x18xf32>
    %c0_169 = arith.constant 0 : index
    %c22_170 = arith.constant 22 : index
    %c9_171 = arith.constant 9 : index
    %214 = vector.load %arg3[%c0_169, %c22_170, %c9_171] : memref<8x32x32xf32, #tpu.memory_space<vmem>>, vector<8x1x13xf32>
    %215 = vector.shape_cast %214 : vector<8x1x13xf32> to vector<8x13xf32>
    %c0_172 = arith.constant 0 : index
    %c22_173 = arith.constant 22 : index
    %c22_174 = arith.constant 22 : index
    %216 = vector.load %arg1[%c0_172, %c22_173, %c22_174] : memref<8x32x32xf32, #tpu.memory_space<vmem>>, vector<8x1x1xf32>
    %217 = vector.shape_cast %216 : vector<8x1x1xf32> to vector<8x1xf32>
    %218 = vector.shape_cast %217 : vector<8x1xf32> to vector<8x1xf32>
    %219 = vector.broadcast %218 : vector<8x1xf32> to vector<8x18xf32>
    %c0_175 = arith.constant 0 : index
    %c22_176 = arith.constant 22 : index
    %c9_177 = arith.constant 9 : index
    %220 = vector.load %arg2[%c0_175, %c22_176, %c9_177] : memref<8x32x32xf32, #tpu.memory_space<vmem>>, vector<8x1x13xf32>
    %221 = vector.shape_cast %220 : vector<8x1x13xf32> to vector<8x13xf32>
    %c0_178 = arith.constant 0 : index
    %c22_179 = arith.constant 22 : index
    %c9_180 = arith.constant 9 : index
    %222 = vector.load %arg1[%c0_178, %c22_179, %c9_180] : memref<8x32x32xf32, #tpu.memory_space<vmem>>, vector<8x1x1xf32>
    %223 = vector.shape_cast %222 : vector<8x1x1xf32> to vector<8x1xf32>
    %224 = vector.shape_cast %223 : vector<8x1xf32> to vector<8x1xf32>
    %225 = vector.broadcast %224 : vector<8x1xf32> to vector<8x18xf32>
    %c0_181 = arith.constant 0 : index
    %c9_182 = arith.constant 9 : index
    %c9_183 = arith.constant 9 : index
    %226 = vector.load %arg4[%c0_181, %c9_182, %c9_183] : memref<8x32x32xf32, #tpu.memory_space<vmem>>, vector<8x1x13xf32>
    %227 = vector.shape_cast %226 : vector<8x1x13xf32> to vector<8x13xf32>
    %c0_184 = arith.constant 0 : index
    %c9_185 = arith.constant 9 : index
    %c9_186 = arith.constant 9 : index
    %228 = vector.load %arg1[%c0_184, %c9_185, %c9_186] : memref<8x32x32xf32, #tpu.memory_space<vmem>>, vector<8x1x1xf32>
    %229 = vector.shape_cast %228 : vector<8x1x1xf32> to vector<8x1xf32>
    %230 = vector.shape_cast %229 : vector<8x1xf32> to vector<8x1xf32>
    %231 = vector.broadcast %230 : vector<8x1xf32> to vector<8x9xf32>
    %232 = tpu.concatenate %207, %209, %213, %215, %219, %221, %225, %227, %231 in 1 : vector<8x9xf32>, vector<8x13xf32>, vector<8x18xf32>, vector<8x13xf32>, vector<8x18xf32>, vector<8x13xf32>, vector<8x18xf32>, vector<8x13xf32>, vector<8x9xf32> -> vector<8x124xf32>
    %233 = vector.extract_strided_slice %232 {offsets = [0, 0], sizes = [8, 4], strides = [1, 1]} : vector<8x124xf32> to vector<8x4xf32>
    %234 = tpu.concatenate %232, %233 in 1 : vector<8x124xf32>, vector<8x4xf32> -> vector<8x128xf32>
    %c0_187 = arith.constant 0 : index
    %c6 = arith.constant 6 : index
    %c0_188 = arith.constant 0 : index
    %235 = vector.load %arg5[%c0_187, %c6, %c0_188] : memref<8x16x128xf32, #tpu.memory_space<vmem>>, vector<8x1x128xf32>
    %236 = vector.shape_cast %235 : vector<8x1x128xf32> to vector<8x128xf32>
    %237 = vector.shape_cast %234 : vector<8x128xf32> to vector<8x1x128xf32>
    tpu.vector_store %arg5[%c0_187, %c6, %c0_188], %237 {strides = array<i32>} : memref<8x16x128xf32, #tpu.memory_space<vmem>>, vector<8x1x128xf32>,
    %c0_189 = arith.constant 0 : index
    %c8 = arith.constant 8 : index
    %c8_190 = arith.constant 8 : index
    %238 = vector.load %arg1[%c0_189, %c8, %c8_190] : memref<8x32x32xf32, #tpu.memory_space<vmem>>, vector<8x1x1xf32>
    %239 = vector.shape_cast %238 : vector<8x1x1xf32> to vector<8x1xf32>
    %240 = vector.shape_cast %239 : vector<8x1xf32> to vector<8x1xf32>
    %241 = vector.broadcast %240 : vector<8x1xf32> to vector<8x8xf32>
    %c0_191 = arith.constant 0 : index
    %c8_192 = arith.constant 8 : index
    %c8_193 = arith.constant 8 : index
    %242 = vector.load %arg1[%c0_191, %c8_192, %c8_193] : memref<8x32x32xf32, #tpu.memory_space<vmem>>, vector<8x1x15xf32>
    %243 = vector.shape_cast %242 : vector<8x1x15xf32> to vector<8x15xf32>
    %c0_194 = arith.constant 0 : index
    %c8_195 = arith.constant 8 : index
    %c23 = arith.constant 23 : index
    %244 = vector.load %arg1[%c0_194, %c8_195, %c23] : memref<8x32x32xf32, #tpu.memory_space<vmem>>, vector<8x1x1xf32>
    %245 = vector.shape_cast %244 : vector<8x1x1xf32> to vector<8x1xf32>
    %246 = vector.shape_cast %245 : vector<8x1xf32> to vector<8x1xf32>
    %247 = vector.broadcast %246 : vector<8x1xf32> to vector<8x16xf32>
    %c0_196 = arith.constant 0 : index
    %c23_197 = arith.constant 23 : index
    %c8_198 = arith.constant 8 : index
    %248 = vector.load %arg3[%c0_196, %c23_197, %c8_198] : memref<8x32x32xf32, #tpu.memory_space<vmem>>, vector<8x1x15xf32>
    %249 = vector.shape_cast %248 : vector<8x1x15xf32> to vector<8x15xf32>
    %c0_199 = arith.constant 0 : index
    %c23_200 = arith.constant 23 : index
    %c23_201 = arith.constant 23 : index
    %250 = vector.load %arg1[%c0_199, %c23_200, %c23_201] : memref<8x32x32xf32, #tpu.memory_space<vmem>>, vector<8x1x1xf32>
    %251 = vector.shape_cast %250 : vector<8x1x1xf32> to vector<8x1xf32>
    %252 = vector.shape_cast %251 : vector<8x1xf32> to vector<8x1xf32>
    %253 = vector.broadcast %252 : vector<8x1xf32> to vector<8x16xf32>
    %c0_202 = arith.constant 0 : index
    %c23_203 = arith.constant 23 : index
    %c8_204 = arith.constant 8 : index
    %254 = vector.load %arg2[%c0_202, %c23_203, %c8_204] : memref<8x32x32xf32, #tpu.memory_space<vmem>>, vector<8x1x15xf32>
    %255 = vector.shape_cast %254 : vector<8x1x15xf32> to vector<8x15xf32>
    %c0_205 = arith.constant 0 : index
    %c23_206 = arith.constant 23 : index
    %c8_207 = arith.constant 8 : index
    %256 = vector.load %arg1[%c0_205, %c23_206, %c8_207] : memref<8x32x32xf32, #tpu.memory_space<vmem>>, vector<8x1x1xf32>
    %257 = vector.shape_cast %256 : vector<8x1x1xf32> to vector<8x1xf32>
    %258 = vector.shape_cast %257 : vector<8x1xf32> to vector<8x1xf32>
    %259 = vector.broadcast %258 : vector<8x1xf32> to vector<8x16xf32>
    %c0_208 = arith.constant 0 : index
    %c8_209 = arith.constant 8 : index
    %c8_210 = arith.constant 8 : index
    %260 = vector.load %arg4[%c0_208, %c8_209, %c8_210] : memref<8x32x32xf32, #tpu.memory_space<vmem>>, vector<8x1x15xf32>
    %261 = vector.shape_cast %260 : vector<8x1x15xf32> to vector<8x15xf32>
    %c0_211 = arith.constant 0 : index
    %c8_212 = arith.constant 8 : index
    %c8_213 = arith.constant 8 : index
    %262 = vector.load %arg1[%c0_211, %c8_212, %c8_213] : memref<8x32x32xf32, #tpu.memory_space<vmem>>, vector<8x1x1xf32>
    %263 = vector.shape_cast %262 : vector<8x1x1xf32> to vector<8x1xf32>
    %264 = vector.shape_cast %263 : vector<8x1xf32> to vector<8x1xf32>
    %265 = vector.broadcast %264 : vector<8x1xf32> to vector<8x8xf32>
    %266 = tpu.concatenate %241, %243, %247, %249, %253, %255, %259, %261, %265 in 1 : vector<8x8xf32>, vector<8x15xf32>, vector<8x16xf32>, vector<8x15xf32>, vector<8x16xf32>, vector<8x15xf32>, vector<8x16xf32>, vector<8x15xf32>, vector<8x8xf32> -> vector<8x124xf32>
    %267 = vector.extract_strided_slice %266 {offsets = [0, 0], sizes = [8, 4], strides = [1, 1]} : vector<8x124xf32> to vector<8x4xf32>
    %268 = tpu.concatenate %266, %267 in 1 : vector<8x124xf32>, vector<8x4xf32> -> vector<8x128xf32>
    %c0_214 = arith.constant 0 : index
    %c7 = arith.constant 7 : index
    %c0_215 = arith.constant 0 : index
    %269 = vector.load %arg5[%c0_214, %c7, %c0_215] : memref<8x16x128xf32, #tpu.memory_space<vmem>>, vector<8x1x128xf32>
    %270 = vector.shape_cast %269 : vector<8x1x128xf32> to vector<8x128xf32>
    %271 = vector.shape_cast %268 : vector<8x128xf32> to vector<8x1x128xf32>
    tpu.vector_store %arg5[%c0_214, %c7, %c0_215], %271 {strides = array<i32>} : memref<8x16x128xf32, #tpu.memory_space<vmem>>, vector<8x1x128xf32>,
    %c0_216 = arith.constant 0 : index
    %c7_217 = arith.constant 7 : index
    %c7_218 = arith.constant 7 : index
    %272 = vector.load %arg1[%c0_216, %c7_217, %c7_218] : memref<8x32x32xf32, #tpu.memory_space<vmem>>, vector<8x1x1xf32>
    %273 = vector.shape_cast %272 : vector<8x1x1xf32> to vector<8x1xf32>
    %274 = vector.shape_cast %273 : vector<8x1xf32> to vector<8x1xf32>
    %275 = vector.broadcast %274 : vector<8x1xf32> to vector<8x7xf32>
    %c0_219 = arith.constant 0 : index
    %c7_220 = arith.constant 7 : index
    %c7_221 = arith.constant 7 : index
    %276 = vector.load %arg1[%c0_219, %c7_220, %c7_221] : memref<8x32x32xf32, #tpu.memory_space<vmem>>, vector<8x1x17xf32>
    %277 = vector.shape_cast %276 : vector<8x1x17xf32> to vector<8x17xf32>
    %c0_222 = arith.constant 0 : index
    %c7_223 = arith.constant 7 : index
    %c24 = arith.constant 24 : index
    %278 = vector.load %arg1[%c0_222, %c7_223, %c24] : memref<8x32x32xf32, #tpu.memory_space<vmem>>, vector<8x1x1xf32>
    %279 = vector.shape_cast %278 : vector<8x1x1xf32> to vector<8x1xf32>
    %280 = vector.shape_cast %279 : vector<8x1xf32> to vector<8x1xf32>
    %281 = vector.broadcast %280 : vector<8x1xf32> to vector<8x14xf32>
    %c0_224 = arith.constant 0 : index
    %c24_225 = arith.constant 24 : index
    %c7_226 = arith.constant 7 : index
    %282 = vector.load %arg3[%c0_224, %c24_225, %c7_226] : memref<8x32x32xf32, #tpu.memory_space<vmem>>, vector<8x1x17xf32>
    %283 = vector.shape_cast %282 : vector<8x1x17xf32> to vector<8x17xf32>
    %c0_227 = arith.constant 0 : index
    %c24_228 = arith.constant 24 : index
    %c24_229 = arith.constant 24 : index
    %284 = vector.load %arg1[%c0_227, %c24_228, %c24_229] : memref<8x32x32xf32, #tpu.memory_space<vmem>>, vector<8x1x1xf32>
    %285 = vector.shape_cast %284 : vector<8x1x1xf32> to vector<8x1xf32>
    %286 = vector.shape_cast %285 : vector<8x1xf32> to vector<8x1xf32>
    %287 = vector.broadcast %286 : vector<8x1xf32> to vector<8x14xf32>
    %c0_230 = arith.constant 0 : index
    %c24_231 = arith.constant 24 : index
    %c7_232 = arith.constant 7 : index
    %288 = vector.load %arg2[%c0_230, %c24_231, %c7_232] : memref<8x32x32xf32, #tpu.memory_space<vmem>>, vector<8x1x17xf32>
    %289 = vector.shape_cast %288 : vector<8x1x17xf32> to vector<8x17xf32>
    %c0_233 = arith.constant 0 : index
    %c24_234 = arith.constant 24 : index
    %c7_235 = arith.constant 7 : index
    %290 = vector.load %arg1[%c0_233, %c24_234, %c7_235] : memref<8x32x32xf32, #tpu.memory_space<vmem>>, vector<8x1x1xf32>
    %291 = vector.shape_cast %290 : vector<8x1x1xf32> to vector<8x1xf32>
    %292 = vector.shape_cast %291 : vector<8x1xf32> to vector<8x1xf32>
    %293 = vector.broadcast %292 : vector<8x1xf32> to vector<8x14xf32>
    %c0_236 = arith.constant 0 : index
    %c7_237 = arith.constant 7 : index
    %c7_238 = arith.constant 7 : index
    %294 = vector.load %arg4[%c0_236, %c7_237, %c7_238] : memref<8x32x32xf32, #tpu.memory_space<vmem>>, vector<8x1x17xf32>
    %295 = vector.shape_cast %294 : vector<8x1x17xf32> to vector<8x17xf32>
    %c0_239 = arith.constant 0 : index
    %c7_240 = arith.constant 7 : index
    %c7_241 = arith.constant 7 : index
    %296 = vector.load %arg1[%c0_239, %c7_240, %c7_241] : memref<8x32x32xf32, #tpu.memory_space<vmem>>, vector<8x1x1xf32>
    %297 = vector.shape_cast %296 : vector<8x1x1xf32> to vector<8x1xf32>
    %298 = vector.shape_cast %297 : vector<8x1xf32> to vector<8x1xf32>
    %299 = vector.broadcast %298 : vector<8x1xf32> to vector<8x7xf32>
    %300 = tpu.concatenate %275, %277, %281, %283, %287, %289, %293, %295, %299 in 1 : vector<8x7xf32>, vector<8x17xf32>, vector<8x14xf32>, vector<8x17xf32>, vector<8x14xf32>, vector<8x17xf32>, vector<8x14xf32>, vector<8x17xf32>, vector<8x7xf32> -> vector<8x124xf32>
    %301 = vector.extract_strided_slice %300 {offsets = [0, 0], sizes = [8, 4], strides = [1, 1]} : vector<8x124xf32> to vector<8x4xf32>
    %302 = tpu.concatenate %300, %301 in 1 : vector<8x124xf32>, vector<8x4xf32> -> vector<8x128xf32>
    %c0_242 = arith.constant 0 : index
    %c8_243 = arith.constant 8 : index
    %c0_244 = arith.constant 0 : index
    %303 = vector.load %arg5[%c0_242, %c8_243, %c0_244] : memref<8x16x128xf32, #tpu.memory_space<vmem>>, vector<8x1x128xf32>
    %304 = vector.shape_cast %303 : vector<8x1x128xf32> to vector<8x128xf32>
    %305 = vector.shape_cast %302 : vector<8x128xf32> to vector<8x1x128xf32>
    tpu.vector_store %arg5[%c0_242, %c8_243, %c0_244], %305 {strides = array<i32>} : memref<8x16x128xf32, #tpu.memory_space<vmem>>, vector<8x1x128xf32>,
    %c0_245 = arith.constant 0 : index
    %c6_246 = arith.constant 6 : index
    %c6_247 = arith.constant 6 : index
    %306 = vector.load %arg1[%c0_245, %c6_246, %c6_247] : memref<8x32x32xf32, #tpu.memory_space<vmem>>, vector<8x1x1xf32>
    %307 = vector.shape_cast %306 : vector<8x1x1xf32> to vector<8x1xf32>
    %308 = vector.shape_cast %307 : vector<8x1xf32> to vector<8x1xf32>
    %309 = vector.broadcast %308 : vector<8x1xf32> to vector<8x6xf32>
    %c0_248 = arith.constant 0 : index
    %c6_249 = arith.constant 6 : index
    %c6_250 = arith.constant 6 : index
    %310 = vector.load %arg1[%c0_248, %c6_249, %c6_250] : memref<8x32x32xf32, #tpu.memory_space<vmem>>, vector<8x1x19xf32>
    %311 = vector.shape_cast %310 : vector<8x1x19xf32> to vector<8x19xf32>
    %c0_251 = arith.constant 0 : index
    %c6_252 = arith.constant 6 : index
    %c25 = arith.constant 25 : index
    %312 = vector.load %arg1[%c0_251, %c6_252, %c25] : memref<8x32x32xf32, #tpu.memory_space<vmem>>, vector<8x1x1xf32>
    %313 = vector.shape_cast %312 : vector<8x1x1xf32> to vector<8x1xf32>
    %314 = vector.shape_cast %313 : vector<8x1xf32> to vector<8x1xf32>
    %315 = vector.broadcast %314 : vector<8x1xf32> to vector<8x12xf32>
    %c0_253 = arith.constant 0 : index
    %c25_254 = arith.constant 25 : index
    %c6_255 = arith.constant 6 : index
    %316 = vector.load %arg3[%c0_253, %c25_254, %c6_255] : memref<8x32x32xf32, #tpu.memory_space<vmem>>, vector<8x1x19xf32>
    %317 = vector.shape_cast %316 : vector<8x1x19xf32> to vector<8x19xf32>
    %c0_256 = arith.constant 0 : index
    %c25_257 = arith.constant 25 : index
    %c25_258 = arith.constant 25 : index
    %318 = vector.load %arg1[%c0_256, %c25_257, %c25_258] : memref<8x32x32xf32, #tpu.memory_space<vmem>>, vector<8x1x1xf32>
    %319 = vector.shape_cast %318 : vector<8x1x1xf32> to vector<8x1xf32>
    %320 = vector.shape_cast %319 : vector<8x1xf32> to vector<8x1xf32>
    %321 = vector.broadcast %320 : vector<8x1xf32> to vector<8x12xf32>
    %c0_259 = arith.constant 0 : index
    %c25_260 = arith.constant 25 : index
    %c6_261 = arith.constant 6 : index
    %322 = vector.load %arg2[%c0_259, %c25_260, %c6_261] : memref<8x32x32xf32, #tpu.memory_space<vmem>>, vector<8x1x19xf32>
    %323 = vector.shape_cast %322 : vector<8x1x19xf32> to vector<8x19xf32>
    %c0_262 = arith.constant 0 : index
    %c25_263 = arith.constant 25 : index
    %c6_264 = arith.constant 6 : index
    %324 = vector.load %arg1[%c0_262, %c25_263, %c6_264] : memref<8x32x32xf32, #tpu.memory_space<vmem>>, vector<8x1x1xf32>
    %325 = vector.shape_cast %324 : vector<8x1x1xf32> to vector<8x1xf32>
    %326 = vector.shape_cast %325 : vector<8x1xf32> to vector<8x1xf32>
    %327 = vector.broadcast %326 : vector<8x1xf32> to vector<8x12xf32>
    %c0_265 = arith.constant 0 : index
    %c6_266 = arith.constant 6 : index
    %c6_267 = arith.constant 6 : index
    %328 = vector.load %arg4[%c0_265, %c6_266, %c6_267] : memref<8x32x32xf32, #tpu.memory_space<vmem>>, vector<8x1x19xf32>
    %329 = vector.shape_cast %328 : vector<8x1x19xf32> to vector<8x19xf32>
    %c0_268 = arith.constant 0 : index
    %c6_269 = arith.constant 6 : index
    %c6_270 = arith.constant 6 : index
    %330 = vector.load %arg1[%c0_268, %c6_269, %c6_270] : memref<8x32x32xf32, #tpu.memory_space<vmem>>, vector<8x1x1xf32>
    %331 = vector.shape_cast %330 : vector<8x1x1xf32> to vector<8x1xf32>
    %332 = vector.shape_cast %331 : vector<8x1xf32> to vector<8x1xf32>
    %333 = vector.broadcast %332 : vector<8x1xf32> to vector<8x6xf32>
    %334 = tpu.concatenate %309, %311, %315, %317, %321, %323, %327, %329, %333 in 1 : vector<8x6xf32>, vector<8x19xf32>, vector<8x12xf32>, vector<8x19xf32>, vector<8x12xf32>, vector<8x19xf32>, vector<8x12xf32>, vector<8x19xf32>, vector<8x6xf32> -> vector<8x124xf32>
    %335 = vector.extract_strided_slice %334 {offsets = [0, 0], sizes = [8, 4], strides = [1, 1]} : vector<8x124xf32> to vector<8x4xf32>
    %336 = tpu.concatenate %334, %335 in 1 : vector<8x124xf32>, vector<8x4xf32> -> vector<8x128xf32>
    %c0_271 = arith.constant 0 : index
    %c9_272 = arith.constant 9 : index
    %c0_273 = arith.constant 0 : index
    %337 = vector.load %arg5[%c0_271, %c9_272, %c0_273] : memref<8x16x128xf32, #tpu.memory_space<vmem>>, vector<8x1x128xf32>
    %338 = vector.shape_cast %337 : vector<8x1x128xf32> to vector<8x128xf32>
    %339 = vector.shape_cast %336 : vector<8x128xf32> to vector<8x1x128xf32>
    tpu.vector_store %arg5[%c0_271, %c9_272, %c0_273], %339 {strides = array<i32>} : memref<8x16x128xf32, #tpu.memory_space<vmem>>, vector<8x1x128xf32>,
    %c0_274 = arith.constant 0 : index
    %c5_275 = arith.constant 5 : index
    %c5_276 = arith.constant 5 : index
    %340 = vector.load %arg1[%c0_274, %c5_275, %c5_276] : memref<8x32x32xf32, #tpu.memory_space<vmem>>, vector<8x1x1xf32>
    %341 = vector.shape_cast %340 : vector<8x1x1xf32> to vector<8x1xf32>
    %342 = vector.shape_cast %341 : vector<8x1xf32> to vector<8x1xf32>
    %343 = vector.broadcast %342 : vector<8x1xf32> to vector<8x5xf32>
    %c0_277 = arith.constant 0 : index
    %c5_278 = arith.constant 5 : index
    %c5_279 = arith.constant 5 : index
    %344 = vector.load %arg1[%c0_277, %c5_278, %c5_279] : memref<8x32x32xf32, #tpu.memory_space<vmem>>, vector<8x1x21xf32>
    %345 = vector.shape_cast %344 : vector<8x1x21xf32> to vector<8x21xf32>
    %c0_280 = arith.constant 0 : index
    %c5_281 = arith.constant 5 : index
    %c26 = arith.constant 26 : index
    %346 = vector.load %arg1[%c0_280, %c5_281, %c26] : memref<8x32x32xf32, #tpu.memory_space<vmem>>, vector<8x1x1xf32>
    %347 = vector.shape_cast %346 : vector<8x1x1xf32> to vector<8x1xf32>
    %348 = vector.shape_cast %347 : vector<8x1xf32> to vector<8x1xf32>
    %349 = vector.broadcast %348 : vector<8x1xf32> to vector<8x10xf32>
    %c0_282 = arith.constant 0 : index
    %c26_283 = arith.constant 26 : index
    %c5_284 = arith.constant 5 : index
    %350 = vector.load %arg3[%c0_282, %c26_283, %c5_284] : memref<8x32x32xf32, #tpu.memory_space<vmem>>, vector<8x1x21xf32>
    %351 = vector.shape_cast %350 : vector<8x1x21xf32> to vector<8x21xf32>
    %c0_285 = arith.constant 0 : index
    %c26_286 = arith.constant 26 : index
    %c26_287 = arith.constant 26 : index
    %352 = vector.load %arg1[%c0_285, %c26_286, %c26_287] : memref<8x32x32xf32, #tpu.memory_space<vmem>>, vector<8x1x1xf32>
    %353 = vector.shape_cast %352 : vector<8x1x1xf32> to vector<8x1xf32>
    %354 = vector.shape_cast %353 : vector<8x1xf32> to vector<8x1xf32>
    %355 = vector.broadcast %354 : vector<8x1xf32> to vector<8x10xf32>
    %c0_288 = arith.constant 0 : index
    %c26_289 = arith.constant 26 : index
    %c5_290 = arith.constant 5 : index
    %356 = vector.load %arg2[%c0_288, %c26_289, %c5_290] : memref<8x32x32xf32, #tpu.memory_space<vmem>>, vector<8x1x21xf32>
    %357 = vector.shape_cast %356 : vector<8x1x21xf32> to vector<8x21xf32>
    %c0_291 = arith.constant 0 : index
    %c26_292 = arith.constant 26 : index
    %c5_293 = arith.constant 5 : index
    %358 = vector.load %arg1[%c0_291, %c26_292, %c5_293] : memref<8x32x32xf32, #tpu.memory_space<vmem>>, vector<8x1x1xf32>
    %359 = vector.shape_cast %358 : vector<8x1x1xf32> to vector<8x1xf32>
    %360 = vector.shape_cast %359 : vector<8x1xf32> to vector<8x1xf32>
    %361 = vector.broadcast %360 : vector<8x1xf32> to vector<8x10xf32>
    %c0_294 = arith.constant 0 : index
    %c5_295 = arith.constant 5 : index
    %c5_296 = arith.constant 5 : index
    %362 = vector.load %arg4[%c0_294, %c5_295, %c5_296] : memref<8x32x32xf32, #tpu.memory_space<vmem>>, vector<8x1x21xf32>
    %363 = vector.shape_cast %362 : vector<8x1x21xf32> to vector<8x21xf32>
    %c0_297 = arith.constant 0 : index
    %c5_298 = arith.constant 5 : index
    %c5_299 = arith.constant 5 : index
    %364 = vector.load %arg1[%c0_297, %c5_298, %c5_299] : memref<8x32x32xf32, #tpu.memory_space<vmem>>, vector<8x1x1xf32>
    %365 = vector.shape_cast %364 : vector<8x1x1xf32> to vector<8x1xf32>
    %366 = vector.shape_cast %365 : vector<8x1xf32> to vector<8x1xf32>
    %367 = vector.broadcast %366 : vector<8x1xf32> to vector<8x5xf32>
    %368 = tpu.concatenate %343, %345, %349, %351, %355, %357, %361, %363, %367 in 1 : vector<8x5xf32>, vector<8x21xf32>, vector<8x10xf32>, vector<8x21xf32>, vector<8x10xf32>, vector<8x21xf32>, vector<8x10xf32>, vector<8x21xf32>, vector<8x5xf32> -> vector<8x124xf32>
    %369 = vector.extract_strided_slice %368 {offsets = [0, 0], sizes = [8, 4], strides = [1, 1]} : vector<8x124xf32> to vector<8x4xf32>
    %370 = tpu.concatenate %368, %369 in 1 : vector<8x124xf32>, vector<8x4xf32> -> vector<8x128xf32>
    %c0_300 = arith.constant 0 : index
    %c10_301 = arith.constant 10 : index
    %c0_302 = arith.constant 0 : index
    %371 = vector.load %arg5[%c0_300, %c10_301, %c0_302] : memref<8x16x128xf32, #tpu.memory_space<vmem>>, vector<8x1x128xf32>
    %372 = vector.shape_cast %371 : vector<8x1x128xf32> to vector<8x128xf32>
    %373 = vector.shape_cast %370 : vector<8x128xf32> to vector<8x1x128xf32>
    tpu.vector_store %arg5[%c0_300, %c10_301, %c0_302], %373 {strides = array<i32>} : memref<8x16x128xf32, #tpu.memory_space<vmem>>, vector<8x1x128xf32>,
    %c0_303 = arith.constant 0 : index
    %c4_304 = arith.constant 4 : index
    %c4_305 = arith.constant 4 : index
    %374 = vector.load %arg1[%c0_303, %c4_304, %c4_305] : memref<8x32x32xf32, #tpu.memory_space<vmem>>, vector<8x1x1xf32>
    %375 = vector.shape_cast %374 : vector<8x1x1xf32> to vector<8x1xf32>
    %376 = vector.shape_cast %375 : vector<8x1xf32> to vector<8x1xf32>
    %377 = vector.broadcast %376 : vector<8x1xf32> to vector<8x4xf32>
    %c0_306 = arith.constant 0 : index
    %c4_307 = arith.constant 4 : index
    %c4_308 = arith.constant 4 : index
    %378 = vector.load %arg1[%c0_306, %c4_307, %c4_308] : memref<8x32x32xf32, #tpu.memory_space<vmem>>, vector<8x1x23xf32>
    %379 = vector.shape_cast %378 : vector<8x1x23xf32> to vector<8x23xf32>
    %c0_309 = arith.constant 0 : index
    %c4_310 = arith.constant 4 : index
    %c27 = arith.constant 27 : index
    %380 = vector.load %arg1[%c0_309, %c4_310, %c27] : memref<8x32x32xf32, #tpu.memory_space<vmem>>, vector<8x1x1xf32>
    %381 = vector.shape_cast %380 : vector<8x1x1xf32> to vector<8x1xf32>
    %382 = vector.shape_cast %381 : vector<8x1xf32> to vector<8x1xf32>
    %383 = vector.broadcast %382 : vector<8x1xf32> to vector<8x8xf32>
    %c0_311 = arith.constant 0 : index
    %c27_312 = arith.constant 27 : index
    %c4_313 = arith.constant 4 : index
    %384 = vector.load %arg3[%c0_311, %c27_312, %c4_313] : memref<8x32x32xf32, #tpu.memory_space<vmem>>, vector<8x1x23xf32>
    %385 = vector.shape_cast %384 : vector<8x1x23xf32> to vector<8x23xf32>
    %c0_314 = arith.constant 0 : index
    %c27_315 = arith.constant 27 : index
    %c27_316 = arith.constant 27 : index
    %386 = vector.load %arg1[%c0_314, %c27_315, %c27_316] : memref<8x32x32xf32, #tpu.memory_space<vmem>>, vector<8x1x1xf32>
    %387 = vector.shape_cast %386 : vector<8x1x1xf32> to vector<8x1xf32>
    %388 = vector.shape_cast %387 : vector<8x1xf32> to vector<8x1xf32>
    %389 = vector.broadcast %388 : vector<8x1xf32> to vector<8x8xf32>
    %c0_317 = arith.constant 0 : index
    %c27_318 = arith.constant 27 : index
    %c4_319 = arith.constant 4 : index
    %390 = vector.load %arg2[%c0_317, %c27_318, %c4_319] : memref<8x32x32xf32, #tpu.memory_space<vmem>>, vector<8x1x23xf32>
    %391 = vector.shape_cast %390 : vector<8x1x23xf32> to vector<8x23xf32>
    %c0_320 = arith.constant 0 : index
    %c27_321 = arith.constant 27 : index
    %c4_322 = arith.constant 4 : index
    %392 = vector.load %arg1[%c0_320, %c27_321, %c4_322] : memref<8x32x32xf32, #tpu.memory_space<vmem>>, vector<8x1x1xf32>
    %393 = vector.shape_cast %392 : vector<8x1x1xf32> to vector<8x1xf32>
    %394 = vector.shape_cast %393 : vector<8x1xf32> to vector<8x1xf32>
    %395 = vector.broadcast %394 : vector<8x1xf32> to vector<8x8xf32>
    %c0_323 = arith.constant 0 : index
    %c4_324 = arith.constant 4 : index
    %c4_325 = arith.constant 4 : index
    %396 = vector.load %arg4[%c0_323, %c4_324, %c4_325] : memref<8x32x32xf32, #tpu.memory_space<vmem>>, vector<8x1x23xf32>
    %397 = vector.shape_cast %396 : vector<8x1x23xf32> to vector<8x23xf32>
    %c0_326 = arith.constant 0 : index
    %c4_327 = arith.constant 4 : index
    %c4_328 = arith.constant 4 : index
    %398 = vector.load %arg1[%c0_326, %c4_327, %c4_328] : memref<8x32x32xf32, #tpu.memory_space<vmem>>, vector<8x1x1xf32>
    %399 = vector.shape_cast %398 : vector<8x1x1xf32> to vector<8x1xf32>
    %400 = vector.shape_cast %399 : vector<8x1xf32> to vector<8x1xf32>
    %401 = vector.broadcast %400 : vector<8x1xf32> to vector<8x4xf32>
    %402 = tpu.concatenate %377, %379, %383, %385, %389, %391, %395, %397, %401 in 1 : vector<8x4xf32>, vector<8x23xf32>, vector<8x8xf32>, vector<8x23xf32>, vector<8x8xf32>, vector<8x23xf32>, vector<8x8xf32>, vector<8x23xf32>, vector<8x4xf32> -> vector<8x124xf32>
    %403 = vector.extract_strided_slice %402 {offsets = [0, 0], sizes = [8, 4], strides = [1, 1]} : vector<8x124xf32> to vector<8x4xf32>
    %404 = tpu.concatenate %402, %403 in 1 : vector<8x124xf32>, vector<8x4xf32> -> vector<8x128xf32>
    %c0_329 = arith.constant 0 : index
    %c11_330 = arith.constant 11 : index
    %c0_331 = arith.constant 0 : index
    %405 = vector.load %arg5[%c0_329, %c11_330, %c0_331] : memref<8x16x128xf32, #tpu.memory_space<vmem>>, vector<8x1x128xf32>
    %406 = vector.shape_cast %405 : vector<8x1x128xf32> to vector<8x128xf32>
    %407 = vector.shape_cast %404 : vector<8x128xf32> to vector<8x1x128xf32>
    tpu.vector_store %arg5[%c0_329, %c11_330, %c0_331], %407 {strides = array<i32>} : memref<8x16x128xf32, #tpu.memory_space<vmem>>, vector<8x1x128xf32>,
    %c0_332 = arith.constant 0 : index
    %c3_333 = arith.constant 3 : index
    %c3_334 = arith.constant 3 : index
    %408 = vector.load %arg1[%c0_332, %c3_333, %c3_334] : memref<8x32x32xf32, #tpu.memory_space<vmem>>, vector<8x1x1xf32>
    %409 = vector.shape_cast %408 : vector<8x1x1xf32> to vector<8x1xf32>
    %410 = vector.shape_cast %409 : vector<8x1xf32> to vector<8x1xf32>
    %411 = vector.broadcast %410 : vector<8x1xf32> to vector<8x3xf32>
    %c0_335 = arith.constant 0 : index
    %c3_336 = arith.constant 3 : index
    %c3_337 = arith.constant 3 : index
    %412 = vector.load %arg1[%c0_335, %c3_336, %c3_337] : memref<8x32x32xf32, #tpu.memory_space<vmem>>, vector<8x1x25xf32>
    %413 = vector.shape_cast %412 : vector<8x1x25xf32> to vector<8x25xf32>
    %c0_338 = arith.constant 0 : index
    %c3_339 = arith.constant 3 : index
    %c28 = arith.constant 28 : index
    %414 = vector.load %arg1[%c0_338, %c3_339, %c28] : memref<8x32x32xf32, #tpu.memory_space<vmem>>, vector<8x1x1xf32>
    %415 = vector.shape_cast %414 : vector<8x1x1xf32> to vector<8x1xf32>
    %416 = vector.shape_cast %415 : vector<8x1xf32> to vector<8x1xf32>
    %417 = vector.broadcast %416 : vector<8x1xf32> to vector<8x6xf32>
    %c0_340 = arith.constant 0 : index
    %c28_341 = arith.constant 28 : index
    %c3_342 = arith.constant 3 : index
    %418 = vector.load %arg3[%c0_340, %c28_341, %c3_342] : memref<8x32x32xf32, #tpu.memory_space<vmem>>, vector<8x1x25xf32>
    %419 = vector.shape_cast %418 : vector<8x1x25xf32> to vector<8x25xf32>
    %c0_343 = arith.constant 0 : index
    %c28_344 = arith.constant 28 : index
    %c28_345 = arith.constant 28 : index
    %420 = vector.load %arg1[%c0_343, %c28_344, %c28_345] : memref<8x32x32xf32, #tpu.memory_space<vmem>>, vector<8x1x1xf32>
    %421 = vector.shape_cast %420 : vector<8x1x1xf32> to vector<8x1xf32>
    %422 = vector.shape_cast %421 : vector<8x1xf32> to vector<8x1xf32>
    %423 = vector.broadcast %422 : vector<8x1xf32> to vector<8x6xf32>
    %c0_346 = arith.constant 0 : index
    %c28_347 = arith.constant 28 : index
    %c3_348 = arith.constant 3 : index
    %424 = vector.load %arg2[%c0_346, %c28_347, %c3_348] : memref<8x32x32xf32, #tpu.memory_space<vmem>>, vector<8x1x25xf32>
    %425 = vector.shape_cast %424 : vector<8x1x25xf32> to vector<8x25xf32>
    %c0_349 = arith.constant 0 : index
    %c28_350 = arith.constant 28 : index
    %c3_351 = arith.constant 3 : index
    %426 = vector.load %arg1[%c0_349, %c28_350, %c3_351] : memref<8x32x32xf32, #tpu.memory_space<vmem>>, vector<8x1x1xf32>
    %427 = vector.shape_cast %426 : vector<8x1x1xf32> to vector<8x1xf32>
    %428 = vector.shape_cast %427 : vector<8x1xf32> to vector<8x1xf32>
    %429 = vector.broadcast %428 : vector<8x1xf32> to vector<8x6xf32>
    %c0_352 = arith.constant 0 : index
    %c3_353 = arith.constant 3 : index
    %c3_354 = arith.constant 3 : index
    %430 = vector.load %arg4[%c0_352, %c3_353, %c3_354] : memref<8x32x32xf32, #tpu.memory_space<vmem>>, vector<8x1x25xf32>
    %431 = vector.shape_cast %430 : vector<8x1x25xf32> to vector<8x25xf32>
    %c0_355 = arith.constant 0 : index
    %c3_356 = arith.constant 3 : index
    %c3_357 = arith.constant 3 : index
    %432 = vector.load %arg1[%c0_355, %c3_356, %c3_357] : memref<8x32x32xf32, #tpu.memory_space<vmem>>, vector<8x1x1xf32>
    %433 = vector.shape_cast %432 : vector<8x1x1xf32> to vector<8x1xf32>
    %434 = vector.shape_cast %433 : vector<8x1xf32> to vector<8x1xf32>
    %435 = vector.broadcast %434 : vector<8x1xf32> to vector<8x3xf32>
    %436 = tpu.concatenate %411, %413, %417, %419, %423, %425, %429, %431, %435 in 1 : vector<8x3xf32>, vector<8x25xf32>, vector<8x6xf32>, vector<8x25xf32>, vector<8x6xf32>, vector<8x25xf32>, vector<8x6xf32>, vector<8x25xf32>, vector<8x3xf32> -> vector<8x124xf32>
    %437 = vector.extract_strided_slice %436 {offsets = [0, 0], sizes = [8, 4], strides = [1, 1]} : vector<8x124xf32> to vector<8x4xf32>
    %438 = tpu.concatenate %436, %437 in 1 : vector<8x124xf32>, vector<8x4xf32> -> vector<8x128xf32>
    %c0_358 = arith.constant 0 : index
    %c12_359 = arith.constant 12 : index
    %c0_360 = arith.constant 0 : index
    %439 = vector.load %arg5[%c0_358, %c12_359, %c0_360] : memref<8x16x128xf32, #tpu.memory_space<vmem>>, vector<8x1x128xf32>
    %440 = vector.shape_cast %439 : vector<8x1x128xf32> to vector<8x128xf32>
    %441 = vector.shape_cast %438 : vector<8x128xf32> to vector<8x1x128xf32>
    tpu.vector_store %arg5[%c0_358, %c12_359, %c0_360], %441 {strides = array<i32>} : memref<8x16x128xf32, #tpu.memory_space<vmem>>, vector<8x1x128xf32>,
    %c0_361 = arith.constant 0 : index
    %c2_362 = arith.constant 2 : index
    %c2_363 = arith.constant 2 : index
    %442 = vector.load %arg1[%c0_361, %c2_362, %c2_363] : memref<8x32x32xf32, #tpu.memory_space<vmem>>, vector<8x1x1xf32>
    %443 = vector.shape_cast %442 : vector<8x1x1xf32> to vector<8x1xf32>
    %444 = vector.shape_cast %443 : vector<8x1xf32> to vector<8x1xf32>
    %445 = vector.broadcast %444 : vector<8x1xf32> to vector<8x2xf32>
    %c0_364 = arith.constant 0 : index
    %c2_365 = arith.constant 2 : index
    %c2_366 = arith.constant 2 : index
    %446 = vector.load %arg1[%c0_364, %c2_365, %c2_366] : memref<8x32x32xf32, #tpu.memory_space<vmem>>, vector<8x1x27xf32>
    %447 = vector.shape_cast %446 : vector<8x1x27xf32> to vector<8x27xf32>
    %c0_367 = arith.constant 0 : index
    %c2_368 = arith.constant 2 : index
    %c29 = arith.constant 29 : index
    %448 = vector.load %arg1[%c0_367, %c2_368, %c29] : memref<8x32x32xf32, #tpu.memory_space<vmem>>, vector<8x1x1xf32>
    %449 = vector.shape_cast %448 : vector<8x1x1xf32> to vector<8x1xf32>
    %450 = vector.shape_cast %449 : vector<8x1xf32> to vector<8x1xf32>
    %451 = vector.broadcast %450 : vector<8x1xf32> to vector<8x4xf32>
    %c0_369 = arith.constant 0 : index
    %c29_370 = arith.constant 29 : index
    %c2_371 = arith.constant 2 : index
    %452 = vector.load %arg3[%c0_369, %c29_370, %c2_371] : memref<8x32x32xf32, #tpu.memory_space<vmem>>, vector<8x1x27xf32>
    %453 = vector.shape_cast %452 : vector<8x1x27xf32> to vector<8x27xf32>
    %c0_372 = arith.constant 0 : index
    %c29_373 = arith.constant 29 : index
    %c29_374 = arith.constant 29 : index
    %454 = vector.load %arg1[%c0_372, %c29_373, %c29_374] : memref<8x32x32xf32, #tpu.memory_space<vmem>>, vector<8x1x1xf32>
    %455 = vector.shape_cast %454 : vector<8x1x1xf32> to vector<8x1xf32>
    %456 = vector.shape_cast %455 : vector<8x1xf32> to vector<8x1xf32>
    %457 = vector.broadcast %456 : vector<8x1xf32> to vector<8x4xf32>
    %c0_375 = arith.constant 0 : index
    %c29_376 = arith.constant 29 : index
    %c2_377 = arith.constant 2 : index
    %458 = vector.load %arg2[%c0_375, %c29_376, %c2_377] : memref<8x32x32xf32, #tpu.memory_space<vmem>>, vector<8x1x27xf32>
    %459 = vector.shape_cast %458 : vector<8x1x27xf32> to vector<8x27xf32>
    %c0_378 = arith.constant 0 : index
    %c29_379 = arith.constant 29 : index
    %c2_380 = arith.constant 2 : index
    %460 = vector.load %arg1[%c0_378, %c29_379, %c2_380] : memref<8x32x32xf32, #tpu.memory_space<vmem>>, vector<8x1x1xf32>
    %461 = vector.shape_cast %460 : vector<8x1x1xf32> to vector<8x1xf32>
    %462 = vector.shape_cast %461 : vector<8x1xf32> to vector<8x1xf32>
    %463 = vector.broadcast %462 : vector<8x1xf32> to vector<8x4xf32>
    %c0_381 = arith.constant 0 : index
    %c2_382 = arith.constant 2 : index
    %c2_383 = arith.constant 2 : index
    %464 = vector.load %arg4[%c0_381, %c2_382, %c2_383] : memref<8x32x32xf32, #tpu.memory_space<vmem>>, vector<8x1x27xf32>
    %465 = vector.shape_cast %464 : vector<8x1x27xf32> to vector<8x27xf32>
    %c0_384 = arith.constant 0 : index
    %c2_385 = arith.constant 2 : index
    %c2_386 = arith.constant 2 : index
    %466 = vector.load %arg1[%c0_384, %c2_385, %c2_386] : memref<8x32x32xf32, #tpu.memory_space<vmem>>, vector<8x1x1xf32>
    %467 = vector.shape_cast %466 : vector<8x1x1xf32> to vector<8x1xf32>
    %468 = vector.shape_cast %467 : vector<8x1xf32> to vector<8x1xf32>
    %469 = vector.broadcast %468 : vector<8x1xf32> to vector<8x2xf32>
    %470 = tpu.concatenate %445, %447, %451, %453, %457, %459, %463, %465, %469 in 1 : vector<8x2xf32>, vector<8x27xf32>, vector<8x4xf32>, vector<8x27xf32>, vector<8x4xf32>, vector<8x27xf32>, vector<8x4xf32>, vector<8x27xf32>, vector<8x2xf32> -> vector<8x124xf32>
    %471 = vector.extract_strided_slice %470 {offsets = [0, 0], sizes = [8, 4], strides = [1, 1]} : vector<8x124xf32> to vector<8x4xf32>
    %472 = tpu.concatenate %470, %471 in 1 : vector<8x124xf32>, vector<8x4xf32> -> vector<8x128xf32>
    %c0_387 = arith.constant 0 : index
    %c13_388 = arith.constant 13 : index
    %c0_389 = arith.constant 0 : index
    %473 = vector.load %arg5[%c0_387, %c13_388, %c0_389] : memref<8x16x128xf32, #tpu.memory_space<vmem>>, vector<8x1x128xf32>
    %474 = vector.shape_cast %473 : vector<8x1x128xf32> to vector<8x128xf32>
    %475 = vector.shape_cast %472 : vector<8x128xf32> to vector<8x1x128xf32>
    tpu.vector_store %arg5[%c0_387, %c13_388, %c0_389], %475 {strides = array<i32>} : memref<8x16x128xf32, #tpu.memory_space<vmem>>, vector<8x1x128xf32>,
    %c0_390 = arith.constant 0 : index
    %c1_391 = arith.constant 1 : index
    %c1_392 = arith.constant 1 : index
    %476 = vector.load %arg1[%c0_390, %c1_391, %c1_392] : memref<8x32x32xf32, #tpu.memory_space<vmem>>, vector<8x1x1xf32>
    %477 = vector.shape_cast %476 : vector<8x1x1xf32> to vector<8x1xf32>
    %c0_393 = arith.constant 0 : index
    %c1_394 = arith.constant 1 : index
    %c1_395 = arith.constant 1 : index
    %478 = vector.load %arg1[%c0_393, %c1_394, %c1_395] : memref<8x32x32xf32, #tpu.memory_space<vmem>>, vector<8x1x29xf32>
    %479 = vector.shape_cast %478 : vector<8x1x29xf32> to vector<8x29xf32>
    %c0_396 = arith.constant 0 : index
    %c1_397 = arith.constant 1 : index
    %c30 = arith.constant 30 : index
    %480 = vector.load %arg1[%c0_396, %c1_397, %c30] : memref<8x32x32xf32, #tpu.memory_space<vmem>>, vector<8x1x1xf32>
    %481 = vector.shape_cast %480 : vector<8x1x1xf32> to vector<8x1xf32>
    %482 = vector.shape_cast %481 : vector<8x1xf32> to vector<8x1xf32>
    %483 = vector.broadcast %482 : vector<8x1xf32> to vector<8x2xf32>
    %c0_398 = arith.constant 0 : index
    %c30_399 = arith.constant 30 : index
    %c1_400 = arith.constant 1 : index
    %484 = vector.load %arg3[%c0_398, %c30_399, %c1_400] : memref<8x32x32xf32, #tpu.memory_space<vmem>>, vector<8x1x29xf32>
    %485 = vector.shape_cast %484 : vector<8x1x29xf32> to vector<8x29xf32>
    %c0_401 = arith.constant 0 : index
    %c30_402 = arith.constant 30 : index
    %c30_403 = arith.constant 30 : index
    %486 = vector.load %arg1[%c0_401, %c30_402, %c30_403] : memref<8x32x32xf32, #tpu.memory_space<vmem>>, vector<8x1x1xf32>
    %487 = vector.shape_cast %486 : vector<8x1x1xf32> to vector<8x1xf32>
    %488 = vector.shape_cast %487 : vector<8x1xf32> to vector<8x1xf32>
    %489 = vector.broadcast %488 : vector<8x1xf32> to vector<8x2xf32>
    %c0_404 = arith.constant 0 : index
    %c30_405 = arith.constant 30 : index
    %c1_406 = arith.constant 1 : index
    %490 = vector.load %arg2[%c0_404, %c30_405, %c1_406] : memref<8x32x32xf32, #tpu.memory_space<vmem>>, vector<8x1x29xf32>
    %491 = vector.shape_cast %490 : vector<8x1x29xf32> to vector<8x29xf32>
    %c0_407 = arith.constant 0 : index
    %c30_408 = arith.constant 30 : index
    %c1_409 = arith.constant 1 : index
    %492 = vector.load %arg1[%c0_407, %c30_408, %c1_409] : memref<8x32x32xf32, #tpu.memory_space<vmem>>, vector<8x1x1xf32>
    %493 = vector.shape_cast %492 : vector<8x1x1xf32> to vector<8x1xf32>
    %494 = vector.shape_cast %493 : vector<8x1xf32> to vector<8x1xf32>
    %495 = vector.broadcast %494 : vector<8x1xf32> to vector<8x2xf32>
    %c0_410 = arith.constant 0 : index
    %c1_411 = arith.constant 1 : index
    %c1_412 = arith.constant 1 : index
    %496 = vector.load %arg4[%c0_410, %c1_411, %c1_412] : memref<8x32x32xf32, #tpu.memory_space<vmem>>, vector<8x1x29xf32>
    %497 = vector.shape_cast %496 : vector<8x1x29xf32> to vector<8x29xf32>
    %c0_413 = arith.constant 0 : index
    %c1_414 = arith.constant 1 : index
    %c1_415 = arith.constant 1 : index
    %498 = vector.load %arg1[%c0_413, %c1_414, %c1_415] : memref<8x32x32xf32, #tpu.memory_space<vmem>>, vector<8x1x1xf32>
    %499 = vector.shape_cast %498 : vector<8x1x1xf32> to vector<8x1xf32>
    %500 = tpu.concatenate %477, %479, %483, %485, %489, %491, %495, %497, %499 in 1 : vector<8x1xf32>, vector<8x29xf32>, vector<8x2xf32>, vector<8x29xf32>, vector<8x2xf32>, vector<8x29xf32>, vector<8x2xf32>, vector<8x29xf32>, vector<8x1xf32> -> vector<8x124xf32>
    %501 = vector.extract_strided_slice %500 {offsets = [0, 0], sizes = [8, 4], strides = [1, 1]} : vector<8x124xf32> to vector<8x4xf32>
    %502 = tpu.concatenate %500, %501 in 1 : vector<8x124xf32>, vector<8x4xf32> -> vector<8x128xf32>
    %c0_416 = arith.constant 0 : index
    %c14_417 = arith.constant 14 : index
    %c0_418 = arith.constant 0 : index
    %503 = vector.load %arg5[%c0_416, %c14_417, %c0_418] : memref<8x16x128xf32, #tpu.memory_space<vmem>>, vector<8x1x128xf32>
    %504 = vector.shape_cast %503 : vector<8x1x128xf32> to vector<8x128xf32>
    %505 = vector.shape_cast %502 : vector<8x128xf32> to vector<8x1x128xf32>
    tpu.vector_store %arg5[%c0_416, %c14_417, %c0_418], %505 {strides = array<i32>} : memref<8x16x128xf32, #tpu.memory_space<vmem>>, vector<8x1x128xf32>,
    %c0_419 = arith.constant 0 : index
    %c0_420 = arith.constant 0 : index
    %c0_421 = arith.constant 0 : index
    %506 = vector.load %arg1[%c0_419, %c0_420, %c0_421] : memref<8x32x32xf32, #tpu.memory_space<vmem>>, vector<8x1x31xf32>
    %507 = vector.shape_cast %506 : vector<8x1x31xf32> to vector<8x31xf32>
    %c0_422 = arith.constant 0 : index
    %c31 = arith.constant 31 : index
    %c0_423 = arith.constant 0 : index
    %508 = vector.load %arg3[%c0_422, %c31, %c0_423] : memref<8x32x32xf32, #tpu.memory_space<vmem>>, vector<8x1x31xf32>
    %509 = vector.shape_cast %508 : vector<8x1x31xf32> to vector<8x31xf32>
    %c0_424 = arith.constant 0 : index
    %c31_425 = arith.constant 31 : index
    %c0_426 = arith.constant 0 : index
    %510 = vector.load %arg2[%c0_424, %c31_425, %c0_426] : memref<8x32x32xf32, #tpu.memory_space<vmem>>, vector<8x1x31xf32>
    %511 = vector.shape_cast %510 : vector<8x1x31xf32> to vector<8x31xf32>
    %c0_427 = arith.constant 0 : index
    %c0_428 = arith.constant 0 : index
    %c0_429 = arith.constant 0 : index
    %512 = vector.load %arg4[%c0_427, %c0_428, %c0_429] : memref<8x32x32xf32, #tpu.memory_space<vmem>>, vector<8x1x31xf32>
    %513 = vector.shape_cast %512 : vector<8x1x31xf32> to vector<8x31xf32>
    %514 = tpu.concatenate %507, %509, %511, %513 in 1 : vector<8x31xf32>, vector<8x31xf32>, vector<8x31xf32>, vector<8x31xf32> -> vector<8x124xf32>
    %515 = vector.extract_strided_slice %514 {offsets = [0, 0], sizes = [8, 4], strides = [1, 1]} : vector<8x124xf32> to vector<8x4xf32>
    %516 = tpu.concatenate %514, %515 in 1 : vector<8x124xf32>, vector<8x4xf32> -> vector<8x128xf32>
    %c0_430 = arith.constant 0 : index
    %c15_431 = arith.constant 15 : index
    %c0_432 = arith.constant 0 : index
    %517 = vector.load %arg5[%c0_430, %c15_431, %c0_432] : memref<8x16x128xf32, #tpu.memory_space<vmem>>, vector<8x1x128xf32>
    %518 = vector.shape_cast %517 : vector<8x1x128xf32> to vector<8x128xf32>
    %519 = vector.shape_cast %516 : vector<8x128xf32> to vector<8x1x128xf32>
    tpu.vector_store %arg5[%c0_430, %c15_431, %c0_432], %519 {strides = array<i32>} : memref<8x16x128xf32, #tpu.memory_space<vmem>>, vector<8x1x128xf32>,
    return
  }
  func.func @transform_0(%arg0: i32) -> (i32, i32, i32) {
    %c0_i32 = arith.constant 0 : i32
    %c0_i32_0 = arith.constant 0 : i32
    %c0_i32_1 = arith.constant 0 : i32
    return %arg0, %c0_i32, %c0_i32_0 : i32, i32, i32
  }
  func.func @transform_1(%arg0: i32) -> (i32, i32, i32) {
    %c0_i32 = arith.constant 0 : i32
    %c0_i32_0 = arith.constant 0 : i32
    %c0_i32_1 = arith.constant 0 : i32
    return %arg0, %c0_i32, %c0_i32_0 : i32, i32, i32
  }
  func.func @transform_2(%arg0: i32) -> (i32, i32, i32) {
    %c0_i32 = arith.constant 0 : i32
    %c0_i32_0 = arith.constant 0 : i32
    %c0_i32_1 = arith.constant 0 : i32
    return %arg0, %c0_i32, %c0_i32_0 : i32, i32, i32
  }
  func.func @transform_3(%arg0: i32) -> (i32, i32, i32) {
    %c0_i32 = arith.constant 0 : i32
    %c0_i32_0 = arith.constant 0 : i32
    %c0_i32_1 = arith.constant 0 : i32
    return %arg0, %c0_i32, %c0_i32_0 : i32, i32, i32
  }
  func.func @transform_4(%arg0: i32) -> (i32, i32, i32) {
    %c0_i32 = arith.constant 0 : i32
    %c0_i32_0 = arith.constant 0 : i32
    %c0_i32_1 = arith.constant 0 : i32
    return %arg0, %c0_i32, %c0_i32_0 : i32, i32, i32
  }
}

</mosaic_0001>

<bundles_post_ra>
// kernel: sqrl_forward.1
= control target key start
LH: loop header
LB: loop body
LE: loop exit
PB: predicated region body
PF: predicated region fallthrough
CT: control target
= control target key end

     0   :  { %v5551_v2 = vmov 16   ;;  %v5552_v3 = vmov 15   ;;  %vm171_vm0 = vcmask 1041409   ;;  %vm174_vm1 = vcmask 1042434   ;;  %s10112_s0 = inlined_call_operand.vmem [shape: f32[8,32,32], index: 0, kind: input, shape index: {}]   ;;  %s10113_s1 = inlined_call_operand.vmem [shape: f32[8,32,32], index: 1, kind: input, shape index: {}]   ;;  %s10114_s2 = inlined_call_operand.vmem [shape: f32[8,32,32], index: 2, kind: input, shape index: {}]   ;;  %s10115_s3 = inlined_call_operand.vmem [shape: f32[8,32,32], index: 3, kind: input, shape index: {}]   ;;  %s10116_s4 = inlined_call_operand.hbm [shape: f32[8,16,128], index: 4, kind: output, shape index: {}]  }
   0x1   :  { %v22_v0 = vld [vmem:[%s10112_s0 + $0x8f] sm:$0x1]  ;;  %5407 = vset.pattern.permute.xlu0 %v5551_v2  ;;  %5405 = vset.pattern.permute.xlu2 %v5552_v3  ;;  %vm177_vm2 = vcmask 1043459  }
   0x2   :  { %v20_v1 = vld [vmem:[%s10112_s0 + $0x4f] sm:$0x1]  ;;  %5404 = vset.pattern.permute.xlu1 %v5552_v3  ;;  %44 = vperm.xlu2 %5405, %v22_v0   ;;  %v198_v9 = vrot.slane %v22_v0, 4 }
   0x3   :  { %v19_v4 = vld [vmem:[%s10112_s0 + $0x2f] sm:$0x1]  ;;  %v194_v5 = vrot.slane %v20_v1, 6  ;;  %36 = vperm.xlu1 %5404, %v20_v1  }
   0x4   :  { %v192_v6 = vrot.slane %v19_v4, 7  ;;  %v21_v7 = vld [vmem:[%s10112_s0 + $0x6f] sm:$0x1]  ;;  %62 = vperm.xlu0 %5407, %v19_v4  }
   0x5   :  { %v196_v8 = vrot.slane %v21_v7, 5  ;;  %v18_v10 = vld [vmem:[%s10112_s0 + $0xf] sm:$0x1] }
   0x6   :  { %v193_v11 = vsel %vm171_vm0, %v192_v6, %v18_v10 }
   0x7   :  { %v195_v12 = vsel %vm174_vm1, %v194_v5, %v193_v11 }
   0x8   :  { %9 = vsyncpa [#allocation3], 0  ;;  %v5637_v13 = vld [vmem:[%s10112_s0 + $0xaf] sm:$0x1]  ;;  %vm180_vm3 = vcmask 1044484   ;;  %v197_v14 = vsel %vm177_vm2, %v196_v8, %v195_v12  ;;  %vm183_vm4 = vcmask 1045509  }
   0x9   :  { %v5643_v15 = vld [vmem:[%s10112_s0 + $0xcf] sm:$0x1]  ;;  %v5646_v16 = vsel %vm180_vm3, %v198_v9, %v197_v14  ;;  %v91_v18 = vld [vmem:[%s10112_s0 + $0x30] sm:$0x1]  ;;  %vm186_vm5 = vcmask 1046534   ;;  %vm189_vm6 = vcmask 1047559  }
   0xa   :  { %48 = vperm.xlu2 %5405, %v5637_v13   ;;  %v5653_v17 = vld [vmem:[%s10112_s0 + $0xef] sm:$0x1]  ;;  %v5662_v19 = vld [vmem:[%s10112_s0 + $0x90] sm:$0x1]  ;;  %s5553_s15 = smov 93   ;;  %s5554_s18 = smov 31  }
   0xb   :  { %40 = vperm.xlu1 %5404, %v21_v7   ;;  %v97_v20 = vld [vmem:[%s10112_s0 + $0xf0] sm:$0x1]  ;;  %v163_v24 = vld [vmem:[%s10115_s3 + $0x2f] sm:$0x1]  ;;  %s5555_s19 = smov 62   ;;  %vm327_vm7 = vcmask 121856  }
   0xc   :  { %77 = vperm.xlu0 %5407, %v5643_v15   ;;  %v90_v21 = vld [vmem:[%s10112_s0 + $0x10] sm:$0x1]  ;;  %v164_v27 = vld [vmem:[%s10115_s3 + $0x4f] sm:$0x1]  ;;  %v310_v28 = vrot.slane %v163_v24, 7  ;;  %vm329_vm8 = vcmask 130048  }
   0xd   :  { %v92_v22 = vld [vmem:[%s10112_s0 + $0x50] sm:$0x1]  ;;  %v162_v29 = vld [vmem:[%s10115_s3 + $0xf] sm:$0x1]  ;;  %v312_v31 = vrot.slane %v164_v27, 6  ;;  %vm331_vm9 = vcmask 375808  }
   0xe   :  { %v93_v23 = vld [vmem:[%s10112_s0 + $0x70] sm:$0x1]  ;;  %v165_v30 = vld [vmem:[%s10115_s3 + $0x6f] sm:$0x1]  ;;  %v311_v32 = vsel %vm171_vm0, %v310_v28, %v162_v29  ;;  %vm333_vm10 = vcmask 384000   ;;  %vm335_vm11 = vcmask 629760  }
   0xf   :  { %v5686_v25 = vld [vmem:[%s10112_s0 + $0xb0] sm:$0x1]  ;;  %v166_v34 = vld [vmem:[%s10115_s3 + $0x8f] sm:$0x1]  ;;  %v314_v35 = vrot.slane %v165_v30, 5  ;;  %v313_v36 = vsel %vm174_vm1, %v312_v31, %v311_v32  ;;  %vm337_vm12 = vcmask 637952  }
  0x10   :  { %v5691_v26 = vld [vmem:[%s10112_s0 + $0xd0] sm:$0x1]  ;;  %v167_v39 = vld [vmem:[%s10115_s3 + $0xaf] sm:$0x1]  ;;  %v316_v40 = vrot.slane %v166_v34, 4  ;;  %vm339_vm13 = vcmask 883712  }
  0x11   :  { %v83_v33 = vld [vmem:[%s10114_s2 + $0x30] sm:$0x1]  ;;  %v315_v42 = vsel %vm177_vm2, %v314_v35, %v313_v36  ;;  %v168_v45 = vld [vmem:[%s10115_s3 + $0xcf] sm:$0x1]  ;;  %v318_v46 = vrot.slane %v167_v39, 3  ;;  %vm341_vm14 = vcmask 891904  }
  0x12   :  { %5406 = vset.pattern.permute.xlu2 %v5551_v2  ;;  %v84_v37 = vld [vmem:[%s10114_s2 + $0x50] sm:$0x1]  ;;  %v230_v38 = vrot.slane %v83_v33, 7  ;;  %v317_v48 = vsel %vm180_vm3, %v316_v40, %v315_v42  ;;  %v169_v51 = vld [vmem:[%s10115_s3 + $0xef] sm:$0x1]  ;;  %v320_v52 = vrot.slane %v168_v45, 2 }
  0x13   :  { %56 = vperm.xlu1 %5404, %v5653_v17   ;;  %59 = vperm.xlu2 %5406, %v18_v10   ;;  %v82_v41 = vld [vmem:[%s10114_s2 + $0x10] sm:$0x1]  ;;  %v232_v44 = vrot.slane %v84_v37, 6  ;;  %v319_v54 = vsel %vm183_vm4, %v318_v46, %v317_v48  ;;  %v322_v57 = vrot.slane %v169_v51, 1  ;;  %v5803_v35 = vld [vmem:[%s10112_s0 + $0xce] sm:$0x1] }
  0x14   :  { %104 = vperm.xlu0 %5407, %v91_v18   ;;  %v85_v43 = vld [vmem:[%s10114_s2 + $0x70] sm:$0x1]  ;;  %v231_v47 = vsel %vm171_vm0, %v230_v38, %v82_v41  ;;  %v321_v59 = vsel %vm186_vm5, %v320_v52, %v319_v54  ;;  %v5811_v37 = vld [vmem:[%s10112_s0 + $0x31] sm:$0x1]  ;;  %v5557_v46 = vmov 14   ;;  %s5558_s27 = smov 124  }
  0x15   :  { %v86_v49 = vld [vmem:[%s10114_s2 + $0x90] sm:$0x1]  ;;  %v234_v50 = vrot.slane %v85_v43, 5  ;;  %v233_v53 = vsel %vm174_vm1, %v232_v44, %v231_v47  ;;  %v323_v5 = vsel %vm189_vm6, %v322_v57, %v321_v59  ;;  %v5823_v41 = vld [vmem:[%s10112_s0 + $0x91] sm:$0x1]  ;;  %v202_v59 = vrot.slane %v5643_v15, 2 }
  0x16   :  { %v87_v55 = vld [vmem:[%s10114_s2 + $0xb0] sm:$0x1]  ;;  %v236_v56 = vrot.slane %v86_v49, 4  ;;  %v374_v44 = vld [vmem:[%s10112_s0 + $0x4e] sm:$0x1]  ;;  %vm347_vm15 = vcmask 1014784  }
  0x17   :  { %v235_v58 = vsel %vm177_vm2, %v234_v50, %v233_v53  ;;  %v131_v60 = vld [vmem:[%s10113_s1 + $0x30] sm:$0x1]  ;;  %v5836_v45 = vld [vmem:[%s10112_s0 + $0xf1] sm:$0x1]  ;;  %v372_v51 = vld [vmem:[%s10112_s0 + $0xe] sm:$0x1] }
  0x18   :  { %v88_v61 = vld [vmem:[%s10114_s2 + $0xd0] sm:$0x1]  ;;  %v270_v63 = vrot.slane %v131_v60, 7  ;;  %v541_v52 = vrot.slane %v374_v44, 6  ;;  %v5855_v54 = vld [vmem:[%s10112_s0 + $0x8e] sm:$0x1] }
  0x19   :  { %v132_v62 = vld [vmem:[%s10113_s1 + $0x50] sm:$0x1]  ;;  %v240_v14 = vrot.slane %v88_v61, 2  ;;  %v204_v61 = vrot.slane %v5653_v17, 1  ;;  %s5585_s25 = smov 127   ;;  %s5586_s14 = smov 122  }
  0x1a   :  { %v134_v6 = vld [vmem:[%s10113_s1 + $0x90] sm:$0x1]  ;;  %s5353_s7 = sshll.u32 %s10116_s4, 4  ;;  %s5589_s8 = smov 8   ;;  %s5354_s7 = int_to_ptr.hbm [resolvable:$true] %s5353_s7 }
  0x1b   :  { %5408 = vset.pattern.permute.xlu1 %v5551_v2  ;;  %68 = vperm.xlu2 %5406, %v21_v7   ;;  %v133_v2 = vld [vmem:[%s10113_s1 + $0x70] sm:$0x1]  ;;  %v276_v11 = vrot.slane %v134_v6, 4 }
  0x1c   :  { %116 = vperm.xlu0 %5407, %v5662_v19   ;;  %65 = vperm.xlu1 %5408, %v20_v1   ;;  %v130_v1 = vld [vmem:[%s10113_s1 + $0x10] sm:$0x1]  ;;  %v274_v8 = vrot.slane %v133_v2, 5  ;;  %v545_v2 = vrot.slane %v5855_v54, 4 }
  0x1d   :  { %v271_v7 = vsel %vm171_vm0, %v270_v63, %v130_v1  ;;  %v135_v9 = vld [vmem:[%s10113_s1 + $0xb0] sm:$0x1] }
  0x1e   :  { %v89_v12 = vld [vmem:[%s10114_s2 + $0xf0] sm:$0x1] }
  0x1f   :  { %v242_v28 = vrot.slane %v89_v12, 1 }
  0x23   :  { %74 = vperm.xlu2 %5406, %v5637_v13  }
  0x24   :  { %128 = vperm.xlu0 %5407, %v97_v20   ;;  %71 = vperm.xlu1 %5408, %v22_v0   ;;  %v238_v0 = vrot.slane %v87_v55, 3 }
  0x2b   :  { %100 = vperm.xlu2 %5406, %v90_v21  }
  0x2c   :  { %5409 = vset.pattern.permute.xlu0 %v5552_v3  ;;  %80 = vperm.xlu1 %5408, %v5653_v17  }
  0x2d   :  { %28 = vperm.xlu0 %5409, %v18_v10  }
  0x33   :  { %112 = vperm.xlu2 %5406, %v93_v23  }
  0x34   :  { %108 = vperm.xlu1 %5408, %v92_v22  }
  0x35   :  { %32 = vperm.xlu0 %5409, %v19_v4   ;;  %v237_v4 = vsel %vm180_vm3, %v236_v56, %v235_v58  ;;  %v200_v56 = vrot.slane %v5637_v13, 3  ;;  %v5874_v13 = vld [vmem:[%s10112_s0 + $0xee] sm:$0x1] }
  0x3b   :  { %124 = vperm.xlu2 %5406, %v5691_v26  }
  0x3c   :  { %120 = vperm.xlu1 %5408, %v5686_v25  }
  0x3d   :  { %52 = vperm.xlu0 %5409, %v5643_v15  }
  0x43   :  { %5411 = vset.pattern.permute.xlu2 %v5552_v3 }
  0x44   :  { %5410 = vset.pattern.permute.xlu1 %v5552_v3  ;;  %142 = vperm.xlu2 %5411, %v91_v18   ;;  %v272_v3 = vrot.slane %v132_v62, 6  ;;  %v136_v18 = vld [vmem:[%s10113_s1 + $0xd0] sm:$0x1]  ;;  %v375_v62 = vld [vmem:[%s10112_s0 + $0x6e] sm:$0x1] }
  0x45   :  { %145 = vperm.xlu0 %5409, %v92_v22   ;;  %139 = vperm.xlu1 %5410, %v90_v21   ;;  %v239_v21 = vsel %vm183_vm4, %v238_v0, %v237_v4  ;;  %v137_v22 = vld [vmem:[%s10113_s1 + $0xf0] sm:$0x1]  ;;  %v280_v24 = vrot.slane %v136_v18, 2  ;;  %v543_v63 = vrot.slane %v375_v62, 5  ;;  %v201_v0 = vsel %vm183_vm4, %v200_v56, %v5646_v16  ;;  %v377_v16 = vld [vmem:[%s10112_s0 + $0xae] sm:$0x1] }
  0x46   :  { %v273_v10 = vsel %vm174_vm1, %v272_v3, %v271_v7  ;;  %v241_v29 = vsel %vm186_vm5, %v240_v14, %v239_v21  ;;  %v282_v30 = vrot.slane %v137_v22, 1  ;;  %v203_v15 = vsel %vm186_vm5, %v202_v59, %v201_v0 }
  0x47   :  { %v243_v32 = vsel %vm189_vm6, %v242_v28, %v241_v29  ;;  %v5881_v17 = vsel %vm189_vm6, %v204_v61, %v203_v15  ;;  %v547_v7 = vrot.slane %v377_v16, 3 }
  0x4c   :  { %151 = vperm.xlu2 %5411, %v5662_v19   ;;  %v275_v19 = vsel %vm177_vm2, %v274_v8, %v273_v10 }
  0x4d   :  { %160 = vperm.xlu0 %5409, %v97_v20   ;;  %148 = vperm.xlu1 %5410, %v93_v23   ;;  %v278_v20 = vrot.slane %v135_v9, 3  ;;  %v277_v23 = vsel %vm180_vm3, %v276_v11, %v275_v19 }
  0x4f   :  { %v279_v27 = vsel %vm183_vm4, %v278_v20, %v277_v23  ;;  %v5908_v23 = vld [vmem:[%s10112_s0 + $0x11] sm:$0x1] }
  0x50   :  { %v281_v31 = vsel %vm186_vm5, %v280_v24, %v279_v27 }
  0x51   :  { %v283_v33 = vsel %vm189_vm6, %v282_v30, %v281_v31 }
  0x54   :  { %157 = vperm.xlu2 %5411, %v5691_v26   ;;  %v5556_v26 = vmov 17  }
  0x55   :  { %324 = vrot.lane.b32.xlu0 %v323_v5, %s5553_s15  ;;  %154 = vperm.xlu1 %5410, %v5686_v25   ;;  %v373_v25 = vld [vmem:[%s10112_s0 + $0x2e] sm:$0x1] }
  0x56   :  { %5415 = vset.pattern.permute.xlu0 %v5556_v26  ;;  %v539_v50 = vrot.slane %v373_v25, 7 }
  0x58   :  { %v540_v53 = vsel %vm171_vm0, %v539_v50, %v372_v51 }
  0x59   :  { %v542_v55 = vsel %vm174_vm1, %v541_v52, %v540_v53 }
  0x5a   :  { %v544_v1 = vsel %vm177_vm2, %v543_v63, %v542_v55 }
  0x5b   :  { %v546_v6 = vsel %vm180_vm3, %v545_v2, %v544_v1 }
  0x5c   :  { %284 = vrot.lane.b32.xlu2 %v283_v33, %s5555_s19  ;;  %v5798_v34 = vpop.permute.xlu2 %44  ;;  %v5895_v8 = vsel %vm183_vm4, %v547_v7, %v546_v6 }
  0x5d   :  { %244 = vrot.lane.b32.xlu1 %v243_v32, %s5554_s18  ;;  %416 = vperm.xlu0 %5415, %v373_v25   ;;  %v179_v52 = vrot.slane %v5798_v34, 4 }
  0x5e   :  { %5413 = vset.pattern.permute.xlu1 %v5557_v46  ;;  %5412 = vset.pattern.permute.xlu2 %v5557_v46 }
  0x64   :  { %v5806_v36 = vpop.permute.xlu2 %48  ;;  %382 = vperm.xlu2 %5412, %v372_v51  }
  0x65   :  { %431 = vperm.xlu0 %5415, %v5803_v35   ;;  %390 = vperm.xlu1 %5413, %v374_v44   ;;  %v182_v53 = vrot.slane %v5806_v36, 3 }
  0x6c   :  { %394 = vperm.xlu2 %5412, %v375_v62  }
  0x6d   :  { %458 = vperm.xlu0 %5415, %v5811_v37   ;;  %v5818_v40 = vpop.permute.xlu2 %59  ;;  %398 = vperm.xlu1 %5413, %v5855_v54  }
  0x74   :  { %402 = vperm.xlu2 %5412, %v377_v16  }
  0x75   :  { %v5814_v38 = vpop.permute.xlu1 %36  ;;  %470 = vperm.xlu0 %5415, %v5823_v41   ;;  %v5840_v47 = vpop.permute.xlu2 %68  ;;  %410 = vperm.xlu1 %5413, %v5874_v13  }
  0x76   :  { %v5816_v39 = vpop.permute.xlu0 %62  ;;  %v173_v28 = vrot.slane %v5814_v38, 6 }
  0x77   :  { %v207_v32 = vrot.slane %v5816_v39, 7 }
  0x79   :  { %v208_v39 = vsel %vm171_vm0, %v207_v32, %v5818_v40 }
  0x7c   :  { %5414 = vset.pattern.permute.xlu2 %v5556_v26 }
  0x7d   :  { %v5826_v42 = vpop.permute.xlu1 %40  ;;  %482 = vperm.xlu0 %5415, %v5836_v45   ;;  %v5860_v57 = vpop.permute.xlu2 %74  ;;  %5416 = vset.pattern.permute.xlu1 %v5556_v26 }
  0x7e   :  { %v5828_v43 = vpop.permute.xlu0 %77  ;;  %419 = vperm.xlu1 %5416, %v374_v44   ;;  %413 = vperm.xlu2 %5414, %v372_v51   ;;  %v176_v30 = vrot.slane %v5826_v42, 5 }
  0x85   :  { %v5843_v48 = vpop.permute.xlu1 %56  ;;  %5417 = vset.pattern.permute.xlu0 %v5557_v46  ;;  %v101_v4 = vpop.permute.xlu2 %100 }
  0x86   :  { %v5845_v49 = vpop.permute.xlu0 %104  ;;  %386 = vperm.xlu0 %5417, %v373_v25   ;;  %422 = vperm.xlu2 %5414, %v375_v62   ;;  %v5920_v25 = vld [vmem:[%s10112_s0 + $0x71] sm:$0x1]  ;;  %v211_v62 = vrot.slane %v5840_v47, 5 }
  0x87   :  { %v247_v33 = vrot.slane %v5845_v49, 7  ;;  %v446_v47 = vld [vmem:[%s10112_s0 + $0x51] sm:$0x1] }
  0x89   :  { %v248_v49 = vsel %vm171_vm0, %v247_v33, %v101_v4 }
  0x8d   :  { %v113_v10 = vpop.permute.xlu2 %112 }
  0x8e   :  { %v5862_v58 = vpop.permute.xlu0 %116  ;;  %v5865_v60 = vpop.permute.xlu1 %65  ;;  %406 = vperm.xlu0 %5417, %v5803_v35   ;;  %428 = vperm.xlu2 %5414, %v377_v16   ;;  %v251_v36 = vrot.slane %v113_v10, 5  ;;  %v188_v16 = vrot.slane %v5843_v48, 1 }
  0x8f   :  { %v209_v26 = vrot.slane %v5865_v60, 6  ;;  %v253_v6 = vrot.slane %v5862_v58, 4 }
  0x91   :  { %v210_v59 = vsel %vm174_vm1, %v209_v26, %v208_v39 }
  0x92   :  { %v212_v15 = vsel %vm177_vm2, %v211_v62, %v210_v59  ;;  %v520_v62 = vld [vmem:[%s10115_s3 + $0x8e] sm:$0x1] }
  0x95   :  { %v5901_v14 = vpop.permute.xlu2 %124 }
  0x96   :  { %v5886_v3 = vpop.permute.xlu1 %71  ;;  %v5888_v5 = vpop.permute.xlu0 %128  ;;  %454 = vperm.xlu2 %5414, %v5908_v23   ;;  %499 = vperm.xlu0 %5417, %v446_v47  }
  0x97   :  { %v213_v60 = vrot.slane %v5886_v3, 4  ;;  %v450_v3 = vld [vmem:[%s10112_s0 + $0xd1] sm:$0x1] }
  0x99   :  { %v214_v7 = vsel %vm180_vm3, %v213_v60, %v212_v15  ;;  %v518_v60 = vld [vmem:[%s10115_s3 + $0x4e] sm:$0x1]  ;;  %v663_v15 = vrot.slane %v520_v62, 4 }
  0x9e   :  { %v5898_v9 = vpop.permute.xlu1 %80  ;;  %v143_v20 = vpop.permute.xlu2 %142  ;;  %466 = vperm.xlu2 %5414, %v5920_v25   ;;  %514 = vperm.xlu0 %5417, %v5836_v45   ;;  %v5986_v45 = vld [vmem:[%s10112_s0 + $0xb1] sm:$0x1] }
  0x9f   :  { %v29_v11 = vpop.permute.xlu0 %28  ;;  %v287_v42 = vrot.slane %v143_v20, 7 }
  0xa6   :  { %v109_v12 = vpop.permute.xlu1 %108  ;;  %v152_v31 = vpop.permute.xlu2 %151  ;;  %478 = vperm.xlu2 %5414, %v450_v3  }
  0xa7   :  { %v33_v18 = vpop.permute.xlu0 %32  ;;  %v249_v44 = vrot.slane %v109_v12, 6 }
  0xa8   :  { %v170_v21 = vrot.slane %v33_v18, 7  ;;  %v215_v18 = vrot.slane %v5860_v57, 3  ;;  %v257_v57 = vrot.slane %v5901_v14, 2 }
  0xa9   :  { %v250_v61 = vsel %vm174_vm1, %v249_v44, %v248_v49 }
  0xaa   :  { %v172_v27 = vsel %vm171_vm0, %v170_v21, %v29_v11  ;;  %v252_v1 = vsel %vm177_vm2, %v251_v36, %v250_v61  ;;  %v216_v58 = vsel %vm183_vm4, %v215_v18, %v214_v7  ;;  %v519_v61 = vld [vmem:[%s10115_s3 + $0x6e] sm:$0x1]  ;;  %v485_v7 = vld [vmem:[%s10113_s1 + $0x31] sm:$0x1] }
  0xab   :  { %v175_v29 = vsel %vm174_vm1, %v173_v28, %v172_v27  ;;  %v254_v21 = vsel %vm180_vm3, %v253_v6, %v252_v1  ;;  %v219_v27 = vrot.slane %v5898_v9, 1  ;;  %v259_v9 = vrot.slane %v5888_v5, 1  ;;  %v522_v1 = vld [vmem:[%s10115_s3 + $0xce] sm:$0x1]  ;;  %v488_v18 = vld [vmem:[%s10113_s1 + $0x91] sm:$0x1] }
  0xac   :  { %v178_v50 = vsel %vm177_vm2, %v176_v30, %v175_v29  ;;  %v217_v29 = vrot.slane %v5828_v43, 2 }
  0xad   :  { %v181_v55 = vsel %vm180_vm3, %v179_v52, %v178_v50 }
  0xae   :  { %v5903_v19 = vpop.permute.xlu1 %120  ;;  %v184_v40 = vsel %vm183_vm4, %v182_v53, %v181_v55  ;;  %v158_v11 = vpop.permute.xlu2 %157  ;;  %v218_v26 = vsel %vm186_vm5, %v217_v29, %v216_v58  ;;  %5419 = vset.pattern.permute.xlu2 %v5557_v46  ;;  %v617_v58 = vrot.slane %v485_v7, 7  ;;  %v491_v29 = vld [vmem:[%s10113_s1 + $0xf1] sm:$0x1] }
  0xaf   :  { %v53_v22 = vpop.permute.xlu0 %52  ;;  %v255_v2 = vrot.slane %v5903_v19, 3  ;;  %v297_v33 = vrot.slane %v158_v11, 2  ;;  %v220_v50 = vsel %vm189_vm6, %v219_v27, %v218_v26  ;;  %496 = vperm.xlu2 %5419, %v5811_v37   ;;  %v517_v37 = vld [vmem:[%s10115_s3 + $0x2e] sm:$0x1]  ;;  %v486_v11 = vld [vmem:[%s10113_s1 + $0x51] sm:$0x1] }
  0xb0   :  { %v185_v56 = vrot.slane %v53_v22, 2  ;;  %v293_v22 = vrot.slane %v152_v31, 4  ;;  %v619_v27 = vrot.slane %v486_v11, 6 }
  0xb1   :  { %v256_v28 = vsel %vm183_vm4, %v255_v2, %v254_v21  ;;  %v523_v2 = vld [vmem:[%s10115_s3 + $0xee] sm:$0x1]  ;;  %v484_v21 = vld [vmem:[%s10113_s1 + $0x11] sm:$0x1] }
  0xb2   :  { %v187_v4 = vsel %vm186_vm5, %v185_v56, %v184_v40  ;;  %v258_v44 = vsel %vm186_vm5, %v257_v57, %v256_v28  ;;  %v669_v6 = vrot.slane %v523_v2, 1  ;;  %v623_v57 = vrot.slane %v488_v18, 4 }
  0xb3   :  { %v190_v48 = vsel %vm189_vm6, %v188_v16, %v187_v4  ;;  %v667_v16 = vrot.slane %v522_v1, 2 }
  0xb4   :  { %v328_v31 = vsel %vm327_vm7, %v190_v48, %v5881_v17  ;;  %vm674_vm7 = vcmask 113664  }
  0xb5   :  { %v330_v14 = vsel %vm329_vm8, %v328_v31, %v220_v50  ;;  %v438_v31 = vld [vmem:[%s10114_s2 + $0x51] sm:$0x1]  ;;  %vm676_vm8 = vcmask 138240  }
  0xb7   :  { %v140_v24 = vpop.permute.xlu1 %139  ;;  %v146_v38 = vpop.permute.xlu0 %145  ;;  %505 = vperm.xlu2 %5419, %v5823_v41   ;;  %v657_v41 = vrot.slane %v517_v37, 7 }
  0xb8   :  { %v289_v34 = vrot.slane %v146_v38, 6  ;;  %v288_v63 = vsel %vm171_vm0, %v287_v42, %v140_v24  ;;  %v285_v38 = vpop.permute.xlu2 %284  ;;  %v260_v42 = vsel %vm189_vm6, %v259_v9, %v258_v44  ;;  %v436_v9 = vld [vmem:[%s10114_s2 + $0x11] sm:$0x1] }
  0xba   :  { %v290_v10 = vsel %vm174_vm1, %v289_v34, %v288_v63  ;;  %v659_v34 = vrot.slane %v518_v60, 6  ;;  %v661_v63 = vrot.slane %v519_v61, 5  ;;  %v549_v60 = vrot.slane %v5803_v35, 2 }
  0xbf   :  { %v149_v51 = vpop.permute.xlu1 %148  ;;  %v161_v24 = vpop.permute.xlu0 %160  ;;  %511 = vperm.xlu2 %5419, %v450_v3  }
  0xc0   :  { %v291_v0 = vrot.slane %v149_v51, 5  ;;  %v299_v17 = vrot.slane %v161_v24, 1 }
  0xc2   :  { %v292_v19 = vsel %vm177_vm2, %v291_v0, %v290_v10  ;;  %v521_v0 = vld [vmem:[%s10115_s3 + $0xae] sm:$0x1] }
  0xc3   :  { %v294_v30 = vsel %vm180_vm3, %v293_v22, %v292_v19  ;;  %v665_v3 = vrot.slane %v521_v0, 3  ;;  %v437_v19 = vld [vmem:[%s10114_s2 + $0x31] sm:$0x1] }
  0xc4   :  { %v489_v22 = vld [vmem:[%s10113_s1 + $0xb1] sm:$0x1] }
  0xc7   :  { %v155_v12 = vpop.permute.xlu1 %154  ;;  %v325_v39 = vpop.permute.xlu0 %324 }
  0xc8   :  { %v295_v20 = vrot.slane %v155_v12, 3  ;;  %v487_v12 = vld [vmem:[%s10113_s1 + $0x71] sm:$0x1] }
  0xc9   :  { %v621_v28 = vrot.slane %v487_v12, 5 }
  0xca   :  { %v296_v32 = vsel %vm183_vm4, %v295_v20, %v294_v30  ;;  %v618_v30 = vsel %vm171_vm0, %v617_v58, %v484_v21 }
  0xcb   :  { %v298_v51 = vsel %vm186_vm5, %v297_v33, %v296_v32  ;;  %v625_v32 = vrot.slane %v489_v22, 3  ;;  %v577_v33 = vrot.slane %v437_v19, 7  ;;  %v620_v26 = vsel %vm174_vm1, %v619_v27, %v618_v30  ;;  %v6126_v22 = vld [vmem:[%s10112_s0 + $0xcd] sm:$0x1] }
  0xcc   :  { %v300_v49 = vsel %vm189_vm6, %v299_v17, %v298_v51  ;;  %v622_v50 = vsel %vm177_vm2, %v621_v28, %v620_v26 }
  0xcd   :  { %v578_v17 = vsel %vm171_vm0, %v577_v33, %v436_v9  ;;  %v5560_v33 = vmov 13   ;;  %v718_v9 = vld [vmem:[%s10112_s0 + $0xd] sm:$0x1] }
  0xce   :  { %5420 = vset.pattern.permute.xlu2 %v5560_v33 }
  0xcf   :  { %v245_v43 = vpop.permute.xlu1 %244 }
  0xd0   :  { %v332_v52 = vsel %vm331_vm9, %v330_v14, %v245_v43  ;;  %v629_v43 = vrot.slane %v491_v29, 1  ;;  %v624_v14 = vsel %vm180_vm3, %v623_v57, %v622_v50  ;;  %v6138_v29 = vld [vmem:[%s10112_s0 + $0x32] sm:$0x1]  ;;  %vm678_vm9 = vcmask 367616  }
  0xd1   :  { %v334_v53 = vsel %vm333_vm10, %v332_v52, %v260_v42  ;;  %v626_v51 = vsel %vm183_vm4, %v625_v32, %v624_v14  ;;  %v440_v42 = vld [vmem:[%s10114_s2 + $0x91] sm:$0x1]  ;;  %v6148_v32 = vld [vmem:[%s10112_s0 + $0x92] sm:$0x1]  ;;  %vm680_vm10 = vcmask 392192  }
  0xd2   :  { %v336_v5 = vsel %vm335_vm11, %v334_v53, %v285_v38  ;;  %v579_v38 = vrot.slane %v438_v31, 6  ;;  %v6161_v50 = vld [vmem:[%s10112_s0 + $0xf2] sm:$0x1]  ;;  %vm682_vm11 = vcmask 621568  }
  0xd3   :  { %v338_v55 = vsel %vm337_vm12, %v336_v5, %v300_v49  ;;  %v441_v5 = vld [vmem:[%s10114_s2 + $0xb1] sm:$0x1]  ;;  %v583_v49 = vrot.slane %v440_v42, 4  ;;  %v6180_v42 = vld [vmem:[%s10112_s0 + $0x4d] sm:$0x1]  ;;  %vm684_vm12 = vcmask 646144  }
  0xd4   :  { %v340_v56 = vsel %vm339_vm13, %v338_v55, %v325_v39  ;;  %v580_v39 = vsel %vm174_vm1, %v579_v38, %v578_v17  ;;  %v585_v37 = vrot.slane %v441_v5, 3  ;;  %vm686_vm13 = vcmask 875520  }
  0xd5   :  { %v5973_v59 = vsel %vm341_vm14, %v340_v56, %v190_v48  ;;  %v490_v48 = vld [vmem:[%s10113_s1 + $0xd1] sm:$0x1]  ;;  %vm688_vm14 = vcmask 900096  }
  0xd6   :  { %344 = vrot.lane.b32.xlu1 %v5973_v59, %s5558_s27  ;;  %v627_v44 = vrot.slane %v490_v48, 2  ;;  %v442_v56 = vld [vmem:[%s10114_s2 + $0xd1] sm:$0x1] }
  0xde   :  { %425 = vperm.xlu1 %5416, %v5855_v54   ;;  %v516_v54 = vld [vmem:[%s10115_s3 + $0xe] sm:$0x1] }
  0xdf   :  { %v658_v36 = vsel %vm171_vm0, %v657_v41, %v516_v54  ;;  %v587_v54 = vrot.slane %v442_v56, 2 }
  0xe0   :  { %v660_v40 = vsel %vm174_vm1, %v659_v34, %v658_v36  ;;  %v6086_v34 = vsel %vm186_vm5, %v549_v60, %v5895_v8  ;;  %v6103_v8 = vpop.permute.xlu0 %416 }
  0xe1   :  { %v662_v4 = vsel %vm177_vm2, %v661_v63, %v660_v40  ;;  %v6090_v63 = vpop.permute.xlu2 %382  ;;  %v6095_v40 = vpop.permute.xlu1 %390  ;;  %v554_v60 = vrot.slane %v6103_v8, 7 }
  0xe6   :  { %434 = vperm.xlu1 %5416, %v5874_v13  }
  0xe9   :  { %v6093_v0 = vpop.permute.xlu2 %394 }
  0xea   :  { %v528_v56 = vrot.slane %v6093_v0, 5 }
  0xee   :  { %462 = vperm.xlu1 %5416, %v446_v47   ;;  %v664_v47 = vsel %vm180_vm3, %v663_v15, %v662_v4 }
  0xef   :  { %v666_v10 = vsel %vm183_vm4, %v665_v3, %v664_v47  ;;  %v6111_v47 = vpop.permute.xlu0 %431 }
  0xf0   :  { %v668_v20 = vsel %vm186_vm5, %v667_v16, %v666_v10  ;;  %v719_v16 = vld [vmem:[%s10112_s0 + $0x2d] sm:$0x1] }
  0xf1   :  { %v670_v24 = vsel %vm189_vm6, %v669_v6, %v668_v20  ;;  %v6097_v15 = vpop.permute.xlu2 %402  ;;  %v5559_v6 = vmov 18  }
  0xf2   :  { %671 = vrot.lane.b32.xlu0 %v670_v24, %s5553_s15  ;;  %v532_v8 = vrot.slane %v6097_v15, 3 }
  0xf3   :  { %5423 = vset.pattern.permute.xlu0 %v5559_v6 }
  0xf6   :  { %474 = vperm.xlu1 %5416, %v5986_v45  }
  0xf7   :  { %v6119_v11 = vpop.permute.xlu0 %458 }
  0xf9   :  { %v6101_v1 = vpop.permute.xlu2 %413 }
  0xfa   :  { %762 = vperm.xlu0 %5423, %v719_v16  }
  0xfe   :  { %5418 = vset.pattern.permute.xlu1 %v5557_v46  ;;  %v439_v46 = vld [vmem:[%s10114_s2 + $0x71] sm:$0x1] }
  0xff   :  { %493 = vperm.xlu1 %5418, %v5908_v23   ;;  %v628_v23 = vsel %vm186_vm5, %v627_v44, %v626_v51  ;;  %v581_v53 = vrot.slane %v439_v46, 5  ;;  %v6133_v28 = vpop.permute.xlu0 %470  ;;  %v885_v44 = vrot.slane %v719_v16, 7  ;;  %v6172_v51 = vld [vmem:[%s10112_s0 + $0x6d] sm:$0x1] }
 0x100   :  { %v630_v52 = vsel %vm189_vm6, %v629_v43, %v628_v23 }
 0x101   :  { %631 = vrot.lane.b32.xlu2 %v630_v52, %s5555_s19  ;;  %v582_v55 = vsel %vm177_vm2, %v581_v53, %v580_v39  ;;  %v6107_v4 = vpop.permute.xlu2 %422  ;;  %v886_v14 = vsel %vm171_vm0, %v885_v44, %v718_v9  ;;  %v526_v52 = vrot.slane %v6095_v40, 6  ;;  %v6207_v40 = vld [vmem:[%s10112_s0 + $0x8d] sm:$0x1] }
 0x102   :  { %v584_v41 = vsel %vm180_vm3, %v583_v49, %v582_v55  ;;  %777 = vperm.xlu0 %5423, %v6126_v22   ;;  %v887_v49 = vrot.slane %v6180_v42, 6  ;;  %v6188_v55 = vld [vmem:[%s10112_s0 + $0xad] sm:$0x1] }
 0x103   :  { %v586_v61 = vsel %vm183_vm4, %v585_v37, %v584_v41  ;;  %v893_v0 = vrot.slane %v6188_v55, 3 }
 0x104   :  { %v588_v36 = vsel %vm186_vm5, %v587_v54, %v586_v61  ;;  %v888_v37 = vsel %vm174_vm1, %v887_v49, %v886_v14 }
 0x107   :  { %502 = vperm.xlu1 %5418, %v5920_v25   ;;  %v443_v25 = vld [vmem:[%s10114_s2 + $0xf1] sm:$0x1]  ;;  %v6150_v31 = vpop.permute.xlu0 %482 }
 0x108   :  { %v589_v62 = vrot.slane %v443_v25, 1  ;;  %v889_v25 = vrot.slane %v6172_v51, 5 }
 0x109   :  { %v6117_v7 = vpop.permute.xlu2 %428  ;;  %728 = vperm.xlu2 %5420, %v718_v9  }
 0x10a   :  { %v590_v35 = vsel %vm189_vm6, %v589_v62, %v588_v36  ;;  %804 = vperm.xlu0 %5423, %v6138_v29  }
 0x10f   :  { %508 = vperm.xlu1 %5418, %v5986_v45   ;;  %v6099_v45 = vpop.permute.xlu1 %398  ;;  %v387_v46 = vpop.permute.xlu0 %386 }
 0x110   :  { %v524_v17 = vrot.slane %v387_v46, 7  ;;  %v530_v54 = vrot.slane %v6099_v45, 4  ;;  %v890_v45 = vsel %vm177_vm2, %v889_v25, %v888_v37 }
 0x111   :  { %v6131_v27 = vpop.permute.xlu2 %454  ;;  %740 = vperm.xlu2 %5420, %v6172_v51  }
 0x112   :  { %816 = vperm.xlu0 %5423, %v6148_v32   ;;  %v525_v53 = vsel %vm171_vm0, %v524_v17, %v6090_v63  ;;  %v555_v63 = vsel %vm171_vm0, %v554_v60, %v6101_v1  ;;  %v558_v1 = vrot.slane %v6107_v4, 5 }
 0x113   :  { %v527_v41 = vsel %vm174_vm1, %v526_v52, %v525_v53  ;;  %v562_v52 = vrot.slane %v6117_v7, 3  ;;  %v564_v7 = vrot.slane %v6111_v47, 2 }
 0x114   :  { %v529_v61 = vsel %vm177_vm2, %v528_v56, %v527_v41 }
 0x117   :  { %591 = vrot.lane.b32.xlu1 %v590_v35, %s5554_s18  ;;  %v6105_v2 = vpop.permute.xlu1 %410  ;;  %v407_v39 = vpop.permute.xlu0 %406  ;;  %v594_v35 = vrot.slane %v6119_v11, 7  ;;  %v531_v11 = vsel %vm180_vm3, %v530_v54, %v529_v61 }
 0x118   :  { %5421 = vset.pattern.permute.xlu1 %v5560_v33 }
 0x119   :  { %v6143_v30 = vpop.permute.xlu2 %466  ;;  %748 = vperm.xlu2 %5420, %v6188_v55  }
 0x11a   :  { %828 = vperm.xlu0 %5423, %v6161_v50   ;;  %v598_v4 = vrot.slane %v6143_v30, 5  ;;  %v600_v30 = vrot.slane %v6133_v28, 4 }
 0x11f   :  { %v6109_v3 = vpop.permute.xlu1 %419 }
 0x120   :  { %v556_v62 = vrot.slane %v6109_v3, 6 }
 0x121   :  { %v6163_v43 = vpop.permute.xlu2 %478  ;;  %5422 = vset.pattern.permute.xlu2 %v5559_v6 }
 0x122   :  { %5425 = vset.pattern.permute.xlu0 %v5560_v33  ;;  %759 = vperm.xlu2 %5422, %v718_v9  }
 0x123   :  { %732 = vperm.xlu0 %5425, %v719_v16   ;;  %v500_v16 = vpop.permute.xlu0 %499 }
 0x124   :  { %v636_v17 = vrot.slane %v500_v16, 6 }
 0x129   :  { %v497_v23 = vpop.permute.xlu2 %496 }
 0x12a   :  { %768 = vperm.xlu2 %5422, %v6172_v51  }
 0x12b   :  { %752 = vperm.xlu0 %5425, %v6126_v22   ;;  %v515_v25 = vpop.permute.xlu0 %514 }
 0x131   :  { %v506_v36 = vpop.permute.xlu2 %505 }
 0x132   :  { %774 = vperm.xlu2 %5422, %v6188_v55   ;;  %v792_v55 = vld [vmem:[%s10112_s0 + $0x52] sm:$0x1] }
 0x133   :  { %845 = vperm.xlu0 %5425, %v792_v55  }
 0x139   :  { %v512_v9 = vpop.permute.xlu2 %511 }
 0x13b   :  { %860 = vperm.xlu0 %5425, %v6161_v50   ;;  %v795_v50 = vld [vmem:[%s10112_s0 + $0xb2] sm:$0x1] }
 0x148   :  { %v345_v10 = vpop.permute.xlu1 %344 }
 0x149   :  { %v348_v12 = vsel %vm347_vm15, %v5973_v59, %v345_v10 }
 0x14a   :  { %v350_v18 = vrot.slane %v348_v12, 1  ;;  %v351_v19 = vrot.slane %v348_v12, 2  ;;  %v352_v20 = vrot.slane %v348_v12, 3  ;;  %364 = vst [vmem:[#allocation2] sm:$0x1] %v348_v12  ;;  %v353_v21 = vrot.slane %v348_v12, 4 }
 0x14b   :  { %v354_v24 = vrot.slane %v348_v12, 5  ;;  %v355_v48 = vrot.slane %v348_v12, 6  ;;  %v356_v58 = vrot.slane %v348_v12, 7  ;;  %v891_v12 = vrot.slane %v6207_v40, 4 }
 0x14c   :  { %365 = vst [vmem:[#allocation2 + $0x10] sm:$0x1] %v350_v18  ;;  %v634_v18 = vrot.slane %v497_v23, 7  ;;  %v536_v23 = vrot.slane %v6105_v2, 1 }
 0x14d   :  { %366 = vst [vmem:[#allocation2 + $0x20] sm:$0x1] %v351_v19  ;;  %v557_v19 = vsel %vm174_vm1, %v556_v62, %v555_v63  ;;  %v604_v62 = vrot.slane %v6163_v43, 2 }
 0x14e   :  { %367 = vst [vmem:[#allocation2 + $0x30] sm:$0x1] %v352_v20  ;;  %v559_v44 = vsel %vm177_vm2, %v558_v1, %v557_v19 }
 0x14f   :  { %368 = vst [vmem:[#allocation2 + $0x40] sm:$0x1] %v353_v21  ;;  %v892_v21 = vsel %vm180_vm3, %v891_v12, %v890_v45 }
 0x150   :  { %369 = vst [vmem:[#allocation2 + $0x50] sm:$0x1] %v354_v24  ;;  %v6129_v59 = vpop.permute.xlu1 %425  ;;  %v595_v24 = vsel %vm171_vm0, %v594_v35, %v6131_v27  ;;  %v6220_v15 = vsel %vm183_vm4, %v893_v0, %v892_v21  ;;  %v551_v27 = vrot.slane %v5874_v13, 1 }
 0x151   :  { %370 = vst [vmem:[#allocation2 + $0x60] sm:$0x1] %v355_v48  ;;  %v560_v20 = vrot.slane %v6129_v59, 4  ;;  %v533_v48 = vsel %vm183_vm4, %v532_v8, %v531_v11 }
 0x152   :  { %371 = vst [vmem:[#allocation2 + $0x70] sm:$0x1] %v356_v58  ;;  %v534_v58 = vrot.slane %v407_v39, 2  ;;  %v552_v61 = vsel %vm189_vm6, %v551_v27, %v6086_v34  ;;  %v606_v34 = vrot.slane %v6150_v31, 1 }
 0x153   :  { %v561_v46 = vsel %vm180_vm3, %v560_v20, %v559_v44  ;;  %v868_v44 = vld [vmem:[%s10115_s3 + $0xcd] sm:$0x1] }
 0x154   :  { %v535_v49 = vsel %vm186_vm5, %v534_v58, %v533_v48  ;;  %v563_v13 = vsel %vm183_vm4, %v562_v52, %v561_v46  ;;  %v793_v48 = vld [vmem:[%s10112_s0 + $0x72] sm:$0x1] }
 0x155   :  { %v537_v28 = vsel %vm189_vm6, %v536_v23, %v535_v49  ;;  %v565_v35 = vsel %vm186_vm5, %v564_v7, %v563_v13  ;;  %v796_v58 = vld [vmem:[%s10112_s0 + $0xd2] sm:$0x1] }
 0x156   :  { %v675_v45 = vsel %vm674_vm7, %v537_v28, %v552_v61  ;;  %v783_v46 = vld [vmem:[%s10114_s2 + $0x32] sm:$0x1]  ;;  %vm1020_vm7 = vcmask 105472  }
 0x157   :  { %v784_v49 = vld [vmem:[%s10114_s2 + $0x52] sm:$0x1] }
 0x158   :  { %v6141_v57 = vpop.permute.xlu1 %434  ;;  %v782_v13 = vld [vmem:[%s10114_s2 + $0x12] sm:$0x1] }
 0x159   :  { %v566_v37 = vrot.slane %v6141_v57, 1  ;;  %v787_v61 = vld [vmem:[%s10114_s2 + $0xb2] sm:$0x1] }
 0x15b   :  { %v567_v63 = vsel %vm189_vm6, %v566_v37, %v565_v35  ;;  %v788_v35 = vld [vmem:[%s10114_s2 + $0xd2] sm:$0x1] }
 0x15c   :  { %v677_v43 = vsel %vm676_vm8, %v675_v45, %v567_v63  ;;  %vm1022_vm8 = vcmask 146432  }
 0x160   :  { %v463_v26 = vpop.permute.xlu1 %462 }
 0x161   :  { %v596_v3 = vrot.slane %v463_v26, 6 }
 0x163   :  { %v597_v26 = vsel %vm174_vm1, %v596_v3, %v595_v24  ;;  %v632_v3 = vpop.permute.xlu2 %631  ;;  %v790_v24 = vld [vmem:[%s10112_s0 + $0x12] sm:$0x1] }
 0x164   :  { %v599_v53 = vsel %vm177_vm2, %v598_v4, %v597_v26  ;;  %v672_v1 = vpop.permute.xlu0 %671  ;;  %800 = vperm.xlu2 %5422, %v790_v24   ;;  %v6279_v26 = vld [vmem:[%s10112_s0 + $0xed] sm:$0x1] }
 0x165   :  { %v601_v41 = vsel %vm180_vm3, %v600_v30, %v599_v53  ;;  %v867_v4 = vld [vmem:[%s10115_s3 + $0xad] sm:$0x1]  ;;  %v1013_v30 = vrot.slane %v868_v44, 2 }
 0x166   :  { %v1011_v53 = vrot.slane %v867_v4, 3 }
 0x168   :  { %v6167_v38 = vpop.permute.xlu1 %474 }
 0x169   :  { %v602_v39 = vrot.slane %v6167_v38, 3  ;;  %v640_v38 = vrot.slane %v506_v36, 4  ;;  %v644_v36 = vrot.slane %v512_v9, 2 }
 0x16b   :  { %v603_v54 = vsel %vm183_vm4, %v602_v39, %v601_v41 }
 0x16c   :  { %v605_v0 = vsel %vm186_vm5, %v604_v62, %v603_v54  ;;  %812 = vperm.xlu2 %5422, %v793_v48  }
 0x16d   :  { %v607_v11 = vsel %vm189_vm6, %v606_v34, %v605_v0  ;;  %v933_v0 = vrot.slane %v788_v35, 2  ;;  %v831_v34 = vld [vmem:[%s10113_s1 + $0x32] sm:$0x1] }
 0x171   :  { %v494_v5 = vpop.permute.xlu1 %493 }
 0x172   :  { %v635_v59 = vsel %vm171_vm0, %v634_v18, %v494_v5 }
 0x173   :  { %v637_v5 = vsel %vm174_vm1, %v636_v17, %v635_v59  ;;  %v869_v17 = vld [vmem:[%s10115_s3 + $0xed] sm:$0x1] }
 0x174   :  { %824 = vperm.xlu2 %5422, %v796_v58  }
 0x179   :  { %v503_v10 = vpop.permute.xlu1 %502 }
 0x17a   :  { %v638_v14 = vrot.slane %v503_v10, 5  ;;  %v646_v10 = vrot.slane %v515_v25, 1  ;;  %v786_v25 = vld [vmem:[%s10114_s2 + $0x92] sm:$0x1] }
 0x17b   :  { %v929_v62 = vrot.slane %v786_v25, 4 }
 0x17c   :  { %v639_v2 = vsel %vm177_vm2, %v638_v14, %v637_v5  ;;  %5427 = vset.pattern.permute.xlu2 %v5560_v33  ;;  %v923_v5 = vrot.slane %v783_v46, 7 }
 0x17d   :  { %v641_v57 = vsel %vm180_vm3, %v640_v38, %v639_v2  ;;  %842 = vperm.xlu2 %5427, %v6138_v29   ;;  %v863_v29 = vld [vmem:[%s10115_s3 + $0x2d] sm:$0x1] }
 0x17e   :  { %v1003_v59 = vrot.slane %v863_v29, 7  ;;  %v924_v41 = vsel %vm171_vm0, %v923_v5, %v782_v13 }
 0x181   :  { %v509_v56 = vpop.permute.xlu1 %508 }
 0x182   :  { %v642_v60 = vrot.slane %v509_v56, 3  ;;  %v1015_v56 = vrot.slane %v869_v17, 1 }
 0x184   :  { %v643_v47 = vsel %vm183_vm4, %v642_v60, %v641_v57  ;;  %v925_v60 = vrot.slane %v784_v49, 6 }
 0x185   :  { %v645_v16 = vsel %vm186_vm5, %v644_v36, %v643_v47  ;;  %851 = vperm.xlu2 %5427, %v6148_v32   ;;  %v865_v32 = vld [vmem:[%s10115_s3 + $0x6d] sm:$0x1]  ;;  %v931_v47 = vrot.slane %v787_v61, 3  ;;  %v789_v36 = vld [vmem:[%s10114_s2 + $0xf2] sm:$0x1] }
 0x186   :  { %v647_v19 = vsel %vm189_vm6, %v646_v10, %v645_v16  ;;  %v1007_v27 = vrot.slane %v865_v32, 5  ;;  %v926_v54 = vsel %vm174_vm1, %v925_v60, %v924_v41  ;;  %v833_v16 = vld [vmem:[%s10113_s1 + $0x72] sm:$0x1]  ;;  %v1065_v60 = vld [vmem:[%s10112_s0 + $0x2c] sm:$0x1] }
 0x189   :  { %v592_v8 = vpop.permute.xlu1 %591 }
 0x18a   :  { %v679_v12 = vsel %vm678_vm9, %v677_v43, %v592_v8  ;;  %v832_v43 = vld [vmem:[%s10113_s1 + $0x52] sm:$0x1]  ;;  %v963_v8 = vrot.slane %v831_v34, 7  ;;  %vm1024_vm9 = vcmask 359424  }
 0x18b   :  { %v681_v51 = vsel %vm680_vm10, %v679_v12, %v607_v11  ;;  %v965_v10 = vrot.slane %v832_v43, 6  ;;  %v935_v12 = vrot.slane %v789_v36, 1  ;;  %v834_v11 = vld [vmem:[%s10113_s1 + $0x92] sm:$0x1]  ;;  %v5562_v36 = vmov 12  }
 0x18c   :  { %v683_v18 = vsel %vm682_vm11, %v681_v51, %v632_v3  ;;  %v830_v3 = vld [vmem:[%s10113_s1 + $0x12] sm:$0x1]  ;;  %v1064_v43 = vld [vmem:[%s10112_s0 + $0xc] sm:$0x1]  ;;  %vm1026_vm10 = vcmask 400384   ;;  %vm1028_vm11 = vcmask 613376  }
 0x18d   :  { %v685_v31 = vsel %vm684_vm12, %v683_v18, %v647_v19  ;;  %857 = vperm.xlu2 %5427, %v796_v58   ;;  %v964_v51 = vsel %vm171_vm0, %v963_v8, %v830_v3  ;;  %v835_v19 = vld [vmem:[%s10113_s1 + $0xb2] sm:$0x1]  ;;  %v6463_v8 = vld [vmem:[%s10112_s0 + $0xf3] sm:$0x1]  ;;  %vm1030_vm12 = vcmask 654336  }
 0x18e   :  { %v687_v20 = vsel %vm686_vm13, %v685_v31, %v672_v1  ;;  %v967_v1 = vrot.slane %v833_v16, 5  ;;  %v966_v31 = vsel %vm174_vm1, %v965_v10, %v964_v51  ;;  %v971_v58 = vrot.slane %v835_v19, 3 }
 0x18f   :  { %v6258_v21 = vsel %vm688_vm14, %v687_v20, %v537_v28  ;;  %v969_v20 = vrot.slane %v834_v11, 4  ;;  %v6474_v11 = vld [vmem:[%s10112_s0 + $0x6c] sm:$0x1]  ;;  %vm1032_vm13 = vcmask 867328   ;;  %vm1034_vm14 = vcmask 908288  }
 0x190   :  { %691 = vrot.lane.b32.xlu1 %v6258_v21, %s5558_s27 }
 0x195   :  { %5428 = vset.pattern.permute.xlu2 %v5562_v36 }
 0x198   :  { %736 = vperm.xlu1 %5421, %v6180_v42  }
 0x1a0   :  { %744 = vperm.xlu1 %5421, %v6207_v40  }
 0x1a8   :  { %756 = vperm.xlu1 %5421, %v6279_v26  }
 0x1b0   :  { %5424 = vset.pattern.permute.xlu1 %v5559_v6  ;;  %v864_v6 = vld [vmem:[%s10115_s3 + $0x4d] sm:$0x1] }
 0x1b1   :  { %765 = vperm.xlu1 %5424, %v6180_v42   ;;  %v866_v42 = vld [vmem:[%s10115_s3 + $0x8d] sm:$0x1]  ;;  %v1005_v14 = vrot.slane %v864_v6, 6 }
 0x1b2   :  { %v1009_v23 = vrot.slane %v866_v42, 4 }
 0x1b9   :  { %771 = vperm.xlu1 %5424, %v6207_v40   ;;  %v862_v40 = vld [vmem:[%s10115_s3 + $0xd] sm:$0x1] }
 0x1ba   :  { %v1004_v52 = vsel %vm171_vm0, %v1003_v59, %v862_v40  ;;  %v6386_v40 = vpop.permute.xlu2 %728 }
 0x1bb   :  { %v1006_v39 = vsel %vm174_vm1, %v1005_v14, %v1004_v52  ;;  %v895_v14 = vrot.slane %v6126_v22, 2 }
 0x1bc   :  { %v1008_v9 = vsel %vm177_vm2, %v1007_v27, %v1006_v39  ;;  %v897_v27 = vrot.slane %v6279_v26, 1 }
 0x1bd   :  { %v1010_v37 = vsel %vm180_vm3, %v1009_v23, %v1008_v9  ;;  %v896_v17 = vsel %vm186_vm5, %v895_v14, %v6220_v15 }
 0x1be   :  { %v1012_v2 = vsel %vm183_vm4, %v1011_v53, %v1010_v37  ;;  %v6401_v52 = vsel %vm189_vm6, %v897_v27, %v896_v17 }
 0x1bf   :  { %v1014_v7 = vsel %vm186_vm5, %v1013_v30, %v1012_v2 }
 0x1c0   :  { %v1016_v38 = vsel %vm189_vm6, %v1015_v56, %v1014_v7  ;;  %v6409_v56 = vpop.permute.xlu0 %762  ;;  %v5561_v7 = vmov 19  }
 0x1c1   :  { %780 = vperm.xlu1 %5424, %v6279_v26   ;;  %1017 = vrot.lane.b32.xlu0 %v1016_v38, %s5553_s15 }
 0x1c2   :  { %v6392_v59 = vpop.permute.xlu2 %740  ;;  %5431 = vset.pattern.permute.xlu0 %v5561_v7 }
 0x1c9   :  { %808 = vperm.xlu1 %5424, %v792_v55   ;;  %v968_v55 = vsel %vm177_vm2, %v967_v1, %v966_v31  ;;  %1108 = vperm.xlu0 %5431, %v1065_v60   ;;  %v6481_v1 = vld [vmem:[%s10112_s0 + $0x4c] sm:$0x1] }
 0x1ca   :  { %v6403_v53 = vpop.permute.xlu2 %748  ;;  %v1233_v31 = vrot.slane %v6481_v1, 6 }
 0x1d1   :  { %820 = vperm.xlu1 %5424, %v795_v50  }
 0x1d9   :  { %5426 = vset.pattern.permute.xlu1 %v5560_v33  ;;  %v785_v33 = vld [vmem:[%s10114_s2 + $0x72] sm:$0x1] }
 0x1da   :  { %839 = vperm.xlu1 %5426, %v790_v24   ;;  %v927_v28 = vrot.slane %v785_v33, 5  ;;  %v836_v24 = vld [vmem:[%s10113_s1 + $0xd2] sm:$0x1]  ;;  %v6417_v33 = vpop.permute.xlu0 %777 }
 0x1db   :  { %v973_v29 = vrot.slane %v836_v24, 2 }
 0x1dc   :  { %v928_v57 = vsel %vm177_vm2, %v927_v28, %v926_v54  ;;  %v6430_v28 = vld [vmem:[%s10112_s0 + $0xcc] sm:$0x1] }
 0x1dd   :  { %v930_v63 = vsel %vm180_vm3, %v929_v62, %v928_v57  ;;  %1123 = vperm.xlu0 %5431, %v6430_v28   ;;  %v6438_v62 = vld [vmem:[%s10112_s0 + $0x33] sm:$0x1] }
 0x1de   :  { %v932_v45 = vsel %vm183_vm4, %v931_v47, %v930_v63  ;;  %v6450_v63 = vld [vmem:[%s10112_s0 + $0x93] sm:$0x1] }
 0x1df   :  { %v934_v18 = vsel %vm186_vm5, %v933_v0, %v932_v45  ;;  %v1231_v45 = vrot.slane %v1065_v60, 7 }
 0x1e0   :  { %v936_v32 = vsel %vm189_vm6, %v935_v12, %v934_v18 }
 0x1e1   :  { %v1232_v16 = vsel %vm171_vm0, %v1231_v45, %v1064_v43 }
 0x1e2   :  { %848 = vperm.xlu1 %5426, %v793_v48   ;;  %v837_v48 = vld [vmem:[%s10113_s1 + $0xf2] sm:$0x1]  ;;  %v6425_v25 = vpop.permute.xlu0 %804  ;;  %v1234_v24 = vsel %vm174_vm1, %v1233_v31, %v1232_v16 }
 0x1e3   :  { %v975_v6 = vrot.slane %v837_v48, 1  ;;  %v1235_v48 = vrot.slane %v6474_v11, 5 }
 0x1e5   :  { %1150 = vperm.xlu0 %5431, %v6438_v62  }
 0x1ea   :  { %854 = vperm.xlu1 %5426, %v795_v50   ;;  %v970_v50 = vsel %vm180_vm3, %v969_v20, %v968_v55  ;;  %v6440_v57 = vpop.permute.xlu0 %816  ;;  %v6489_v20 = vld [vmem:[%s10112_s0 + $0xac] sm:$0x1] }
 0x1eb   :  { %v972_v42 = vsel %vm183_vm4, %v971_v58, %v970_v50  ;;  %v900_v58 = vrot.slane %v6409_v56, 7  ;;  %v946_v31 = vrot.slane %v6440_v57, 4 }
 0x1ec   :  { %v974_v4 = vsel %vm186_vm5, %v973_v29, %v972_v42  ;;  %v1239_v42 = vrot.slane %v6489_v20, 3 }
 0x1ed   :  { %v976_v44 = vsel %vm189_vm6, %v975_v6, %v974_v4  ;;  %1162 = vperm.xlu0 %5431, %v6450_v63   ;;  %v6502_v4 = vld [vmem:[%s10112_s0 + $0x8c] sm:$0x1] }
 0x1ee   :  { %977 = vrot.lane.b32.xlu2 %v976_v44, %s5555_s19  ;;  %v1236_v44 = vsel %vm177_vm2, %v1235_v48, %v1234_v24 }
 0x1f2   :  { %937 = vrot.lane.b32.xlu1 %v936_v32, %s5554_s18  ;;  %v6455_v0 = vpop.permute.xlu0 %828  ;;  %v940_v32 = vrot.slane %v6425_v25, 7 }
 0x1f3   :  { %5429 = vset.pattern.permute.xlu1 %v5562_v36 }
 0x1f5   :  { %1174 = vperm.xlu0 %5431, %v6463_v8  }
 0x1f6   :  { %1074 = vperm.xlu2 %5428, %v1064_v43  }
 0x1fa   :  { %v733_v12 = vpop.permute.xlu0 %732 }
 0x1fb   :  { %v870_v55 = vrot.slane %v733_v12, 7 }
 0x1fd   :  { %5433 = vset.pattern.permute.xlu0 %v5562_v36  ;;  %v871_v14 = vsel %vm171_vm0, %v870_v55, %v6386_v40 }
 0x1fe   :  { %1086 = vperm.xlu2 %5428, %v6474_v11   ;;  %1078 = vperm.xlu0 %5433, %v1065_v60  }
 0x202   :  { %v692_v46 = vpop.permute.xlu1 %691  ;;  %v6483_v18 = vpop.permute.xlu0 %752 }
 0x203   :  { %v694_v23 = vsel %vm347_vm15, %v6258_v21, %v692_v46  ;;  %v6407_v21 = vpop.permute.xlu2 %759 }
 0x204   :  { %v696_v39 = vrot.slane %v694_v23, 1  ;;  %v697_v30 = vrot.slane %v694_v23, 2  ;;  %v698_v49 = vrot.slane %v694_v23, 3  ;;  %710 = vst [vmem:[#allocation2 + $0x1] sm:$0x1] %v694_v23  ;;  %v699_v5 = vrot.slane %v694_v23, 4 }
 0x205   :  { %v700_v22 = vrot.slane %v694_v23, 5  ;;  %v701_v26 = vrot.slane %v694_v23, 6  ;;  %v702_v9 = vrot.slane %v694_v23, 7  ;;  %v1237_v23 = vrot.slane %v6502_v4, 4 }
 0x206   :  { %711 = vst [vmem:[#allocation2 + $0x11] sm:$0x1] %v696_v39  ;;  %1094 = vperm.xlu2 %5428, %v6489_v20   ;;  %1098 = vperm.xlu0 %5433, %v6430_v28   ;;  %v901_v39 = vsel %vm171_vm0, %v900_v58, %v6407_v21 }
 0x207   :  { %712 = vst [vmem:[#allocation2 + $0x21] sm:$0x1] %v697_v30  ;;  %v1238_v40 = vsel %vm180_vm3, %v1237_v23, %v1236_v44 }
 0x208   :  { %713 = vst [vmem:[#allocation2 + $0x31] sm:$0x1] %v698_v49  ;;  %v6519_v60 = vsel %vm183_vm4, %v1239_v42, %v1238_v40 }
 0x209   :  { %714 = vst [vmem:[#allocation2 + $0x41] sm:$0x1] %v699_v5 }
 0x20a   :  { %715 = vst [vmem:[#allocation2 + $0x51] sm:$0x1] %v700_v22  ;;  %v6405_v15 = vpop.permute.xlu1 %736  ;;  %v846_v46 = vpop.permute.xlu0 %845  ;;  %v874_v22 = vrot.slane %v6392_v59, 5 }
 0x20b   :  { %716 = vst [vmem:[#allocation2 + $0x61] sm:$0x1] %v701_v26  ;;  %v6413_v37 = vpop.permute.xlu2 %768  ;;  %v872_v50 = vrot.slane %v6405_v15, 6  ;;  %v982_v45 = vrot.slane %v846_v46, 6 }
 0x20c   :  { %717 = vst [vmem:[#allocation2 + $0x71] sm:$0x1] %v702_v9  ;;  %v904_v15 = vrot.slane %v6413_v37, 5 }
 0x20d   :  { %v873_v30 = vsel %vm174_vm1, %v872_v50, %v871_v14  ;;  %v910_v50 = vrot.slane %v6417_v33, 2 }
 0x20e   :  { %v875_v21 = vsel %vm177_vm2, %v874_v22, %v873_v30  ;;  %5430 = vset.pattern.permute.xlu2 %v5561_v7 }
 0x20f   :  { %1105 = vperm.xlu2 %5430, %v1064_v43  }
 0x212   :  { %v6411_v13 = vpop.permute.xlu1 %744 }
 0x213   :  { %v6423_v41 = vpop.permute.xlu2 %774  ;;  %v876_v49 = vrot.slane %v6411_v13, 4 }
 0x214   :  { %v908_v16 = vrot.slane %v6423_v41, 3 }
 0x215   :  { %v877_v59 = vsel %vm180_vm3, %v876_v49, %v875_v21  ;;  %v1136_v21 = vld [vmem:[%s10112_s0 + $0x13] sm:$0x1] }
 0x217   :  { %1114 = vperm.xlu2 %5430, %v6474_v11  }
 0x21a   :  { %v6415_v2 = vpop.permute.xlu1 %756 }
 0x21b   :  { %v801_v61 = vpop.permute.xlu2 %800 }
 0x21c   :  { %v941_v56 = vsel %vm171_vm0, %v940_v32, %v801_v61  ;;  %v878_v61 = vrot.slane %v6403_v53, 3 }
 0x21e   :  { %v879_v24 = vsel %vm183_vm4, %v878_v61, %v877_v59  ;;  %v6580_v59 = vld [vmem:[%s10112_s0 + $0xec] sm:$0x1] }
 0x21f   :  { %1120 = vperm.xlu2 %5430, %v6489_v20   ;;  %v1138_v20 = vld [vmem:[%s10112_s0 + $0x53] sm:$0x1] }
 0x220   :  { %1191 = vperm.xlu0 %5433, %v1138_v20  }
 0x223   :  { %v766_v38 = vpop.permute.xlu1 %765  ;;  %v6445_v47 = vpop.permute.xlu2 %812 }
 0x224   :  { %v902_v29 = vrot.slane %v766_v38, 6  ;;  %v944_v13 = vrot.slane %v6445_v47, 5  ;;  %v880_v47 = vrot.slane %v6483_v18, 2 }
 0x226   :  { %v903_v26 = vsel %vm174_vm1, %v902_v29, %v901_v39  ;;  %v861_v29 = vpop.permute.xlu0 %860  ;;  %v881_v32 = vsel %vm186_vm5, %v880_v47, %v879_v24 }
 0x227   :  { %v905_v25 = vsel %vm177_vm2, %v904_v15, %v903_v26  ;;  %1146 = vperm.xlu2 %5430, %v1136_v21  }
 0x228   :  { %1206 = vperm.xlu0 %5433, %v6463_v8   ;;  %v1141_v8 = vld [vmem:[%s10112_s0 + $0xb3] sm:$0x1] }
 0x22b   :  { %v6433_v54 = vpop.permute.xlu1 %771  ;;  %v6465_v3 = vpop.permute.xlu2 %824 }
 0x22c   :  { %v906_v9 = vrot.slane %v6433_v54, 4  ;;  %v950_v44 = vrot.slane %v6465_v3, 2 }
 0x233   :  { %v6443_v35 = vpop.permute.xlu1 %780  ;;  %v843_v51 = vpop.permute.xlu2 %842 }
 0x234   :  { %v980_v5 = vrot.slane %v843_v51, 7  ;;  %v912_v41 = vrot.slane %v6443_v35, 1 }
 0x23b   :  { %v809_v34 = vpop.permute.xlu1 %808  ;;  %v852_v6 = vpop.permute.xlu2 %851 }
 0x23c   :  { %v942_v27 = vrot.slane %v809_v34, 6  ;;  %v907_v34 = vsel %vm180_vm3, %v906_v9, %v905_v25  ;;  %v986_v57 = vrot.slane %v852_v6, 4  ;;  %v1018_v9 = vpop.permute.xlu0 %1017  ;;  %v1213_v25 = vld [vmem:[%s10115_s3 + $0xac] sm:$0x1] }
 0x23d   :  { %v909_v55 = vsel %vm183_vm4, %v908_v16, %v907_v34  ;;  %v1215_v16 = vld [vmem:[%s10115_s3 + $0xec] sm:$0x1] }
 0x23e   :  { %v943_v38 = vsel %vm174_vm1, %v942_v27, %v941_v56  ;;  %v911_v14 = vsel %vm186_vm5, %v910_v50, %v909_v55  ;;  %v1128_v55 = vld [vmem:[%s10114_s2 + $0x13] sm:$0x1] }
 0x23f   :  { %v945_v12 = vsel %vm177_vm2, %v944_v13, %v943_v38  ;;  %v913_v33 = vsel %vm189_vm6, %v912_v41, %v911_v14  ;;  %v1139_v13 = vld [vmem:[%s10112_s0 + $0x73] sm:$0x1] }
 0x240   :  { %1158 = vperm.xlu2 %5430, %v1139_v13   ;;  %v1142_v38 = vld [vmem:[%s10112_s0 + $0xd3] sm:$0x1] }
 0x241   :  { %v1134_v14 = vld [vmem:[%s10114_s2 + $0xd3] sm:$0x1] }
 0x243   :  { %v6469_v10 = vpop.permute.xlu1 %820  ;;  %v858_v53 = vpop.permute.xlu2 %857 }
 0x244   :  { %v948_v51 = vrot.slane %v6469_v10, 3  ;;  %v947_v10 = vsel %vm180_vm3, %v946_v31, %v945_v12  ;;  %v990_v6 = vrot.slane %v858_v53, 2 }
 0x248   :  { %1170 = vperm.xlu2 %5430, %v1142_v38  }
 0x24b   :  { %v978_v30 = vpop.permute.xlu2 %977 }
 0x24c   :  { %v840_v19 = vpop.permute.xlu1 %839 }
 0x24d   :  { %v981_v54 = vsel %vm171_vm0, %v980_v5, %v840_v19  ;;  %v882_v19 = vrot.slane %v6415_v2, 1  ;;  %v949_v2 = vsel %vm183_vm4, %v948_v51, %v947_v10  ;;  %v992_v5 = vrot.slane %v861_v29, 1  ;;  %v1132_v29 = vld [vmem:[%s10114_s2 + $0x93] sm:$0x1] }
 0x24e   :  { %v983_v43 = vsel %vm174_vm1, %v982_v45, %v981_v54  ;;  %v951_v46 = vsel %vm186_vm5, %v950_v44, %v949_v2  ;;  %v1214_v54 = vld [vmem:[%s10115_s3 + $0xcc] sm:$0x1]  ;;  %v1129_v45 = vld [vmem:[%s10114_s2 + $0x33] sm:$0x1]  ;;  %v1357_v51 = vrot.slane %v1213_v25, 3  ;;  %v1275_v44 = vrot.slane %v1132_v29, 4 }
 0x24f   :  { %v883_v42 = vsel %vm189_vm6, %v882_v19, %v881_v32  ;;  %v1359_v24 = vrot.slane %v1214_v54, 2  ;;  %v1130_v19 = vld [vmem:[%s10114_s2 + $0x53] sm:$0x1] }
 0x250   :  { %v1021_v23 = vsel %vm1020_vm7, %v883_v42, %v6401_v52  ;;  %5435 = vset.pattern.permute.xlu2 %v5562_v36  ;;  %vm1366_vm7 = vcmask 97280  }
 0x251   :  { %v1023_v3 = vsel %vm1022_vm8, %v1021_v23, %v913_v33  ;;  %1188 = vperm.xlu2 %5435, %v6438_v62   ;;  %v1209_v62 = vld [vmem:[%s10115_s3 + $0x2c] sm:$0x1]  ;;  %vm1368_vm8 = vcmask 154624  }
 0x254   :  { %v849_v17 = vpop.permute.xlu1 %848 }
 0x255   :  { %v984_v37 = vrot.slane %v849_v17, 5  ;;  %v952_v17 = vrot.slane %v6455_v0, 1 }
 0x257   :  { %v985_v18 = vsel %vm177_vm2, %v984_v37, %v983_v43  ;;  %v953_v26 = vsel %vm189_vm6, %v952_v17, %v951_v46  ;;  %v1349_v37 = vrot.slane %v1209_v62, 7  ;;  %v1269_v43 = vrot.slane %v1129_v45, 7  ;;  %v1177_v17 = vld [vmem:[%s10113_s1 + $0x33] sm:$0x1] }
 0x258   :  { %v987_v35 = vsel %vm180_vm3, %v986_v57, %v985_v18  ;;  %v1279_v46 = vrot.slane %v1134_v14, 2 }
 0x259   :  { %1197 = vperm.xlu2 %5435, %v6450_v63   ;;  %v1211_v63 = vld [vmem:[%s10115_s3 + $0x6c] sm:$0x1]  ;;  %v1270_v10 = vsel %vm171_vm0, %v1269_v43, %v1128_v55 }
 0x25a   :  { %v1353_v34 = vrot.slane %v1211_v63, 5 }
 0x25c   :  { %v855_v48 = vpop.permute.xlu1 %854 }
 0x25d   :  { %v988_v58 = vrot.slane %v855_v48, 3  ;;  %v1361_v48 = vrot.slane %v1215_v16, 1 }
 0x25f   :  { %v989_v27 = vsel %vm183_vm4, %v988_v58, %v987_v35  ;;  %v1271_v58 = vrot.slane %v1130_v19, 6 }
 0x260   :  { %v991_v49 = vsel %vm186_vm5, %v990_v6, %v989_v27  ;;  %v1135_v6 = vld [vmem:[%s10114_s2 + $0xf3] sm:$0x1] }
 0x261   :  { %v993_v0 = vsel %vm189_vm6, %v992_v5, %v991_v49  ;;  %1203 = vperm.xlu2 %5435, %v1142_v38   ;;  %v1272_v2 = vsel %vm174_vm1, %v1271_v58, %v1270_v10  ;;  %v1179_v49 = vld [vmem:[%s10113_s1 + $0x73] sm:$0x1]  ;;  %v1411_v58 = vld [vmem:[%s10112_s0 + $0x2b] sm:$0x1] }
 0x264   :  { %v938_v39 = vpop.permute.xlu1 %937 }
 0x265   :  { %v1025_v22 = vsel %vm1024_vm9, %v1023_v3, %v938_v39  ;;  %v1178_v3 = vld [vmem:[%s10113_s1 + $0x53] sm:$0x1]  ;;  %v1309_v39 = vrot.slane %v1177_v17, 7  ;;  %vm1370_vm9 = vcmask 351232  }
 0x266   :  { %v1027_v11 = vsel %vm1026_vm10, %v1025_v22, %v953_v26  ;;  %v1311_v5 = vrot.slane %v1178_v3, 6  ;;  %v1281_v22 = vrot.slane %v1135_v6, 1  ;;  %v1180_v26 = vld [vmem:[%s10113_s1 + $0x93] sm:$0x1]  ;;  %v5564_v6 = vmov 11  }
 0x267   :  { %v1029_v40 = vsel %vm1028_vm11, %v1027_v11, %v978_v30  ;;  %v1176_v30 = vld [vmem:[%s10113_s1 + $0x13] sm:$0x1]  ;;  %v1410_v3 = vld [vmem:[%s10112_s0 + $0xb] sm:$0x1]  ;;  %vm1372_vm10 = vcmask 408576   ;;  %vm1374_vm11 = vcmask 605184  }
 0x268   :  { %v1031_v52 = vsel %vm1030_vm12, %v1029_v40, %v993_v0  ;;  %v1310_v11 = vsel %vm171_vm0, %v1309_v39, %v1176_v30  ;;  %v1181_v0 = vld [vmem:[%s10113_s1 + $0xb3] sm:$0x1]  ;;  %v6764_v39 = vld [vmem:[%s10112_s0 + $0xf4] sm:$0x1]  ;;  %vm1376_vm12 = vcmask 662528  }
 0x269   :  { %v1033_v15 = vsel %vm1032_vm13, %v1031_v52, %v1018_v9  ;;  %v1313_v9 = vrot.slane %v1179_v49, 5  ;;  %v1312_v52 = vsel %vm174_vm1, %v1311_v5, %v1310_v11  ;;  %v1317_v38 = vrot.slane %v1181_v0, 3  ;;  %5436 = vset.pattern.permute.xlu2 %v5564_v6 }
 0x26a   :  { %v6559_v56 = vsel %vm1034_vm14, %v1033_v15, %v883_v42  ;;  %v1133_v42 = vld [vmem:[%s10114_s2 + $0xb3] sm:$0x1]  ;;  %v1315_v15 = vrot.slane %v1180_v26, 4  ;;  %v6775_v26 = vld [vmem:[%s10112_s0 + $0x6b] sm:$0x1]  ;;  %vm1378_vm13 = vcmask 859136  }
 0x26b   :  { %1037 = vrot.lane.b32.xlu1 %v6559_v56, %s5558_s27  ;;  %v1277_v27 = vrot.slane %v1133_v42, 3  ;;  %vm1380_vm14 = vcmask 916480  }
 0x273   :  { %1082 = vperm.xlu1 %5429, %v6481_v1  }
 0x27b   :  { %1090 = vperm.xlu1 %5429, %v6502_v4  }
 0x283   :  { %1102 = vperm.xlu1 %5429, %v6580_v59  }
 0x28b   :  { %5432 = vset.pattern.permute.xlu1 %v5561_v7  ;;  %v1210_v7 = vld [vmem:[%s10115_s3 + $0x4c] sm:$0x1] }
 0x28c   :  { %1111 = vperm.xlu1 %5432, %v6481_v1   ;;  %v1212_v1 = vld [vmem:[%s10115_s3 + $0x8c] sm:$0x1]  ;;  %v1351_v61 = vrot.slane %v1210_v7, 6 }
 0x28d   :  { %v1355_v47 = vrot.slane %v1212_v1, 4 }
 0x294   :  { %1117 = vperm.xlu1 %5432, %v6502_v4   ;;  %v1208_v4 = vld [vmem:[%s10115_s3 + $0xc] sm:$0x1] }
 0x295   :  { %v1350_v12 = vsel %vm171_vm0, %v1349_v37, %v1208_v4  ;;  %v6687_v4 = vpop.permute.xlu2 %1074 }
 0x296   :  { %v1352_v31 = vsel %vm174_vm1, %v1351_v61, %v1350_v12  ;;  %v1241_v61 = vrot.slane %v6430_v28, 2 }
 0x297   :  { %v1354_v53 = vsel %vm177_vm2, %v1353_v34, %v1352_v31  ;;  %v1243_v34 = vrot.slane %v6580_v59, 1 }
 0x298   :  { %v1356_v41 = vsel %vm180_vm3, %v1355_v47, %v1354_v53  ;;  %v1242_v16 = vsel %vm186_vm5, %v1241_v61, %v6519_v60 }
 0x299   :  { %v1358_v18 = vsel %vm183_vm4, %v1357_v51, %v1356_v41  ;;  %v6702_v12 = vsel %vm189_vm6, %v1243_v34, %v1242_v16 }
 0x29a   :  { %v1360_v50 = vsel %vm186_vm5, %v1359_v24, %v1358_v18 }
 0x29b   :  { %v1362_v57 = vsel %vm189_vm6, %v1361_v48, %v1360_v50  ;;  %v6710_v48 = vpop.permute.xlu0 %1108  ;;  %v5563_v50 = vmov 20  }
 0x29c   :  { %1126 = vperm.xlu1 %5432, %v6580_v59   ;;  %1363 = vrot.lane.b32.xlu0 %v1362_v57, %s5553_s15 }
 0x29d   :  { %v6693_v37 = vpop.permute.xlu2 %1086  ;;  %5439 = vset.pattern.permute.xlu0 %v5563_v50 }
 0x2a4   :  { %1154 = vperm.xlu1 %5432, %v1138_v20   ;;  %v1314_v20 = vsel %vm177_vm2, %v1313_v9, %v1312_v52  ;;  %1454 = vperm.xlu0 %5439, %v1411_v58   ;;  %v6782_v9 = vld [vmem:[%s10112_s0 + $0x4b] sm:$0x1] }
 0x2a5   :  { %v6704_v51 = vpop.permute.xlu2 %1094  ;;  %v1579_v52 = vrot.slane %v6782_v9, 6 }
 0x2ac   :  { %1166 = vperm.xlu1 %5432, %v1141_v8  }
 0x2b4   :  { %5434 = vset.pattern.permute.xlu1 %v5562_v36  ;;  %v1131_v36 = vld [vmem:[%s10114_s2 + $0x73] sm:$0x1] }
 0x2b5   :  { %1185 = vperm.xlu1 %5434, %v1136_v21   ;;  %v1273_v32 = vrot.slane %v1131_v36, 5  ;;  %v1182_v21 = vld [vmem:[%s10113_s1 + $0xd3] sm:$0x1]  ;;  %v6718_v36 = vpop.permute.xlu0 %1123 }
 0x2b6   :  { %v1319_v62 = vrot.slane %v1182_v21, 2 }
 0x2b7   :  { %v1274_v35 = vsel %vm177_vm2, %v1273_v32, %v1272_v2  ;;  %v6731_v32 = vld [vmem:[%s10112_s0 + $0xcb] sm:$0x1] }
 0x2b8   :  { %v1276_v33 = vsel %vm180_vm3, %v1275_v44, %v1274_v35  ;;  %1469 = vperm.xlu0 %5439, %v6731_v32   ;;  %v6739_v44 = vld [vmem:[%s10112_s0 + $0x34] sm:$0x1] }
 0x2b9   :  { %v1278_v23 = vsel %vm183_vm4, %v1277_v27, %v1276_v33  ;;  %v6751_v33 = vld [vmem:[%s10112_s0 + $0x94] sm:$0x1] }
 0x2ba   :  { %v1280_v40 = vsel %vm186_vm5, %v1279_v46, %v1278_v23  ;;  %v1577_v23 = vrot.slane %v1411_v58, 7 }
 0x2bb   :  { %v1282_v63 = vsel %vm189_vm6, %v1281_v22, %v1280_v40 }
 0x2bc   :  { %v1578_v49 = vsel %vm171_vm0, %v1577_v23, %v1410_v3 }
 0x2bd   :  { %1194 = vperm.xlu1 %5434, %v1139_v13   ;;  %v1183_v13 = vld [vmem:[%s10113_s1 + $0xf3] sm:$0x1]  ;;  %v6726_v29 = vpop.permute.xlu0 %1150  ;;  %v1580_v21 = vsel %vm174_vm1, %v1579_v52, %v1578_v49 }
 0x2be   :  { %v1321_v7 = vrot.slane %v1183_v13, 1  ;;  %v1581_v13 = vrot.slane %v6775_v26, 5 }
 0x2c0   :  { %1496 = vperm.xlu0 %5439, %v6739_v44  }
 0x2c5   :  { %1200 = vperm.xlu1 %5434, %v1141_v8   ;;  %v1316_v8 = vsel %vm180_vm3, %v1315_v15, %v1314_v20  ;;  %v6741_v35 = vpop.permute.xlu0 %1162  ;;  %v6790_v15 = vld [vmem:[%s10112_s0 + $0xab] sm:$0x1] }
 0x2c6   :  { %v1318_v1 = vsel %vm183_vm4, %v1317_v38, %v1316_v8  ;;  %v1246_v38 = vrot.slane %v6710_v48, 7  ;;  %v1292_v52 = vrot.slane %v6741_v35, 4 }
 0x2c7   :  { %v1320_v25 = vsel %vm186_vm5, %v1319_v62, %v1318_v1  ;;  %v1585_v1 = vrot.slane %v6790_v15, 3 }
 0x2c8   :  { %v1322_v54 = vsel %vm189_vm6, %v1321_v7, %v1320_v25  ;;  %1508 = vperm.xlu0 %5439, %v6751_v33   ;;  %v6803_v25 = vld [vmem:[%s10112_s0 + $0x8b] sm:$0x1] }
 0x2c9   :  { %1323 = vrot.lane.b32.xlu2 %v1322_v54, %s5555_s19  ;;  %v1582_v54 = vsel %vm177_vm2, %v1581_v13, %v1580_v21 }
 0x2cd   :  { %1283 = vrot.lane.b32.xlu1 %v1282_v63, %s5554_s18  ;;  %v6756_v46 = vpop.permute.xlu0 %1174  ;;  %v1286_v63 = vrot.slane %v6726_v29, 7 }
 0x2ce   :  { %5437 = vset.pattern.permute.xlu1 %v5564_v6 }
 0x2d0   :  { %1520 = vperm.xlu0 %5439, %v6764_v39  }
 0x2d1   :  { %1420 = vperm.xlu2 %5436, %v1410_v3  }
 0x2d5   :  { %v1079_v22 = vpop.permute.xlu0 %1078 }
 0x2d6   :  { %v1216_v20 = vrot.slane %v1079_v22, 7 }
 0x2d8   :  { %5441 = vset.pattern.permute.xlu0 %v5564_v6  ;;  %v1217_v61 = vsel %vm171_vm0, %v1216_v20, %v6687_v4 }
 0x2d9   :  { %1432 = vperm.xlu2 %5436, %v6775_v26   ;;  %1424 = vperm.xlu0 %5441, %v1411_v58  }
 0x2dd   :  { %v1038_v45 = vpop.permute.xlu1 %1037  ;;  %v6784_v40 = vpop.permute.xlu0 %1098 }
 0x2de   :  { %v1040_v47 = vsel %vm347_vm15, %v6559_v56, %v1038_v45  ;;  %v6708_v56 = vpop.permute.xlu2 %1105 }
 0x2df   :  { %v1042_v31 = vrot.slane %v1040_v47, 1  ;;  %v1043_v24 = vrot.slane %v1040_v47, 2  ;;  %v1044_v19 = vrot.slane %v1040_v47, 3  ;;  %1056 = vst [vmem:[#allocation2 + $0x2] sm:$0x1] %v1040_v47  ;;  %v1045_v43 = vrot.slane %v1040_v47, 4 }
 0x2e0   :  { %v1046_v28 = vrot.slane %v1040_v47, 5  ;;  %v1047_v59 = vrot.slane %v1040_v47, 6  ;;  %v1048_v53 = vrot.slane %v1040_v47, 7  ;;  %v1583_v47 = vrot.slane %v6803_v25, 4 }
 0x2e1   :  { %1057 = vst [vmem:[#allocation2 + $0x12] sm:$0x1] %v1042_v31  ;;  %1440 = vperm.xlu2 %5436, %v6790_v15   ;;  %1444 = vperm.xlu0 %5441, %v6731_v32   ;;  %v1247_v31 = vsel %vm171_vm0, %v1246_v38, %v6708_v56 }
 0x2e2   :  { %1058 = vst [vmem:[#allocation2 + $0x22] sm:$0x1] %v1043_v24  ;;  %v1584_v4 = vsel %vm180_vm3, %v1583_v47, %v1582_v54 }
 0x2e3   :  { %1059 = vst [vmem:[#allocation2 + $0x32] sm:$0x1] %v1044_v19  ;;  %v6820_v58 = vsel %vm183_vm4, %v1585_v1, %v1584_v4 }
 0x2e4   :  { %1060 = vst [vmem:[#allocation2 + $0x42] sm:$0x1] %v1045_v43 }
 0x2e5   :  { %1061 = vst [vmem:[#allocation2 + $0x52] sm:$0x1] %v1046_v28  ;;  %v6706_v60 = vpop.permute.xlu1 %1082  ;;  %v1192_v45 = vpop.permute.xlu0 %1191  ;;  %v1220_v28 = vrot.slane %v6693_v37, 5 }
 0x2e6   :  { %1062 = vst [vmem:[#allocation2 + $0x62] sm:$0x1] %v1047_v59  ;;  %v6714_v41 = vpop.permute.xlu2 %1114  ;;  %v1218_v8 = vrot.slane %v6706_v60, 6  ;;  %v1328_v23 = vrot.slane %v1192_v45, 6 }
 0x2e7   :  { %1063 = vst [vmem:[#allocation2 + $0x72] sm:$0x1] %v1048_v53  ;;  %v1250_v60 = vrot.slane %v6714_v41, 5 }
 0x2e8   :  { %v1219_v24 = vsel %vm174_vm1, %v1218_v8, %v1217_v61  ;;  %v1256_v8 = vrot.slane %v6718_v36, 2 }
 0x2e9   :  { %v1221_v56 = vsel %vm177_vm2, %v1220_v28, %v1219_v24  ;;  %5438 = vset.pattern.permute.xlu2 %v5563_v50 }
 0x2ea   :  { %1451 = vperm.xlu2 %5438, %v1410_v3  }
 0x2ed   :  { %v6712_v55 = vpop.permute.xlu1 %1090 }
 0x2ee   :  { %v6724_v10 = vpop.permute.xlu2 %1120  ;;  %v1222_v19 = vrot.slane %v6712_v55, 4 }
 0x2ef   :  { %v1254_v49 = vrot.slane %v6724_v10, 3 }
 0x2f0   :  { %v1223_v37 = vsel %vm180_vm3, %v1222_v19, %v1221_v56  ;;  %v1482_v56 = vld [vmem:[%s10112_s0 + $0x14] sm:$0x1] }
 0x2f2   :  { %1460 = vperm.xlu2 %5438, %v6775_v26  }
 0x2f5   :  { %v6716_v18 = vpop.permute.xlu1 %1102 }
 0x2f6   :  { %v1147_v42 = vpop.permute.xlu2 %1146 }
 0x2f7   :  { %v1287_v48 = vsel %vm171_vm0, %v1286_v63, %v1147_v42  ;;  %v1224_v42 = vrot.slane %v6704_v51, 3 }
 0x2f9   :  { %v1225_v21 = vsel %vm183_vm4, %v1224_v42, %v1223_v37  ;;  %v6881_v37 = vld [vmem:[%s10112_s0 + $0xeb] sm:$0x1] }
 0x2fa   :  { %1466 = vperm.xlu2 %5438, %v6790_v15   ;;  %v1484_v15 = vld [vmem:[%s10112_s0 + $0x54] sm:$0x1] }
 0x2fb   :  { %1537 = vperm.xlu0 %5441, %v1484_v15  }
 0x2fe   :  { %v1112_v57 = vpop.permute.xlu1 %1111  ;;  %v6746_v27 = vpop.permute.xlu2 %1158 }
 0x2ff   :  { %v1248_v62 = vrot.slane %v1112_v57, 6  ;;  %v1290_v55 = vrot.slane %v6746_v27, 5  ;;  %v1226_v27 = vrot.slane %v6784_v40, 2 }
 0x301   :  { %v1249_v59 = vsel %vm174_vm1, %v1248_v62, %v1247_v31  ;;  %v1207_v62 = vpop.permute.xlu0 %1206  ;;  %v1227_v63 = vsel %vm186_vm5, %v1226_v27, %v1225_v21 }
 0x302   :  { %v1251_v29 = vsel %vm177_vm2, %v1250_v60, %v1249_v59  ;;  %1492 = vperm.xlu2 %5438, %v1482_v56  }
 0x303   :  { %1552 = vperm.xlu0 %5441, %v6764_v39   ;;  %v1487_v39 = vld [vmem:[%s10112_s0 + $0xb4] sm:$0x1] }
 0x306   :  { %v6734_v2 = vpop.permute.xlu1 %1117  ;;  %v6766_v30 = vpop.permute.xlu2 %1170 }
 0x307   :  { %v1252_v53 = vrot.slane %v6734_v2, 4  ;;  %v1296_v54 = vrot.slane %v6766_v30, 2 }
 0x30e   :  { %v6744_v14 = vpop.permute.xlu1 %1126  ;;  %v1189_v11 = vpop.permute.xlu2 %1188 }
 0x30f   :  { %v1326_v43 = vrot.slane %v1189_v11, 7  ;;  %v1258_v10 = vrot.slane %v6744_v14, 1 }
 0x316   :  { %v1155_v17 = vpop.permute.xlu1 %1154  ;;  %v1198_v7 = vpop.permute.xlu2 %1197 }
 0x317   :  { %v1288_v34 = vrot.slane %v1155_v17, 6  ;;  %v1253_v17 = vsel %vm180_vm3, %v1252_v53, %v1251_v29  ;;  %v1332_v35 = vrot.slane %v1198_v7, 4  ;;  %v1364_v53 = vpop.permute.xlu0 %1363  ;;  %v1559_v29 = vld [vmem:[%s10115_s3 + $0xab] sm:$0x1] }
 0x318   :  { %v1255_v20 = vsel %vm183_vm4, %v1254_v49, %v1253_v17  ;;  %v1561_v49 = vld [vmem:[%s10115_s3 + $0xeb] sm:$0x1] }
 0x319   :  { %v1289_v57 = vsel %vm174_vm1, %v1288_v34, %v1287_v48  ;;  %v1257_v61 = vsel %vm186_vm5, %v1256_v8, %v1255_v20  ;;  %v1474_v20 = vld [vmem:[%s10114_s2 + $0x14] sm:$0x1] }
 0x31a   :  { %v1291_v22 = vsel %vm177_vm2, %v1290_v55, %v1289_v57  ;;  %v1259_v36 = vsel %vm189_vm6, %v1258_v10, %v1257_v61  ;;  %v1485_v55 = vld [vmem:[%s10112_s0 + $0x74] sm:$0x1] }
 0x31b   :  { %1504 = vperm.xlu2 %5438, %v1485_v55   ;;  %v1488_v57 = vld [vmem:[%s10112_s0 + $0xd4] sm:$0x1] }
 0x31c   :  { %v1480_v61 = vld [vmem:[%s10114_s2 + $0xd4] sm:$0x1] }
 0x31e   :  { %v6770_v5 = vpop.permute.xlu1 %1166  ;;  %v1204_v51 = vpop.permute.xlu2 %1203 }
 0x31f   :  { %v1294_v11 = vrot.slane %v6770_v5, 3  ;;  %v1293_v5 = vsel %vm180_vm3, %v1292_v52, %v1291_v22  ;;  %v1336_v7 = vrot.slane %v1204_v51, 2 }
 0x323   :  { %1516 = vperm.xlu2 %5438, %v1488_v57  }
 0x326   :  { %v1324_v24 = vpop.permute.xlu2 %1323 }
 0x327   :  { %v1186_v0 = vpop.permute.xlu1 %1185 }
 0x328   :  { %v1327_v2 = vsel %vm171_vm0, %v1326_v43, %v1186_v0  ;;  %v1228_v0 = vrot.slane %v6716_v18, 1  ;;  %v1295_v18 = vsel %vm183_vm4, %v1294_v11, %v1293_v5  ;;  %v1338_v43 = vrot.slane %v1207_v62, 1  ;;  %v1478_v62 = vld [vmem:[%s10114_s2 + $0x94] sm:$0x1] }
 0x329   :  { %v1329_v3 = vsel %vm174_vm1, %v1328_v23, %v1327_v2  ;;  %v1297_v45 = vsel %vm186_vm5, %v1296_v54, %v1295_v18  ;;  %v1560_v2 = vld [vmem:[%s10115_s3 + $0xcb] sm:$0x1]  ;;  %v1475_v23 = vld [vmem:[%s10114_s2 + $0x34] sm:$0x1]  ;;  %v1703_v11 = vrot.slane %v1559_v29, 3  ;;  %v1621_v54 = vrot.slane %v1478_v62, 4 }
 0x32a   :  { %v1229_v1 = vsel %vm189_vm6, %v1228_v0, %v1227_v63  ;;  %v1705_v21 = vrot.slane %v1560_v2, 2  ;;  %v1476_v0 = vld [vmem:[%s10114_s2 + $0x54] sm:$0x1] }
 0x32b   :  { %v1367_v47 = vsel %vm1366_vm7, %v1229_v1, %v6702_v12  ;;  %5443 = vset.pattern.permute.xlu2 %v5564_v6  ;;  %vm1712_vm7 = vcmask 89088  }
 0x32c   :  { %v1369_v30 = vsel %vm1368_vm8, %v1367_v47, %v1259_v36  ;;  %1534 = vperm.xlu2 %5443, %v6739_v44   ;;  %v1555_v44 = vld [vmem:[%s10115_s3 + $0x2b] sm:$0x1]  ;;  %vm1714_vm8 = vcmask 162816  }
 0x32f   :  { %v1195_v16 = vpop.permute.xlu1 %1194 }
 0x330   :  { %v1330_v41 = vrot.slane %v1195_v16, 5  ;;  %v1298_v16 = vrot.slane %v6756_v46, 1 }
 0x332   :  { %v1331_v40 = vsel %vm177_vm2, %v1330_v41, %v1329_v3  ;;  %v1299_v59 = vsel %vm189_vm6, %v1298_v16, %v1297_v45  ;;  %v1695_v41 = vrot.slane %v1555_v44, 7  ;;  %v1615_v3 = vrot.slane %v1475_v23, 7  ;;  %v1523_v16 = vld [vmem:[%s10113_s1 + $0x34] sm:$0x1] }
 0x333   :  { %v1333_v14 = vsel %vm180_vm3, %v1332_v35, %v1331_v40  ;;  %v1625_v45 = vrot.slane %v1480_v61, 2 }
 0x334   :  { %1543 = vperm.xlu2 %5443, %v6751_v33   ;;  %v1557_v33 = vld [vmem:[%s10115_s3 + $0x6b] sm:$0x1]  ;;  %v1616_v5 = vsel %vm171_vm0, %v1615_v3, %v1474_v20 }
 0x335   :  { %v1699_v17 = vrot.slane %v1557_v33, 5 }
 0x337   :  { %v1201_v13 = vpop.permute.xlu1 %1200 }
 0x338   :  { %v1334_v38 = vrot.slane %v1201_v13, 3  ;;  %v1707_v13 = vrot.slane %v1561_v49, 1 }
 0x33a   :  { %v1335_v34 = vsel %vm183_vm4, %v1334_v38, %v1333_v14  ;;  %v1617_v38 = vrot.slane %v1476_v0, 6 }
 0x33b   :  { %v1337_v19 = vsel %vm186_vm5, %v1336_v7, %v1335_v34  ;;  %v1481_v7 = vld [vmem:[%s10114_s2 + $0xf4] sm:$0x1] }
 0x33c   :  { %v1339_v46 = vsel %vm189_vm6, %v1338_v43, %v1337_v19  ;;  %1549 = vperm.xlu2 %5443, %v1488_v57   ;;  %v1618_v18 = vsel %vm174_vm1, %v1617_v38, %v1616_v5  ;;  %v1525_v19 = vld [vmem:[%s10113_s1 + $0x74] sm:$0x1]  ;;  %v1757_v38 = vld [vmem:[%s10112_s0 + $0x2a] sm:$0x1] }
 0x33f   :  { %v1284_v31 = vpop.permute.xlu1 %1283 }
 0x340   :  { %v1371_v28 = vsel %vm1370_vm9, %v1369_v30, %v1284_v31  ;;  %v1524_v30 = vld [vmem:[%s10113_s1 + $0x54] sm:$0x1]  ;;  %v1655_v31 = vrot.slane %v1523_v16, 7  ;;  %vm1716_vm9 = vcmask 343040  }
 0x341   :  { %v1373_v26 = vsel %vm1372_vm10, %v1371_v28, %v1299_v59  ;;  %v1657_v43 = vrot.slane %v1524_v30, 6  ;;  %v1627_v28 = vrot.slane %v1481_v7, 1  ;;  %v1526_v59 = vld [vmem:[%s10113_s1 + $0x94] sm:$0x1]  ;;  %v5566_v7 = vmov 10  }
 0x342   :  { %v1375_v4 = vsel %vm1374_vm11, %v1373_v26, %v1324_v24  ;;  %v1522_v24 = vld [vmem:[%s10113_s1 + $0x14] sm:$0x1]  ;;  %v1756_v30 = vld [vmem:[%s10112_s0 + $0xa] sm:$0x1]  ;;  %vm1718_vm10 = vcmask 416768   ;;  %vm1720_vm11 = vcmask 596992  }
 0x343   :  { %v1377_v12 = vsel %vm1376_vm12, %v1375_v4, %v1339_v46  ;;  %v1656_v26 = vsel %vm171_vm0, %v1655_v31, %v1522_v24  ;;  %v1527_v46 = vld [vmem:[%s10113_s1 + $0xb4] sm:$0x1]  ;;  %v7065_v31 = vld [vmem:[%s10112_s0 + $0xf5] sm:$0x1]  ;;  %vm1722_vm12 = vcmask 670720  }
 0x344   :  { %v1379_v60 = vsel %vm1378_vm13, %v1377_v12, %v1364_v53  ;;  %v1659_v53 = vrot.slane %v1525_v19, 5  ;;  %v1658_v12 = vsel %vm174_vm1, %v1657_v43, %v1656_v26  ;;  %v1663_v57 = vrot.slane %v1527_v46, 3  ;;  %5444 = vset.pattern.permute.xlu2 %v5566_v7 }
 0x345   :  { %v6860_v48 = vsel %vm1380_vm14, %v1379_v60, %v1229_v1  ;;  %v1479_v1 = vld [vmem:[%s10114_s2 + $0xb4] sm:$0x1]  ;;  %v1661_v60 = vrot.slane %v1526_v59, 4  ;;  %v7076_v59 = vld [vmem:[%s10112_s0 + $0x6a] sm:$0x1]  ;;  %vm1724_vm13 = vcmask 850944  }
 0x346   :  { %1383 = vrot.lane.b32.xlu1 %v6860_v48, %s5558_s27  ;;  %v1623_v34 = vrot.slane %v1479_v1, 3  ;;  %vm1726_vm14 = vcmask 924672  }
 0x34e   :  { %1428 = vperm.xlu1 %5437, %v6782_v9  }
 0x356   :  { %1436 = vperm.xlu1 %5437, %v6803_v25  }
 0x35e   :  { %1448 = vperm.xlu1 %5437, %v6881_v37  }
 0x366   :  { %5440 = vset.pattern.permute.xlu1 %v5563_v50  ;;  %v1556_v50 = vld [vmem:[%s10115_s3 + $0x4b] sm:$0x1] }
 0x367   :  { %1457 = vperm.xlu1 %5440, %v6782_v9   ;;  %v1558_v9 = vld [vmem:[%s10115_s3 + $0x8b] sm:$0x1]  ;;  %v1697_v42 = vrot.slane %v1556_v50, 6 }
 0x368   :  { %v1701_v27 = vrot.slane %v1558_v9, 4 }
 0x36f   :  { %1463 = vperm.xlu1 %5440, %v6803_v25   ;;  %v1554_v25 = vld [vmem:[%s10115_s3 + $0xb] sm:$0x1] }
 0x370   :  { %v1696_v22 = vsel %vm171_vm0, %v1695_v41, %v1554_v25  ;;  %v6988_v25 = vpop.permute.xlu2 %1420 }
 0x371   :  { %v1698_v52 = vsel %vm174_vm1, %v1697_v42, %v1696_v22  ;;  %v1587_v42 = vrot.slane %v6731_v32, 2 }
 0x372   :  { %v1700_v51 = vsel %vm177_vm2, %v1699_v17, %v1698_v52  ;;  %v1589_v17 = vrot.slane %v6881_v37, 1 }
 0x373   :  { %v1702_v10 = vsel %vm180_vm3, %v1701_v27, %v1700_v51  ;;  %v1588_v49 = vsel %vm186_vm5, %v1587_v42, %v6820_v58 }
 0x374   :  { %v1704_v40 = vsel %vm183_vm4, %v1703_v11, %v1702_v10  ;;  %v7003_v22 = vsel %vm189_vm6, %v1589_v17, %v1588_v49 }
 0x375   :  { %v1706_v8 = vsel %vm186_vm5, %v1705_v21, %v1704_v40 }
 0x376   :  { %v1708_v35 = vsel %vm189_vm6, %v1707_v13, %v1706_v8  ;;  %v7011_v13 = vpop.permute.xlu0 %1454  ;;  %v5565_v8 = vmov 21  }
 0x377   :  { %1472 = vperm.xlu1 %5440, %v6881_v37   ;;  %1709 = vrot.lane.b32.xlu0 %v1708_v35, %s5553_s15 }
 0x378   :  { %v6994_v41 = vpop.permute.xlu2 %1432  ;;  %5447 = vset.pattern.permute.xlu0 %v5565_v8 }
 0x37f   :  { %1500 = vperm.xlu1 %5440, %v1484_v15   ;;  %v1660_v15 = vsel %vm177_vm2, %v1659_v53, %v1658_v12  ;;  %1800 = vperm.xlu0 %5447, %v1757_v38   ;;  %v7083_v53 = vld [vmem:[%s10112_s0 + $0x4a] sm:$0x1] }
 0x380   :  { %v7005_v11 = vpop.permute.xlu2 %1440  ;;  %v1925_v12 = vrot.slane %v7083_v53, 6 }
 0x387   :  { %1512 = vperm.xlu1 %5440, %v1487_v39  }
 0x38f   :  { %5442 = vset.pattern.permute.xlu1 %v5564_v6  ;;  %v1477_v6 = vld [vmem:[%s10114_s2 + $0x74] sm:$0x1] }
 0x390   :  { %1531 = vperm.xlu1 %5442, %v1482_v56   ;;  %v1619_v63 = vrot.slane %v1477_v6, 5  ;;  %v1528_v56 = vld [vmem:[%s10113_s1 + $0xd4] sm:$0x1]  ;;  %v7019_v6 = vpop.permute.xlu0 %1469 }
 0x391   :  { %v1665_v44 = vrot.slane %v1528_v56, 2 }
 0x392   :  { %v1620_v14 = vsel %vm177_vm2, %v1619_v63, %v1618_v18  ;;  %v7032_v63 = vld [vmem:[%s10112_s0 + $0xca] sm:$0x1] }
 0x393   :  { %v1622_v36 = vsel %vm180_vm3, %v1621_v54, %v1620_v14  ;;  %1815 = vperm.xlu0 %5447, %v7032_v63   ;;  %v7040_v54 = vld [vmem:[%s10112_s0 + $0x35] sm:$0x1] }
 0x394   :  { %v1624_v47 = vsel %vm183_vm4, %v1623_v34, %v1622_v36  ;;  %v7052_v36 = vld [vmem:[%s10112_s0 + $0x95] sm:$0x1] }
 0x395   :  { %v1626_v4 = vsel %vm186_vm5, %v1625_v45, %v1624_v47  ;;  %v1923_v47 = vrot.slane %v1757_v38, 7 }
 0x396   :  { %v1628_v33 = vsel %vm189_vm6, %v1627_v28, %v1626_v4 }
 0x397   :  { %v1924_v19 = vsel %vm171_vm0, %v1923_v47, %v1756_v30 }
 0x398   :  { %1540 = vperm.xlu1 %5442, %v1485_v55   ;;  %v1529_v55 = vld [vmem:[%s10113_s1 + $0xf4] sm:$0x1]  ;;  %v7027_v62 = vpop.permute.xlu0 %1496  ;;  %v1926_v56 = vsel %vm174_vm1, %v1925_v12, %v1924_v19 }
 0x399   :  { %v1667_v50 = vrot.slane %v1529_v55, 1  ;;  %v1927_v55 = vrot.slane %v7076_v59, 5 }
 0x39b   :  { %1842 = vperm.xlu0 %5447, %v7040_v54  }
 0x3a0   :  { %1546 = vperm.xlu1 %5442, %v1487_v39   ;;  %v1662_v39 = vsel %vm180_vm3, %v1661_v60, %v1660_v15  ;;  %v7042_v14 = vpop.permute.xlu0 %1508  ;;  %v7091_v60 = vld [vmem:[%s10112_s0 + $0xaa] sm:$0x1] }
 0x3a1   :  { %v1664_v9 = vsel %vm183_vm4, %v1663_v57, %v1662_v39  ;;  %v1592_v57 = vrot.slane %v7011_v13, 7  ;;  %v1638_v12 = vrot.slane %v7042_v14, 4 }
 0x3a2   :  { %v1666_v29 = vsel %vm186_vm5, %v1665_v44, %v1664_v9  ;;  %v1931_v9 = vrot.slane %v7091_v60, 3 }
 0x3a3   :  { %v1668_v2 = vsel %vm189_vm6, %v1667_v50, %v1666_v29  ;;  %1854 = vperm.xlu0 %5447, %v7052_v36   ;;  %v7104_v29 = vld [vmem:[%s10112_s0 + $0x8a] sm:$0x1] }
 0x3a4   :  { %1669 = vrot.lane.b32.xlu2 %v1668_v2, %s5555_s19  ;;  %v1928_v2 = vsel %vm177_vm2, %v1927_v55, %v1926_v56 }
 0x3a8   :  { %1629 = vrot.lane.b32.xlu1 %v1628_v33, %s5554_s18  ;;  %v7057_v45 = vpop.permute.xlu0 %1520  ;;  %v1632_v33 = vrot.slane %v7027_v62, 7 }
 0x3a9   :  { %5445 = vset.pattern.permute.xlu1 %v5566_v7 }
 0x3ab   :  { %1866 = vperm.xlu0 %5447, %v7065_v31  }
 0x3ac   :  { %1766 = vperm.xlu2 %5444, %v1756_v30  }
 0x3b0   :  { %v1425_v28 = vpop.permute.xlu0 %1424 }
 0x3b1   :  { %v1562_v15 = vrot.slane %v1425_v28, 7 }
 0x3b3   :  { %5449 = vset.pattern.permute.xlu0 %v5566_v7  ;;  %v1563_v42 = vsel %vm171_vm0, %v1562_v15, %v6988_v25 }
 0x3b4   :  { %1778 = vperm.xlu2 %5444, %v7076_v59   ;;  %1770 = vperm.xlu0 %5449, %v1757_v38  }
 0x3b8   :  { %v1384_v23 = vpop.permute.xlu1 %1383  ;;  %v7085_v4 = vpop.permute.xlu0 %1444 }
 0x3b9   :  { %v1386_v27 = vsel %vm347_vm15, %v6860_v48, %v1384_v23  ;;  %v7009_v48 = vpop.permute.xlu2 %1451 }
 0x3ba   :  { %v1388_v52 = vrot.slane %v1386_v27, 1  ;;  %v1389_v21 = vrot.slane %v1386_v27, 2  ;;  %v1390_v0 = vrot.slane %v1386_v27, 3  ;;  %1402 = vst [vmem:[#allocation2 + $0x3] sm:$0x1] %v1386_v27  ;;  %v1391_v3 = vrot.slane %v1386_v27, 4 }
 0x3bb   :  { %v1392_v32 = vrot.slane %v1386_v27, 5  ;;  %v1393_v37 = vrot.slane %v1386_v27, 6  ;;  %v1394_v51 = vrot.slane %v1386_v27, 7  ;;  %v1929_v27 = vrot.slane %v7104_v29, 4 }
 0x3bc   :  { %1403 = vst [vmem:[#allocation2 + $0x13] sm:$0x1] %v1388_v52  ;;  %1786 = vperm.xlu2 %5444, %v7091_v60   ;;  %1790 = vperm.xlu0 %5449, %v7032_v63   ;;  %v1593_v52 = vsel %vm171_vm0, %v1592_v57, %v7009_v48 }
 0x3bd   :  { %1404 = vst [vmem:[#allocation2 + $0x23] sm:$0x1] %v1389_v21  ;;  %v1930_v25 = vsel %vm180_vm3, %v1929_v27, %v1928_v2 }
 0x3be   :  { %1405 = vst [vmem:[#allocation2 + $0x33] sm:$0x1] %v1390_v0  ;;  %v7121_v38 = vsel %vm183_vm4, %v1931_v9, %v1930_v25 }
 0x3bf   :  { %1406 = vst [vmem:[#allocation2 + $0x43] sm:$0x1] %v1391_v3 }
 0x3c0   :  { %1407 = vst [vmem:[#allocation2 + $0x53] sm:$0x1] %v1392_v32  ;;  %v7007_v58 = vpop.permute.xlu1 %1428  ;;  %v1538_v23 = vpop.permute.xlu0 %1537  ;;  %v1566_v32 = vrot.slane %v6994_v41, 5 }
 0x3c1   :  { %1408 = vst [vmem:[#allocation2 + $0x63] sm:$0x1] %v1393_v37  ;;  %v7015_v10 = vpop.permute.xlu2 %1460  ;;  %v1564_v39 = vrot.slane %v7007_v58, 6  ;;  %v1674_v47 = vrot.slane %v1538_v23, 6 }
 0x3c2   :  { %1409 = vst [vmem:[#allocation2 + $0x73] sm:$0x1] %v1394_v51  ;;  %v1596_v58 = vrot.slane %v7015_v10, 5 }
 0x3c3   :  { %v1565_v21 = vsel %vm174_vm1, %v1564_v39, %v1563_v42  ;;  %v1602_v39 = vrot.slane %v7019_v6, 2 }
 0x3c4   :  { %v1567_v48 = vsel %vm177_vm2, %v1566_v32, %v1565_v21  ;;  %5446 = vset.pattern.permute.xlu2 %v5565_v8 }
 0x3c5   :  { %1797 = vperm.xlu2 %5446, %v1756_v30  }
 0x3c8   :  { %v7013_v20 = vpop.permute.xlu1 %1436 }
 0x3c9   :  { %v7025_v5 = vpop.permute.xlu2 %1466  ;;  %v1568_v0 = vrot.slane %v7013_v20, 4 }
 0x3ca   :  { %v1600_v19 = vrot.slane %v7025_v5, 3 }
 0x3cb   :  { %v1569_v41 = vsel %vm180_vm3, %v1568_v0, %v1567_v48  ;;  %v1828_v48 = vld [vmem:[%s10112_s0 + $0x15] sm:$0x1] }
 0x3cd   :  { %1806 = vperm.xlu2 %5446, %v7076_v59  }
 0x3d0   :  { %v7017_v40 = vpop.permute.xlu1 %1448 }
 0x3d1   :  { %v1493_v1 = vpop.permute.xlu2 %1492 }
 0x3d2   :  { %v1633_v13 = vsel %vm171_vm0, %v1632_v33, %v1493_v1  ;;  %v1570_v1 = vrot.slane %v7005_v11, 3 }
 0x3d4   :  { %v1571_v56 = vsel %vm183_vm4, %v1570_v1, %v1569_v41  ;;  %v7182_v41 = vld [vmem:[%s10112_s0 + $0xea] sm:$0x1] }
 0x3d5   :  { %1812 = vperm.xlu2 %5446, %v7091_v60   ;;  %v1830_v60 = vld [vmem:[%s10112_s0 + $0x55] sm:$0x1] }
 0x3d6   :  { %1883 = vperm.xlu0 %5449, %v1830_v60  }
 0x3d9   :  { %v1458_v35 = vpop.permute.xlu1 %1457  ;;  %v7047_v34 = vpop.permute.xlu2 %1504 }
 0x3da   :  { %v1594_v44 = vrot.slane %v1458_v35, 6  ;;  %v1636_v20 = vrot.slane %v7047_v34, 5  ;;  %v1572_v34 = vrot.slane %v7085_v4, 2 }
 0x3dc   :  { %v1595_v37 = vsel %vm174_vm1, %v1594_v44, %v1593_v52  ;;  %v1553_v44 = vpop.permute.xlu0 %1552  ;;  %v1573_v33 = vsel %vm186_vm5, %v1572_v34, %v1571_v56 }
 0x3dd   :  { %v1597_v62 = vsel %vm177_vm2, %v1596_v58, %v1595_v37  ;;  %1838 = vperm.xlu2 %5446, %v1828_v48  }
 0x3de   :  { %1898 = vperm.xlu0 %5449, %v7065_v31   ;;  %v1833_v31 = vld [vmem:[%s10112_s0 + $0xb5] sm:$0x1] }
 0x3e1   :  { %v7035_v18 = vpop.permute.xlu1 %1463  ;;  %v7067_v24 = vpop.permute.xlu2 %1516 }
 0x3e2   :  { %v1598_v51 = vrot.slane %v7035_v18, 4  ;;  %v1642_v2 = vrot.slane %v7067_v24, 2 }
 0x3e9   :  { %v7045_v61 = vpop.permute.xlu1 %1472  ;;  %v1535_v26 = vpop.permute.xlu2 %1534 }
 0x3ea   :  { %v1672_v3 = vrot.slane %v1535_v26, 7  ;;  %v1604_v5 = vrot.slane %v7045_v61, 1 }
 0x3f1   :  { %v1501_v16 = vpop.permute.xlu1 %1500  ;;  %v1544_v50 = vpop.permute.xlu2 %1543 }
 0x3f2   :  { %v1634_v17 = vrot.slane %v1501_v16, 6  ;;  %v1599_v16 = vsel %vm180_vm3, %v1598_v51, %v1597_v62  ;;  %v1678_v14 = vrot.slane %v1544_v50, 4  ;;  %v1710_v51 = vpop.permute.xlu0 %1709  ;;  %v1905_v62 = vld [vmem:[%s10115_s3 + $0xaa] sm:$0x1] }
 0x3f3   :  { %v1601_v15 = vsel %vm183_vm4, %v1600_v19, %v1599_v16  ;;  %v1907_v19 = vld [vmem:[%s10115_s3 + $0xea] sm:$0x1] }
 0x3f4   :  { %v1635_v35 = vsel %vm174_vm1, %v1634_v17, %v1633_v13  ;;  %v1603_v42 = vsel %vm186_vm5, %v1602_v39, %v1601_v15  ;;  %v1820_v15 = vld [vmem:[%s10114_s2 + $0x15] sm:$0x1] }
 0x3f5   :  { %v1637_v28 = vsel %vm177_vm2, %v1636_v20, %v1635_v35  ;;  %v1605_v6 = vsel %vm189_vm6, %v1604_v5, %v1603_v42  ;;  %v1831_v20 = vld [vmem:[%s10112_s0 + $0x75] sm:$0x1] }
 0x3f6   :  { %1850 = vperm.xlu2 %5446, %v1831_v20   ;;  %v1834_v35 = vld [vmem:[%s10112_s0 + $0xd5] sm:$0x1] }
 0x3f7   :  { %v1826_v42 = vld [vmem:[%s10114_s2 + $0xd5] sm:$0x1] }
 0x3f9   :  { %v7071_v43 = vpop.permute.xlu1 %1512  ;;  %v1550_v11 = vpop.permute.xlu2 %1549 }
 0x3fa   :  { %v1640_v26 = vrot.slane %v7071_v43, 3  ;;  %v1639_v43 = vsel %vm180_vm3, %v1638_v12, %v1637_v28  ;;  %v1682_v50 = vrot.slane %v1550_v11, 2 }
 0x3fe   :  { %1862 = vperm.xlu2 %5446, %v1834_v35  }
 0x401   :  { %v1670_v21 = vpop.permute.xlu2 %1669 }
 0x402   :  { %v1532_v46 = vpop.permute.xlu1 %1531 }
 0x403   :  { %v1673_v18 = vsel %vm171_vm0, %v1672_v3, %v1532_v46  ;;  %v1574_v46 = vrot.slane %v7017_v40, 1  ;;  %v1641_v40 = vsel %vm183_vm4, %v1640_v26, %v1639_v43  ;;  %v1684_v3 = vrot.slane %v1553_v44, 1  ;;  %v1824_v44 = vld [vmem:[%s10114_s2 + $0x95] sm:$0x1] }
 0x404   :  { %v1675_v30 = vsel %vm174_vm1, %v1674_v47, %v1673_v18  ;;  %v1643_v23 = vsel %vm186_vm5, %v1642_v2, %v1641_v40  ;;  %v1906_v18 = vld [vmem:[%s10115_s3 + $0xca] sm:$0x1]  ;;  %v1821_v47 = vld [vmem:[%s10114_s2 + $0x35] sm:$0x1]  ;;  %v2049_v26 = vrot.slane %v1905_v62, 3  ;;  %v1967_v2 = vrot.slane %v1824_v44, 4 }
 0x405   :  { %v1575_v9 = vsel %vm189_vm6, %v1574_v46, %v1573_v33  ;;  %v2051_v56 = vrot.slane %v1906_v18, 2  ;;  %v1822_v46 = vld [vmem:[%s10114_s2 + $0x55] sm:$0x1] }
 0x406   :  { %v1713_v27 = vsel %vm1712_vm7, %v1575_v9, %v7003_v22  ;;  %5451 = vset.pattern.permute.xlu2 %v5566_v7  ;;  %vm2058_vm7 = vcmask 80896  }
 0x407   :  { %v1715_v24 = vsel %vm1714_vm8, %v1713_v27, %v1605_v6  ;;  %1880 = vperm.xlu2 %5451, %v7040_v54   ;;  %v1901_v54 = vld [vmem:[%s10115_s3 + $0x2a] sm:$0x1]  ;;  %vm2060_vm8 = vcmask 171008  }
 0x40a   :  { %v1541_v49 = vpop.permute.xlu1 %1540 }
 0x40b   :  { %v1676_v10 = vrot.slane %v1541_v49, 5  ;;  %v1644_v49 = vrot.slane %v7057_v45, 1 }
 0x40d   :  { %v1677_v4 = vsel %vm177_vm2, %v1676_v10, %v1675_v30  ;;  %v1645_v37 = vsel %vm189_vm6, %v1644_v49, %v1643_v23  ;;  %v2041_v10 = vrot.slane %v1901_v54, 7  ;;  %v1961_v30 = vrot.slane %v1821_v47, 7  ;;  %v1869_v49 = vld [vmem:[%s10113_s1 + $0x35] sm:$0x1] }
 0x40e   :  { %v1679_v61 = vsel %vm180_vm3, %v1678_v14, %v1677_v4  ;;  %v1971_v23 = vrot.slane %v1826_v42, 2 }
 0x40f   :  { %1889 = vperm.xlu2 %5451, %v7052_v36   ;;  %v1903_v36 = vld [vmem:[%s10115_s3 + $0x6a] sm:$0x1]  ;;  %v1962_v43 = vsel %vm171_vm0, %v1961_v30, %v1820_v15 }
 0x410   :  { %v2045_v16 = vrot.slane %v1903_v36, 5 }
 0x412   :  { %v1547_v55 = vpop.permute.xlu1 %1546 }
 0x413   :  { %v1680_v57 = vrot.slane %v1547_v55, 3  ;;  %v2053_v55 = vrot.slane %v1907_v19, 1 }
 0x415   :  { %v1681_v17 = vsel %vm183_vm4, %v1680_v57, %v1679_v61  ;;  %v1963_v57 = vrot.slane %v1822_v46, 6 }
 0x416   :  { %v1683_v0 = vsel %vm186_vm5, %v1682_v50, %v1681_v17  ;;  %v1827_v50 = vld [vmem:[%s10114_s2 + $0xf5] sm:$0x1] }
 0x417   :  { %v1685_v45 = vsel %vm189_vm6, %v1684_v3, %v1683_v0  ;;  %1895 = vperm.xlu2 %5451, %v1834_v35   ;;  %v1964_v40 = vsel %vm174_vm1, %v1963_v57, %v1962_v43  ;;  %v1871_v0 = vld [vmem:[%s10113_s1 + $0x75] sm:$0x1]  ;;  %v2103_v57 = vld [vmem:[%s10112_s0 + $0x29] sm:$0x1] }
 0x41a   :  { %v1630_v52 = vpop.permute.xlu1 %1629 }
 0x41b   :  { %v1717_v32 = vsel %vm1716_vm9, %v1715_v24, %v1630_v52  ;;  %v1870_v24 = vld [vmem:[%s10113_s1 + $0x55] sm:$0x1]  ;;  %v2001_v52 = vrot.slane %v1869_v49, 7  ;;  %vm2062_vm9 = vcmask 334848  }
 0x41c   :  { %v1719_v59 = vsel %vm1718_vm10, %v1717_v32, %v1645_v37  ;;  %v2003_v3 = vrot.slane %v1870_v24, 6  ;;  %v1973_v32 = vrot.slane %v1827_v50, 1  ;;  %v1872_v37 = vld [vmem:[%s10113_s1 + $0x95] sm:$0x1]  ;;  %v5568_v50 = vmov 9  }
 0x41d   :  { %v1721_v25 = vsel %vm1720_vm11, %v1719_v59, %v1670_v21  ;;  %v1868_v21 = vld [vmem:[%s10113_s1 + $0x15] sm:$0x1]  ;;  %v2102_v24 = vld [vmem:[%s10112_s0 + $0x9] sm:$0x1]  ;;  %vm2064_vm10 = vcmask 424960   ;;  %vm2066_vm11 = vcmask 588800  }
 0x41e   :  { %v1723_v22 = vsel %vm1722_vm12, %v1721_v25, %v1685_v45  ;;  %v2002_v59 = vsel %vm171_vm0, %v2001_v52, %v1868_v21  ;;  %v1873_v45 = vld [vmem:[%s10113_s1 + $0xb5] sm:$0x1]  ;;  %v7366_v52 = vld [vmem:[%s10112_s0 + $0xf6] sm:$0x1]  ;;  %vm2068_vm12 = vcmask 678912  }
 0x41f   :  { %v1725_v58 = vsel %vm1724_vm13, %v1723_v22, %v1710_v51  ;;  %v2005_v51 = vrot.slane %v1871_v0, 5  ;;  %v2004_v22 = vsel %vm174_vm1, %v2003_v3, %v2002_v59  ;;  %v2009_v35 = vrot.slane %v1873_v45, 3  ;;  %5452 = vset.pattern.permute.xlu2 %v5568_v50 }
 0x420   :  { %v7161_v13 = vsel %vm1726_vm14, %v1725_v58, %v1575_v9  ;;  %v1825_v9 = vld [vmem:[%s10114_s2 + $0xb5] sm:$0x1]  ;;  %v2007_v58 = vrot.slane %v1872_v37, 4  ;;  %v7377_v37 = vld [vmem:[%s10112_s0 + $0x69] sm:$0x1]  ;;  %vm2070_vm13 = vcmask 842752  }
 0x421   :  { %1729 = vrot.lane.b32.xlu1 %v7161_v13, %s5558_s27  ;;  %v1969_v17 = vrot.slane %v1825_v9, 3  ;;  %vm2072_vm14 = vcmask 932864  }
 0x429   :  { %1774 = vperm.xlu1 %5445, %v7083_v53  }
 0x431   :  { %1782 = vperm.xlu1 %5445, %v7104_v29  }
 0x439   :  { %1794 = vperm.xlu1 %5445, %v7182_v41  }
 0x441   :  { %5448 = vset.pattern.permute.xlu1 %v5565_v8  ;;  %v1902_v8 = vld [vmem:[%s10115_s3 + $0x4a] sm:$0x1] }
 0x442   :  { %1803 = vperm.xlu1 %5448, %v7083_v53   ;;  %v1904_v53 = vld [vmem:[%s10115_s3 + $0x8a] sm:$0x1]  ;;  %v2043_v1 = vrot.slane %v1902_v8, 6 }
 0x443   :  { %v2047_v34 = vrot.slane %v1904_v53, 4 }
 0x44a   :  { %1809 = vperm.xlu1 %5448, %v7104_v29   ;;  %v1900_v29 = vld [vmem:[%s10115_s3 + $0xa] sm:$0x1] }
 0x44b   :  { %v2042_v28 = vsel %vm171_vm0, %v2041_v10, %v1900_v29  ;;  %v7289_v29 = vpop.permute.xlu2 %1766 }
 0x44c   :  { %v2044_v12 = vsel %vm174_vm1, %v2043_v1, %v2042_v28  ;;  %v1933_v1 = vrot.slane %v7032_v63, 2 }
 0x44d   :  { %v2046_v11 = vsel %vm177_vm2, %v2045_v16, %v2044_v12  ;;  %v1935_v16 = vrot.slane %v7182_v41, 1 }
 0x44e   :  { %v2048_v5 = vsel %vm180_vm3, %v2047_v34, %v2046_v11  ;;  %v1934_v19 = vsel %vm186_vm5, %v1933_v1, %v7121_v38 }
 0x44f   :  { %v2050_v4 = vsel %vm183_vm4, %v2049_v26, %v2048_v5  ;;  %v7304_v28 = vsel %vm189_vm6, %v1935_v16, %v1934_v19 }
 0x450   :  { %v2052_v39 = vsel %vm186_vm5, %v2051_v56, %v2050_v4 }
 0x451   :  { %v2054_v14 = vsel %vm189_vm6, %v2053_v55, %v2052_v39  ;;  %v7312_v55 = vpop.permute.xlu0 %1800  ;;  %v5567_v39 = vmov 22  }
 0x452   :  { %1818 = vperm.xlu1 %5448, %v7182_v41   ;;  %2055 = vrot.lane.b32.xlu0 %v2054_v14, %s5553_s15 }
 0x453   :  { %v7295_v10 = vpop.permute.xlu2 %1778  ;;  %5455 = vset.pattern.permute.xlu0 %v5567_v39 }
 0x45a   :  { %1846 = vperm.xlu1 %5448, %v1830_v60   ;;  %v2006_v60 = vsel %vm177_vm2, %v2005_v51, %v2004_v22  ;;  %2146 = vperm.xlu0 %5455, %v2103_v57   ;;  %v7384_v51 = vld [vmem:[%s10112_s0 + $0x49] sm:$0x1] }
 0x45b   :  { %v7306_v26 = vpop.permute.xlu2 %1786  ;;  %v2271_v22 = vrot.slane %v7384_v51, 6 }
 0x462   :  { %1858 = vperm.xlu1 %5448, %v1833_v31  }
 0x46a   :  { %5450 = vset.pattern.permute.xlu1 %v5566_v7  ;;  %v1823_v7 = vld [vmem:[%s10114_s2 + $0x75] sm:$0x1] }
 0x46b   :  { %1877 = vperm.xlu1 %5450, %v1828_v48   ;;  %v1965_v33 = vrot.slane %v1823_v7, 5  ;;  %v1874_v48 = vld [vmem:[%s10113_s1 + $0xd5] sm:$0x1]  ;;  %v7320_v7 = vpop.permute.xlu0 %1815 }
 0x46c   :  { %v2011_v54 = vrot.slane %v1874_v48, 2 }
 0x46d   :  { %v1966_v61 = vsel %vm177_vm2, %v1965_v33, %v1964_v40  ;;  %v7333_v33 = vld [vmem:[%s10112_s0 + $0xc9] sm:$0x1] }
 0x46e   :  { %v1968_v6 = vsel %vm180_vm3, %v1967_v2, %v1966_v61  ;;  %2161 = vperm.xlu0 %5455, %v7333_v33   ;;  %v7341_v2 = vld [vmem:[%s10112_s0 + $0x36] sm:$0x1] }
 0x46f   :  { %v1970_v27 = vsel %vm183_vm4, %v1969_v17, %v1968_v6  ;;  %v7353_v6 = vld [vmem:[%s10112_s0 + $0x96] sm:$0x1] }
 0x470   :  { %v1972_v25 = vsel %vm186_vm5, %v1971_v23, %v1970_v27  ;;  %v2269_v27 = vrot.slane %v2103_v57, 7 }
 0x471   :  { %v1974_v36 = vsel %vm189_vm6, %v1973_v32, %v1972_v25 }
 0x472   :  { %v2270_v0 = vsel %vm171_vm0, %v2269_v27, %v2102_v24 }
 0x473   :  { %1886 = vperm.xlu1 %5450, %v1831_v20   ;;  %v1875_v20 = vld [vmem:[%s10113_s1 + $0xf5] sm:$0x1]  ;;  %v7328_v44 = vpop.permute.xlu0 %1842  ;;  %v2272_v48 = vsel %vm174_vm1, %v2271_v22, %v2270_v0 }
 0x474   :  { %v2013_v8 = vrot.slane %v1875_v20, 1  ;;  %v2273_v20 = vrot.slane %v7377_v37, 5 }
 0x476   :  { %2188 = vperm.xlu0 %5455, %v7341_v2  }
 0x47b   :  { %1892 = vperm.xlu1 %5450, %v1833_v31   ;;  %v2008_v31 = vsel %vm180_vm3, %v2007_v58, %v2006_v60  ;;  %v7343_v61 = vpop.permute.xlu0 %1854  ;;  %v7392_v58 = vld [vmem:[%s10112_s0 + $0xa9] sm:$0x1] }
 0x47c   :  { %v2010_v53 = vsel %vm183_vm4, %v2009_v35, %v2008_v31  ;;  %v1938_v35 = vrot.slane %v7312_v55, 7  ;;  %v1984_v22 = vrot.slane %v7343_v61, 4 }
 0x47d   :  { %v2012_v62 = vsel %vm186_vm5, %v2011_v54, %v2010_v53  ;;  %v2277_v53 = vrot.slane %v7392_v58, 3 }
 0x47e   :  { %v2014_v18 = vsel %vm189_vm6, %v2013_v8, %v2012_v62  ;;  %2200 = vperm.xlu0 %5455, %v7353_v6   ;;  %v7405_v62 = vld [vmem:[%s10112_s0 + $0x89] sm:$0x1] }
 0x47f   :  { %2015 = vrot.lane.b32.xlu2 %v2014_v18, %s5555_s19  ;;  %v2274_v18 = vsel %vm177_vm2, %v2273_v20, %v2272_v48 }
 0x483   :  { %1975 = vrot.lane.b32.xlu1 %v1974_v36, %s5554_s18  ;;  %v7358_v23 = vpop.permute.xlu0 %1866  ;;  %v1978_v36 = vrot.slane %v7328_v44, 7 }
 0x484   :  { %5453 = vset.pattern.permute.xlu1 %v5568_v50 }
 0x486   :  { %2212 = vperm.xlu0 %5455, %v7366_v52  }
 0x487   :  { %2112 = vperm.xlu2 %5452, %v2102_v24  }
 0x48b   :  { %v1771_v32 = vpop.permute.xlu0 %1770 }
 0x48c   :  { %v1908_v60 = vrot.slane %v1771_v32, 7 }
 0x48e   :  { %5457 = vset.pattern.permute.xlu0 %v5568_v50  ;;  %v1909_v1 = vsel %vm171_vm0, %v1908_v60, %v7289_v29 }
 0x48f   :  { %2124 = vperm.xlu2 %5452, %v7377_v37   ;;  %2116 = vperm.xlu0 %5457, %v2103_v57  }
 0x493   :  { %v1730_v47 = vpop.permute.xlu1 %1729  ;;  %v7386_v25 = vpop.permute.xlu0 %1790 }
 0x494   :  { %v1732_v34 = vsel %vm347_vm15, %v7161_v13, %v1730_v47  ;;  %v7310_v13 = vpop.permute.xlu2 %1797 }
 0x495   :  { %v1734_v12 = vrot.slane %v1732_v34, 1  ;;  %v1735_v56 = vrot.slane %v1732_v34, 2  ;;  %v1736_v46 = vrot.slane %v1732_v34, 3  ;;  %1748 = vst [vmem:[#allocation2 + $0x4] sm:$0x1] %v1732_v34  ;;  %v1737_v30 = vrot.slane %v1732_v34, 4 }
 0x496   :  { %v1738_v63 = vrot.slane %v1732_v34, 5  ;;  %v1739_v41 = vrot.slane %v1732_v34, 6  ;;  %v1740_v11 = vrot.slane %v1732_v34, 7  ;;  %v2275_v34 = vrot.slane %v7405_v62, 4 }
 0x497   :  { %1749 = vst [vmem:[#allocation2 + $0x14] sm:$0x1] %v1734_v12  ;;  %2132 = vperm.xlu2 %5452, %v7392_v58   ;;  %2136 = vperm.xlu0 %5457, %v7333_v33   ;;  %v1939_v12 = vsel %vm171_vm0, %v1938_v35, %v7310_v13 }
 0x498   :  { %1750 = vst [vmem:[#allocation2 + $0x24] sm:$0x1] %v1735_v56  ;;  %v2276_v29 = vsel %vm180_vm3, %v2275_v34, %v2274_v18 }
 0x499   :  { %1751 = vst [vmem:[#allocation2 + $0x34] sm:$0x1] %v1736_v46  ;;  %v7422_v57 = vsel %vm183_vm4, %v2277_v53, %v2276_v29 }
 0x49a   :  { %1752 = vst [vmem:[#allocation2 + $0x44] sm:$0x1] %v1737_v30 }
 0x49b   :  { %1753 = vst [vmem:[#allocation2 + $0x54] sm:$0x1] %v1738_v63  ;;  %v7308_v38 = vpop.permute.xlu1 %1774  ;;  %v1884_v47 = vpop.permute.xlu0 %1883  ;;  %v1912_v63 = vrot.slane %v7295_v10, 5 }
 0x49c   :  { %1754 = vst [vmem:[#allocation2 + $0x64] sm:$0x1] %v1739_v41  ;;  %v7316_v5 = vpop.permute.xlu2 %1806  ;;  %v1910_v31 = vrot.slane %v7308_v38, 6  ;;  %v2020_v27 = vrot.slane %v1884_v47, 6 }
 0x49d   :  { %1755 = vst [vmem:[#allocation2 + $0x74] sm:$0x1] %v1740_v11  ;;  %v1942_v38 = vrot.slane %v7316_v5, 5 }
 0x49e   :  { %v1911_v56 = vsel %vm174_vm1, %v1910_v31, %v1909_v1  ;;  %v1948_v31 = vrot.slane %v7320_v7, 2 }
 0x49f   :  { %v1913_v13 = vsel %vm177_vm2, %v1912_v63, %v1911_v56  ;;  %5454 = vset.pattern.permute.xlu2 %v5567_v39 }
 0x4a0   :  { %2143 = vperm.xlu2 %5454, %v2102_v24  }
 0x4a3   :  { %v7314_v15 = vpop.permute.xlu1 %1782 }
 0x4a4   :  { %v7326_v43 = vpop.permute.xlu2 %1812  ;;  %v1914_v46 = vrot.slane %v7314_v15, 4 }
 0x4a5   :  { %v1946_v0 = vrot.slane %v7326_v43, 3 }
 0x4a6   :  { %v1915_v10 = vsel %vm180_vm3, %v1914_v46, %v1913_v13  ;;  %v2174_v13 = vld [vmem:[%s10112_s0 + $0x16] sm:$0x1] }
 0x4a8   :  { %2152 = vperm.xlu2 %5454, %v7377_v37  }
 0x4ab   :  { %v7318_v4 = vpop.permute.xlu1 %1794 }
 0x4ac   :  { %v1839_v9 = vpop.permute.xlu2 %1838 }
 0x4ad   :  { %v1979_v55 = vsel %vm171_vm0, %v1978_v36, %v1839_v9  ;;  %v1916_v9 = vrot.slane %v7306_v26, 3 }
 0x4af   :  { %v1917_v48 = vsel %vm183_vm4, %v1916_v9, %v1915_v10  ;;  %v7483_v10 = vld [vmem:[%s10112_s0 + $0xe9] sm:$0x1] }
 0x4b0   :  { %2158 = vperm.xlu2 %5454, %v7392_v58   ;;  %v2176_v58 = vld [vmem:[%s10112_s0 + $0x56] sm:$0x1] }
 0x4b1   :  { %2229 = vperm.xlu0 %5457, %v2176_v58  }
 0x4b4   :  { %v1804_v14 = vpop.permute.xlu1 %1803  ;;  %v7348_v17 = vpop.permute.xlu2 %1850 }
 0x4b5   :  { %v1940_v54 = vrot.slane %v1804_v14, 6  ;;  %v1982_v15 = vrot.slane %v7348_v17, 5  ;;  %v1918_v17 = vrot.slane %v7386_v25, 2 }
 0x4b7   :  { %v1941_v41 = vsel %vm174_vm1, %v1940_v54, %v1939_v12  ;;  %v1899_v54 = vpop.permute.xlu0 %1898  ;;  %v1919_v36 = vsel %vm186_vm5, %v1918_v17, %v1917_v48 }
 0x4b8   :  { %v1943_v44 = vsel %vm177_vm2, %v1942_v38, %v1941_v41  ;;  %2184 = vperm.xlu2 %5454, %v2174_v13  }
 0x4b9   :  { %2244 = vperm.xlu0 %5457, %v7366_v52   ;;  %v2179_v52 = vld [vmem:[%s10112_s0 + $0xb6] sm:$0x1] }
 0x4bc   :  { %v7336_v40 = vpop.permute.xlu1 %1809  ;;  %v7368_v21 = vpop.permute.xlu2 %1862 }
 0x4bd   :  { %v1944_v11 = vrot.slane %v7336_v40, 4  ;;  %v1988_v18 = vrot.slane %v7368_v21, 2 }
 0x4c4   :  { %v7346_v42 = vpop.permute.xlu1 %1818  ;;  %v1881_v59 = vpop.permute.xlu2 %1880 }
 0x4c5   :  { %v2018_v30 = vrot.slane %v1881_v59, 7  ;;  %v1950_v43 = vrot.slane %v7346_v42, 1 }
 0x4cc   :  { %v1847_v49 = vpop.permute.xlu1 %1846  ;;  %v1890_v8 = vpop.permute.xlu2 %1889 }
 0x4cd   :  { %v1980_v16 = vrot.slane %v1847_v49, 6  ;;  %v1945_v49 = vsel %vm180_vm3, %v1944_v11, %v1943_v44  ;;  %v2024_v61 = vrot.slane %v1890_v8, 4  ;;  %v2056_v11 = vpop.permute.xlu0 %2055  ;;  %v2251_v44 = vld [vmem:[%s10115_s3 + $0xa9] sm:$0x1] }
 0x4ce   :  { %v1947_v60 = vsel %vm183_vm4, %v1946_v0, %v1945_v49  ;;  %v2253_v0 = vld [vmem:[%s10115_s3 + $0xe9] sm:$0x1] }
 0x4cf   :  { %v1981_v14 = vsel %vm174_vm1, %v1980_v16, %v1979_v55  ;;  %v1949_v1 = vsel %vm186_vm5, %v1948_v31, %v1947_v60  ;;  %v2166_v60 = vld [vmem:[%s10114_s2 + $0x16] sm:$0x1] }
 0x4d0   :  { %v1983_v32 = vsel %vm177_vm2, %v1982_v15, %v1981_v14  ;;  %v1951_v7 = vsel %vm189_vm6, %v1950_v43, %v1949_v1  ;;  %v2177_v15 = vld [vmem:[%s10112_s0 + $0x76] sm:$0x1] }
 0x4d1   :  { %2196 = vperm.xlu2 %5454, %v2177_v15   ;;  %v2180_v14 = vld [vmem:[%s10112_s0 + $0xd6] sm:$0x1] }
 0x4d2   :  { %v2172_v1 = vld [vmem:[%s10114_s2 + $0xd6] sm:$0x1] }
 0x4d4   :  { %v7372_v3 = vpop.permute.xlu1 %1858  ;;  %v1896_v26 = vpop.permute.xlu2 %1895 }
 0x4d5   :  { %v1986_v59 = vrot.slane %v7372_v3, 3  ;;  %v1985_v3 = vsel %vm180_vm3, %v1984_v22, %v1983_v32  ;;  %v2028_v8 = vrot.slane %v1896_v26, 2 }
 0x4d9   :  { %2208 = vperm.xlu2 %5454, %v2180_v14  }
 0x4dc   :  { %v2016_v56 = vpop.permute.xlu2 %2015 }
 0x4dd   :  { %v1878_v45 = vpop.permute.xlu1 %1877 }
 0x4de   :  { %v2019_v40 = vsel %vm171_vm0, %v2018_v30, %v1878_v45  ;;  %v1920_v45 = vrot.slane %v7318_v4, 1  ;;  %v1987_v4 = vsel %vm183_vm4, %v1986_v59, %v1985_v3  ;;  %v2030_v30 = vrot.slane %v1899_v54, 1  ;;  %v2170_v54 = vld [vmem:[%s10114_s2 + $0x96] sm:$0x1] }
 0x4df   :  { %v2021_v24 = vsel %vm174_vm1, %v2020_v27, %v2019_v40  ;;  %v1989_v47 = vsel %vm186_vm5, %v1988_v18, %v1987_v4  ;;  %v2252_v40 = vld [vmem:[%s10115_s3 + $0xc9] sm:$0x1]  ;;  %v2167_v27 = vld [vmem:[%s10114_s2 + $0x36] sm:$0x1]  ;;  %v2395_v59 = vrot.slane %v2251_v44, 3  ;;  %v2313_v18 = vrot.slane %v2170_v54, 4 }
 0x4e0   :  { %v1921_v53 = vsel %vm189_vm6, %v1920_v45, %v1919_v36  ;;  %v2397_v48 = vrot.slane %v2252_v40, 2  ;;  %v2168_v45 = vld [vmem:[%s10114_s2 + $0x56] sm:$0x1] }
 0x4e1   :  { %v2059_v34 = vsel %vm2058_vm7, %v1921_v53, %v7304_v28  ;;  %5459 = vset.pattern.permute.xlu2 %v5568_v50  ;;  %vm2404_vm7 = vcmask 72704  }
 0x4e2   :  { %v2061_v21 = vsel %vm2060_vm8, %v2059_v34, %v1951_v7  ;;  %2226 = vperm.xlu2 %5459, %v7341_v2   ;;  %v2247_v2 = vld [vmem:[%s10115_s3 + $0x29] sm:$0x1]  ;;  %vm2406_vm8 = vcmask 179200  }
 0x4e5   :  { %v1887_v19 = vpop.permute.xlu1 %1886 }
 0x4e6   :  { %v2022_v5 = vrot.slane %v1887_v19, 5  ;;  %v1990_v19 = vrot.slane %v7358_v23, 1 }
 0x4e8   :  { %v2023_v25 = vsel %vm177_vm2, %v2022_v5, %v2021_v24  ;;  %v1991_v41 = vsel %vm189_vm6, %v1990_v19, %v1989_v47  ;;  %v2387_v5 = vrot.slane %v2247_v2, 7  ;;  %v2307_v24 = vrot.slane %v2167_v27, 7  ;;  %v2215_v19 = vld [vmem:[%s10113_s1 + $0x36] sm:$0x1] }
 0x4e9   :  { %v2025_v42 = vsel %vm180_vm3, %v2024_v61, %v2023_v25  ;;  %v2317_v47 = vrot.slane %v2172_v1, 2 }
 0x4ea   :  { %2235 = vperm.xlu2 %5459, %v7353_v6   ;;  %v2249_v6 = vld [vmem:[%s10115_s3 + $0x69] sm:$0x1]  ;;  %v2308_v3 = vsel %vm171_vm0, %v2307_v24, %v2166_v60 }
 0x4eb   :  { %v2391_v49 = vrot.slane %v2249_v6, 5 }
 0x4ed   :  { %v1893_v20 = vpop.permute.xlu1 %1892 }
 0x4ee   :  { %v2026_v35 = vrot.slane %v1893_v20, 3  ;;  %v2399_v20 = vrot.slane %v2253_v0, 1 }
 0x4f0   :  { %v2027_v16 = vsel %vm183_vm4, %v2026_v35, %v2025_v42  ;;  %v2309_v35 = vrot.slane %v2168_v45, 6 }
 0x4f1   :  { %v2029_v46 = vsel %vm186_vm5, %v2028_v8, %v2027_v16  ;;  %v2173_v8 = vld [vmem:[%s10114_s2 + $0xf6] sm:$0x1] }
 0x4f2   :  { %v2031_v23 = vsel %vm189_vm6, %v2030_v30, %v2029_v46  ;;  %2241 = vperm.xlu2 %5459, %v2180_v14   ;;  %v2310_v4 = vsel %vm174_vm1, %v2309_v35, %v2308_v3  ;;  %v2217_v46 = vld [vmem:[%s10113_s1 + $0x76] sm:$0x1]  ;;  %v2449_v35 = vld [vmem:[%s10112_s0 + $0x28] sm:$0x1] }
 0x4f5   :  { %v1976_v12 = vpop.permute.xlu1 %1975 }
 0x4f6   :  { %v2063_v63 = vsel %vm2062_vm9, %v2061_v21, %v1976_v12  ;;  %v2216_v21 = vld [vmem:[%s10113_s1 + $0x56] sm:$0x1]  ;;  %v2347_v12 = vrot.slane %v2215_v19, 7  ;;  %vm2408_vm9 = vcmask 326656  }
 0x4f7   :  { %v2065_v37 = vsel %vm2064_vm10, %v2063_v63, %v1991_v41  ;;  %v2349_v30 = vrot.slane %v2216_v21, 6  ;;  %v2319_v63 = vrot.slane %v2173_v8, 1  ;;  %v2218_v41 = vld [vmem:[%s10113_s1 + $0x96] sm:$0x1]  ;;  %v5570_v8 = vmov 8  }
 0x4f8   :  { %v2067_v29 = vsel %vm2066_vm11, %v2065_v37, %v2016_v56  ;;  %v2214_v56 = vld [vmem:[%s10113_s1 + $0x16] sm:$0x1]  ;;  %v2448_v21 = vld [vmem:[%s10112_s0 + $0x8] sm:$0x1]  ;;  %vm2410_vm10 = vcmask 433152   ;;  %vm2412_vm11 = vcmask 580608  }
 0x4f9   :  { %v2069_v28 = vsel %vm2068_vm12, %v2067_v29, %v2031_v23  ;;  %v2348_v37 = vsel %vm171_vm0, %v2347_v12, %v2214_v56  ;;  %v2219_v23 = vld [vmem:[%s10113_s1 + $0xb6] sm:$0x1]  ;;  %v7667_v12 = vld [vmem:[%s10112_s0 + $0xf7] sm:$0x1]  ;;  %vm2414_vm12 = vcmask 687104  }
 0x4fa   :  { %v2071_v38 = vsel %vm2070_vm13, %v2069_v28, %v2056_v11  ;;  %v2351_v11 = vrot.slane %v2217_v46, 5  ;;  %v2350_v28 = vsel %vm174_vm1, %v2349_v30, %v2348_v37  ;;  %v2355_v14 = vrot.slane %v2219_v23, 3  ;;  %5460 = vset.pattern.permute.xlu2 %v5570_v8 }
 0x4fb   :  { %v7462_v55 = vsel %vm2072_vm14, %v2071_v38, %v1921_v53  ;;  %v2171_v53 = vld [vmem:[%s10114_s2 + $0xb6] sm:$0x1]  ;;  %v2353_v38 = vrot.slane %v2218_v41, 4  ;;  %v7678_v41 = vld [vmem:[%s10112_s0 + $0x68] sm:$0x1]  ;;  %vm2416_vm13 = vcmask 834560  }
 0x4fc   :  { %2075 = vrot.lane.b32.xlu1 %v7462_v55, %s5558_s27  ;;  %v2315_v16 = vrot.slane %v2171_v53, 3  ;;  %vm2418_vm14 = vcmask 941056  }
 0x504   :  { %2120 = vperm.xlu1 %5453, %v7384_v51  }
 0x50c   :  { %2128 = vperm.xlu1 %5453, %v7405_v62  }
 0x514   :  { %2140 = vperm.xlu1 %5453, %v7483_v10  }
 0x51c   :  { %5456 = vset.pattern.permute.xlu1 %v5567_v39  ;;  %v2248_v39 = vld [vmem:[%s10115_s3 + $0x49] sm:$0x1] }
 0x51d   :  { %2149 = vperm.xlu1 %5456, %v7384_v51   ;;  %v2250_v51 = vld [vmem:[%s10115_s3 + $0x89] sm:$0x1]  ;;  %v2389_v9 = vrot.slane %v2248_v39, 6 }
 0x51e   :  { %v2393_v17 = vrot.slane %v2250_v51, 4 }
 0x525   :  { %2155 = vperm.xlu1 %5456, %v7405_v62   ;;  %v2246_v62 = vld [vmem:[%s10115_s3 + $0x9] sm:$0x1] }
 0x526   :  { %v2388_v32 = vsel %vm171_vm0, %v2387_v5, %v2246_v62  ;;  %v7590_v62 = vpop.permute.xlu2 %2112 }
 0x527   :  { %v2390_v22 = vsel %vm174_vm1, %v2389_v9, %v2388_v32  ;;  %v2279_v9 = vrot.slane %v7333_v33, 2 }
 0x528   :  { %v2392_v26 = vsel %vm177_vm2, %v2391_v49, %v2390_v22  ;;  %v2281_v49 = vrot.slane %v7483_v10, 1 }
 0x529   :  { %v2394_v43 = vsel %vm180_vm3, %v2393_v17, %v2392_v26  ;;  %v2280_v0 = vsel %vm186_vm5, %v2279_v9, %v7422_v57 }
 0x52a   :  { %v2396_v25 = vsel %vm183_vm4, %v2395_v59, %v2394_v43  ;;  %v7605_v32 = vsel %vm189_vm6, %v2281_v49, %v2280_v0 }
 0x52b   :  { %v2398_v31 = vsel %vm186_vm5, %v2397_v48, %v2396_v25 }
 0x52c   :  { %v2400_v61 = vsel %vm189_vm6, %v2399_v20, %v2398_v31  ;;  %v7613_v20 = vpop.permute.xlu0 %2146  ;;  %v5569_v31 = vmov 23  }
 0x52d   :  { %2164 = vperm.xlu1 %5456, %v7483_v10   ;;  %2401 = vrot.lane.b32.xlu0 %v2400_v61, %s5553_s15 }
 0x52e   :  { %v7596_v5 = vpop.permute.xlu2 %2124  ;;  %5463 = vset.pattern.permute.xlu0 %v5569_v31 }
 0x535   :  { %2192 = vperm.xlu1 %5456, %v2176_v58   ;;  %v2352_v58 = vsel %vm177_vm2, %v2351_v11, %v2350_v28  ;;  %2492 = vperm.xlu0 %5463, %v2449_v35   ;;  %v7685_v11 = vld [vmem:[%s10112_s0 + $0x48] sm:$0x1] }
 0x536   :  { %v7607_v59 = vpop.permute.xlu2 %2132  ;;  %v2617_v28 = vrot.slane %v7685_v11, 6 }
 0x53d   :  { %2204 = vperm.xlu1 %5456, %v2179_v52  }
 0x545   :  { %5458 = vset.pattern.permute.xlu1 %v5568_v50  ;;  %v2169_v50 = vld [vmem:[%s10114_s2 + $0x76] sm:$0x1] }
 0x546   :  { %2223 = vperm.xlu1 %5458, %v2174_v13   ;;  %v2311_v36 = vrot.slane %v2169_v50, 5  ;;  %v2220_v13 = vld [vmem:[%s10113_s1 + $0xd6] sm:$0x1]  ;;  %v7621_v50 = vpop.permute.xlu0 %2161 }
 0x547   :  { %v2357_v2 = vrot.slane %v2220_v13, 2 }
 0x548   :  { %v2312_v42 = vsel %vm177_vm2, %v2311_v36, %v2310_v4  ;;  %v7634_v36 = vld [vmem:[%s10112_s0 + $0xc8] sm:$0x1] }
 0x549   :  { %v2314_v7 = vsel %vm180_vm3, %v2313_v18, %v2312_v42  ;;  %2507 = vperm.xlu0 %5463, %v7634_v36   ;;  %v7642_v18 = vld [vmem:[%s10112_s0 + $0x37] sm:$0x1] }
 0x54a   :  { %v2316_v34 = vsel %vm183_vm4, %v2315_v16, %v2314_v7  ;;  %v7654_v7 = vld [vmem:[%s10112_s0 + $0x97] sm:$0x1] }
 0x54b   :  { %v2318_v29 = vsel %vm186_vm5, %v2317_v47, %v2316_v34  ;;  %v2615_v34 = vrot.slane %v2449_v35, 7 }
 0x54c   :  { %v2320_v6 = vsel %vm189_vm6, %v2319_v63, %v2318_v29 }
 0x54d   :  { %v2616_v46 = vsel %vm171_vm0, %v2615_v34, %v2448_v21 }
 0x54e   :  { %2232 = vperm.xlu1 %5458, %v2177_v15   ;;  %v2221_v15 = vld [vmem:[%s10113_s1 + $0xf6] sm:$0x1]  ;;  %v7629_v54 = vpop.permute.xlu0 %2188  ;;  %v2618_v13 = vsel %vm174_vm1, %v2617_v28, %v2616_v46 }
 0x54f   :  { %v2359_v39 = vrot.slane %v2221_v15, 1  ;;  %v2619_v15 = vrot.slane %v7678_v41, 5 }
 0x551   :  { %2534 = vperm.xlu0 %5463, %v7642_v18  }
 0x556   :  { %2238 = vperm.xlu1 %5458, %v2179_v52   ;;  %v2354_v52 = vsel %vm180_vm3, %v2353_v38, %v2352_v58  ;;  %v7644_v42 = vpop.permute.xlu0 %2200  ;;  %v7693_v38 = vld [vmem:[%s10112_s0 + $0xa8] sm:$0x1] }
 0x557   :  { %v2356_v51 = vsel %vm183_vm4, %v2355_v14, %v2354_v52  ;;  %v2284_v14 = vrot.slane %v7613_v20, 7  ;;  %v2330_v28 = vrot.slane %v7644_v42, 4 }
 0x558   :  { %v2358_v44 = vsel %vm186_vm5, %v2357_v2, %v2356_v51  ;;  %v2623_v51 = vrot.slane %v7693_v38, 3 }
 0x559   :  { %v2360_v40 = vsel %vm189_vm6, %v2359_v39, %v2358_v44  ;;  %2546 = vperm.xlu0 %5463, %v7654_v7   ;;  %v7706_v44 = vld [vmem:[%s10112_s0 + $0x88] sm:$0x1] }
 0x55a   :  { %2361 = vrot.lane.b32.xlu2 %v2360_v40, %s5555_s19  ;;  %v2620_v40 = vsel %vm177_vm2, %v2619_v15, %v2618_v13 }
 0x55e   :  { %2321 = vrot.lane.b32.xlu1 %v2320_v6, %s5554_s18  ;;  %v7659_v47 = vpop.permute.xlu0 %2212  ;;  %v2324_v6 = vrot.slane %v7629_v54, 7 }
 0x55f   :  { %5461 = vset.pattern.permute.xlu1 %v5570_v8 }
 0x561   :  { %2558 = vperm.xlu0 %5463, %v7667_v12  }
 0x562   :  { %2458 = vperm.xlu2 %5460, %v2448_v21  }
 0x566   :  { %v2117_v63 = vpop.permute.xlu0 %2116 }
 0x567   :  { %v2254_v58 = vrot.slane %v2117_v63, 7 }
 0x569   :  { %5465 = vset.pattern.permute.xlu0 %v5570_v8  ;;  %v2255_v9 = vsel %vm171_vm0, %v2254_v58, %v7590_v62 }
 0x56a   :  { %2470 = vperm.xlu2 %5460, %v7678_v41   ;;  %2462 = vperm.xlu0 %5465, %v2449_v35  }
 0x56e   :  { %v2076_v27 = vpop.permute.xlu1 %2075  ;;  %v7687_v29 = vpop.permute.xlu0 %2136 }
 0x56f   :  { %v2078_v17 = vsel %vm347_vm15, %v7462_v55, %v2076_v27  ;;  %v7611_v55 = vpop.permute.xlu2 %2143 }
 0x570   :  { %v2080_v22 = vrot.slane %v2078_v17, 1  ;;  %v2081_v48 = vrot.slane %v2078_v17, 2  ;;  %v2082_v45 = vrot.slane %v2078_v17, 3  ;;  %2094 = vst [vmem:[#allocation2 + $0x5] sm:$0x1] %v2078_v17  ;;  %v2083_v24 = vrot.slane %v2078_v17, 4 }
 0x571   :  { %v2084_v33 = vrot.slane %v2078_v17, 5  ;;  %v2085_v10 = vrot.slane %v2078_v17, 6  ;;  %v2086_v26 = vrot.slane %v2078_v17, 7  ;;  %v2621_v17 = vrot.slane %v7706_v44, 4 }
 0x572   :  { %2095 = vst [vmem:[#allocation2 + $0x15] sm:$0x1] %v2080_v22  ;;  %2478 = vperm.xlu2 %5460, %v7693_v38   ;;  %2482 = vperm.xlu0 %5465, %v7634_v36   ;;  %v2285_v22 = vsel %vm171_vm0, %v2284_v14, %v7611_v55 }
 0x573   :  { %2096 = vst [vmem:[#allocation2 + $0x25] sm:$0x1] %v2081_v48  ;;  %v2622_v62 = vsel %vm180_vm3, %v2621_v17, %v2620_v40 }
 0x574   :  { %2097 = vst [vmem:[#allocation2 + $0x35] sm:$0x1] %v2082_v45  ;;  %v7723_v35 = vsel %vm183_vm4, %v2623_v51, %v2622_v62 }
 0x575   :  { %2098 = vst [vmem:[#allocation2 + $0x45] sm:$0x1] %v2083_v24 }
 0x576   :  { %2099 = vst [vmem:[#allocation2 + $0x55] sm:$0x1] %v2084_v33  ;;  %v7609_v57 = vpop.permute.xlu1 %2120  ;;  %v2230_v27 = vpop.permute.xlu0 %2229  ;;  %v2258_v33 = vrot.slane %v7596_v5, 5 }
 0x577   :  { %2100 = vst [vmem:[#allocation2 + $0x65] sm:$0x1] %v2085_v10  ;;  %v7617_v43 = vpop.permute.xlu2 %2152  ;;  %v2256_v52 = vrot.slane %v7609_v57, 6  ;;  %v2366_v34 = vrot.slane %v2230_v27, 6 }
 0x578   :  { %2101 = vst [vmem:[#allocation2 + $0x75] sm:$0x1] %v2086_v26  ;;  %v2288_v57 = vrot.slane %v7617_v43, 5 }
 0x579   :  { %v2257_v48 = vsel %vm174_vm1, %v2256_v52, %v2255_v9  ;;  %v2294_v52 = vrot.slane %v7621_v50, 2 }
 0x57a   :  { %v2259_v55 = vsel %vm177_vm2, %v2258_v33, %v2257_v48  ;;  %5462 = vset.pattern.permute.xlu2 %v5569_v31 }
 0x57b   :  { %2489 = vperm.xlu2 %5462, %v2448_v21  }
 0x57e   :  { %v7615_v60 = vpop.permute.xlu1 %2128 }
 0x57f   :  { %v7627_v3 = vpop.permute.xlu2 %2158  ;;  %v2260_v45 = vrot.slane %v7615_v60, 4 }
 0x580   :  { %v2292_v46 = vrot.slane %v7627_v3, 3 }
 0x581   :  { %v2261_v5 = vsel %vm180_vm3, %v2260_v45, %v2259_v55  ;;  %v2520_v55 = vld [vmem:[%s10112_s0 + $0x17] sm:$0x1] }
 0x583   :  { %2498 = vperm.xlu2 %5462, %v7678_v41  }
 0x586   :  { %v7619_v25 = vpop.permute.xlu1 %2140 }
 0x587   :  { %v2185_v53 = vpop.permute.xlu2 %2184 }
 0x588   :  { %v2325_v20 = vsel %vm171_vm0, %v2324_v6, %v2185_v53  ;;  %v2262_v53 = vrot.slane %v7607_v59, 3 }
 0x58a   :  { %v2263_v13 = vsel %vm183_vm4, %v2262_v53, %v2261_v5  ;;  %v7784_v5 = vld [vmem:[%s10112_s0 + $0xe8] sm:$0x1] }
 0x58b   :  { %2504 = vperm.xlu2 %5462, %v7693_v38   ;;  %v2522_v38 = vld [vmem:[%s10112_s0 + $0x57] sm:$0x1] }
 0x58c   :  { %2575 = vperm.xlu0 %5465, %v2522_v38  }
 0x58f   :  { %v2150_v61 = vpop.permute.xlu1 %2149  ;;  %v7649_v16 = vpop.permute.xlu2 %2196 }
 0x590   :  { %v2286_v2 = vrot.slane %v2150_v61, 6  ;;  %v2328_v60 = vrot.slane %v7649_v16, 5  ;;  %v2264_v16 = vrot.slane %v7687_v29, 2 }
 0x592   :  { %v2287_v10 = vsel %vm174_vm1, %v2286_v2, %v2285_v22  ;;  %v2245_v2 = vpop.permute.xlu0 %2244  ;;  %v2265_v6 = vsel %vm186_vm5, %v2264_v16, %v2263_v13 }
 0x593   :  { %v2289_v54 = vsel %vm177_vm2, %v2288_v57, %v2287_v10  ;;  %2530 = vperm.xlu2 %5462, %v2520_v55  }
 0x594   :  { %2590 = vperm.xlu0 %5465, %v7667_v12   ;;  %v2525_v12 = vld [vmem:[%s10112_s0 + $0xb7] sm:$0x1] }
 0x597   :  { %v7637_v4 = vpop.permute.xlu1 %2155  ;;  %v7669_v56 = vpop.permute.xlu2 %2208 }
 0x598   :  { %v2290_v26 = vrot.slane %v7637_v4, 4  ;;  %v2334_v40 = vrot.slane %v7669_v56, 2 }
 0x59f   :  { %v7647_v1 = vpop.permute.xlu1 %2164  ;;  %v2227_v37 = vpop.permute.xlu2 %2226 }
 0x5a0   :  { %v2364_v24 = vrot.slane %v2227_v37, 7  ;;  %v2296_v3 = vrot.slane %v7647_v1, 1 }
 0x5a7   :  { %v2193_v19 = vpop.permute.xlu1 %2192  ;;  %v2236_v39 = vpop.permute.xlu2 %2235 }
 0x5a8   :  { %v2326_v49 = vrot.slane %v2193_v19, 6  ;;  %v2291_v19 = vsel %vm180_vm3, %v2290_v26, %v2289_v54  ;;  %v2370_v42 = vrot.slane %v2236_v39, 4  ;;  %v2402_v26 = vpop.permute.xlu0 %2401  ;;  %v2597_v54 = vld [vmem:[%s10115_s3 + $0xa8] sm:$0x1] }
 0x5a9   :  { %v2293_v58 = vsel %vm183_vm4, %v2292_v46, %v2291_v19  ;;  %v2599_v46 = vld [vmem:[%s10115_s3 + $0xe8] sm:$0x1] }
 0x5aa   :  { %v2327_v61 = vsel %vm174_vm1, %v2326_v49, %v2325_v20  ;;  %v2295_v9 = vsel %vm186_vm5, %v2294_v52, %v2293_v58  ;;  %v2512_v58 = vld [vmem:[%s10114_s2 + $0x17] sm:$0x1] }
 0x5ab   :  { %v2329_v63 = vsel %vm177_vm2, %v2328_v60, %v2327_v61  ;;  %v2297_v50 = vsel %vm189_vm6, %v2296_v3, %v2295_v9  ;;  %v2523_v60 = vld [vmem:[%s10112_s0 + $0x77] sm:$0x1] }
 0x5ac   :  { %2542 = vperm.xlu2 %5462, %v2523_v60   ;;  %v2526_v61 = vld [vmem:[%s10112_s0 + $0xd7] sm:$0x1] }
 0x5ad   :  { %v2518_v9 = vld [vmem:[%s10114_s2 + $0xd7] sm:$0x1] }
 0x5af   :  { %v7673_v30 = vpop.permute.xlu1 %2204  ;;  %v2242_v59 = vpop.permute.xlu2 %2241 }
 0x5b0   :  { %v2332_v37 = vrot.slane %v7673_v30, 3  ;;  %v2331_v30 = vsel %vm180_vm3, %v2330_v28, %v2329_v63  ;;  %v2374_v39 = vrot.slane %v2242_v59, 2 }
 0x5b4   :  { %2554 = vperm.xlu2 %5462, %v2526_v61  }
 0x5b7   :  { %v2362_v48 = vpop.permute.xlu2 %2361 }
 0x5b8   :  { %v2224_v23 = vpop.permute.xlu1 %2223 }
 0x5b9   :  { %v2365_v4 = vsel %vm171_vm0, %v2364_v24, %v2224_v23  ;;  %v2266_v23 = vrot.slane %v7619_v25, 1  ;;  %v2333_v25 = vsel %vm183_vm4, %v2332_v37, %v2331_v30  ;;  %v2376_v24 = vrot.slane %v2245_v2, 1  ;;  %v2516_v2 = vld [vmem:[%s10114_s2 + $0x97] sm:$0x1] }
 0x5ba   :  { %v2367_v21 = vsel %vm174_vm1, %v2366_v34, %v2365_v4  ;;  %v2335_v27 = vsel %vm186_vm5, %v2334_v40, %v2333_v25  ;;  %v2598_v4 = vld [vmem:[%s10115_s3 + $0xc8] sm:$0x1]  ;;  %v2513_v34 = vld [vmem:[%s10114_s2 + $0x37] sm:$0x1]  ;;  %v2741_v37 = vrot.slane %v2597_v54, 3  ;;  %v2659_v40 = vrot.slane %v2516_v2, 4 }
 0x5bb   :  { %v2267_v51 = vsel %vm189_vm6, %v2266_v23, %v2265_v6  ;;  %v2743_v13 = vrot.slane %v2598_v4, 2  ;;  %v2514_v23 = vld [vmem:[%s10114_s2 + $0x57] sm:$0x1] }
 0x5bc   :  { %v2405_v17 = vsel %vm2404_vm7, %v2267_v51, %v7605_v32  ;;  %5467 = vset.pattern.permute.xlu2 %v5570_v8  ;;  %vm2750_vm7 = vcmask 64512  }
 0x5bd   :  { %v2407_v56 = vsel %vm2406_vm8, %v2405_v17, %v2297_v50  ;;  %2572 = vperm.xlu2 %5467, %v7642_v18   ;;  %v2593_v18 = vld [vmem:[%s10115_s3 + $0x28] sm:$0x1]  ;;  %vm2752_vm8 = vcmask 187392  }
 0x5c0   :  { %v2233_v0 = vpop.permute.xlu1 %2232 }
 0x5c1   :  { %v2368_v43 = vrot.slane %v2233_v0, 5  ;;  %v2336_v0 = vrot.slane %v7659_v47, 1 }
 0x5c3   :  { %v2369_v29 = vsel %vm177_vm2, %v2368_v43, %v2367_v21  ;;  %v2337_v10 = vsel %vm189_vm6, %v2336_v0, %v2335_v27  ;;  %v2733_v43 = vrot.slane %v2593_v18, 7  ;;  %v2653_v21 = vrot.slane %v2513_v34, 7  ;;  %v2561_v0 = vld [vmem:[%s10113_s1 + $0x37] sm:$0x1] }
 0x5c4   :  { %v2371_v1 = vsel %vm180_vm3, %v2370_v42, %v2369_v29  ;;  %v2663_v27 = vrot.slane %v2518_v9, 2 }
 0x5c5   :  { %2581 = vperm.xlu2 %5467, %v7654_v7   ;;  %v2595_v7 = vld [vmem:[%s10115_s3 + $0x68] sm:$0x1]  ;;  %v2654_v30 = vsel %vm171_vm0, %v2653_v21, %v2512_v58 }
 0x5c6   :  { %v2737_v19 = vrot.slane %v2595_v7, 5 }
 0x5c8   :  { %v2239_v15 = vpop.permute.xlu1 %2238 }
 0x5c9   :  { %v2372_v14 = vrot.slane %v2239_v15, 3  ;;  %v2745_v15 = vrot.slane %v2599_v46, 1 }
 0x5cb   :  { %v2373_v49 = vsel %vm183_vm4, %v2372_v14, %v2371_v1  ;;  %v2655_v14 = vrot.slane %v2514_v23, 6 }
 0x5cc   :  { %v2375_v45 = vsel %vm186_vm5, %v2374_v39, %v2373_v49  ;;  %v2519_v39 = vld [vmem:[%s10114_s2 + $0xf7] sm:$0x1] }
 0x5cd   :  { %v2377_v47 = vsel %vm189_vm6, %v2376_v24, %v2375_v45  ;;  %2587 = vperm.xlu2 %5467, %v2526_v61   ;;  %v2656_v25 = vsel %vm174_vm1, %v2655_v14, %v2654_v30  ;;  %v2563_v45 = vld [vmem:[%s10113_s1 + $0x77] sm:$0x1]  ;;  %v2795_v14 = vld [vmem:[%s10112_s0 + $0x27] sm:$0x1] }
 0x5d0   :  { %v2322_v22 = vpop.permute.xlu1 %2321 }
 0x5d1   :  { %v2409_v33 = vsel %vm2408_vm9, %v2407_v56, %v2322_v22  ;;  %v2562_v56 = vld [vmem:[%s10113_s1 + $0x57] sm:$0x1]  ;;  %v2693_v22 = vrot.slane %v2561_v0, 7  ;;  %vm2754_vm9 = vcmask 318464  }
 0x5d2   :  { %v2411_v41 = vsel %vm2410_vm10, %v2409_v33, %v2337_v10  ;;  %v2695_v24 = vrot.slane %v2562_v56, 6  ;;  %v2665_v33 = vrot.slane %v2519_v39, 1  ;;  %v2564_v10 = vld [vmem:[%s10113_s1 + $0x97] sm:$0x1]  ;;  %v5572_v39 = vmov 7  }
 0x5d3   :  { %v2413_v62 = vsel %vm2412_vm11, %v2411_v41, %v2362_v48  ;;  %v2560_v48 = vld [vmem:[%s10113_s1 + $0x17] sm:$0x1]  ;;  %v2794_v56 = vld [vmem:[%s10112_s0 + $0x7] sm:$0x1]  ;;  %vm2756_vm10 = vcmask 441344   ;;  %vm2758_vm11 = vcmask 572416  }
 0x5d4   :  { %v2415_v32 = vsel %vm2414_vm12, %v2413_v62, %v2377_v47  ;;  %v2694_v41 = vsel %vm171_vm0, %v2693_v22, %v2560_v48  ;;  %v2565_v47 = vld [vmem:[%s10113_s1 + $0xb7] sm:$0x1]  ;;  %v7968_v22 = vld [vmem:[%s10112_s0 + $0xf8] sm:$0x1]  ;;  %vm2760_vm12 = vcmask 695296  }
 0x5d5   :  { %v2417_v57 = vsel %vm2416_vm13, %v2415_v32, %v2402_v26  ;;  %v2697_v26 = vrot.slane %v2563_v45, 5  ;;  %v2696_v32 = vsel %vm174_vm1, %v2695_v24, %v2694_v41  ;;  %v2701_v61 = vrot.slane %v2565_v47, 3  ;;  %5468 = vset.pattern.permute.xlu2 %v5572_v39 }
 0x5d6   :  { %v7763_v20 = vsel %vm2418_vm14, %v2417_v57, %v2267_v51  ;;  %v2517_v51 = vld [vmem:[%s10114_s2 + $0xb7] sm:$0x1]  ;;  %v2699_v57 = vrot.slane %v2564_v10, 4  ;;  %v7979_v10 = vld [vmem:[%s10112_s0 + $0x67] sm:$0x1]  ;;  %vm2762_vm13 = vcmask 826368  }
 0x5d7   :  { %2421 = vrot.lane.b32.xlu1 %v7763_v20, %s5558_s27  ;;  %v2661_v49 = vrot.slane %v2517_v51, 3  ;;  %vm2764_vm14 = vcmask 949248  }
 0x5df   :  { %2466 = vperm.xlu1 %5461, %v7685_v11  }
 0x5e7   :  { %2474 = vperm.xlu1 %5461, %v7706_v44  }
 0x5ef   :  { %2486 = vperm.xlu1 %5461, %v7784_v5  }
 0x5f7   :  { %5464 = vset.pattern.permute.xlu1 %v5569_v31  ;;  %v2594_v31 = vld [vmem:[%s10115_s3 + $0x48] sm:$0x1] }
 0x5f8   :  { %2495 = vperm.xlu1 %5464, %v7685_v11   ;;  %v2596_v11 = vld [vmem:[%s10115_s3 + $0x88] sm:$0x1]  ;;  %v2735_v53 = vrot.slane %v2594_v31, 6 }
 0x5f9   :  { %v2739_v16 = vrot.slane %v2596_v11, 4 }
 0x600   :  { %2501 = vperm.xlu1 %5464, %v7706_v44   ;;  %v2592_v44 = vld [vmem:[%s10115_s3 + $0x8] sm:$0x1] }
 0x601   :  { %v2734_v63 = vsel %vm171_vm0, %v2733_v43, %v2592_v44  ;;  %v7891_v44 = vpop.permute.xlu2 %2458 }
 0x602   :  { %v2736_v28 = vsel %vm174_vm1, %v2735_v53, %v2734_v63  ;;  %v2625_v53 = vrot.slane %v7634_v36, 2 }
 0x603   :  { %v2738_v59 = vsel %vm177_vm2, %v2737_v19, %v2736_v28  ;;  %v2627_v19 = vrot.slane %v7784_v5, 1 }
 0x604   :  { %v2740_v3 = vsel %vm180_vm3, %v2739_v16, %v2738_v59  ;;  %v2626_v46 = vsel %vm186_vm5, %v2625_v53, %v7723_v35 }
 0x605   :  { %v2742_v29 = vsel %vm183_vm4, %v2741_v37, %v2740_v3  ;;  %v7906_v63 = vsel %vm189_vm6, %v2627_v19, %v2626_v46 }
 0x606   :  { %v2744_v52 = vsel %vm186_vm5, %v2743_v13, %v2742_v29 }
 0x607   :  { %v2746_v42 = vsel %vm189_vm6, %v2745_v15, %v2744_v52  ;;  %v7914_v15 = vpop.permute.xlu0 %2492  ;;  %v5571_v52 = vmov 24  }
 0x608   :  { %2510 = vperm.xlu1 %5464, %v7784_v5   ;;  %2747 = vrot.lane.b32.xlu0 %v2746_v42, %s5553_s15 }
 0x609   :  { %v7897_v43 = vpop.permute.xlu2 %2470  ;;  %5471 = vset.pattern.permute.xlu0 %v5571_v52 }
 0x610   :  { %2538 = vperm.xlu1 %5464, %v2522_v38   ;;  %v2698_v38 = vsel %vm177_vm2, %v2697_v26, %v2696_v32  ;;  %2838 = vperm.xlu0 %5471, %v2795_v14   ;;  %v7986_v26 = vld [vmem:[%s10112_s0 + $0x47] sm:$0x1] }
 0x611   :  { %v7908_v37 = vpop.permute.xlu2 %2478  ;;  %v2963_v32 = vrot.slane %v7986_v26, 6 }
 0x618   :  { %2550 = vperm.xlu1 %5464, %v2525_v12  }
 0x620   :  { %5466 = vset.pattern.permute.xlu1 %v5570_v8  ;;  %v2515_v8 = vld [vmem:[%s10114_s2 + $0x77] sm:$0x1] }
 0x621   :  { %2569 = vperm.xlu1 %5466, %v2520_v55   ;;  %v2657_v6 = vrot.slane %v2515_v8, 5  ;;  %v2566_v55 = vld [vmem:[%s10113_s1 + $0xd7] sm:$0x1]  ;;  %v7922_v8 = vpop.permute.xlu0 %2507 }
 0x622   :  { %v2703_v18 = vrot.slane %v2566_v55, 2 }
 0x623   :  { %v2658_v1 = vsel %vm177_vm2, %v2657_v6, %v2656_v25  ;;  %v7935_v6 = vld [vmem:[%s10112_s0 + $0xc7] sm:$0x1] }
 0x624   :  { %v2660_v50 = vsel %vm180_vm3, %v2659_v40, %v2658_v1  ;;  %2853 = vperm.xlu0 %5471, %v7935_v6   ;;  %v7943_v40 = vld [vmem:[%s10112_s0 + $0x38] sm:$0x1] }
 0x625   :  { %v2662_v17 = vsel %vm183_vm4, %v2661_v49, %v2660_v50  ;;  %v7955_v50 = vld [vmem:[%s10112_s0 + $0x98] sm:$0x1] }
 0x626   :  { %v2664_v62 = vsel %vm186_vm5, %v2663_v27, %v2662_v17  ;;  %v2961_v17 = vrot.slane %v2795_v14, 7 }
 0x627   :  { %v2666_v7 = vsel %vm189_vm6, %v2665_v33, %v2664_v62 }
 0x628   :  { %v2962_v45 = vsel %vm171_vm0, %v2961_v17, %v2794_v56 }
 0x629   :  { %2578 = vperm.xlu1 %5466, %v2523_v60   ;;  %v2567_v60 = vld [vmem:[%s10113_s1 + $0xf7] sm:$0x1]  ;;  %v7930_v2 = vpop.permute.xlu0 %2534  ;;  %v2964_v55 = vsel %vm174_vm1, %v2963_v32, %v2962_v45 }
 0x62a   :  { %v2705_v31 = vrot.slane %v2567_v60, 1  ;;  %v2965_v60 = vrot.slane %v7979_v10, 5 }
 0x62c   :  { %2880 = vperm.xlu0 %5471, %v7943_v40  }
 0x631   :  { %2584 = vperm.xlu1 %5466, %v2525_v12   ;;  %v2700_v12 = vsel %vm180_vm3, %v2699_v57, %v2698_v38  ;;  %v7945_v1 = vpop.permute.xlu0 %2546  ;;  %v7994_v57 = vld [vmem:[%s10112_s0 + $0xa7] sm:$0x1] }
 0x632   :  { %v2702_v11 = vsel %vm183_vm4, %v2701_v61, %v2700_v12  ;;  %v2630_v61 = vrot.slane %v7914_v15, 7  ;;  %v2676_v32 = vrot.slane %v7945_v1, 4 }
 0x633   :  { %v2704_v54 = vsel %vm186_vm5, %v2703_v18, %v2702_v11  ;;  %v2969_v11 = vrot.slane %v7994_v57, 3 }
 0x634   :  { %v2706_v4 = vsel %vm189_vm6, %v2705_v31, %v2704_v54  ;;  %2892 = vperm.xlu0 %5471, %v7955_v50   ;;  %v8007_v54 = vld [vmem:[%s10112_s0 + $0x87] sm:$0x1] }
 0x635   :  { %2707 = vrot.lane.b32.xlu2 %v2706_v4, %s5555_s19  ;;  %v2966_v4 = vsel %vm177_vm2, %v2965_v60, %v2964_v55 }
 0x639   :  { %2667 = vrot.lane.b32.xlu1 %v2666_v7, %s5554_s18  ;;  %v7960_v27 = vpop.permute.xlu0 %2558  ;;  %v2670_v7 = vrot.slane %v7930_v2, 7 }
 0x63a   :  { %5469 = vset.pattern.permute.xlu1 %v5572_v39 }
 0x63c   :  { %2904 = vperm.xlu0 %5471, %v7968_v22  }
 0x63d   :  { %2804 = vperm.xlu2 %5468, %v2794_v56  }
 0x641   :  { %v2463_v33 = vpop.permute.xlu0 %2462 }
 0x642   :  { %v2600_v38 = vrot.slane %v2463_v33, 7 }
 0x644   :  { %5473 = vset.pattern.permute.xlu0 %v5572_v39  ;;  %v2601_v53 = vsel %vm171_vm0, %v2600_v38, %v7891_v44 }
 0x645   :  { %2816 = vperm.xlu2 %5468, %v7979_v10   ;;  %2808 = vperm.xlu0 %5473, %v2795_v14  }
 0x649   :  { %v2422_v34 = vpop.permute.xlu1 %2421  ;;  %v7988_v62 = vpop.permute.xlu0 %2482 }
 0x64a   :  { %v2424_v16 = vsel %vm347_vm15, %v7763_v20, %v2422_v34  ;;  %v7912_v20 = vpop.permute.xlu2 %2489 }
 0x64b   :  { %v2426_v28 = vrot.slane %v2424_v16, 1  ;;  %v2427_v13 = vrot.slane %v2424_v16, 2  ;;  %v2428_v23 = vrot.slane %v2424_v16, 3  ;;  %2440 = vst [vmem:[#allocation2 + $0x6] sm:$0x1] %v2424_v16  ;;  %v2429_v21 = vrot.slane %v2424_v16, 4 }
 0x64c   :  { %v2430_v36 = vrot.slane %v2424_v16, 5  ;;  %v2431_v5 = vrot.slane %v2424_v16, 6  ;;  %v2432_v59 = vrot.slane %v2424_v16, 7  ;;  %v2967_v16 = vrot.slane %v8007_v54, 4 }
 0x64d   :  { %2441 = vst [vmem:[#allocation2 + $0x16] sm:$0x1] %v2426_v28  ;;  %2824 = vperm.xlu2 %5468, %v7994_v57   ;;  %2828 = vperm.xlu0 %5473, %v7935_v6   ;;  %v2631_v28 = vsel %vm171_vm0, %v2630_v61, %v7912_v20 }
 0x64e   :  { %2442 = vst [vmem:[#allocation2 + $0x26] sm:$0x1] %v2427_v13  ;;  %v2968_v44 = vsel %vm180_vm3, %v2967_v16, %v2966_v4 }
 0x64f   :  { %2443 = vst [vmem:[#allocation2 + $0x36] sm:$0x1] %v2428_v23  ;;  %v8024_v14 = vsel %vm183_vm4, %v2969_v11, %v2968_v44 }
 0x650   :  { %2444 = vst [vmem:[#allocation2 + $0x46] sm:$0x1] %v2429_v21 }
 0x651   :  { %2445 = vst [vmem:[#allocation2 + $0x56] sm:$0x1] %v2430_v36  ;;  %v7910_v35 = vpop.permute.xlu1 %2466  ;;  %v2576_v34 = vpop.permute.xlu0 %2575  ;;  %v2604_v36 = vrot.slane %v7897_v43, 5 }
 0x652   :  { %2446 = vst [vmem:[#allocation2 + $0x66] sm:$0x1] %v2431_v5  ;;  %v7918_v3 = vpop.permute.xlu2 %2498  ;;  %v2602_v12 = vrot.slane %v7910_v35, 6  ;;  %v2712_v17 = vrot.slane %v2576_v34, 6 }
 0x653   :  { %2447 = vst [vmem:[#allocation2 + $0x76] sm:$0x1] %v2432_v59  ;;  %v2634_v35 = vrot.slane %v7918_v3, 5 }
 0x654   :  { %v2603_v13 = vsel %vm174_vm1, %v2602_v12, %v2601_v53  ;;  %v2640_v12 = vrot.slane %v7922_v8, 2 }
 0x655   :  { %v2605_v20 = vsel %vm177_vm2, %v2604_v36, %v2603_v13  ;;  %5470 = vset.pattern.permute.xlu2 %v5571_v52 }
 0x656   :  { %2835 = vperm.xlu2 %5470, %v2794_v56  }
 0x659   :  { %v7916_v58 = vpop.permute.xlu1 %2474 }
 0x65a   :  { %v7928_v30 = vpop.permute.xlu2 %2504  ;;  %v2606_v23 = vrot.slane %v7916_v58, 4 }
 0x65b   :  { %v2638_v45 = vrot.slane %v7928_v30, 3 }
 0x65c   :  { %v2607_v43 = vsel %vm180_vm3, %v2606_v23, %v2605_v20  ;;  %v2866_v20 = vld [vmem:[%s10112_s0 + $0x18] sm:$0x1] }
 0x65e   :  { %2844 = vperm.xlu2 %5470, %v7979_v10  }
 0x661   :  { %v7920_v29 = vpop.permute.xlu1 %2486 }
 0x662   :  { %v2531_v51 = vpop.permute.xlu2 %2530 }
 0x663   :  { %v2671_v15 = vsel %vm171_vm0, %v2670_v7, %v2531_v51  ;;  %v2608_v51 = vrot.slane %v7908_v37, 3 }
 0x665   :  { %v2609_v55 = vsel %vm183_vm4, %v2608_v51, %v2607_v43  ;;  %v8085_v43 = vld [vmem:[%s10112_s0 + $0xe7] sm:$0x1] }
 0x666   :  { %2850 = vperm.xlu2 %5470, %v7994_v57   ;;  %v2868_v57 = vld [vmem:[%s10112_s0 + $0x58] sm:$0x1] }
 0x667   :  { %2921 = vperm.xlu0 %5473, %v2868_v57  }
 0x66a   :  { %v2496_v42 = vpop.permute.xlu1 %2495  ;;  %v7950_v49 = vpop.permute.xlu2 %2542 }
 0x66b   :  { %v2632_v18 = vrot.slane %v2496_v42, 6  ;;  %v2674_v58 = vrot.slane %v7950_v49, 5  ;;  %v2610_v49 = vrot.slane %v7988_v62, 2 }
 0x66d   :  { %v2633_v5 = vsel %vm174_vm1, %v2632_v18, %v2631_v28  ;;  %v2591_v18 = vpop.permute.xlu0 %2590  ;;  %v2611_v7 = vsel %vm186_vm5, %v2610_v49, %v2609_v55 }
 0x66e   :  { %v2635_v2 = vsel %vm177_vm2, %v2634_v35, %v2633_v5  ;;  %2876 = vperm.xlu2 %5470, %v2866_v20  }
 0x66f   :  { %2936 = vperm.xlu0 %5473, %v7968_v22   ;;  %v2871_v22 = vld [vmem:[%s10112_s0 + $0xb8] sm:$0x1] }
 0x672   :  { %v7938_v25 = vpop.permute.xlu1 %2501  ;;  %v7970_v48 = vpop.permute.xlu2 %2554 }
 0x673   :  { %v2636_v59 = vrot.slane %v7938_v25, 4  ;;  %v2680_v4 = vrot.slane %v7970_v48, 2 }
 0x67a   :  { %v7948_v9 = vpop.permute.xlu1 %2510  ;;  %v2573_v41 = vpop.permute.xlu2 %2572 }
 0x67b   :  { %v2710_v21 = vrot.slane %v2573_v41, 7  ;;  %v2642_v30 = vrot.slane %v7948_v9, 1 }
 0x682   :  { %v2539_v0 = vpop.permute.xlu1 %2538  ;;  %v2582_v31 = vpop.permute.xlu2 %2581 }
 0x683   :  { %v2672_v19 = vrot.slane %v2539_v0, 6  ;;  %v2637_v0 = vsel %vm180_vm3, %v2636_v59, %v2635_v2  ;;  %v2716_v1 = vrot.slane %v2582_v31, 4  ;;  %v2748_v59 = vpop.permute.xlu0 %2747  ;;  %v2943_v2 = vld [vmem:[%s10115_s3 + $0xa7] sm:$0x1] }
 0x684   :  { %v2639_v38 = vsel %vm183_vm4, %v2638_v45, %v2637_v0  ;;  %v2945_v45 = vld [vmem:[%s10115_s3 + $0xe7] sm:$0x1] }
 0x685   :  { %v2673_v42 = vsel %vm174_vm1, %v2672_v19, %v2671_v15  ;;  %v2641_v53 = vsel %vm186_vm5, %v2640_v12, %v2639_v38  ;;  %v2858_v38 = vld [vmem:[%s10114_s2 + $0x18] sm:$0x1] }
 0x686   :  { %v2675_v33 = vsel %vm177_vm2, %v2674_v58, %v2673_v42  ;;  %v2643_v8 = vsel %vm189_vm6, %v2642_v30, %v2641_v53  ;;  %v2869_v58 = vld [vmem:[%s10112_s0 + $0x78] sm:$0x1] }
 0x687   :  { %2888 = vperm.xlu2 %5470, %v2869_v58   ;;  %v2872_v42 = vld [vmem:[%s10112_s0 + $0xd8] sm:$0x1] }
 0x688   :  { %v2864_v53 = vld [vmem:[%s10114_s2 + $0xd8] sm:$0x1] }
 0x68a   :  { %v7974_v24 = vpop.permute.xlu1 %2550  ;;  %v2588_v37 = vpop.permute.xlu2 %2587 }
 0x68b   :  { %v2678_v41 = vrot.slane %v7974_v24, 3  ;;  %v2677_v24 = vsel %vm180_vm3, %v2676_v32, %v2675_v33  ;;  %v2720_v31 = vrot.slane %v2588_v37, 2 }
 0x68f   :  { %2900 = vperm.xlu2 %5470, %v2872_v42  }
 0x692   :  { %v2708_v13 = vpop.permute.xlu2 %2707 }
 0x693   :  { %v2570_v47 = vpop.permute.xlu1 %2569 }
 0x694   :  { %v2711_v25 = vsel %vm171_vm0, %v2710_v21, %v2570_v47  ;;  %v2612_v47 = vrot.slane %v7920_v29, 1  ;;  %v2679_v29 = vsel %vm183_vm4, %v2678_v41, %v2677_v24  ;;  %v2722_v21 = vrot.slane %v2591_v18, 1  ;;  %v2862_v18 = vld [vmem:[%s10114_s2 + $0x98] sm:$0x1] }
 0x695   :  { %v2713_v56 = vsel %vm174_vm1, %v2712_v17, %v2711_v25  ;;  %v2681_v34 = vsel %vm186_vm5, %v2680_v4, %v2679_v29  ;;  %v2944_v25 = vld [vmem:[%s10115_s3 + $0xc7] sm:$0x1]  ;;  %v2859_v17 = vld [vmem:[%s10114_s2 + $0x38] sm:$0x1]  ;;  %v3087_v41 = vrot.slane %v2943_v2, 3  ;;  %v3005_v4 = vrot.slane %v2862_v18, 4 }
 0x696   :  { %v2613_v11 = vsel %vm189_vm6, %v2612_v47, %v2611_v7  ;;  %v3089_v55 = vrot.slane %v2944_v25, 2  ;;  %v2860_v47 = vld [vmem:[%s10114_s2 + $0x58] sm:$0x1] }
 0x697   :  { %v2751_v16 = vsel %vm2750_vm7, %v2613_v11, %v7906_v63  ;;  %5475 = vset.pattern.permute.xlu2 %v5572_v39  ;;  %vm3096_vm7 = vcmask 56320  }
 0x698   :  { %v2753_v48 = vsel %vm2752_vm8, %v2751_v16, %v2643_v8  ;;  %2918 = vperm.xlu2 %5475, %v7943_v40   ;;  %v2939_v40 = vld [vmem:[%s10115_s3 + $0x27] sm:$0x1]  ;;  %vm3098_vm8 = vcmask 195584  }
 0x69b   :  { %v2579_v46 = vpop.permute.xlu1 %2578 }
 0x69c   :  { %v2714_v3 = vrot.slane %v2579_v46, 5  ;;  %v2682_v46 = vrot.slane %v7960_v27, 1 }
 0x69e   :  { %v2715_v62 = vsel %vm177_vm2, %v2714_v3, %v2713_v56  ;;  %v2683_v5 = vsel %vm189_vm6, %v2682_v46, %v2681_v34  ;;  %v3079_v3 = vrot.slane %v2939_v40, 7  ;;  %v2999_v56 = vrot.slane %v2859_v17, 7  ;;  %v2907_v46 = vld [vmem:[%s10113_s1 + $0x38] sm:$0x1] }
 0x69f   :  { %v2717_v9 = vsel %vm180_vm3, %v2716_v1, %v2715_v62  ;;  %v3009_v34 = vrot.slane %v2864_v53, 2 }
 0x6a0   :  { %2927 = vperm.xlu2 %5475, %v7955_v50   ;;  %v2941_v50 = vld [vmem:[%s10115_s3 + $0x67] sm:$0x1]  ;;  %v3000_v24 = vsel %vm171_vm0, %v2999_v56, %v2858_v38 }
 0x6a1   :  { %v3083_v0 = vrot.slane %v2941_v50, 5 }
 0x6a3   :  { %v2585_v60 = vpop.permute.xlu1 %2584 }
 0x6a4   :  { %v2718_v61 = vrot.slane %v2585_v60, 3  ;;  %v3091_v60 = vrot.slane %v2945_v45, 1 }
 0x6a6   :  { %v2719_v19 = vsel %vm183_vm4, %v2718_v61, %v2717_v9  ;;  %v3001_v61 = vrot.slane %v2860_v47, 6 }
 0x6a7   :  { %v2721_v23 = vsel %vm186_vm5, %v2720_v31, %v2719_v19  ;;  %v2865_v31 = vld [vmem:[%s10114_s2 + $0xf8] sm:$0x1] }
 0x6a8   :  { %v2723_v27 = vsel %vm189_vm6, %v2722_v21, %v2721_v23  ;;  %2933 = vperm.xlu2 %5475, %v2872_v42   ;;  %v3002_v29 = vsel %vm174_vm1, %v3001_v61, %v3000_v24  ;;  %v2909_v23 = vld [vmem:[%s10113_s1 + $0x78] sm:$0x1]  ;;  %v3141_v61 = vld [vmem:[%s10112_s0 + $0x26] sm:$0x1] }
 0x6ab   :  { %v2668_v28 = vpop.permute.xlu1 %2667 }
 0x6ac   :  { %v2755_v36 = vsel %vm2754_vm9, %v2753_v48, %v2668_v28  ;;  %v2908_v48 = vld [vmem:[%s10113_s1 + $0x58] sm:$0x1]  ;;  %v3039_v28 = vrot.slane %v2907_v46, 7  ;;  %vm3100_vm9 = vcmask 310272  }
 0x6ad   :  { %v2757_v10 = vsel %vm2756_vm10, %v2755_v36, %v2683_v5  ;;  %v3041_v21 = vrot.slane %v2908_v48, 6  ;;  %v3011_v36 = vrot.slane %v2865_v31, 1  ;;  %v2910_v5 = vld [vmem:[%s10113_s1 + $0x98] sm:$0x1]  ;;  %v5574_v31 = vmov 6  }
 0x6ae   :  { %v2759_v44 = vsel %vm2758_vm11, %v2757_v10, %v2708_v13  ;;  %v2906_v13 = vld [vmem:[%s10113_s1 + $0x18] sm:$0x1]  ;;  %v3140_v48 = vld [vmem:[%s10112_s0 + $0x6] sm:$0x1]  ;;  %vm3102_vm10 = vcmask 449536   ;;  %vm3104_vm11 = vcmask 564224  }
 0x6af   :  { %v2761_v63 = vsel %vm2760_vm12, %v2759_v44, %v2723_v27  ;;  %v3040_v10 = vsel %vm171_vm0, %v3039_v28, %v2906_v13  ;;  %v2911_v27 = vld [vmem:[%s10113_s1 + $0xb8] sm:$0x1]  ;;  %v8269_v28 = vld [vmem:[%s10112_s0 + $0xf9] sm:$0x1]  ;;  %vm3106_vm12 = vcmask 703488  }
 0x6b0   :  { %v2763_v35 = vsel %vm2762_vm13, %v2761_v63, %v2748_v59  ;;  %v3043_v59 = vrot.slane %v2909_v23, 5  ;;  %v3042_v63 = vsel %vm174_vm1, %v3041_v21, %v3040_v10  ;;  %v3047_v42 = vrot.slane %v2911_v27, 3  ;;  %5476 = vset.pattern.permute.xlu2 %v5574_v31 }
 0x6b1   :  { %v8064_v15 = vsel %vm2764_vm14, %v2763_v35, %v2613_v11  ;;  %v2863_v11 = vld [vmem:[%s10114_s2 + $0xb8] sm:$0x1]  ;;  %v3045_v35 = vrot.slane %v2910_v5, 4  ;;  %v8280_v5 = vld [vmem:[%s10112_s0 + $0x66] sm:$0x1]  ;;  %vm3108_vm13 = vcmask 818176  }
 0x6b2   :  { %2767 = vrot.lane.b32.xlu1 %v8064_v15, %s5558_s27  ;;  %v3007_v19 = vrot.slane %v2863_v11, 3  ;;  %vm3110_vm14 = vcmask 957440  }
 0x6ba   :  { %2812 = vperm.xlu1 %5469, %v7986_v26  }
 0x6c2   :  { %2820 = vperm.xlu1 %5469, %v8007_v54  }
 0x6ca   :  { %2832 = vperm.xlu1 %5469, %v8085_v43  }
 0x6d2   :  { %5472 = vset.pattern.permute.xlu1 %v5571_v52  ;;  %v2940_v52 = vld [vmem:[%s10115_s3 + $0x47] sm:$0x1] }
 0x6d3   :  { %2841 = vperm.xlu1 %5472, %v7986_v26   ;;  %v2942_v26 = vld [vmem:[%s10115_s3 + $0x87] sm:$0x1]  ;;  %v3081_v51 = vrot.slane %v2940_v52, 6 }
 0x6d4   :  { %v3085_v49 = vrot.slane %v2942_v26, 4 }
 0x6db   :  { %2847 = vperm.xlu1 %5472, %v8007_v54   ;;  %v2938_v54 = vld [vmem:[%s10115_s3 + $0x7] sm:$0x1] }
 0x6dc   :  { %v3080_v33 = vsel %vm171_vm0, %v3079_v3, %v2938_v54  ;;  %v8192_v54 = vpop.permute.xlu2 %2804 }
 0x6dd   :  { %v3082_v32 = vsel %vm174_vm1, %v3081_v51, %v3080_v33  ;;  %v2971_v51 = vrot.slane %v7935_v6, 2 }
 0x6de   :  { %v3084_v37 = vsel %vm177_vm2, %v3083_v0, %v3082_v32  ;;  %v2973_v0 = vrot.slane %v8085_v43, 1 }
 0x6df   :  { %v3086_v30 = vsel %vm180_vm3, %v3085_v49, %v3084_v37  ;;  %v2972_v45 = vsel %vm186_vm5, %v2971_v51, %v8024_v14 }
 0x6e0   :  { %v3088_v62 = vsel %vm183_vm4, %v3087_v41, %v3086_v30  ;;  %v8207_v33 = vsel %vm189_vm6, %v2973_v0, %v2972_v45 }
 0x6e1   :  { %v3090_v12 = vsel %vm186_vm5, %v3089_v55, %v3088_v62 }
 0x6e2   :  { %v3092_v1 = vsel %vm189_vm6, %v3091_v60, %v3090_v12  ;;  %v8215_v60 = vpop.permute.xlu0 %2838  ;;  %v5573_v12 = vmov 25  }
 0x6e3   :  { %2856 = vperm.xlu1 %5472, %v8085_v43   ;;  %3093 = vrot.lane.b32.xlu0 %v3092_v1, %s5553_s15 }
 0x6e4   :  { %v8198_v3 = vpop.permute.xlu2 %2816  ;;  %5479 = vset.pattern.permute.xlu0 %v5573_v12 }
 0x6eb   :  { %2884 = vperm.xlu1 %5472, %v2868_v57   ;;  %v3044_v57 = vsel %vm177_vm2, %v3043_v59, %v3042_v63  ;;  %3184 = vperm.xlu0 %5479, %v3141_v61   ;;  %v8287_v59 = vld [vmem:[%s10112_s0 + $0x46] sm:$0x1] }
 0x6ec   :  { %v8209_v41 = vpop.permute.xlu2 %2824  ;;  %v3309_v63 = vrot.slane %v8287_v59, 6 }
 0x6f3   :  { %2896 = vperm.xlu1 %5472, %v2871_v22  }
 0x6fb   :  { %5474 = vset.pattern.permute.xlu1 %v5572_v39  ;;  %v2861_v39 = vld [vmem:[%s10114_s2 + $0x78] sm:$0x1] }
 0x6fc   :  { %2915 = vperm.xlu1 %5474, %v2866_v20   ;;  %v3003_v7 = vrot.slane %v2861_v39, 5  ;;  %v2912_v20 = vld [vmem:[%s10113_s1 + $0xd8] sm:$0x1]  ;;  %v8223_v39 = vpop.permute.xlu0 %2853 }
 0x6fd   :  { %v3049_v40 = vrot.slane %v2912_v20, 2 }
 0x6fe   :  { %v3004_v9 = vsel %vm177_vm2, %v3003_v7, %v3002_v29  ;;  %v8236_v7 = vld [vmem:[%s10112_s0 + $0xc6] sm:$0x1] }
 0x6ff   :  { %v3006_v8 = vsel %vm180_vm3, %v3005_v4, %v3004_v9  ;;  %3199 = vperm.xlu0 %5479, %v8236_v7   ;;  %v8244_v4 = vld [vmem:[%s10112_s0 + $0x39] sm:$0x1] }
 0x700   :  { %v3008_v16 = vsel %vm183_vm4, %v3007_v19, %v3006_v8  ;;  %v8256_v8 = vld [vmem:[%s10112_s0 + $0x99] sm:$0x1] }
 0x701   :  { %v3010_v44 = vsel %vm186_vm5, %v3009_v34, %v3008_v16  ;;  %v3307_v16 = vrot.slane %v3141_v61, 7 }
 0x702   :  { %v3012_v50 = vsel %vm189_vm6, %v3011_v36, %v3010_v44 }
 0x703   :  { %v3308_v23 = vsel %vm171_vm0, %v3307_v16, %v3140_v48 }
 0x704   :  { %2924 = vperm.xlu1 %5474, %v2869_v58   ;;  %v2913_v58 = vld [vmem:[%s10113_s1 + $0xf8] sm:$0x1]  ;;  %v8231_v18 = vpop.permute.xlu0 %2880  ;;  %v3310_v20 = vsel %vm174_vm1, %v3309_v63, %v3308_v23 }
 0x705   :  { %v3051_v52 = vrot.slane %v2913_v58, 1  ;;  %v3311_v58 = vrot.slane %v8280_v5, 5 }
 0x707   :  { %3226 = vperm.xlu0 %5479, %v8244_v4  }
 0x70c   :  { %2930 = vperm.xlu1 %5474, %v2871_v22   ;;  %v3046_v22 = vsel %vm180_vm3, %v3045_v35, %v3044_v57  ;;  %v8246_v9 = vpop.permute.xlu0 %2892  ;;  %v8295_v35 = vld [vmem:[%s10112_s0 + $0xa6] sm:$0x1] }
 0x70d   :  { %v3048_v26 = vsel %vm183_vm4, %v3047_v42, %v3046_v22  ;;  %v2976_v42 = vrot.slane %v8215_v60, 7  ;;  %v3022_v63 = vrot.slane %v8246_v9, 4 }
 0x70e   :  { %v3050_v2 = vsel %vm186_vm5, %v3049_v40, %v3048_v26  ;;  %v3315_v26 = vrot.slane %v8295_v35, 3 }
 0x70f   :  { %v3052_v25 = vsel %vm189_vm6, %v3051_v52, %v3050_v2  ;;  %3238 = vperm.xlu0 %5479, %v8256_v8   ;;  %v8308_v2 = vld [vmem:[%s10112_s0 + $0x86] sm:$0x1] }
 0x710   :  { %3053 = vrot.lane.b32.xlu2 %v3052_v25, %s5555_s19  ;;  %v3312_v25 = vsel %vm177_vm2, %v3311_v58, %v3310_v20 }
 0x714   :  { %3013 = vrot.lane.b32.xlu1 %v3012_v50, %s5554_s18  ;;  %v8261_v34 = vpop.permute.xlu0 %2904  ;;  %v3016_v50 = vrot.slane %v8231_v18, 7 }
 0x715   :  { %5477 = vset.pattern.permute.xlu1 %v5574_v31 }
 0x717   :  { %3250 = vperm.xlu0 %5479, %v8269_v28  }
 0x718   :  { %3150 = vperm.xlu2 %5476, %v3140_v48  }
 0x71c   :  { %v2809_v36 = vpop.permute.xlu0 %2808 }
 0x71d   :  { %v2946_v57 = vrot.slane %v2809_v36, 7 }
 0x71f   :  { %5481 = vset.pattern.permute.xlu0 %v5574_v31  ;;  %v2947_v51 = vsel %vm171_vm0, %v2946_v57, %v8192_v54 }
 0x720   :  { %3162 = vperm.xlu2 %5476, %v8280_v5   ;;  %3154 = vperm.xlu0 %5481, %v3141_v61  }
 0x724   :  { %v2768_v17 = vpop.permute.xlu1 %2767  ;;  %v8289_v44 = vpop.permute.xlu0 %2828 }
 0x725   :  { %v2770_v49 = vsel %vm347_vm15, %v8064_v15, %v2768_v17  ;;  %v8213_v15 = vpop.permute.xlu2 %2835 }
 0x726   :  { %v2772_v32 = vrot.slane %v2770_v49, 1  ;;  %v2773_v55 = vrot.slane %v2770_v49, 2  ;;  %v2774_v47 = vrot.slane %v2770_v49, 3  ;;  %2786 = vst [vmem:[#allocation2 + $0x7] sm:$0x1] %v2770_v49  ;;  %v2775_v56 = vrot.slane %v2770_v49, 4 }
 0x727   :  { %v2776_v6 = vrot.slane %v2770_v49, 5  ;;  %v2777_v43 = vrot.slane %v2770_v49, 6  ;;  %v2778_v37 = vrot.slane %v2770_v49, 7  ;;  %v3313_v49 = vrot.slane %v8308_v2, 4 }
 0x728   :  { %2787 = vst [vmem:[#allocation2 + $0x17] sm:$0x1] %v2772_v32  ;;  %3170 = vperm.xlu2 %5476, %v8295_v35   ;;  %3174 = vperm.xlu0 %5481, %v8236_v7   ;;  %v2977_v32 = vsel %vm171_vm0, %v2976_v42, %v8213_v15 }
 0x729   :  { %2788 = vst [vmem:[#allocation2 + $0x27] sm:$0x1] %v2773_v55  ;;  %v3314_v54 = vsel %vm180_vm3, %v3313_v49, %v3312_v25 }
 0x72a   :  { %2789 = vst [vmem:[#allocation2 + $0x37] sm:$0x1] %v2774_v47  ;;  %v8325_v61 = vsel %vm183_vm4, %v3315_v26, %v3314_v54 }
 0x72b   :  { %2790 = vst [vmem:[#allocation2 + $0x47] sm:$0x1] %v2775_v56 }
 0x72c   :  { %2791 = vst [vmem:[#allocation2 + $0x57] sm:$0x1] %v2776_v6  ;;  %v8211_v14 = vpop.permute.xlu1 %2812  ;;  %v2922_v17 = vpop.permute.xlu0 %2921  ;;  %v2950_v6 = vrot.slane %v8198_v3, 5 }
 0x72d   :  { %2792 = vst [vmem:[#allocation2 + $0x67] sm:$0x1] %v2777_v43  ;;  %v8219_v30 = vpop.permute.xlu2 %2844  ;;  %v2948_v22 = vrot.slane %v8211_v14, 6  ;;  %v3058_v16 = vrot.slane %v2922_v17, 6 }
 0x72e   :  { %2793 = vst [vmem:[#allocation2 + $0x77] sm:$0x1] %v2778_v37  ;;  %v2980_v14 = vrot.slane %v8219_v30, 5 }
 0x72f   :  { %v2949_v55 = vsel %vm174_vm1, %v2948_v22, %v2947_v51  ;;  %v2986_v22 = vrot.slane %v8223_v39, 2 }
 0x730   :  { %v2951_v15 = vsel %vm177_vm2, %v2950_v6, %v2949_v55  ;;  %5478 = vset.pattern.permute.xlu2 %v5573_v12 }
 0x731   :  { %3181 = vperm.xlu2 %5478, %v3140_v48  }
 0x734   :  { %v8217_v38 = vpop.permute.xlu1 %2820 }
 0x735   :  { %v8229_v24 = vpop.permute.xlu2 %2850  ;;  %v2952_v47 = vrot.slane %v8217_v38, 4 }
 0x736   :  { %v2984_v23 = vrot.slane %v8229_v24, 3 }
 0x737   :  { %v2953_v3 = vsel %vm180_vm3, %v2952_v47, %v2951_v15  ;;  %v3212_v15 = vld [vmem:[%s10112_s0 + $0x19] sm:$0x1] }
 0x739   :  { %3190 = vperm.xlu2 %5478, %v8280_v5  }
 0x73c   :  { %v8221_v62 = vpop.permute.xlu1 %2832 }
 0x73d   :  { %v2877_v11 = vpop.permute.xlu2 %2876 }
 0x73e   :  { %v3017_v60 = vsel %vm171_vm0, %v3016_v50, %v2877_v11  ;;  %v2954_v11 = vrot.slane %v8209_v41, 3 }
 0x740   :  { %v2955_v20 = vsel %vm183_vm4, %v2954_v11, %v2953_v3  ;;  %v8386_v3 = vld [vmem:[%s10112_s0 + $0xe6] sm:$0x1] }
 0x741   :  { %3196 = vperm.xlu2 %5478, %v8295_v35   ;;  %v3214_v35 = vld [vmem:[%s10112_s0 + $0x59] sm:$0x1] }
 0x742   :  { %3267 = vperm.xlu0 %5481, %v3214_v35  }
 0x745   :  { %v2842_v1 = vpop.permute.xlu1 %2841  ;;  %v8251_v19 = vpop.permute.xlu2 %2888 }
 0x746   :  { %v2978_v40 = vrot.slane %v2842_v1, 6  ;;  %v3020_v38 = vrot.slane %v8251_v19, 5  ;;  %v2956_v19 = vrot.slane %v8289_v44, 2 }
 0x748   :  { %v2979_v43 = vsel %vm174_vm1, %v2978_v40, %v2977_v32  ;;  %v2937_v40 = vpop.permute.xlu0 %2936  ;;  %v2957_v50 = vsel %vm186_vm5, %v2956_v19, %v2955_v20 }
 0x749   :  { %v2981_v18 = vsel %vm177_vm2, %v2980_v14, %v2979_v43  ;;  %3222 = vperm.xlu2 %5478, %v3212_v15  }
 0x74a   :  { %3282 = vperm.xlu0 %5481, %v8269_v28   ;;  %v3217_v28 = vld [vmem:[%s10112_s0 + $0xb9] sm:$0x1] }
 0x74d   :  { %v8239_v29 = vpop.permute.xlu1 %2847  ;;  %v8271_v13 = vpop.permute.xlu2 %2900 }
 0x74e   :  { %v2982_v37 = vrot.slane %v8239_v29, 4  ;;  %v3026_v25 = vrot.slane %v8271_v13, 2 }
 0x755   :  { %v8249_v53 = vpop.permute.xlu1 %2856  ;;  %v2919_v10 = vpop.permute.xlu2 %2918 }
 0x756   :  { %v3056_v56 = vrot.slane %v2919_v10, 7  ;;  %v2988_v24 = vrot.slane %v8249_v53, 1 }
 0x75d   :  { %v2885_v46 = vpop.permute.xlu1 %2884  ;;  %v2928_v52 = vpop.permute.xlu2 %2927 }
 0x75e   :  { %v3018_v0 = vrot.slane %v2885_v46, 6  ;;  %v2983_v46 = vsel %vm180_vm3, %v2982_v37, %v2981_v18  ;;  %v3062_v9 = vrot.slane %v2928_v52, 4  ;;  %v3094_v37 = vpop.permute.xlu0 %3093  ;;  %v3289_v18 = vld [vmem:[%s10115_s3 + $0xa6] sm:$0x1] }
 0x75f   :  { %v2985_v57 = vsel %vm183_vm4, %v2984_v23, %v2983_v46  ;;  %v3291_v23 = vld [vmem:[%s10115_s3 + $0xe6] sm:$0x1] }
 0x760   :  { %v3019_v1 = vsel %vm174_vm1, %v3018_v0, %v3017_v60  ;;  %v2987_v51 = vsel %vm186_vm5, %v2986_v22, %v2985_v57  ;;  %v3204_v57 = vld [vmem:[%s10114_s2 + $0x19] sm:$0x1] }
 0x761   :  { %v3021_v36 = vsel %vm177_vm2, %v3020_v38, %v3019_v1  ;;  %v2989_v39 = vsel %vm189_vm6, %v2988_v24, %v2987_v51  ;;  %v3215_v38 = vld [vmem:[%s10112_s0 + $0x79] sm:$0x1] }
 0x762   :  { %3234 = vperm.xlu2 %5478, %v3215_v38   ;;  %v3218_v1 = vld [vmem:[%s10112_s0 + $0xd9] sm:$0x1] }
 0x763   :  { %v3210_v51 = vld [vmem:[%s10114_s2 + $0xd9] sm:$0x1] }
 0x765   :  { %v8275_v21 = vpop.permute.xlu1 %2896  ;;  %v2934_v41 = vpop.permute.xlu2 %2933 }
 0x766   :  { %v3024_v10 = vrot.slane %v8275_v21, 3  ;;  %v3023_v21 = vsel %vm180_vm3, %v3022_v63, %v3021_v36  ;;  %v3066_v52 = vrot.slane %v2934_v41, 2 }
 0x76a   :  { %3246 = vperm.xlu2 %5478, %v3218_v1  }
 0x76d   :  { %v3054_v55 = vpop.permute.xlu2 %3053 }
 0x76e   :  { %v2916_v27 = vpop.permute.xlu1 %2915 }
 0x76f   :  { %v3057_v29 = vsel %vm171_vm0, %v3056_v56, %v2916_v27  ;;  %v2958_v27 = vrot.slane %v8221_v62, 1  ;;  %v3025_v62 = vsel %vm183_vm4, %v3024_v10, %v3023_v21  ;;  %v3068_v56 = vrot.slane %v2937_v40, 1  ;;  %v3208_v40 = vld [vmem:[%s10114_s2 + $0x99] sm:$0x1] }
 0x770   :  { %v3059_v48 = vsel %vm174_vm1, %v3058_v16, %v3057_v29  ;;  %v3027_v17 = vsel %vm186_vm5, %v3026_v25, %v3025_v62  ;;  %v3290_v29 = vld [vmem:[%s10115_s3 + $0xc6] sm:$0x1]  ;;  %v3205_v16 = vld [vmem:[%s10114_s2 + $0x39] sm:$0x1]  ;;  %v3433_v10 = vrot.slane %v3289_v18, 3  ;;  %v3351_v25 = vrot.slane %v3208_v40, 4 }
 0x771   :  { %v2959_v26 = vsel %vm189_vm6, %v2958_v27, %v2957_v50  ;;  %v3435_v20 = vrot.slane %v3290_v29, 2  ;;  %v3206_v27 = vld [vmem:[%s10114_s2 + $0x59] sm:$0x1] }
 0x772   :  { %v3097_v49 = vsel %vm3096_vm7, %v2959_v26, %v8207_v33  ;;  %5483 = vset.pattern.permute.xlu2 %v5574_v31  ;;  %vm3442_vm7 = vcmask 48128  }
 0x773   :  { %v3099_v13 = vsel %vm3098_vm8, %v3097_v49, %v2989_v39  ;;  %3264 = vperm.xlu2 %5483, %v8244_v4   ;;  %v3285_v4 = vld [vmem:[%s10115_s3 + $0x26] sm:$0x1]  ;;  %vm3444_vm8 = vcmask 203776  }
 0x776   :  { %v2925_v45 = vpop.permute.xlu1 %2924 }
 0x777   :  { %v3060_v30 = vrot.slane %v2925_v45, 5  ;;  %v3028_v45 = vrot.slane %v8261_v34, 1 }
 0x779   :  { %v3061_v44 = vsel %vm177_vm2, %v3060_v30, %v3059_v48  ;;  %v3029_v43 = vsel %vm189_vm6, %v3028_v45, %v3027_v17  ;;  %v3425_v30 = vrot.slane %v3285_v4, 7  ;;  %v3345_v48 = vrot.slane %v3205_v16, 7  ;;  %v3253_v45 = vld [vmem:[%s10113_s1 + $0x39] sm:$0x1] }
 0x77a   :  { %v3063_v53 = vsel %vm180_vm3, %v3062_v9, %v3061_v44  ;;  %v3355_v17 = vrot.slane %v3210_v51, 2 }
 0x77b   :  { %3273 = vperm.xlu2 %5483, %v8256_v8   ;;  %v3287_v8 = vld [vmem:[%s10115_s3 + $0x66] sm:$0x1]  ;;  %v3346_v21 = vsel %vm171_vm0, %v3345_v48, %v3204_v57 }
 0x77c   :  { %v3429_v46 = vrot.slane %v3287_v8, 5 }
 0x77e   :  { %v2931_v58 = vpop.permute.xlu1 %2930 }
 0x77f   :  { %v3064_v42 = vrot.slane %v2931_v58, 3  ;;  %v3437_v58 = vrot.slane %v3291_v23, 1 }
 0x781   :  { %v3065_v0 = vsel %vm183_vm4, %v3064_v42, %v3063_v53  ;;  %v3347_v42 = vrot.slane %v3206_v27, 6 }
 0x782   :  { %v3067_v47 = vsel %vm186_vm5, %v3066_v52, %v3065_v0  ;;  %v3211_v52 = vld [vmem:[%s10114_s2 + $0xf9] sm:$0x1] }
 0x783   :  { %v3069_v34 = vsel %vm189_vm6, %v3068_v56, %v3067_v47  ;;  %3279 = vperm.xlu2 %5483, %v3218_v1   ;;  %v3348_v62 = vsel %vm174_vm1, %v3347_v42, %v3346_v21  ;;  %v3255_v47 = vld [vmem:[%s10113_s1 + $0x79] sm:$0x1]  ;;  %v3487_v42 = vld [vmem:[%s10112_s0 + $0x25] sm:$0x1] }
 0x786   :  { %v3014_v32 = vpop.permute.xlu1 %3013 }
 0x787   :  { %v3101_v6 = vsel %vm3100_vm9, %v3099_v13, %v3014_v32  ;;  %v3254_v13 = vld [vmem:[%s10113_s1 + $0x59] sm:$0x1]  ;;  %v3385_v32 = vrot.slane %v3253_v45, 7  ;;  %vm3446_vm9 = vcmask 302080  }
 0x788   :  { %v3103_v5 = vsel %vm3102_vm10, %v3101_v6, %v3029_v43  ;;  %v3387_v56 = vrot.slane %v3254_v13, 6  ;;  %v3357_v6 = vrot.slane %v3211_v52, 1  ;;  %v3256_v43 = vld [vmem:[%s10113_s1 + $0x99] sm:$0x1]  ;;  %v5576_v52 = vmov 5  }
 0x789   :  { %v3105_v54 = vsel %vm3104_vm11, %v3103_v5, %v3054_v55  ;;  %v3252_v55 = vld [vmem:[%s10113_s1 + $0x19] sm:$0x1]  ;;  %v3486_v13 = vld [vmem:[%s10112_s0 + $0x5] sm:$0x1]  ;;  %vm3448_vm10 = vcmask 457728   ;;  %vm3450_vm11 = vcmask 556032  }
 0x78a   :  { %v3107_v33 = vsel %vm3106_vm12, %v3105_v54, %v3069_v34  ;;  %v3386_v5 = vsel %vm171_vm0, %v3385_v32, %v3252_v55  ;;  %v3257_v34 = vld [vmem:[%s10113_s1 + $0xb9] sm:$0x1]  ;;  %v8570_v32 = vld [vmem:[%s10112_s0 + $0xfa] sm:$0x1]  ;;  %vm3452_vm12 = vcmask 711680  }
 0x78b   :  { %v3109_v14 = vsel %vm3108_vm13, %v3107_v33, %v3094_v37  ;;  %v3389_v37 = vrot.slane %v3255_v47, 5  ;;  %v3388_v33 = vsel %vm174_vm1, %v3387_v56, %v3386_v5  ;;  %v3393_v1 = vrot.slane %v3257_v34, 3  ;;  %5484 = vset.pattern.permute.xlu2 %v5576_v52 }
 0x78c   :  { %v8365_v60 = vsel %vm3110_vm14, %v3109_v14, %v2959_v26  ;;  %v3209_v26 = vld [vmem:[%s10114_s2 + $0xb9] sm:$0x1]  ;;  %v3391_v14 = vrot.slane %v3256_v43, 4  ;;  %v8581_v43 = vld [vmem:[%s10112_s0 + $0x65] sm:$0x1]  ;;  %vm3454_vm13 = vcmask 809984  }
 0x78d   :  { %3113 = vrot.lane.b32.xlu1 %v8365_v60, %s5558_s27  ;;  %v3353_v0 = vrot.slane %v3209_v26, 3  ;;  %vm3456_vm14 = vcmask 965632  }
 0x795   :  { %3158 = vperm.xlu1 %5477, %v8287_v59  }
 0x79d   :  { %3166 = vperm.xlu1 %5477, %v8308_v2  }
 0x7a5   :  { %3178 = vperm.xlu1 %5477, %v8386_v3  }
 0x7ad   :  { %5480 = vset.pattern.permute.xlu1 %v5573_v12  ;;  %v3286_v12 = vld [vmem:[%s10115_s3 + $0x46] sm:$0x1] }
 0x7ae   :  { %3187 = vperm.xlu1 %5480, %v8287_v59   ;;  %v3288_v59 = vld [vmem:[%s10115_s3 + $0x86] sm:$0x1]  ;;  %v3427_v11 = vrot.slane %v3286_v12, 6 }
 0x7af   :  { %v3431_v19 = vrot.slane %v3288_v59, 4 }
 0x7b6   :  { %3193 = vperm.xlu1 %5480, %v8308_v2   ;;  %v3284_v2 = vld [vmem:[%s10115_s3 + $0x6] sm:$0x1] }
 0x7b7   :  { %v3426_v36 = vsel %vm171_vm0, %v3425_v30, %v3284_v2  ;;  %v8493_v2 = vpop.permute.xlu2 %3150 }
 0x7b8   :  { %v3428_v63 = vsel %vm174_vm1, %v3427_v11, %v3426_v36  ;;  %v3317_v11 = vrot.slane %v8236_v7, 2 }
 0x7b9   :  { %v3430_v41 = vsel %vm177_vm2, %v3429_v46, %v3428_v63  ;;  %v3319_v46 = vrot.slane %v8386_v3, 1 }
 0x7ba   :  { %v3432_v24 = vsel %vm180_vm3, %v3431_v19, %v3430_v41  ;;  %v3318_v23 = vsel %vm186_vm5, %v3317_v11, %v8325_v61 }
 0x7bb   :  { %v3434_v44 = vsel %vm183_vm4, %v3433_v10, %v3432_v24  ;;  %v8508_v36 = vsel %vm189_vm6, %v3319_v46, %v3318_v23 }
 0x7bc   :  { %v3436_v22 = vsel %vm186_vm5, %v3435_v20, %v3434_v44 }
 0x7bd   :  { %v3438_v9 = vsel %vm189_vm6, %v3437_v58, %v3436_v22  ;;  %v8516_v58 = vpop.permute.xlu0 %3184  ;;  %v5575_v22 = vmov 26  }
 0x7be   :  { %3202 = vperm.xlu1 %5480, %v8386_v3   ;;  %3439 = vrot.lane.b32.xlu0 %v3438_v9, %s5553_s15 }
 0x7bf   :  { %v8499_v30 = vpop.permute.xlu2 %3162  ;;  %5487 = vset.pattern.permute.xlu0 %v5575_v22 }
 0x7c6   :  { %3230 = vperm.xlu1 %5480, %v3214_v35   ;;  %v3390_v35 = vsel %vm177_vm2, %v3389_v37, %v3388_v33  ;;  %3530 = vperm.xlu0 %5487, %v3487_v42   ;;  %v8588_v37 = vld [vmem:[%s10112_s0 + $0x45] sm:$0x1] }
 0x7c7   :  { %v8510_v10 = vpop.permute.xlu2 %3170  ;;  %v3655_v33 = vrot.slane %v8588_v37, 6 }
 0x7ce   :  { %3242 = vperm.xlu1 %5480, %v3217_v28  }
 0x7d6   :  { %5482 = vset.pattern.permute.xlu1 %v5574_v31  ;;  %v3207_v31 = vld [vmem:[%s10114_s2 + $0x79] sm:$0x1] }
 0x7d7   :  { %3261 = vperm.xlu1 %5482, %v3212_v15   ;;  %v3349_v50 = vrot.slane %v3207_v31, 5  ;;  %v3258_v15 = vld [vmem:[%s10113_s1 + $0xd9] sm:$0x1]  ;;  %v8524_v31 = vpop.permute.xlu0 %3199 }
 0x7d8   :  { %v3395_v4 = vrot.slane %v3258_v15, 2 }
 0x7d9   :  { %v3350_v53 = vsel %vm177_vm2, %v3349_v50, %v3348_v62  ;;  %v8537_v50 = vld [vmem:[%s10112_s0 + $0xc5] sm:$0x1] }
 0x7da   :  { %v3352_v39 = vsel %vm180_vm3, %v3351_v25, %v3350_v53  ;;  %3545 = vperm.xlu0 %5487, %v8537_v50   ;;  %v8545_v25 = vld [vmem:[%s10112_s0 + $0x3a] sm:$0x1] }
 0x7db   :  { %v3354_v49 = vsel %vm183_vm4, %v3353_v0, %v3352_v39  ;;  %v8557_v39 = vld [vmem:[%s10112_s0 + $0x9a] sm:$0x1] }
 0x7dc   :  { %v3356_v54 = vsel %vm186_vm5, %v3355_v17, %v3354_v49  ;;  %v3653_v49 = vrot.slane %v3487_v42, 7 }
 0x7dd   :  { %v3358_v8 = vsel %vm189_vm6, %v3357_v6, %v3356_v54 }
 0x7de   :  { %v3654_v47 = vsel %vm171_vm0, %v3653_v49, %v3486_v13 }
 0x7df   :  { %3270 = vperm.xlu1 %5482, %v3215_v38   ;;  %v3259_v38 = vld [vmem:[%s10113_s1 + $0xf9] sm:$0x1]  ;;  %v8532_v40 = vpop.permute.xlu0 %3226  ;;  %v3656_v15 = vsel %vm174_vm1, %v3655_v33, %v3654_v47 }
 0x7e0   :  { %v3397_v12 = vrot.slane %v3259_v38, 1  ;;  %v3657_v38 = vrot.slane %v8581_v43, 5 }
 0x7e2   :  { %3572 = vperm.xlu0 %5487, %v8545_v25  }
 0x7e7   :  { %3276 = vperm.xlu1 %5482, %v3217_v28   ;;  %v3392_v28 = vsel %vm180_vm3, %v3391_v14, %v3390_v35  ;;  %v8547_v53 = vpop.permute.xlu0 %3238  ;;  %v8596_v14 = vld [vmem:[%s10112_s0 + $0xa5] sm:$0x1] }
 0x7e8   :  { %v3394_v59 = vsel %vm183_vm4, %v3393_v1, %v3392_v28  ;;  %v3322_v1 = vrot.slane %v8516_v58, 7  ;;  %v3368_v33 = vrot.slane %v8547_v53, 4 }
 0x7e9   :  { %v3396_v18 = vsel %vm186_vm5, %v3395_v4, %v3394_v59  ;;  %v3661_v59 = vrot.slane %v8596_v14, 3 }
 0x7ea   :  { %v3398_v29 = vsel %vm189_vm6, %v3397_v12, %v3396_v18  ;;  %3584 = vperm.xlu0 %5487, %v8557_v39   ;;  %v8609_v18 = vld [vmem:[%s10112_s0 + $0x85] sm:$0x1] }
 0x7eb   :  { %3399 = vrot.lane.b32.xlu2 %v3398_v29, %s5555_s19  ;;  %v3658_v29 = vsel %vm177_vm2, %v3657_v38, %v3656_v15 }
 0x7ef   :  { %3359 = vrot.lane.b32.xlu1 %v3358_v8, %s5554_s18  ;;  %v8562_v17 = vpop.permute.xlu0 %3250  ;;  %v3362_v8 = vrot.slane %v8532_v40, 7 }
 0x7f0   :  { %5485 = vset.pattern.permute.xlu1 %v5576_v52 }
 0x7f2   :  { %3596 = vperm.xlu0 %5487, %v8570_v32  }
 0x7f3   :  { %3496 = vperm.xlu2 %5484, %v3486_v13  }
 0x7f7   :  { %v3155_v6 = vpop.permute.xlu0 %3154 }
 0x7f8   :  { %v3292_v35 = vrot.slane %v3155_v6, 7 }
 0x7fa   :  { %5489 = vset.pattern.permute.xlu0 %v5576_v52  ;;  %v3293_v11 = vsel %vm171_vm0, %v3292_v35, %v8493_v2 }
 0x7fb   :  { %3508 = vperm.xlu2 %5484, %v8581_v43   ;;  %3500 = vperm.xlu0 %5489, %v3487_v42  }
 0x7ff   :  { %v3114_v16 = vpop.permute.xlu1 %3113  ;;  %v8590_v54 = vpop.permute.xlu0 %3174 }
 0x800   :  { %v3116_v19 = vsel %vm347_vm15, %v8365_v60, %v3114_v16  ;;  %v8514_v60 = vpop.permute.xlu2 %3181 }
 0x801   :  { %v3118_v63 = vrot.slane %v3116_v19, 1  ;;  %v3119_v20 = vrot.slane %v3116_v19, 2  ;;  %v3120_v27 = vrot.slane %v3116_v19, 3  ;;  %3132 = vst [vmem:[#allocation2 + $0x8] sm:$0x1] %v3116_v19  ;;  %v3121_v48 = vrot.slane %v3116_v19, 4 }
 0x802   :  { %v3122_v7 = vrot.slane %v3116_v19, 5  ;;  %v3123_v3 = vrot.slane %v3116_v19, 6  ;;  %v3124_v41 = vrot.slane %v3116_v19, 7  ;;  %v3659_v19 = vrot.slane %v8609_v18, 4 }
 0x803   :  { %3133 = vst [vmem:[#allocation2 + $0x18] sm:$0x1] %v3118_v63  ;;  %3516 = vperm.xlu2 %5484, %v8596_v14   ;;  %3520 = vperm.xlu0 %5489, %v8537_v50   ;;  %v3323_v63 = vsel %vm171_vm0, %v3322_v1, %v8514_v60 }
 0x804   :  { %3134 = vst [vmem:[#allocation2 + $0x28] sm:$0x1] %v3119_v20  ;;  %v3660_v2 = vsel %vm180_vm3, %v3659_v19, %v3658_v29 }
 0x805   :  { %3135 = vst [vmem:[#allocation2 + $0x38] sm:$0x1] %v3120_v27  ;;  %v8626_v42 = vsel %vm183_vm4, %v3661_v59, %v3660_v2 }
 0x806   :  { %3136 = vst [vmem:[#allocation2 + $0x48] sm:$0x1] %v3121_v48 }
 0x807   :  { %3137 = vst [vmem:[#allocation2 + $0x58] sm:$0x1] %v3122_v7  ;;  %v8512_v61 = vpop.permute.xlu1 %3158  ;;  %v3268_v16 = vpop.permute.xlu0 %3267  ;;  %v3296_v7 = vrot.slane %v8499_v30, 5 }
 0x808   :  { %3138 = vst [vmem:[#allocation2 + $0x68] sm:$0x1] %v3123_v3  ;;  %v8520_v24 = vpop.permute.xlu2 %3190  ;;  %v3294_v28 = vrot.slane %v8512_v61, 6  ;;  %v3404_v49 = vrot.slane %v3268_v16, 6 }
 0x809   :  { %3139 = vst [vmem:[#allocation2 + $0x78] sm:$0x1] %v3124_v41  ;;  %v3326_v61 = vrot.slane %v8520_v24, 5 }
 0x80a   :  { %v3295_v20 = vsel %vm174_vm1, %v3294_v28, %v3293_v11  ;;  %v3332_v28 = vrot.slane %v8524_v31, 2 }
 0x80b   :  { %v3297_v60 = vsel %vm177_vm2, %v3296_v7, %v3295_v20  ;;  %5486 = vset.pattern.permute.xlu2 %v5575_v22 }
 0x80c   :  { %3527 = vperm.xlu2 %5486, %v3486_v13  }
 0x80f   :  { %v8518_v57 = vpop.permute.xlu1 %3166 }
 0x810   :  { %v8530_v21 = vpop.permute.xlu2 %3196  ;;  %v3298_v27 = vrot.slane %v8518_v57, 4 }
 0x811   :  { %v3330_v47 = vrot.slane %v8530_v21, 3 }
 0x812   :  { %v3299_v30 = vsel %vm180_vm3, %v3298_v27, %v3297_v60  ;;  %v3558_v60 = vld [vmem:[%s10112_s0 + $0x1a] sm:$0x1] }
 0x814   :  { %3536 = vperm.xlu2 %5486, %v8581_v43  }
 0x817   :  { %v8522_v44 = vpop.permute.xlu1 %3178 }
 0x818   :  { %v3223_v26 = vpop.permute.xlu2 %3222 }
 0x819   :  { %v3363_v58 = vsel %vm171_vm0, %v3362_v8, %v3223_v26  ;;  %v3300_v26 = vrot.slane %v8510_v10, 3 }
 0x81b   :  { %v3301_v15 = vsel %vm183_vm4, %v3300_v26, %v3299_v30  ;;  %v8687_v30 = vld [vmem:[%s10112_s0 + $0xe5] sm:$0x1] }
 0x81c   :  { %3542 = vperm.xlu2 %5486, %v8596_v14   ;;  %v3560_v14 = vld [vmem:[%s10112_s0 + $0x5a] sm:$0x1] }
 0x81d   :  { %3613 = vperm.xlu0 %5489, %v3560_v14  }
 0x820   :  { %v3188_v9 = vpop.permute.xlu1 %3187  ;;  %v8552_v0 = vpop.permute.xlu2 %3234 }
 0x821   :  { %v3324_v4 = vrot.slane %v3188_v9, 6  ;;  %v3366_v57 = vrot.slane %v8552_v0, 5  ;;  %v3302_v0 = vrot.slane %v8590_v54, 2 }
 0x823   :  { %v3325_v3 = vsel %vm174_vm1, %v3324_v4, %v3323_v63  ;;  %v3283_v4 = vpop.permute.xlu0 %3282  ;;  %v3303_v8 = vsel %vm186_vm5, %v3302_v0, %v3301_v15 }
 0x824   :  { %v3327_v40 = vsel %vm177_vm2, %v3326_v61, %v3325_v3  ;;  %3568 = vperm.xlu2 %5486, %v3558_v60  }
 0x825   :  { %3628 = vperm.xlu0 %5489, %v8570_v32   ;;  %v3563_v32 = vld [vmem:[%s10112_s0 + $0xba] sm:$0x1] }
 0x828   :  { %v8540_v62 = vpop.permute.xlu1 %3193  ;;  %v8572_v55 = vpop.permute.xlu2 %3246 }
 0x829   :  { %v3328_v41 = vrot.slane %v8540_v62, 4  ;;  %v3372_v29 = vrot.slane %v8572_v55, 2 }
 0x830   :  { %v8550_v51 = vpop.permute.xlu1 %3202  ;;  %v3265_v5 = vpop.permute.xlu2 %3264 }
 0x831   :  { %v3402_v48 = vrot.slane %v3265_v5, 7  ;;  %v3334_v21 = vrot.slane %v8550_v51, 1 }
 0x838   :  { %v3231_v45 = vpop.permute.xlu1 %3230  ;;  %v3274_v12 = vpop.permute.xlu2 %3273 }
 0x839   :  { %v3364_v46 = vrot.slane %v3231_v45, 6  ;;  %v3329_v45 = vsel %vm180_vm3, %v3328_v41, %v3327_v40  ;;  %v3408_v53 = vrot.slane %v3274_v12, 4  ;;  %v3440_v41 = vpop.permute.xlu0 %3439  ;;  %v3635_v40 = vld [vmem:[%s10115_s3 + $0xa5] sm:$0x1] }
 0x83a   :  { %v3331_v35 = vsel %vm183_vm4, %v3330_v47, %v3329_v45  ;;  %v3637_v47 = vld [vmem:[%s10115_s3 + $0xe5] sm:$0x1] }
 0x83b   :  { %v3365_v9 = vsel %vm174_vm1, %v3364_v46, %v3363_v58  ;;  %v3333_v11 = vsel %vm186_vm5, %v3332_v28, %v3331_v35  ;;  %v3550_v35 = vld [vmem:[%s10114_s2 + $0x1a] sm:$0x1] }
 0x83c   :  { %v3367_v6 = vsel %vm177_vm2, %v3366_v57, %v3365_v9  ;;  %v3335_v31 = vsel %vm189_vm6, %v3334_v21, %v3333_v11  ;;  %v3561_v57 = vld [vmem:[%s10112_s0 + $0x7a] sm:$0x1] }
 0x83d   :  { %3580 = vperm.xlu2 %5486, %v3561_v57   ;;  %v3564_v9 = vld [vmem:[%s10112_s0 + $0xda] sm:$0x1] }
 0x83e   :  { %v3556_v11 = vld [vmem:[%s10114_s2 + $0xda] sm:$0x1] }
 0x840   :  { %v8576_v56 = vpop.permute.xlu1 %3242  ;;  %v3280_v10 = vpop.permute.xlu2 %3279 }
 0x841   :  { %v3370_v5 = vrot.slane %v8576_v56, 3  ;;  %v3369_v56 = vsel %vm180_vm3, %v3368_v33, %v3367_v6  ;;  %v3412_v12 = vrot.slane %v3280_v10, 2 }
 0x845   :  { %3592 = vperm.xlu2 %5486, %v3564_v9  }
 0x848   :  { %v3400_v20 = vpop.permute.xlu2 %3399 }
 0x849   :  { %v3262_v34 = vpop.permute.xlu1 %3261 }
 0x84a   :  { %v3403_v62 = vsel %vm171_vm0, %v3402_v48, %v3262_v34  ;;  %v3304_v34 = vrot.slane %v8522_v44, 1  ;;  %v3371_v44 = vsel %vm183_vm4, %v3370_v5, %v3369_v56  ;;  %v3414_v48 = vrot.slane %v3283_v4, 1  ;;  %v3554_v4 = vld [vmem:[%s10114_s2 + $0x9a] sm:$0x1] }
 0x84b   :  { %v3405_v13 = vsel %vm174_vm1, %v3404_v49, %v3403_v62  ;;  %v3373_v16 = vsel %vm186_vm5, %v3372_v29, %v3371_v44  ;;  %v3636_v62 = vld [vmem:[%s10115_s3 + $0xc5] sm:$0x1]  ;;  %v3551_v49 = vld [vmem:[%s10114_s2 + $0x3a] sm:$0x1]  ;;  %v3779_v5 = vrot.slane %v3635_v40, 3  ;;  %v3697_v29 = vrot.slane %v3554_v4, 4 }
 0x84c   :  { %v3305_v59 = vsel %vm189_vm6, %v3304_v34, %v3303_v8  ;;  %v3781_v15 = vrot.slane %v3636_v62, 2  ;;  %v3552_v34 = vld [vmem:[%s10114_s2 + $0x5a] sm:$0x1] }
 0x84d   :  { %v3443_v19 = vsel %vm3442_vm7, %v3305_v59, %v8508_v36  ;;  %5491 = vset.pattern.permute.xlu2 %v5576_v52  ;;  %vm3788_vm7 = vcmask 39936  }
 0x84e   :  { %v3445_v55 = vsel %vm3444_vm8, %v3443_v19, %v3335_v31  ;;  %3610 = vperm.xlu2 %5491, %v8545_v25   ;;  %v3631_v25 = vld [vmem:[%s10115_s3 + $0x25] sm:$0x1]  ;;  %vm3790_vm8 = vcmask 211968  }
 0x851   :  { %v3271_v23 = vpop.permute.xlu1 %3270 }
 0x852   :  { %v3406_v24 = vrot.slane %v3271_v23, 5  ;;  %v3374_v23 = vrot.slane %v8562_v17, 1 }
 0x854   :  { %v3407_v54 = vsel %vm177_vm2, %v3406_v24, %v3405_v13  ;;  %v3375_v3 = vsel %vm189_vm6, %v3374_v23, %v3373_v16  ;;  %v3771_v24 = vrot.slane %v3631_v25, 7  ;;  %v3691_v13 = vrot.slane %v3551_v49, 7  ;;  %v3599_v23 = vld [vmem:[%s10113_s1 + $0x3a] sm:$0x1] }
 0x855   :  { %v3409_v51 = vsel %vm180_vm3, %v3408_v53, %v3407_v54  ;;  %v3701_v16 = vrot.slane %v3556_v11, 2 }
 0x856   :  { %3619 = vperm.xlu2 %5491, %v8557_v39   ;;  %v3633_v39 = vld [vmem:[%s10115_s3 + $0x65] sm:$0x1]  ;;  %v3692_v56 = vsel %vm171_vm0, %v3691_v13, %v3550_v35 }
 0x857   :  { %v3775_v45 = vrot.slane %v3633_v39, 5 }
 0x859   :  { %v3277_v38 = vpop.permute.xlu1 %3276 }
 0x85a   :  { %v3410_v1 = vrot.slane %v3277_v38, 3  ;;  %v3783_v38 = vrot.slane %v3637_v47, 1 }
 0x85c   :  { %v3411_v46 = vsel %vm183_vm4, %v3410_v1, %v3409_v51  ;;  %v3693_v1 = vrot.slane %v3552_v34, 6 }
 0x85d   :  { %v3413_v27 = vsel %vm186_vm5, %v3412_v12, %v3411_v46  ;;  %v3557_v12 = vld [vmem:[%s10114_s2 + $0xfa] sm:$0x1] }
 0x85e   :  { %v3415_v17 = vsel %vm189_vm6, %v3414_v48, %v3413_v27  ;;  %3625 = vperm.xlu2 %5491, %v3564_v9   ;;  %v3694_v44 = vsel %vm174_vm1, %v3693_v1, %v3692_v56  ;;  %v3601_v27 = vld [vmem:[%s10113_s1 + $0x7a] sm:$0x1]  ;;  %v3833_v1 = vld [vmem:[%s10112_s0 + $0x24] sm:$0x1] }
 0x861   :  { %v3360_v63 = vpop.permute.xlu1 %3359 }
 0x862   :  { %v3447_v7 = vsel %vm3446_vm9, %v3445_v55, %v3360_v63  ;;  %v3600_v55 = vld [vmem:[%s10113_s1 + $0x5a] sm:$0x1]  ;;  %v3731_v63 = vrot.slane %v3599_v23, 7  ;;  %vm3792_vm9 = vcmask 293888  }
 0x863   :  { %v3449_v43 = vsel %vm3448_vm10, %v3447_v7, %v3375_v3  ;;  %v3733_v48 = vrot.slane %v3600_v55, 6  ;;  %v3703_v7 = vrot.slane %v3557_v12, 1  ;;  %v3602_v3 = vld [vmem:[%s10113_s1 + $0x9a] sm:$0x1]  ;;  %v5578_v12 = vmov 4  }
 0x864   :  { %v3451_v2 = vsel %vm3450_vm11, %v3449_v43, %v3400_v20  ;;  %v3598_v20 = vld [vmem:[%s10113_s1 + $0x1a] sm:$0x1]  ;;  %v3832_v55 = vld [vmem:[%s10112_s0 + $0x4] sm:$0x1]  ;;  %vm3794_vm10 = vcmask 465920   ;;  %vm3796_vm11 = vcmask 547840  }
 0x865   :  { %v3453_v36 = vsel %vm3452_vm12, %v3451_v2, %v3415_v17  ;;  %v3732_v43 = vsel %vm171_vm0, %v3731_v63, %v3598_v20  ;;  %v3603_v17 = vld [vmem:[%s10113_s1 + $0xba] sm:$0x1]  ;;  %v8871_v63 = vld [vmem:[%s10112_s0 + $0xfb] sm:$0x1]  ;;  %vm3798_vm12 = vcmask 719872  }
 0x866   :  { %v3455_v61 = vsel %vm3454_vm13, %v3453_v36, %v3440_v41  ;;  %v3735_v41 = vrot.slane %v3601_v27, 5  ;;  %v3734_v36 = vsel %vm174_vm1, %v3733_v48, %v3732_v43  ;;  %v3739_v9 = vrot.slane %v3603_v17, 3  ;;  %5492 = vset.pattern.permute.xlu2 %v5578_v12 }
 0x867   :  { %v8666_v58 = vsel %vm3456_vm14, %v3455_v61, %v3305_v59  ;;  %v3555_v59 = vld [vmem:[%s10114_s2 + $0xba] sm:$0x1]  ;;  %v3737_v61 = vrot.slane %v3602_v3, 4  ;;  %v8882_v3 = vld [vmem:[%s10112_s0 + $0x64] sm:$0x1]  ;;  %vm3800_vm13 = vcmask 801792  }
 0x868   :  { %3459 = vrot.lane.b32.xlu1 %v8666_v58, %s5558_s27  ;;  %v3699_v46 = vrot.slane %v3555_v59, 3  ;;  %vm3802_vm14 = vcmask 973824  }
 0x870   :  { %3504 = vperm.xlu1 %5485, %v8588_v37  }
 0x878   :  { %3512 = vperm.xlu1 %5485, %v8609_v18  }
 0x880   :  { %3524 = vperm.xlu1 %5485, %v8687_v30  }
 0x888   :  { %5488 = vset.pattern.permute.xlu1 %v5575_v22  ;;  %v3632_v22 = vld [vmem:[%s10115_s3 + $0x45] sm:$0x1] }
 0x889   :  { %3533 = vperm.xlu1 %5488, %v8588_v37   ;;  %v3634_v37 = vld [vmem:[%s10115_s3 + $0x85] sm:$0x1]  ;;  %v3773_v26 = vrot.slane %v3632_v22, 6 }
 0x88a   :  { %v3777_v0 = vrot.slane %v3634_v37, 4 }
 0x891   :  { %3539 = vperm.xlu1 %5488, %v8609_v18   ;;  %v3630_v18 = vld [vmem:[%s10115_s3 + $0x5] sm:$0x1] }
 0x892   :  { %v3772_v6 = vsel %vm171_vm0, %v3771_v24, %v3630_v18  ;;  %v8794_v18 = vpop.permute.xlu2 %3496 }
 0x893   :  { %v3774_v33 = vsel %vm174_vm1, %v3773_v26, %v3772_v6  ;;  %v3663_v26 = vrot.slane %v8537_v50, 2 }
 0x894   :  { %v3776_v10 = vsel %vm177_vm2, %v3775_v45, %v3774_v33  ;;  %v3665_v45 = vrot.slane %v8687_v30, 1 }
 0x895   :  { %v3778_v21 = vsel %vm180_vm3, %v3777_v0, %v3776_v10  ;;  %v3664_v47 = vsel %vm186_vm5, %v3663_v26, %v8626_v42 }
 0x896   :  { %v3780_v54 = vsel %vm183_vm4, %v3779_v5, %v3778_v21  ;;  %v8809_v6 = vsel %vm189_vm6, %v3665_v45, %v3664_v47 }
 0x897   :  { %v3782_v28 = vsel %vm186_vm5, %v3781_v15, %v3780_v54 }
 0x898   :  { %v3784_v53 = vsel %vm189_vm6, %v3783_v38, %v3782_v28  ;;  %v8817_v38 = vpop.permute.xlu0 %3530  ;;  %v5577_v28 = vmov 27  }
 0x899   :  { %3548 = vperm.xlu1 %5488, %v8687_v30   ;;  %3785 = vrot.lane.b32.xlu0 %v3784_v53, %s5553_s15 }
 0x89a   :  { %v8800_v24 = vpop.permute.xlu2 %3508  ;;  %5495 = vset.pattern.permute.xlu0 %v5577_v28 }
 0x8a1   :  { %3576 = vperm.xlu1 %5488, %v3560_v14   ;;  %v3736_v14 = vsel %vm177_vm2, %v3735_v41, %v3734_v36  ;;  %3876 = vperm.xlu0 %5495, %v3833_v1   ;;  %v8889_v41 = vld [vmem:[%s10112_s0 + $0x44] sm:$0x1] }
 0x8a2   :  { %v8811_v5 = vpop.permute.xlu2 %3516  ;;  %v4001_v36 = vrot.slane %v8889_v41, 6 }
 0x8a9   :  { %3588 = vperm.xlu1 %5488, %v3563_v32  }
 0x8b1   :  { %5490 = vset.pattern.permute.xlu1 %v5576_v52  ;;  %v3553_v52 = vld [vmem:[%s10114_s2 + $0x7a] sm:$0x1] }
 0x8b2   :  { %3607 = vperm.xlu1 %5490, %v3558_v60   ;;  %v3695_v8 = vrot.slane %v3553_v52, 5  ;;  %v3604_v60 = vld [vmem:[%s10113_s1 + $0xda] sm:$0x1]  ;;  %v8825_v52 = vpop.permute.xlu0 %3545 }
 0x8b3   :  { %v3741_v25 = vrot.slane %v3604_v60, 2 }
 0x8b4   :  { %v3696_v51 = vsel %vm177_vm2, %v3695_v8, %v3694_v44  ;;  %v8838_v8 = vld [vmem:[%s10112_s0 + $0xc4] sm:$0x1] }
 0x8b5   :  { %v3698_v31 = vsel %vm180_vm3, %v3697_v29, %v3696_v51  ;;  %3891 = vperm.xlu0 %5495, %v8838_v8   ;;  %v8846_v29 = vld [vmem:[%s10112_s0 + $0x3b] sm:$0x1] }
 0x8b6   :  { %v3700_v19 = vsel %vm183_vm4, %v3699_v46, %v3698_v31  ;;  %v8858_v31 = vld [vmem:[%s10112_s0 + $0x9b] sm:$0x1] }
 0x8b7   :  { %v3702_v2 = vsel %vm186_vm5, %v3701_v16, %v3700_v19  ;;  %v3999_v19 = vrot.slane %v3833_v1, 7 }
 0x8b8   :  { %v3704_v39 = vsel %vm189_vm6, %v3703_v7, %v3702_v2 }
 0x8b9   :  { %v4000_v27 = vsel %vm171_vm0, %v3999_v19, %v3832_v55 }
 0x8ba   :  { %3616 = vperm.xlu1 %5490, %v3561_v57   ;;  %v3605_v57 = vld [vmem:[%s10113_s1 + $0xfa] sm:$0x1]  ;;  %v8833_v4 = vpop.permute.xlu0 %3572  ;;  %v4002_v60 = vsel %vm174_vm1, %v4001_v36, %v4000_v27 }
 0x8bb   :  { %v3743_v22 = vrot.slane %v3605_v57, 1  ;;  %v4003_v57 = vrot.slane %v8882_v3, 5 }
 0x8bd   :  { %3918 = vperm.xlu0 %5495, %v8846_v29  }
 0x8c2   :  { %3622 = vperm.xlu1 %5490, %v3563_v32   ;;  %v3738_v32 = vsel %vm180_vm3, %v3737_v61, %v3736_v14  ;;  %v8848_v51 = vpop.permute.xlu0 %3584  ;;  %v8897_v61 = vld [vmem:[%s10112_s0 + $0xa4] sm:$0x1] }
 0x8c3   :  { %v3740_v37 = vsel %vm183_vm4, %v3739_v9, %v3738_v32  ;;  %v3668_v9 = vrot.slane %v8817_v38, 7  ;;  %v3714_v36 = vrot.slane %v8848_v51, 4 }
 0x8c4   :  { %v3742_v40 = vsel %vm186_vm5, %v3741_v25, %v3740_v37  ;;  %v4007_v37 = vrot.slane %v8897_v61, 3 }
 0x8c5   :  { %v3744_v62 = vsel %vm189_vm6, %v3743_v22, %v3742_v40  ;;  %3930 = vperm.xlu0 %5495, %v8858_v31   ;;  %v8910_v40 = vld [vmem:[%s10112_s0 + $0x84] sm:$0x1] }
 0x8c6   :  { %3745 = vrot.lane.b32.xlu2 %v3744_v62, %s5555_s19  ;;  %v4004_v62 = vsel %vm177_vm2, %v4003_v57, %v4002_v60 }
 0x8ca   :  { %3705 = vrot.lane.b32.xlu1 %v3704_v39, %s5554_s18  ;;  %v8863_v16 = vpop.permute.xlu0 %3596  ;;  %v3708_v39 = vrot.slane %v8833_v4, 7 }
 0x8cb   :  { %5493 = vset.pattern.permute.xlu1 %v5578_v12 }
 0x8cd   :  { %3942 = vperm.xlu0 %5495, %v8871_v63  }
 0x8ce   :  { %3842 = vperm.xlu2 %5492, %v3832_v55  }
 0x8d2   :  { %v3501_v7 = vpop.permute.xlu0 %3500 }
 0x8d3   :  { %v3638_v14 = vrot.slane %v3501_v7, 7 }
 0x8d5   :  { %5497 = vset.pattern.permute.xlu0 %v5578_v12  ;;  %v3639_v26 = vsel %vm171_vm0, %v3638_v14, %v8794_v18 }
 0x8d6   :  { %3854 = vperm.xlu2 %5492, %v8882_v3   ;;  %3846 = vperm.xlu0 %5497, %v3833_v1  }
 0x8da   :  { %v3460_v49 = vpop.permute.xlu1 %3459  ;;  %v8891_v2 = vpop.permute.xlu0 %3520 }
 0x8db   :  { %v3462_v0 = vsel %vm347_vm15, %v8666_v58, %v3460_v49  ;;  %v8815_v58 = vpop.permute.xlu2 %3527 }
 0x8dc   :  { %v3464_v33 = vrot.slane %v3462_v0, 1  ;;  %v3465_v15 = vrot.slane %v3462_v0, 2  ;;  %v3466_v34 = vrot.slane %v3462_v0, 3  ;;  %3478 = vst [vmem:[#allocation2 + $0x9] sm:$0x1] %v3462_v0  ;;  %v3467_v13 = vrot.slane %v3462_v0, 4 }
 0x8dd   :  { %v3468_v50 = vrot.slane %v3462_v0, 5  ;;  %v3469_v30 = vrot.slane %v3462_v0, 6  ;;  %v3470_v10 = vrot.slane %v3462_v0, 7  ;;  %v4005_v0 = vrot.slane %v8910_v40, 4 }
 0x8de   :  { %3479 = vst [vmem:[#allocation2 + $0x19] sm:$0x1] %v3464_v33  ;;  %3862 = vperm.xlu2 %5492, %v8897_v61   ;;  %3866 = vperm.xlu0 %5497, %v8838_v8   ;;  %v3669_v33 = vsel %vm171_vm0, %v3668_v9, %v8815_v58 }
 0x8df   :  { %3480 = vst [vmem:[#allocation2 + $0x29] sm:$0x1] %v3465_v15  ;;  %v4006_v18 = vsel %vm180_vm3, %v4005_v0, %v4004_v62 }
 0x8e0   :  { %3481 = vst [vmem:[#allocation2 + $0x39] sm:$0x1] %v3466_v34  ;;  %v8927_v1 = vsel %vm183_vm4, %v4007_v37, %v4006_v18 }
 0x8e1   :  { %3482 = vst [vmem:[#allocation2 + $0x49] sm:$0x1] %v3467_v13 }
 0x8e2   :  { %3483 = vst [vmem:[#allocation2 + $0x59] sm:$0x1] %v3468_v50  ;;  %v8813_v42 = vpop.permute.xlu1 %3504  ;;  %v3614_v49 = vpop.permute.xlu0 %3613  ;;  %v3642_v50 = vrot.slane %v8800_v24, 5 }
 0x8e3   :  { %3484 = vst [vmem:[#allocation2 + $0x69] sm:$0x1] %v3469_v30  ;;  %v8821_v21 = vpop.permute.xlu2 %3536  ;;  %v3640_v32 = vrot.slane %v8813_v42, 6  ;;  %v3750_v19 = vrot.slane %v3614_v49, 6 }
 0x8e4   :  { %3485 = vst [vmem:[#allocation2 + $0x79] sm:$0x1] %v3470_v10  ;;  %v3672_v42 = vrot.slane %v8821_v21, 5 }
 0x8e5   :  { %v3641_v15 = vsel %vm174_vm1, %v3640_v32, %v3639_v26  ;;  %v3678_v32 = vrot.slane %v8825_v52, 2 }
 0x8e6   :  { %v3643_v58 = vsel %vm177_vm2, %v3642_v50, %v3641_v15  ;;  %5494 = vset.pattern.permute.xlu2 %v5577_v28 }
 0x8e7   :  { %3873 = vperm.xlu2 %5494, %v3832_v55  }
 0x8ea   :  { %v8819_v35 = vpop.permute.xlu1 %3512 }
 0x8eb   :  { %v8831_v56 = vpop.permute.xlu2 %3542  ;;  %v3644_v34 = vrot.slane %v8819_v35, 4 }
 0x8ec   :  { %v3676_v27 = vrot.slane %v8831_v56, 3 }
 0x8ed   :  { %v3645_v24 = vsel %vm180_vm3, %v3644_v34, %v3643_v58  ;;  %v3904_v58 = vld [vmem:[%s10112_s0 + $0x1b] sm:$0x1] }
 0x8ef   :  { %3882 = vperm.xlu2 %5494, %v8882_v3  }
 0x8f2   :  { %v8823_v54 = vpop.permute.xlu1 %3524 }
 0x8f3   :  { %v3569_v59 = vpop.permute.xlu2 %3568 }
 0x8f4   :  { %v3709_v38 = vsel %vm171_vm0, %v3708_v39, %v3569_v59  ;;  %v3646_v59 = vrot.slane %v8811_v5, 3 }
 0x8f6   :  { %v3647_v60 = vsel %vm183_vm4, %v3646_v59, %v3645_v24  ;;  %v8988_v24 = vld [vmem:[%s10112_s0 + $0xe4] sm:$0x1] }
 0x8f7   :  { %3888 = vperm.xlu2 %5494, %v8897_v61   ;;  %v3906_v61 = vld [vmem:[%s10112_s0 + $0x5b] sm:$0x1] }
 0x8f8   :  { %3959 = vperm.xlu0 %5497, %v3906_v61  }
 0x8fb   :  { %v3534_v53 = vpop.permute.xlu1 %3533  ;;  %v8853_v46 = vpop.permute.xlu2 %3580 }
 0x8fc   :  { %v3670_v25 = vrot.slane %v3534_v53, 6  ;;  %v3712_v35 = vrot.slane %v8853_v46, 5  ;;  %v3648_v46 = vrot.slane %v8891_v2, 2 }
 0x8fe   :  { %v3671_v30 = vsel %vm174_vm1, %v3670_v25, %v3669_v33  ;;  %v3629_v25 = vpop.permute.xlu0 %3628  ;;  %v3649_v39 = vsel %vm186_vm5, %v3648_v46, %v3647_v60 }
 0x8ff   :  { %v3673_v4 = vsel %vm177_vm2, %v3672_v42, %v3671_v30  ;;  %3914 = vperm.xlu2 %5494, %v3904_v58  }
 0x900   :  { %3974 = vperm.xlu0 %5497, %v8871_v63   ;;  %v3909_v63 = vld [vmem:[%s10112_s0 + $0xbb] sm:$0x1] }
 0x903   :  { %v8841_v44 = vpop.permute.xlu1 %3539  ;;  %v8873_v20 = vpop.permute.xlu2 %3592 }
 0x904   :  { %v3674_v10 = vrot.slane %v8841_v44, 4  ;;  %v3718_v62 = vrot.slane %v8873_v20, 2 }
 0x90b   :  { %v8851_v11 = vpop.permute.xlu1 %3548  ;;  %v3611_v43 = vpop.permute.xlu2 %3610 }
 0x90c   :  { %v3748_v13 = vrot.slane %v3611_v43, 7  ;;  %v3680_v56 = vrot.slane %v8851_v11, 1 }
 0x913   :  { %v3577_v23 = vpop.permute.xlu1 %3576  ;;  %v3620_v22 = vpop.permute.xlu2 %3619 }
 0x914   :  { %v3710_v45 = vrot.slane %v3577_v23, 6  ;;  %v3675_v23 = vsel %vm180_vm3, %v3674_v10, %v3673_v4  ;;  %v3754_v51 = vrot.slane %v3620_v22, 4  ;;  %v3786_v10 = vpop.permute.xlu0 %3785  ;;  %v3981_v4 = vld [vmem:[%s10115_s3 + $0xa4] sm:$0x1] }
 0x915   :  { %v3677_v14 = vsel %vm183_vm4, %v3676_v27, %v3675_v23  ;;  %v3983_v27 = vld [vmem:[%s10115_s3 + $0xe4] sm:$0x1] }
 0x916   :  { %v3711_v53 = vsel %vm174_vm1, %v3710_v45, %v3709_v38  ;;  %v3679_v26 = vsel %vm186_vm5, %v3678_v32, %v3677_v14  ;;  %v4129_v14 = vrot.slane %v3983_v27, 1 }
 0x917   :  { %v3713_v7 = vsel %vm177_vm2, %v3712_v35, %v3711_v53  ;;  %v3681_v52 = vsel %vm189_vm6, %v3680_v56, %v3679_v26  ;;  %v3907_v35 = vld [vmem:[%s10112_s0 + $0x7b] sm:$0x1] }
 0x918   :  { %3926 = vperm.xlu2 %5494, %v3907_v35   ;;  %v3910_v53 = vld [vmem:[%s10112_s0 + $0xdb] sm:$0x1] }
 0x919   :  { %v3896_v56 = vld [vmem:[%s10114_s2 + $0x1b] sm:$0x1] }
 0x91b   :  { %v8877_v48 = vpop.permute.xlu1 %3588  ;;  %v3626_v5 = vpop.permute.xlu2 %3625 }
 0x91c   :  { %v3716_v43 = vrot.slane %v8877_v48, 3  ;;  %v3715_v48 = vsel %vm180_vm3, %v3714_v36, %v3713_v7  ;;  %v3758_v22 = vrot.slane %v3626_v5, 2  ;;  %v9030_v36 = vpop.permute.xlu0 %3876 }
 0x920   :  { %3938 = vperm.xlu2 %5494, %v3910_v53  }
 0x923   :  { %v3746_v15 = vpop.permute.xlu2 %3745 }
 0x924   :  { %v3608_v17 = vpop.permute.xlu1 %3607 }
 0x925   :  { %v3749_v44 = vsel %vm171_vm0, %v3748_v13, %v3608_v17  ;;  %v3650_v17 = vrot.slane %v8823_v54, 1  ;;  %v3717_v54 = vsel %vm183_vm4, %v3716_v43, %v3715_v48  ;;  %v3760_v13 = vrot.slane %v3629_v25, 1 }
 0x926   :  { %v3751_v55 = vsel %vm174_vm1, %v3750_v19, %v3749_v44  ;;  %v3719_v49 = vsel %vm186_vm5, %v3718_v62, %v3717_v54  ;;  %v3982_v44 = vld [vmem:[%s10115_s3 + $0xc4] sm:$0x1]  ;;  %v3897_v19 = vld [vmem:[%s10114_s2 + $0x3b] sm:$0x1]  ;;  %v4125_v43 = vrot.slane %v3981_v4, 3 }
 0x927   :  { %v3651_v37 = vsel %vm189_vm6, %v3650_v17, %v3649_v39  ;;  %v4127_v17 = vrot.slane %v3982_v44, 2  ;;  %v4037_v5 = vrot.slane %v3897_v19, 7  ;;  %v3900_v39 = vld [vmem:[%s10114_s2 + $0x9b] sm:$0x1]  ;;  %v9054_v62 = vpop.permute.xlu0 %3891 }
 0x928   :  { %v3789_v0 = vsel %vm3788_vm7, %v3651_v37, %v8809_v6  ;;  %5499 = vset.pattern.permute.xlu2 %v5578_v12  ;;  %v4043_v26 = vrot.slane %v3900_v39, 4  ;;  %vm4134_vm7 = vcmask 31744  }
 0x929   :  { %v3791_v20 = vsel %vm3790_vm8, %v3789_v0, %v3681_v52  ;;  %3956 = vperm.xlu2 %5499, %v8846_v29   ;;  %v3977_v29 = vld [vmem:[%s10115_s3 + $0x24] sm:$0x1]  ;;  %v3902_v52 = vld [vmem:[%s10114_s2 + $0xdb] sm:$0x1]  ;;  %vm4136_vm8 = vcmask 220160  }
 0x92a   :  { %v4047_v0 = vrot.slane %v3902_v52, 2 }
 0x92c   :  { %v3617_v47 = vpop.permute.xlu1 %3616 }
 0x92d   :  { %v3752_v21 = vrot.slane %v3617_v47, 5  ;;  %v3720_v47 = vrot.slane %v8863_v16, 1 }
 0x92f   :  { %v3753_v2 = vsel %vm177_vm2, %v3752_v21, %v3751_v55  ;;  %v3721_v30 = vsel %vm189_vm6, %v3720_v47, %v3719_v49  ;;  %v4117_v21 = vrot.slane %v3977_v29, 7  ;;  %v3898_v55 = vld [vmem:[%s10114_s2 + $0x5b] sm:$0x1] }
 0x930   :  { %v3755_v11 = vsel %vm180_vm3, %v3754_v51, %v3753_v2  ;;  %v4039_v32 = vrot.slane %v3898_v55, 6  ;;  %v4038_v51 = vsel %vm171_vm0, %v4037_v5, %v3896_v56  ;;  %v3903_v47 = vld [vmem:[%s10114_s2 + $0xfb] sm:$0x1] }
 0x931   :  { %3965 = vperm.xlu2 %5499, %v8858_v31   ;;  %v3979_v31 = vld [vmem:[%s10115_s3 + $0x64] sm:$0x1] }
 0x932   :  { %v4121_v23 = vrot.slane %v3979_v31, 5 }
 0x934   :  { %v3623_v57 = vpop.permute.xlu1 %3622 }
 0x935   :  { %v3756_v9 = vrot.slane %v3623_v57, 3 }
 0x937   :  { %v3757_v45 = vsel %vm183_vm4, %v3756_v9, %v3755_v11  ;;  %v3901_v11 = vld [vmem:[%s10114_s2 + $0xbb] sm:$0x1] }
 0x938   :  { %v3759_v34 = vsel %vm186_vm5, %v3758_v22, %v3757_v45  ;;  %v4045_v22 = vrot.slane %v3901_v11, 3 }
 0x939   :  { %v3761_v16 = vsel %vm189_vm6, %v3760_v13, %v3759_v34  ;;  %3971 = vperm.xlu2 %5499, %v3910_v53   ;;  %v3944_v13 = vld [vmem:[%s10113_s1 + $0x1b] sm:$0x1] }
 0x93a   :  { %v3950_v53 = vld [vmem:[%s10113_s1 + $0xdb] sm:$0x1] }
 0x93c   :  { %v3706_v33 = vpop.permute.xlu1 %3705 }
 0x93d   :  { %v3793_v50 = vsel %vm3792_vm9, %v3791_v20, %v3706_v33  ;;  %v3945_v20 = vld [vmem:[%s10113_s1 + $0x3b] sm:$0x1]  ;;  %vm4138_vm9 = vcmask 285696  }
 0x93e   :  { %v3795_v3 = vsel %vm3794_vm10, %v3793_v50, %v3721_v30  ;;  %v4077_v34 = vrot.slane %v3945_v20, 7  ;;  %v3947_v50 = vld [vmem:[%s10113_s1 + $0x7b] sm:$0x1]  ;;  %vm4140_vm10 = vcmask 474112  }
 0x93f   :  { %v3797_v18 = vsel %vm3796_vm11, %v3795_v3, %v3746_v15  ;;  %v3946_v15 = vld [vmem:[%s10113_s1 + $0x5b] sm:$0x1]  ;;  %v4049_v3 = vrot.slane %v3903_v47, 1  ;;  %vm4142_vm11 = vcmask 539648  }
 0x940   :  { %v3799_v6 = vsel %vm3798_vm12, %v3797_v18, %v3761_v16  ;;  %v4079_v30 = vrot.slane %v3946_v15, 6  ;;  %v4078_v18 = vsel %vm171_vm0, %v4077_v34, %v3944_v13  ;;  %v4081_v16 = vrot.slane %v3947_v50, 5  ;;  %v4179_v50 = vld [vmem:[%s10112_s0 + $0x23] sm:$0x1] }
 0x941   :  { %v3801_v42 = vsel %vm3800_vm13, %v3799_v6, %v3786_v10  ;;  %v3948_v10 = vld [vmem:[%s10113_s1 + $0x9b] sm:$0x1]  ;;  %v9084_v6 = vpop.permute.xlu0 %3918  ;;  %vm4144_vm12 = vcmask 728064   ;;  %vm4146_vm13 = vcmask 793600  }
 0x942   :  { %v8967_v38 = vsel %vm3802_vm14, %v3801_v42, %v3651_v37  ;;  %v4040_v37 = vsel %vm174_vm1, %v4039_v32, %v4038_v51  ;;  %vm4148_vm14 = vcmask 982016  }
 0x943   :  { %3805 = vrot.lane.b32.xlu1 %v8967_v38, %s5558_s27 }
 0x949   :  { %v9105_v19 = vpop.permute.xlu0 %3930 }
 0x94b   :  { %3850 = vperm.xlu1 %5493, %v8889_v41  }
 0x953   :  { %3858 = vperm.xlu1 %5493, %v8910_v40  }
 0x95b   :  { %3870 = vperm.xlu1 %5493, %v8988_v24  }
 0x963   :  { %5496 = vset.pattern.permute.xlu1 %v5577_v28  ;;  %v3978_v28 = vld [vmem:[%s10115_s3 + $0x44] sm:$0x1] }
 0x964   :  { %3879 = vperm.xlu1 %5496, %v8889_v41   ;;  %v3980_v41 = vld [vmem:[%s10115_s3 + $0x84] sm:$0x1]  ;;  %v4119_v59 = vrot.slane %v3978_v28, 6 }
 0x965   :  { %v4123_v46 = vrot.slane %v3980_v41, 4  ;;  %v4087_v41 = vrot.slane %v3950_v53, 2  ;;  %v9155_v53 = vld [vmem:[%s10112_s0 + $0x9c] sm:$0x1] }
 0x96c   :  { %3885 = vperm.xlu1 %5496, %v8910_v40   ;;  %v3976_v40 = vld [vmem:[%s10115_s3 + $0x4] sm:$0x1] }
 0x96d   :  { %v4118_v7 = vsel %vm171_vm0, %v4117_v21, %v3976_v40  ;;  %v3843_v21 = vpop.permute.xlu2 %3842 }
 0x96e   :  { %v4120_v60 = vsel %vm174_vm1, %v4119_v59, %v4118_v7  ;;  %v4011_v7 = vrot.slane %v8988_v24, 1 }
 0x96f   :  { %v4122_v57 = vsel %vm177_vm2, %v4121_v23, %v4120_v60 }
 0x970   :  { %v4124_v2 = vsel %vm180_vm3, %v4123_v46, %v4122_v57  ;;  %v4009_v46 = vrot.slane %v8838_v8, 2 }
 0x971   :  { %v4126_v9 = vsel %vm183_vm4, %v4125_v43, %v4124_v2  ;;  %v9109_v43 = vpop.permute.xlu0 %3942 }
 0x972   :  { %v4128_v48 = vsel %vm186_vm5, %v4127_v17, %v4126_v9  ;;  %v4010_v17 = vsel %vm186_vm5, %v4009_v46, %v8927_v1 }
 0x973   :  { %v4130_v25 = vsel %vm189_vm6, %v4129_v14, %v4128_v48  ;;  %v4012_v5 = vsel %vm189_vm6, %v4011_v7, %v4010_v17  ;;  %v9188_v7 = vld [vmem:[%s10112_s0 + $0xa3] sm:$0x1] }
 0x974   :  { %3894 = vperm.xlu1 %5496, %v8988_v24   ;;  %4131 = vrot.lane.b32.xlu0 %v4130_v25, %s5553_s15 }
 0x975   :  { %v3855_v27 = vpop.permute.xlu2 %3854 }
 0x979   :  { %v3847_v32 = vpop.permute.xlu0 %3846 }
 0x97c   :  { %3922 = vperm.xlu1 %5496, %v3906_v61   ;;  %v4083_v61 = vrot.slane %v3948_v10, 4 }
 0x97d   :  { %v3863_v57 = vpop.permute.xlu2 %3862 }
 0x984   :  { %3934 = vperm.xlu1 %5496, %v3909_v63  }
 0x985   :  { %v9116_v48 = vpop.permute.xlu2 %3873 }
 0x98c   :  { %5498 = vset.pattern.permute.xlu1 %v5578_v12  ;;  %v3899_v12 = vld [vmem:[%s10114_s2 + $0x7b] sm:$0x1] }
 0x98d   :  { %3953 = vperm.xlu1 %5498, %v3904_v58   ;;  %v4041_v54 = vrot.slane %v3899_v12, 5  ;;  %v3949_v58 = vld [vmem:[%s10113_s1 + $0xbb] sm:$0x1] }
 0x98e   :  { %v4085_v28 = vrot.slane %v3949_v58, 3  ;;  %v9147_v58 = vld [vmem:[%s10112_s0 + $0x3c] sm:$0x1] }
 0x98f   :  { %v4042_v45 = vsel %vm177_vm2, %v4041_v54, %v4040_v37  ;;  %v3988_v37 = vrot.slane %v3855_v27, 5 }
 0x990   :  { %v4044_v49 = vsel %vm180_vm3, %v4043_v26, %v4042_v45  ;;  %v3867_v45 = vpop.permute.xlu0 %3866 }
 0x991   :  { %v4046_v33 = vsel %vm183_vm4, %v4045_v22, %v4044_v49  ;;  %v3992_v22 = vrot.slane %v3863_v57, 3  ;;  %v9122_v49 = vpop.permute.xlu2 %3882  ;;  %v3994_v47 = vrot.slane %v3867_v45, 2 }
 0x992   :  { %v4048_v42 = vsel %vm186_vm5, %v4047_v0, %v4046_v33 }
 0x993   :  { %v4050_v4 = vsel %vm189_vm6, %v4049_v3, %v4048_v42 }
 0x995   :  { %3962 = vperm.xlu1 %5498, %v3907_v35   ;;  %v4080_v35 = vsel %vm174_vm1, %v4079_v30, %v4078_v18  ;;  %v5579_v30 = vmov 28   ;;  %v9141_v18 = vld [vmem:[%s10112_s0 + $0xc3] sm:$0x1] }
 0x996   :  { %v4082_v29 = vsel %vm177_vm2, %v4081_v16, %v4080_v35  ;;  %5503 = vset.pattern.permute.xlu0 %v5579_v30 }
 0x997   :  { %v4084_v31 = vsel %vm180_vm3, %v4083_v61, %v4082_v29  ;;  %4222 = vperm.xlu0 %5503, %v4179_v50  }
 0x998   :  { %v4086_v44 = vsel %vm183_vm4, %v4085_v28, %v4084_v31  ;;  %v4345_v28 = vrot.slane %v4179_v50, 7 }
 0x999   :  { %v4088_v59 = vsel %vm186_vm5, %v4087_v41, %v4086_v44  ;;  %v9136_v3 = vpop.permute.xlu2 %3888  ;;  %v4178_v41 = vld [vmem:[%s10112_s0 + $0x3] sm:$0x1] }
 0x99d   :  { %3968 = vperm.xlu1 %5498, %v3909_v63   ;;  %v3951_v63 = vld [vmem:[%s10113_s1 + $0xfb] sm:$0x1] }
 0x99e   :  { %v4089_v40 = vrot.slane %v3951_v63, 1  ;;  %v5580_v63 = vmov 3  }
 0x99f   :  { %4237 = vperm.xlu0 %5503, %v9141_v18   ;;  %5500 = vset.pattern.permute.xlu2 %v5580_v63 }
 0x9a0   :  { %v4090_v23 = vsel %vm189_vm6, %v4089_v40, %v4088_v59  ;;  %v9168_v40 = vld [vmem:[%s10112_s0 + $0xfc] sm:$0x1] }
 0x9a1   :  { %4091 = vrot.lane.b32.xlu2 %v4090_v23, %s5555_s19  ;;  %v3915_v42 = vpop.permute.xlu2 %3914  ;;  %v9182_v23 = vld [vmem:[%s10112_s0 + $0x43] sm:$0x1] }
 0x9a2   :  { %v4347_v46 = vrot.slane %v9182_v23, 6 }
 0x9a5   :  { %4051 = vrot.lane.b32.xlu1 %v4050_v4, %s5554_s18  ;;  %v4346_v4 = vsel %vm171_vm0, %v4345_v28, %v4178_v41 }
 0x9a6   :  { %5501 = vset.pattern.permute.xlu1 %v5580_v63 }
 0x9a7   :  { %4264 = vperm.xlu0 %5503, %v9147_v58  }
 0x9a9   :  { %v3927_v61 = vpop.permute.xlu2 %3926  ;;  %4188 = vperm.xlu2 %5500, %v4178_v41  }
 0x9af   :  { %4276 = vperm.xlu0 %5503, %v9155_v53  }
 0x9b1   :  { %v9160_v31 = vpop.permute.xlu2 %3938 }
 0x9b5   :  { %v3806_v60 = vpop.permute.xlu1 %3805 }
 0x9b6   :  { %v3808_v55 = vsel %vm347_vm15, %v8967_v38, %v3806_v60  ;;  %v3984_v38 = vrot.slane %v3847_v32, 7  ;;  %v4348_v60 = vsel %vm174_vm1, %v4347_v46, %v4346_v4 }
 0x9b7   :  { %v3810_v14 = vrot.slane %v3808_v55, 1  ;;  %v3811_v56 = vrot.slane %v3808_v55, 2  ;;  %v3812_v2 = vrot.slane %v3808_v55, 3  ;;  %3824 = vst [vmem:[#allocation2 + $0xa] sm:$0x1] %v3808_v55  ;;  %v3813_v9 = vrot.slane %v3808_v55, 4  ;;  %4288 = vperm.xlu0 %5503, %v9168_v40  }
 0x9b8   :  { %v3814_v8 = vrot.slane %v3808_v55, 5  ;;  %v3815_v24 = vrot.slane %v3808_v55, 6  ;;  %v3816_v12 = vrot.slane %v3808_v55, 7  ;;  %v3985_v25 = vsel %vm171_vm0, %v3984_v38, %v3843_v21  ;;  %v9175_v21 = vld [vmem:[%s10112_s0 + $0x63] sm:$0x1] }
 0x9b9   :  { %3825 = vst [vmem:[#allocation2 + $0x1a] sm:$0x1] %v3810_v14  ;;  %v3957_v59 = vpop.permute.xlu2 %3956  ;;  %4200 = vperm.xlu2 %5500, %v9175_v21   ;;  %v4349_v17 = vrot.slane %v9175_v21, 5  ;;  %v4014_v55 = vrot.slane %v9030_v36, 7  ;;  %v4054_v14 = vrot.slane %v9084_v6, 7 }
 0x9ba   :  { %3826 = vst [vmem:[#allocation2 + $0x2a] sm:$0x1] %v3811_v56  ;;  %v4353_v56 = vrot.slane %v9188_v7, 3 }
 0x9bb   :  { %3827 = vst [vmem:[#allocation2 + $0x3a] sm:$0x1] %v3812_v2  ;;  %v9200_v2 = vld [vmem:[%s10112_s0 + $0x83] sm:$0x1]  ;;  %v4015_v32 = vsel %vm171_vm0, %v4014_v55, %v9116_v48 }
 0x9bc   :  { %3828 = vst [vmem:[#allocation2 + $0x4a] sm:$0x1] %v3813_v9  ;;  %v4350_v9 = vsel %vm177_vm2, %v4349_v17, %v4348_v60  ;;  %v4066_v60 = vrot.slane %v9109_v43, 1 }
 0x9bd   :  { %3829 = vst [vmem:[#allocation2 + $0x5a] sm:$0x1] %v3814_v8  ;;  %v3851_v1 = vpop.permute.xlu1 %3850 }
 0x9be   :  { %3830 = vst [vmem:[#allocation2 + $0x6a] sm:$0x1] %v3815_v24  ;;  %v3986_v51 = vrot.slane %v3851_v1, 6  ;;  %v3960_v24 = vpop.permute.xlu0 %3959  ;;  %v4094_v1 = vrot.slane %v3957_v59, 7 }
 0x9bf   :  { %3831 = vst [vmem:[#allocation2 + $0x7a] sm:$0x1] %v3816_v12  ;;  %5505 = vset.pattern.permute.xlu0 %v5580_v63  ;;  %v4351_v12 = vrot.slane %v9200_v2, 4 }
 0x9c0   :  { %v3987_v39 = vsel %vm174_vm1, %v3986_v51, %v3985_v25  ;;  %4192 = vperm.xlu0 %5505, %v4179_v50   ;;  %v4018_v25 = vrot.slane %v9122_v49, 5  ;;  %v4022_v49 = vrot.slane %v9136_v3, 3 }
 0x9c1   :  { %v3989_v26 = vsel %vm177_vm2, %v3988_v37, %v3987_v39  ;;  %4208 = vperm.xlu2 %5500, %v9188_v7   ;;  %v3966_v57 = vpop.permute.xlu2 %3965  ;;  %v4352_v51 = vsel %vm180_vm3, %v4351_v12, %v4350_v9  ;;  %v4055_v39 = vsel %vm171_vm0, %v4054_v14, %v3915_v42 }
 0x9c2   :  { %v4100_v28 = vrot.slane %v3966_v57, 4 }
 0x9c5   :  { %v3859_v54 = vpop.permute.xlu1 %3858 }
 0x9c6   :  { %v3990_v11 = vrot.slane %v3859_v54, 4  ;;  %v9211_v54 = vsel %vm183_vm4, %v4353_v56, %v4352_v51  ;;  %v4328_v51 = vld [vmem:[%s10115_s3 + $0xc3] sm:$0x1] }
 0x9c8   :  { %v3991_v52 = vsel %vm180_vm3, %v3990_v11, %v3989_v26  ;;  %4212 = vperm.xlu0 %5505, %v9141_v18   ;;  %v4058_v11 = vrot.slane %v3927_v61, 5 }
 0x9c9   :  { %v3993_v0 = vsel %vm183_vm4, %v3992_v22, %v3991_v52  ;;  %5502 = vset.pattern.permute.xlu2 %v5579_v30  ;;  %v4096_v22 = vrot.slane %v3960_v24, 6 }
 0x9ca   :  { %v3995_v15 = vsel %vm186_vm5, %v3994_v47, %v3993_v0  ;;  %4219 = vperm.xlu2 %5502, %v4178_v41   ;;  %v3975_v41 = vpop.permute.xlu0 %3974 }
 0x9cb   :  { %v4106_v57 = vrot.slane %v3975_v41, 1 }
 0x9cd   :  { %v3871_v20 = vpop.permute.xlu1 %3870 }
 0x9ce   :  { %v3996_v33 = vrot.slane %v3871_v20, 1  ;;  %v4060_v20 = vrot.slane %v9105_v19, 4  ;;  %v4064_v19 = vrot.slane %v9160_v31, 2 }
 0x9d0   :  { %v9127_v34 = vsel %vm189_vm6, %v3996_v33, %v3995_v15  ;;  %v3972_v15 = vpop.permute.xlu2 %3971 }
 0x9d1   :  { %v9130_v13 = vsel %vm4134_vm7, %v9127_v34, %v4012_v5  ;;  %vm4480_vm7 = vcmask 23552  }
 0x9d2   :  { %4228 = vperm.xlu2 %5502, %v9175_v21  }
 0x9d6   :  { %v3880_v10 = vpop.permute.xlu1 %3879 }
 0x9d7   :  { %v4016_v5 = vrot.slane %v3880_v10, 6 }
 0x9d9   :  { %v4017_v6 = vsel %vm174_vm1, %v4016_v5, %v4015_v32  ;;  %v4253_v32 = vld [vmem:[%s10112_s0 + $0x7c] sm:$0x1] }
 0x9da   :  { %v4019_v26 = vsel %vm177_vm2, %v4018_v25, %v4017_v6  ;;  %4234 = vperm.xlu2 %5502, %v9188_v7   ;;  %v4256_v7 = vld [vmem:[%s10112_s0 + $0xdc] sm:$0x1]  ;;  %v4322_v6 = vld [vmem:[%s10115_s3 + $0x3] sm:$0x1] }
 0x9de   :  { %v3886_v16 = vpop.permute.xlu1 %3885 }
 0x9df   :  { %v4020_v38 = vrot.slane %v3886_v16, 4 }
 0x9e1   :  { %v4021_v52 = vsel %vm180_vm3, %v4020_v38, %v4019_v26  ;;  %v4327_v38 = vld [vmem:[%s10115_s3 + $0xa3] sm:$0x1] }
 0x9e2   :  { %v4023_v10 = vsel %vm183_vm4, %v4022_v49, %v4021_v52  ;;  %v4329_v26 = vld [vmem:[%s10115_s3 + $0xe3] sm:$0x1]  ;;  %v4471_v52 = vrot.slane %v4327_v38, 3  ;;  %v4473_v49 = vrot.slane %v4328_v51, 2 }
 0x9e6   :  { %v9150_v35 = vpop.permute.xlu1 %3894 }
 0x9e7   :  { %v4026_v16 = vrot.slane %v9150_v35, 1 }
 0x9ee   :  { %v3923_v29 = vpop.permute.xlu1 %3922 }
 0x9ef   :  { %v4056_v8 = vrot.slane %v3923_v29, 6  ;;  %v4024_v29 = vrot.slane %v9054_v62, 2  ;;  %v4104_v62 = vrot.slane %v3972_v15, 2  ;;  %v4242_v15 = vld [vmem:[%s10114_s2 + $0x1c] sm:$0x1] }
 0x9f1   :  { %v4057_v37 = vsel %vm174_vm1, %v4056_v8, %v4055_v39  ;;  %v4132_v8 = vpop.permute.xlu0 %4131 }
 0x9f2   :  { %v4059_v47 = vsel %vm177_vm2, %v4058_v11, %v4057_v37  ;;  %v4243_v11 = vld [vmem:[%s10114_s2 + $0x3c] sm:$0x1] }
 0x9f3   :  { %v4061_v3 = vsel %vm180_vm3, %v4060_v20, %v4059_v47  ;;  %v4244_v47 = vld [vmem:[%s10114_s2 + $0x5c] sm:$0x1] }
 0x9f6   :  { %v3935_v44 = vpop.permute.xlu1 %3934 }
 0x9f7   :  { %v4062_v0 = vrot.slane %v3935_v44, 3  ;;  %v4025_v44 = vsel %vm186_vm5, %v4024_v29, %v4023_v10 }
 0x9f9   :  { %v4063_v4 = vsel %vm183_vm4, %v4062_v0, %v4061_v3  ;;  %v4383_v0 = vrot.slane %v4243_v11, 7 }
 0x9fa   :  { %v4065_v46 = vsel %vm186_vm5, %v4064_v19, %v4063_v4  ;;  %v4247_v19 = vld [vmem:[%s10114_s2 + $0xbc] sm:$0x1] }
 0x9fb   :  { %v4092_v5 = vpop.permute.xlu2 %4091  ;;  %v4067_v56 = vsel %vm189_vm6, %v4066_v60, %v4065_v46  ;;  %v4384_v29 = vsel %vm171_vm0, %v4383_v0, %v4242_v15  ;;  %v4249_v60 = vld [vmem:[%s10114_s2 + $0xfc] sm:$0x1] }
 0x9ff   :  { %v3954_v27 = vpop.permute.xlu1 %3953 }
 0xa00   :  { %v4095_v48 = vsel %vm171_vm0, %v4094_v1, %v3954_v27  ;;  %v4027_v27 = vsel %vm189_vm6, %v4026_v16, %v4025_v44  ;;  %v9263_v1 = vld [vmem:[%s10112_s0 + $0xe3] sm:$0x1]  ;;  %v4385_v16 = vrot.slane %v4244_v47, 6 }
 0xa01   :  { %v4097_v33 = vsel %vm174_vm1, %v4096_v22, %v4095_v48  ;;  %v4137_v17 = vsel %vm4136_vm8, %v9130_v13, %v4027_v27  ;;  %v4250_v13 = vld [vmem:[%s10112_s0 + $0x1c] sm:$0x1]  ;;  %vm4482_vm8 = vcmask 228352  }
 0xa02   :  { %4260 = vperm.xlu2 %5502, %v4250_v13   ;;  %v4386_v4 = vsel %vm174_vm1, %v4385_v16, %v4384_v29  ;;  %v4248_v27 = vld [vmem:[%s10114_s2 + $0xdc] sm:$0x1] }
 0xa07   :  { %v3963_v36 = vpop.permute.xlu1 %3962 }
 0xa08   :  { %v4098_v45 = vrot.slane %v3963_v36, 5 }
 0xa0a   :  { %v4099_v42 = vsel %vm177_vm2, %v4098_v45, %v4097_v33  ;;  %4272 = vperm.xlu2 %5502, %v4253_v32   ;;  %v4475_v33 = vrot.slane %v4329_v26, 1 }
 0xa0b   :  { %v4101_v59 = vsel %vm180_vm3, %v4100_v28, %v4099_v42  ;;  %v4246_v28 = vld [vmem:[%s10114_s2 + $0x9c] sm:$0x1] }
 0xa0c   :  { %v4389_v44 = vrot.slane %v4246_v28, 4 }
 0xa0f   :  { %v3969_v50 = vpop.permute.xlu1 %3968 }
 0xa10   :  { %v4102_v61 = vrot.slane %v3969_v50, 3 }
 0xa12   :  { %v4103_v35 = vsel %vm183_vm4, %v4102_v61, %v4101_v59  ;;  %4284 = vperm.xlu2 %5502, %v4256_v7  }
 0xa13   :  { %v4105_v31 = vsel %vm186_vm5, %v4104_v62, %v4103_v35  ;;  %v4391_v35 = vrot.slane %v4247_v19, 3 }
 0xa14   :  { %v4107_v21 = vsel %vm189_vm6, %v4106_v57, %v4105_v31  ;;  %v4393_v31 = vrot.slane %v4248_v27, 2 }
 0xa17   :  { %v4052_v55 = vpop.permute.xlu1 %4051 }
 0xa18   :  { %v4139_v14 = vsel %vm4138_vm9, %v4137_v17, %v4052_v55  ;;  %v4291_v17 = vld [vmem:[%s10113_s1 + $0x3c] sm:$0x1]  ;;  %vm4484_vm9 = vcmask 277504  }
 0xa19   :  { %v4141_v9 = vsel %vm4140_vm10, %v4139_v14, %v4067_v56  ;;  %v4423_v57 = vrot.slane %v4291_v17, 7  ;;  %v4290_v14 = vld [vmem:[%s10113_s1 + $0x1c] sm:$0x1]  ;;  %vm4486_vm10 = vcmask 482304  }
 0xa1a   :  { %v4143_v24 = vsel %vm4142_vm11, %v4141_v9, %v4092_v5  ;;  %5507 = vset.pattern.permute.xlu2 %v5580_v63  ;;  %v4292_v5 = vld [vmem:[%s10113_s1 + $0x5c] sm:$0x1]  ;;  %vm4488_vm11 = vcmask 531456  }
 0xa1b   :  { %v4145_v43 = vsel %vm4144_vm12, %v4143_v24, %v4107_v21  ;;  %4302 = vperm.xlu2 %5507, %v9147_v58   ;;  %v9280_v58 = vpop.permute.xlu0 %4222  ;;  %v4293_v56 = vld [vmem:[%s10113_s1 + $0x7c] sm:$0x1]  ;;  %v4425_v9 = vrot.slane %v4292_v5, 6  ;;  %v4424_v21 = vsel %vm171_vm0, %v4423_v57, %v4290_v14  ;;  %vm4490_vm12 = vcmask 736256  }
 0xa1c   :  { %v4147_v36 = vsel %vm4146_vm13, %v4145_v43, %v4132_v8  ;;  %v4395_v8 = vrot.slane %v4249_v60, 1  ;;  %v4294_v24 = vld [vmem:[%s10113_s1 + $0x9c] sm:$0x1]  ;;  %v4427_v43 = vrot.slane %v4293_v56, 5  ;;  %v4525_v56 = vld [vmem:[%s10112_s0 + $0x22] sm:$0x1] }
 0xa1d   :  { %v9241_v12 = vsel %vm4148_vm14, %v4147_v36, %v9127_v34  ;;  %v4252_v34 = vld [vmem:[%s10112_s0 + $0x5c] sm:$0x1]  ;;  %vm4492_vm13 = vcmask 785408   ;;  %vm4494_vm14 = vcmask 990208  }
 0xa1e   :  { %4151 = vrot.lane.b32.xlu1 %v9241_v12, %s5558_s27  ;;  %4305 = vperm.xlu0 %5505, %v4252_v34  }
 0xa23   :  { %4311 = vperm.xlu2 %5507, %v9155_v53   ;;  %v4324_v53 = vld [vmem:[%s10115_s3 + $0x43] sm:$0x1]  ;;  %v9322_v61 = vpop.permute.xlu0 %4237 }
 0xa24   :  { %v4465_v39 = vrot.slane %v4324_v53, 6 }
 0xa26   :  { %4196 = vperm.xlu1 %5501, %v9182_v23   ;;  %4320 = vperm.xlu0 %5505, %v9168_v40   ;;  %v4255_v40 = vld [vmem:[%s10112_s0 + $0xbc] sm:$0x1] }
 0xa2b   :  { %4317 = vperm.xlu2 %5507, %v4256_v7   ;;  %v9339_v62 = vpop.permute.xlu0 %4264  ;;  %v4296_v7 = vld [vmem:[%s10113_s1 + $0xdc] sm:$0x1] }
 0xa2e   :  { %4204 = vperm.xlu1 %5501, %v9200_v2  }
 0xa36   :  { %4216 = vperm.xlu1 %5501, %v9263_v1  }
 0xa3e   :  { %5504 = vset.pattern.permute.xlu1 %v5579_v30  ;;  %v4323_v30 = vld [vmem:[%s10115_s3 + $0x23] sm:$0x1] }
 0xa3f   :  { %4225 = vperm.xlu1 %5504, %v9182_v23   ;;  %v4325_v23 = vld [vmem:[%s10115_s3 + $0x63] sm:$0x1]  ;;  %v4463_v25 = vrot.slane %v4323_v30, 7 }
 0xa40   :  { %v4467_v37 = vrot.slane %v4325_v23, 5 }
 0xa41   :  { %v4464_v45 = vsel %vm171_vm0, %v4463_v25, %v4322_v6  ;;  %v4189_v25 = vpop.permute.xlu2 %4188 }
 0xa42   :  { %v4466_v22 = vsel %vm174_vm1, %v4465_v39, %v4464_v45  ;;  %v4355_v45 = vrot.slane %v9141_v18, 2 }
 0xa43   :  { %v4468_v20 = vsel %vm177_vm2, %v4467_v37, %v4466_v22  ;;  %v9377_v37 = vpop.permute.xlu0 %4276 }
 0xa47   :  { %4231 = vperm.xlu1 %5504, %v9200_v2   ;;  %v4326_v2 = vld [vmem:[%s10115_s3 + $0x83] sm:$0x1] }
 0xa48   :  { %v4469_v48 = vrot.slane %v4326_v2, 4  ;;  %v4433_v2 = vrot.slane %v4296_v7, 2  ;;  %v9430_v7 = vld [vmem:[%s10112_s0 + $0x9d] sm:$0x1] }
 0xa49   :  { %v4201_v26 = vpop.permute.xlu2 %4200 }
 0xa4a   :  { %v4470_v50 = vsel %vm180_vm3, %v4469_v48, %v4468_v20  ;;  %v4334_v29 = vrot.slane %v4201_v26, 5 }
 0xa4b   :  { %v4472_v10 = vsel %vm183_vm4, %v4471_v52, %v4470_v50  ;;  %v9382_v48 = vpop.permute.xlu0 %4288  ;;  %v4357_v52 = vrot.slane %v9263_v1, 1 }
 0xa4c   :  { %v4474_v42 = vsel %vm186_vm5, %v4473_v49, %v4472_v10  ;;  %v4356_v49 = vsel %vm186_vm5, %v4355_v45, %v9211_v54 }
 0xa4d   :  { %v4476_v3 = vsel %vm189_vm6, %v4475_v33, %v4474_v42  ;;  %v4358_v0 = vsel %vm189_vm6, %v4357_v52, %v4356_v49  ;;  %v9463_v52 = vld [vmem:[%s10112_s0 + $0xa2] sm:$0x1] }
 0xa4e   :  { %4477 = vrot.lane.b32.xlu0 %v4476_v3, %s5553_s15 }
 0xa4f   :  { %4240 = vperm.xlu1 %5504, %v9263_v1  }
 0xa51   :  { %v4209_v20 = vpop.permute.xlu2 %4208 }
 0xa53   :  { %v4193_v10 = vpop.permute.xlu0 %4192 }
 0xa54   :  { %v4330_v1 = vrot.slane %v4193_v10, 7 }
 0xa56   :  { %v4331_v3 = vsel %vm171_vm0, %v4330_v1, %v4189_v25  ;;  %v9450_v25 = vld [vmem:[%s10112_s0 + $0x62] sm:$0x1] }
 0xa57   :  { %4268 = vperm.xlu1 %5504, %v4252_v34   ;;  %v4429_v34 = vrot.slane %v4294_v24, 4  ;;  %v4695_v49 = vrot.slane %v9450_v25, 5 }
 0xa5f   :  { %4280 = vperm.xlu1 %5504, %v4255_v40  }
 0xa67   :  { %5506 = vset.pattern.permute.xlu1 %v5580_v63  ;;  %v4245_v63 = vld [vmem:[%s10114_s2 + $0x7c] sm:$0x1] }
 0xa68   :  { %4299 = vperm.xlu1 %5506, %v4250_v13   ;;  %v4387_v41 = vrot.slane %v4245_v63, 5  ;;  %v4295_v13 = vld [vmem:[%s10113_s1 + $0xbc] sm:$0x1] }
 0xa69   :  { %v4431_v53 = vrot.slane %v4295_v13, 3  ;;  %v9422_v13 = vld [vmem:[%s10112_s0 + $0x3d] sm:$0x1] }
 0xa6a   :  { %v4388_v59 = vsel %vm177_vm2, %v4387_v41, %v4386_v4  ;;  %v9393_v41 = vpop.permute.xlu2 %4219 }
 0xa6b   :  { %v4390_v46 = vsel %vm180_vm3, %v4389_v44, %v4388_v59  ;;  %v4338_v59 = vrot.slane %v4209_v20, 3 }
 0xa6c   :  { %v4392_v55 = vsel %vm183_vm4, %v4391_v35, %v4390_v46  ;;  %v4213_v35 = vpop.permute.xlu0 %4212 }
 0xa6d   :  { %v4394_v36 = vsel %vm186_vm5, %v4393_v31, %v4392_v55  ;;  %v4340_v31 = vrot.slane %v4213_v35, 2 }
 0xa6e   :  { %v4396_v38 = vsel %vm189_vm6, %v4395_v8, %v4394_v36 }
 0xa70   :  { %4308 = vperm.xlu1 %5506, %v4253_v32   ;;  %v4426_v32 = vsel %vm174_vm1, %v4425_v9, %v4424_v21  ;;  %v5581_v9 = vmov 29   ;;  %v9416_v21 = vld [vmem:[%s10112_s0 + $0xc2] sm:$0x1] }
 0xa71   :  { %v4428_v30 = vsel %vm177_vm2, %v4427_v43, %v4426_v32  ;;  %5511 = vset.pattern.permute.xlu0 %v5581_v9 }
 0xa72   :  { %v4430_v23 = vsel %vm180_vm3, %v4429_v34, %v4428_v30  ;;  %v9398_v60 = vpop.permute.xlu2 %4228  ;;  %4568 = vperm.xlu0 %5511, %v4525_v56  }
 0xa73   :  { %v4432_v51 = vsel %vm183_vm4, %v4431_v53, %v4430_v23  ;;  %v4691_v53 = vrot.slane %v4525_v56, 7 }
 0xa74   :  { %v4434_v39 = vsel %vm186_vm5, %v4433_v2, %v4432_v51  ;;  %v4524_v2 = vld [vmem:[%s10112_s0 + $0x2] sm:$0x1] }
 0xa78   :  { %4314 = vperm.xlu1 %5506, %v4255_v40   ;;  %v4297_v40 = vld [vmem:[%s10113_s1 + $0xfc] sm:$0x1] }
 0xa79   :  { %v4435_v6 = vrot.slane %v4297_v40, 1  ;;  %v5582_v40 = vmov 2  }
 0xa7a   :  { %v9411_v8 = vpop.permute.xlu2 %4234  ;;  %4583 = vperm.xlu0 %5511, %v9416_v21   ;;  %5508 = vset.pattern.permute.xlu2 %v5582_v40 }
 0xa7b   :  { %v4436_v11 = vsel %vm189_vm6, %v4435_v6, %v4434_v39  ;;  %v9443_v6 = vld [vmem:[%s10112_s0 + $0xfd] sm:$0x1] }
 0xa7c   :  { %4437 = vrot.lane.b32.xlu2 %v4436_v11, %s5555_s19  ;;  %v9457_v11 = vld [vmem:[%s10112_s0 + $0x42] sm:$0x1] }
 0xa7d   :  { %v4693_v45 = vrot.slane %v9457_v11, 6 }
 0xa80   :  { %4397 = vrot.lane.b32.xlu1 %v4396_v38, %s5554_s18  ;;  %v4692_v38 = vsel %vm171_vm0, %v4691_v53, %v4524_v2 }
 0xa81   :  { %5509 = vset.pattern.permute.xlu1 %v5582_v40 }
 0xa82   :  { %v4261_v36 = vpop.permute.xlu2 %4260  ;;  %4610 = vperm.xlu0 %5511, %v9422_v13  }
 0xa84   :  { %4534 = vperm.xlu2 %5508, %v4524_v2  }
 0xa8a   :  { %v4273_v34 = vpop.permute.xlu2 %4272  ;;  %4622 = vperm.xlu0 %5511, %v9430_v7  }
 0xa8c   :  { %4546 = vperm.xlu2 %5508, %v9450_v25  }
 0xa90   :  { %v4152_v22 = vpop.permute.xlu1 %4151 }
 0xa91   :  { %v4154_v47 = vsel %vm347_vm15, %v9241_v12, %v4152_v22  ;;  %v4694_v22 = vsel %vm174_vm1, %v4693_v45, %v4692_v38 }
 0xa92   :  { %v4156_v33 = vrot.slane %v4154_v47, 1  ;;  %v4157_v15 = vrot.slane %v4154_v47, 2  ;;  %v4158_v50 = vrot.slane %v4154_v47, 3  ;;  %4170 = vst [vmem:[#allocation2 + $0xb] sm:$0x1] %v4154_v47  ;;  %v4159_v63 = vrot.slane %v4154_v47, 4  ;;  %v9435_v23 = vpop.permute.xlu2 %4284  ;;  %4634 = vperm.xlu0 %5511, %v9443_v6  }
 0xa93   :  { %v4160_v16 = vrot.slane %v4154_v47, 5  ;;  %v4161_v18 = vrot.slane %v4154_v47, 6  ;;  %v4162_v42 = vrot.slane %v4154_v47, 7  ;;  %v4360_v47 = vrot.slane %v9280_v58, 7 }
 0xa94   :  { %4171 = vst [vmem:[#allocation2 + $0x1b] sm:$0x1] %v4156_v33  ;;  %4554 = vperm.xlu2 %5508, %v9463_v52   ;;  %v4400_v33 = vrot.slane %v9339_v62, 7  ;;  %v4696_v10 = vsel %vm177_vm2, %v4695_v49, %v4694_v22  ;;  %v4412_v22 = vrot.slane %v9382_v48, 1 }
 0xa95   :  { %4172 = vst [vmem:[#allocation2 + $0x2b] sm:$0x1] %v4157_v15  ;;  %v4699_v15 = vrot.slane %v9463_v52, 3  ;;  %v4361_v1 = vsel %vm171_vm0, %v4360_v47, %v9393_v41 }
 0xa96   :  { %4173 = vst [vmem:[#allocation2 + $0x3b] sm:$0x1] %v4158_v50  ;;  %v9475_v50 = vld [vmem:[%s10112_s0 + $0x82] sm:$0x1] }
 0xa97   :  { %4174 = vst [vmem:[#allocation2 + $0x4b] sm:$0x1] %v4159_v63 }
 0xa98   :  { %4175 = vst [vmem:[#allocation2 + $0x5b] sm:$0x1] %v4160_v16  ;;  %v4197_v54 = vpop.permute.xlu1 %4196  ;;  %v4306_v16 = vpop.permute.xlu0 %4305 }
 0xa99   :  { %4176 = vst [vmem:[#allocation2 + $0x6b] sm:$0x1] %v4161_v18  ;;  %v4332_v12 = vrot.slane %v4197_v54, 6  ;;  %v4697_v18 = vrot.slane %v9475_v50, 4  ;;  %v4442_v35 = vrot.slane %v4306_v16, 6 }
 0xa9a   :  { %4177 = vst [vmem:[#allocation2 + $0x7b] sm:$0x1] %v4162_v42  ;;  %v4303_v39 = vpop.permute.xlu2 %4302  ;;  %5513 = vset.pattern.permute.xlu0 %v5582_v40 }
 0xa9b   :  { %v4333_v28 = vsel %vm174_vm1, %v4332_v12, %v4331_v3  ;;  %4538 = vperm.xlu0 %5513, %v4525_v56   ;;  %v4440_v42 = vrot.slane %v4303_v39, 7  ;;  %v4698_v12 = vsel %vm180_vm3, %v4697_v18, %v4696_v10  ;;  %v4401_v3 = vsel %vm171_vm0, %v4400_v33, %v4261_v36 }
 0xa9c   :  { %v4335_v4 = vsel %vm177_vm2, %v4334_v29, %v4333_v28  ;;  %v4364_v29 = vrot.slane %v9398_v60, 5  ;;  %v9486_v28 = vsel %vm183_vm4, %v4699_v15, %v4698_v12  ;;  %5510 = vset.pattern.permute.xlu2 %v5581_v9  ;;  %v4674_v12 = vld [vmem:[%s10115_s3 + $0xc2] sm:$0x1] }
 0xa9d   :  { %4565 = vperm.xlu2 %5510, %v4524_v2  }
 0xaa0   :  { %v4205_v19 = vpop.permute.xlu1 %4204  ;;  %v4321_v2 = vpop.permute.xlu0 %4320 }
 0xaa1   :  { %v4336_v44 = vrot.slane %v4205_v19, 4  ;;  %v4404_v19 = vrot.slane %v4273_v34, 5 }
 0xaa2   :  { %v4312_v20 = vpop.permute.xlu2 %4311 }
 0xaa3   :  { %v4337_v27 = vsel %vm180_vm3, %v4336_v44, %v4335_v4  ;;  %4558 = vperm.xlu0 %5513, %v9416_v21   ;;  %v4446_v53 = vrot.slane %v4312_v20, 4  ;;  %v4452_v20 = vrot.slane %v4321_v2, 1 }
 0xaa4   :  { %v4339_v46 = vsel %vm183_vm4, %v4338_v59, %v4337_v27 }
 0xaa5   :  { %v4341_v5 = vsel %vm186_vm5, %v4340_v31, %v4339_v46  ;;  %v4368_v46 = vrot.slane %v9411_v8, 3  ;;  %4574 = vperm.xlu2 %5510, %v9450_v25  }
 0xaa8   :  { %v4217_v17 = vpop.permute.xlu1 %4216 }
 0xaa9   :  { %v4342_v55 = vrot.slane %v4217_v17, 1  ;;  %v4406_v17 = vrot.slane %v9377_v37, 4  ;;  %v4410_v37 = vrot.slane %v9435_v23, 2 }
 0xaab   :  { %v9402_v57 = vsel %vm189_vm6, %v4342_v55, %v4341_v5  ;;  %v4318_v5 = vpop.permute.xlu2 %4317 }
 0xaac   :  { %v9405_v14 = vsel %vm4480_vm7, %v9402_v57, %v4358_v0  ;;  %vm4826_vm7 = vcmask 15360  }
 0xaad   :  { %4580 = vperm.xlu2 %5510, %v9463_v52   ;;  %v4602_v52 = vld [vmem:[%s10112_s0 + $0xdd] sm:$0x1] }
 0xab1   :  { %v4226_v24 = vpop.permute.xlu1 %4225 }
 0xab2   :  { %v4362_v0 = vrot.slane %v4226_v24, 6 }
 0xab4   :  { %v4363_v62 = vsel %vm174_vm1, %v4362_v0, %v4361_v1  ;;  %v4599_v1 = vld [vmem:[%s10112_s0 + $0x7d] sm:$0x1] }
 0xab5   :  { %v4365_v44 = vsel %vm177_vm2, %v4364_v29, %v4363_v62  ;;  %v4668_v62 = vld [vmem:[%s10115_s3 + $0x2] sm:$0x1] }
 0xab9   :  { %v4232_v43 = vpop.permute.xlu1 %4231 }
 0xaba   :  { %v4366_v54 = vrot.slane %v4232_v43, 4 }
 0xabc   :  { %v4367_v27 = vsel %vm180_vm3, %v4366_v54, %v4365_v44  ;;  %v4673_v54 = vld [vmem:[%s10115_s3 + $0xa2] sm:$0x1] }
 0xabd   :  { %v4369_v24 = vsel %vm183_vm4, %v4368_v46, %v4367_v27  ;;  %v4675_v44 = vld [vmem:[%s10115_s3 + $0xe2] sm:$0x1]  ;;  %v4817_v27 = vrot.slane %v4673_v54, 3  ;;  %v4819_v46 = vrot.slane %v4674_v12, 2 }
 0xac1   :  { %v9425_v32 = vpop.permute.xlu1 %4240 }
 0xac2   :  { %v4372_v43 = vrot.slane %v9425_v32, 1 }
 0xac9   :  { %v4269_v30 = vpop.permute.xlu1 %4268 }
 0xaca   :  { %v4402_v63 = vrot.slane %v4269_v30, 6  ;;  %v4370_v30 = vrot.slane %v9322_v61, 2  ;;  %v4450_v61 = vrot.slane %v4318_v5, 2  ;;  %v4588_v5 = vld [vmem:[%s10114_s2 + $0x1d] sm:$0x1] }
 0xacc   :  { %v4403_v4 = vsel %vm174_vm1, %v4402_v63, %v4401_v3  ;;  %v4478_v63 = vpop.permute.xlu0 %4477 }
 0xacd   :  { %v4405_v60 = vsel %vm177_vm2, %v4404_v19, %v4403_v4  ;;  %v4589_v19 = vld [vmem:[%s10114_s2 + $0x3d] sm:$0x1] }
 0xace   :  { %v4407_v8 = vsel %vm180_vm3, %v4406_v17, %v4405_v60  ;;  %v4590_v60 = vld [vmem:[%s10114_s2 + $0x5d] sm:$0x1] }
 0xad1   :  { %v4281_v51 = vpop.permute.xlu1 %4280 }
 0xad2   :  { %v4408_v31 = vrot.slane %v4281_v51, 3  ;;  %v4371_v51 = vsel %vm186_vm5, %v4370_v30, %v4369_v24 }
 0xad4   :  { %v4409_v38 = vsel %vm183_vm4, %v4408_v31, %v4407_v8  ;;  %v4729_v31 = vrot.slane %v4589_v19, 7 }
 0xad5   :  { %v4411_v45 = vsel %vm186_vm5, %v4410_v37, %v4409_v38  ;;  %v4593_v37 = vld [vmem:[%s10114_s2 + $0xbd] sm:$0x1] }
 0xad6   :  { %v4438_v0 = vpop.permute.xlu2 %4437  ;;  %v4413_v15 = vsel %vm189_vm6, %v4412_v22, %v4411_v45  ;;  %v4730_v30 = vsel %vm171_vm0, %v4729_v31, %v4588_v5  ;;  %v4595_v22 = vld [vmem:[%s10114_s2 + $0xfd] sm:$0x1] }
 0xada   :  { %v4300_v26 = vpop.permute.xlu1 %4299 }
 0xadb   :  { %v4441_v41 = vsel %vm171_vm0, %v4440_v42, %v4300_v26  ;;  %v4373_v26 = vsel %vm189_vm6, %v4372_v43, %v4371_v51  ;;  %v9538_v42 = vld [vmem:[%s10112_s0 + $0xe2] sm:$0x1]  ;;  %v4731_v43 = vrot.slane %v4590_v60, 6 }
 0xadc   :  { %v4443_v55 = vsel %vm174_vm1, %v4442_v35, %v4441_v41  ;;  %v4483_v49 = vsel %vm4482_vm8, %v9405_v14, %v4373_v26  ;;  %v4596_v14 = vld [vmem:[%s10112_s0 + $0x1d] sm:$0x1]  ;;  %vm4828_vm8 = vcmask 236544  }
 0xadd   :  { %4606 = vperm.xlu2 %5510, %v4596_v14   ;;  %v4732_v38 = vsel %vm174_vm1, %v4731_v43, %v4730_v30  ;;  %v4594_v26 = vld [vmem:[%s10114_s2 + $0xdd] sm:$0x1] }
 0xae2   :  { %v4309_v58 = vpop.permute.xlu1 %4308 }
 0xae3   :  { %v4444_v59 = vrot.slane %v4309_v58, 5 }
 0xae5   :  { %v4445_v36 = vsel %vm177_vm2, %v4444_v59, %v4443_v55  ;;  %4618 = vperm.xlu2 %5510, %v4599_v1   ;;  %v4821_v55 = vrot.slane %v4675_v44, 1 }
 0xae6   :  { %v4447_v39 = vsel %vm180_vm3, %v4446_v53, %v4445_v36  ;;  %v4592_v53 = vld [vmem:[%s10114_s2 + $0x9d] sm:$0x1] }
 0xae7   :  { %v4735_v51 = vrot.slane %v4592_v53, 4 }
 0xaea   :  { %v4315_v56 = vpop.permute.xlu1 %4314 }
 0xaeb   :  { %v4448_v34 = vrot.slane %v4315_v56, 3 }
 0xaed   :  { %v4449_v32 = vsel %vm183_vm4, %v4448_v34, %v4447_v39  ;;  %4630 = vperm.xlu2 %5510, %v4602_v52  }
 0xaee   :  { %v4451_v23 = vsel %vm186_vm5, %v4450_v61, %v4449_v32  ;;  %v4737_v32 = vrot.slane %v4593_v37, 3 }
 0xaef   :  { %v4453_v25 = vsel %vm189_vm6, %v4452_v20, %v4451_v23  ;;  %v4739_v23 = vrot.slane %v4594_v26, 2 }
 0xaf2   :  { %v4398_v47 = vpop.permute.xlu1 %4397 }
 0xaf3   :  { %v4485_v33 = vsel %vm4484_vm9, %v4483_v49, %v4398_v47  ;;  %v4637_v49 = vld [vmem:[%s10113_s1 + $0x3d] sm:$0x1]  ;;  %vm4830_vm9 = vcmask 269312  }
 0xaf4   :  { %v4487_v10 = vsel %vm4486_vm10, %v4485_v33, %v4413_v15  ;;  %v4769_v20 = vrot.slane %v4637_v49, 7  ;;  %v4636_v33 = vld [vmem:[%s10113_s1 + $0x1d] sm:$0x1]  ;;  %vm4832_vm10 = vcmask 490496  }
 0xaf5   :  { %v4489_v16 = vsel %vm4488_vm11, %v4487_v10, %v4438_v0  ;;  %5515 = vset.pattern.permute.xlu2 %v5582_v40  ;;  %v4638_v0 = vld [vmem:[%s10113_s1 + $0x5d] sm:$0x1]  ;;  %vm4834_vm11 = vcmask 523264  }
 0xaf6   :  { %v4491_v48 = vsel %vm4490_vm12, %v4489_v16, %v4453_v25  ;;  %4648 = vperm.xlu2 %5515, %v9422_v13   ;;  %v9555_v13 = vpop.permute.xlu0 %4568  ;;  %v4639_v15 = vld [vmem:[%s10113_s1 + $0x7d] sm:$0x1]  ;;  %v4771_v10 = vrot.slane %v4638_v0, 6  ;;  %v4770_v25 = vsel %vm171_vm0, %v4769_v20, %v4636_v33  ;;  %vm4836_vm12 = vcmask 744448  }
 0xaf7   :  { %v4493_v58 = vsel %vm4492_vm13, %v4491_v48, %v4478_v63  ;;  %v4741_v63 = vrot.slane %v4595_v22, 1  ;;  %v4640_v16 = vld [vmem:[%s10113_s1 + $0x9d] sm:$0x1]  ;;  %v4773_v48 = vrot.slane %v4639_v15, 5  ;;  %vm4838_vm13 = vcmask 777216  }
 0xaf8   :  { %v9516_v18 = vsel %vm4494_vm14, %v4493_v58, %v9402_v57  ;;  %v4598_v57 = vld [vmem:[%s10112_s0 + $0x5d] sm:$0x1]  ;;  %vm4840_vm14 = vcmask 998400  }
 0xaf9   :  { %4497 = vrot.lane.b32.xlu1 %v9516_v18, %s5558_s27  ;;  %4651 = vperm.xlu0 %5513, %v4598_v57  }
 0xafe   :  { %4657 = vperm.xlu2 %5515, %v9430_v7   ;;  %v4670_v7 = vld [vmem:[%s10115_s3 + $0x42] sm:$0x1]  ;;  %v9597_v34 = vpop.permute.xlu0 %4583 }
 0xaff   :  { %v4811_v3 = vrot.slane %v4670_v7, 6 }
 0xb01   :  { %4542 = vperm.xlu1 %5509, %v9457_v11   ;;  %4666 = vperm.xlu0 %5513, %v9443_v6   ;;  %v4601_v6 = vld [vmem:[%s10112_s0 + $0xbd] sm:$0x1] }
 0xb06   :  { %4663 = vperm.xlu2 %5515, %v4602_v52   ;;  %v9614_v61 = vpop.permute.xlu0 %4610  ;;  %v4642_v52 = vld [vmem:[%s10113_s1 + $0xdd] sm:$0x1] }
 0xb09   :  { %4550 = vperm.xlu1 %5509, %v9475_v50  }
 0xb11   :  { %4562 = vperm.xlu1 %5509, %v9538_v42  }
 0xb19   :  { %5512 = vset.pattern.permute.xlu1 %v5581_v9  ;;  %v4669_v9 = vld [vmem:[%s10115_s3 + $0x22] sm:$0x1] }
 0xb1a   :  { %4571 = vperm.xlu1 %5512, %v9457_v11   ;;  %v4671_v11 = vld [vmem:[%s10115_s3 + $0x62] sm:$0x1]  ;;  %v4809_v29 = vrot.slane %v4669_v9, 7 }
 0xb1b   :  { %v4813_v4 = vrot.slane %v4671_v11, 5 }
 0xb1c   :  { %v4810_v59 = vsel %vm171_vm0, %v4809_v29, %v4668_v62  ;;  %v4535_v29 = vpop.permute.xlu2 %4534 }
 0xb1d   :  { %v4812_v35 = vsel %vm174_vm1, %v4811_v3, %v4810_v59  ;;  %v4701_v59 = vrot.slane %v9416_v21, 2 }
 0xb1e   :  { %v4814_v17 = vsel %vm177_vm2, %v4813_v4, %v4812_v35  ;;  %v9652_v4 = vpop.permute.xlu0 %4622 }
 0xb22   :  { %4577 = vperm.xlu1 %5512, %v9475_v50   ;;  %v4672_v50 = vld [vmem:[%s10115_s3 + $0x82] sm:$0x1] }
 0xb23   :  { %v4815_v41 = vrot.slane %v4672_v50, 4  ;;  %v4779_v50 = vrot.slane %v4642_v52, 2  ;;  %v5584_v52 = vmov 30  }
 0xb24   :  { %v4547_v44 = vpop.permute.xlu2 %4546  ;;  %5516 = vset.pattern.permute.xlu2 %v5584_v52 }
 0xb25   :  { %v4816_v56 = vsel %vm180_vm3, %v4815_v41, %v4814_v17  ;;  %v4680_v30 = vrot.slane %v4547_v44, 5 }
 0xb26   :  { %v4818_v24 = vsel %vm183_vm4, %v4817_v27, %v4816_v56  ;;  %v9657_v41 = vpop.permute.xlu0 %4634  ;;  %v4703_v27 = vrot.slane %v9538_v42, 1 }
 0xb27   :  { %v4820_v36 = vsel %vm186_vm5, %v4819_v46, %v4818_v24  ;;  %v4702_v46 = vsel %vm186_vm5, %v4701_v59, %v9486_v28  ;;  %v4746_v59 = vrot.slane %v9614_v61, 7 }
 0xb28   :  { %v4822_v8 = vsel %vm189_vm6, %v4821_v55, %v4820_v36  ;;  %v4704_v31 = vsel %vm189_vm6, %v4703_v27, %v4702_v46  ;;  %v9740_v46 = vld [vmem:[%s10112_s0 + $0x9e] sm:$0x1] }
 0xb29   :  { %4823 = vrot.lane.b32.xlu0 %v4822_v8, %s5553_s15 }
 0xb2a   :  { %4586 = vperm.xlu1 %5512, %v9538_v42  }
 0xb2c   :  { %v4555_v17 = vpop.permute.xlu2 %4554 }
 0xb2e   :  { %v4539_v24 = vpop.permute.xlu0 %4538 }
 0xb2f   :  { %v4676_v42 = vrot.slane %v4539_v24, 7 }
 0xb31   :  { %v4677_v8 = vsel %vm171_vm0, %v4676_v42, %v4535_v29 }
 0xb32   :  { %4614 = vperm.xlu1 %5512, %v4598_v57   ;;  %v4775_v57 = vrot.slane %v4640_v16, 4 }
 0xb3a   :  { %4626 = vperm.xlu1 %5512, %v4601_v6  }
 0xb42   :  { %5514 = vset.pattern.permute.xlu1 %v5582_v40  ;;  %v4591_v40 = vld [vmem:[%s10114_s2 + $0x7d] sm:$0x1] }
 0xb43   :  { %4645 = vperm.xlu1 %5514, %v4596_v14   ;;  %v4733_v2 = vrot.slane %v4591_v40, 5  ;;  %v4641_v14 = vld [vmem:[%s10113_s1 + $0xbd] sm:$0x1] }
 0xb44   :  { %v4777_v7 = vrot.slane %v4641_v14, 3 }
 0xb45   :  { %v4734_v39 = vsel %vm177_vm2, %v4733_v2, %v4732_v38  ;;  %v4566_v2 = vpop.permute.xlu2 %4565 }
 0xb46   :  { %v4736_v45 = vsel %vm180_vm3, %v4735_v51, %v4734_v39  ;;  %v4684_v39 = vrot.slane %v4555_v17, 3 }
 0xb47   :  { %v4738_v47 = vsel %vm183_vm4, %v4737_v32, %v4736_v45  ;;  %v4559_v32 = vpop.permute.xlu0 %4558 }
 0xb48   :  { %v4740_v58 = vsel %vm186_vm5, %v4739_v23, %v4738_v47  ;;  %v4686_v23 = vrot.slane %v4559_v32, 2 }
 0xb49   :  { %v4742_v54 = vsel %vm189_vm6, %v4741_v63, %v4740_v58  ;;  %v5583_v63 = vmov 1  }
 0xb4a   :  { %5519 = vset.pattern.permute.xlu0 %v5583_v63 }
 0xb4b   :  { %4654 = vperm.xlu1 %5514, %v4599_v1   ;;  %v4772_v1 = vsel %vm174_vm1, %v4771_v10, %v4770_v25 }
 0xb4c   :  { %v4774_v9 = vsel %vm177_vm2, %v4773_v48, %v4772_v1  ;;  %v9684_v48 = vld [vmem:[%s10112_s0 + $0x5e] sm:$0x1]  ;;  %v9692_v1 = vld [vmem:[%s10112_s0 + $0x21] sm:$0x1] }
 0xb4d   :  { %v4776_v11 = vsel %vm180_vm3, %v4775_v57, %v4774_v9  ;;  %v4575_v22 = vpop.permute.xlu2 %4574  ;;  %4973 = vperm.xlu0 %5519, %v9684_v48   ;;  %v9697_v57 = vld [vmem:[%s10112_s0 + $0x1] sm:$0x1] }
 0xb4e   :  { %v4778_v12 = vsel %vm183_vm4, %v4777_v7, %v4776_v11  ;;  %v9709_v7 = vld [vmem:[%s10112_s0 + $0xc1] sm:$0x1] }
 0xb4f   :  { %v4780_v3 = vsel %vm186_vm5, %v4779_v50, %v4778_v12  ;;  %v9714_v11 = vld [vmem:[%s10112_s0 + $0x61] sm:$0x1] }
 0xb50   :  { %v9727_v12 = vld [vmem:[%s10112_s0 + $0xa1] sm:$0x1] }
 0xb53   :  { %4660 = vperm.xlu1 %5514, %v4601_v6   ;;  %v4643_v6 = vld [vmem:[%s10113_s1 + $0xfd] sm:$0x1] }
 0xb54   :  { %v4781_v62 = vrot.slane %v4643_v6, 1 }
 0xb55   :  { %v9678_v15 = vpop.permute.xlu2 %4580  ;;  %5520 = vset.pattern.permute.xlu0 %v5584_v52 }
 0xb56   :  { %v4782_v19 = vsel %vm189_vm6, %v4781_v62, %v4780_v3  ;;  %4884 = vperm.xlu0 %5520, %v9692_v1   ;;  %v9721_v62 = vld [vmem:[%s10112_s0 + $0x3e] sm:$0x1]  ;;  %v4706_v3 = vrot.slane %v9555_v13, 7 }
 0xb57   :  { %4783 = vrot.lane.b32.xlu2 %v4782_v19, %s5555_s19 }
 0xb58   :  { %v4707_v13 = vsel %vm171_vm0, %v4706_v3, %v4566_v2  ;;  %v9761_v2 = vld [vmem:[%s10112_s0 + $0xfe] sm:$0x1] }
 0xb5b   :  { %4743 = vrot.lane.b32.xlu1 %v4742_v54, %s5554_s18 }
 0xb5c   :  { %5517 = vset.pattern.permute.xlu1 %v5584_v52 }
 0xb5d   :  { %v4607_v25 = vpop.permute.xlu2 %4606 }
 0xb5e   :  { %4904 = vperm.xlu0 %5520, %v9709_v7  }
 0xb5f   :  { %4880 = vperm.xlu2 %5516, %v9697_v57  }
 0xb65   :  { %v4619_v14 = vpop.permute.xlu2 %4618 }
 0xb66   :  { %4932 = vperm.xlu0 %5520, %v9721_v62  }
 0xb67   :  { %4892 = vperm.xlu2 %5516, %v9714_v11  }
 0xb6b   :  { %v4498_v35 = vpop.permute.xlu1 %4497  ;;  %v4652_v27 = vpop.permute.xlu0 %4651 }
 0xb6c   :  { %v4500_v60 = vsel %vm347_vm15, %v9516_v18, %v4498_v35  ;;  %v9735_v35 = vld [vmem:[%s10112_s0 + $0x1e] sm:$0x1] }
 0xb6d   :  { %v4502_v55 = vrot.slane %v4500_v60, 1  ;;  %v4503_v5 = vrot.slane %v4500_v60, 2  ;;  %v4504_v56 = vrot.slane %v4500_v60, 3  ;;  %4516 = vst [vmem:[#allocation2 + $0xc] sm:$0x1] %v4500_v60  ;;  %v4505_v40 = vrot.slane %v4500_v60, 4  ;;  %v9704_v9 = vpop.permute.xlu2 %4630 }
 0xb6e   :  { %v4506_v43 = vrot.slane %v4500_v60, 5  ;;  %v4507_v21 = vrot.slane %v4500_v60, 6  ;;  %v4508_v36 = vrot.slane %v4500_v60, 7  ;;  %4944 = vperm.xlu0 %5520, %v9740_v46  }
 0xb6f   :  { %4517 = vst [vmem:[#allocation2 + $0x1c] sm:$0x1] %v4502_v55  ;;  %4900 = vperm.xlu2 %5516, %v9727_v12  }
 0xb70   :  { %4518 = vst [vmem:[#allocation2 + $0x2c] sm:$0x1] %v4503_v5  ;;  %v4710_v5 = vrot.slane %v4575_v22, 5 }
 0xb71   :  { %4519 = vst [vmem:[#allocation2 + $0x3c] sm:$0x1] %v4504_v56  ;;  %v4747_v56 = vsel %vm171_vm0, %v4746_v59, %v4607_v25  ;;  %v4913_v59 = vld [vmem:[%s10114_s2 + $0x7e] sm:$0x1] }
 0xb72   :  { %4520 = vst [vmem:[#allocation2 + $0x4c] sm:$0x1] %v4505_v40  ;;  %v4750_v40 = vrot.slane %v4619_v14, 5 }
 0xb73   :  { %4521 = vst [vmem:[#allocation2 + $0x5c] sm:$0x1] %v4506_v43  ;;  %v4543_v28 = vpop.permute.xlu1 %4542 }
 0xb74   :  { %4522 = vst [vmem:[#allocation2 + $0x6c] sm:$0x1] %v4507_v21  ;;  %v4678_v18 = vrot.slane %v4543_v28, 6  ;;  %v4788_v28 = vrot.slane %v4652_v27, 6  ;;  %v4914_v27 = vld [vmem:[%s10114_s2 + $0x9e] sm:$0x1] }
 0xb75   :  { %4523 = vst [vmem:[#allocation2 + $0x7c] sm:$0x1] %v4508_v36  ;;  %v4649_v54 = vpop.permute.xlu2 %4648 }
 0xb76   :  { %v4679_v53 = vsel %vm174_vm1, %v4678_v18, %v4677_v8  ;;  %v4786_v61 = vrot.slane %v4649_v54, 7  ;;  %v4714_v18 = vrot.slane %v9678_v15, 3  ;;  %4956 = vperm.xlu0 %5520, %v9761_v2   ;;  %v4756_v15 = vrot.slane %v9704_v9, 2  ;;  %v4911_v9 = vld [vmem:[%s10114_s2 + $0x3e] sm:$0x1] }
 0xb77   :  { %v4681_v38 = vsel %vm177_vm2, %v4680_v30, %v4679_v53  ;;  %4928 = vperm.xlu2 %5516, %v9735_v35   ;;  %v9756_v53 = vld [vmem:[%s10112_s0 + $0x7e] sm:$0x1] }
 0xb78   :  { %v4912_v54 = vld [vmem:[%s10114_s2 + $0x5e] sm:$0x1] }
 0xb7b   :  { %v4551_v37 = vpop.permute.xlu1 %4550 }
 0xb7c   :  { %v4682_v51 = vrot.slane %v4551_v37, 4 }
 0xb7d   :  { %v4658_v44 = vpop.permute.xlu2 %4657 }
 0xb7e   :  { %v4683_v26 = vsel %vm180_vm3, %v4682_v51, %v4681_v38  ;;  %v4752_v38 = vrot.slane %v9652_v4, 4  ;;  %5524 = vset.pattern.permute.xlu0 %v5583_v63 }
 0xb7f   :  { %v4685_v45 = vsel %vm183_vm4, %v4684_v39, %v4683_v26  ;;  %4940 = vperm.xlu2 %5516, %v9756_v53  }
 0xb80   :  { %v4687_v0 = vsel %vm186_vm5, %v4686_v23, %v4685_v45  ;;  %v4667_v45 = vpop.permute.xlu0 %4666 }
 0xb81   :  { %v4798_v25 = vrot.slane %v4667_v45, 1 }
 0xb83   :  { %v4563_v49 = vpop.permute.xlu1 %4562 }
 0xb84   :  { %v4688_v47 = vrot.slane %v4563_v49, 1  ;;  %v4716_v49 = vrot.slane %v9597_v34, 2 }
 0xb85   :  { %v4664_v51 = vpop.permute.xlu2 %4663 }
 0xb86   :  { %v9673_v20 = vsel %vm189_vm6, %v4688_v47, %v4687_v0  ;;  %v4792_v47 = vrot.slane %v4658_v44, 4  ;;  %v4758_v0 = vrot.slane %v9657_v41, 1  ;;  %v4910_v41 = vld [vmem:[%s10114_s2 + $0x1e] sm:$0x1] }
 0xb87   :  { %v9676_v33 = vsel %vm4826_vm7, %v9673_v20, %v4704_v31  ;;  %5518 = vset.pattern.permute.xlu2 %v5583_v63  ;;  %vm5139_vm7 = vcmask 7168  }
 0xb88   :  { %4970 = vperm.xlu2 %5518, %v9721_v62  }
 0xb8c   :  { %v4572_v10 = vpop.permute.xlu1 %4571 }
 0xb8d   :  { %v4708_v19 = vrot.slane %v4572_v10, 6 }
 0xb8f   :  { %v4709_v17 = vsel %vm174_vm1, %v4708_v19, %v4707_v13  ;;  %v4916_v13 = vld [vmem:[%s10114_s2 + $0xde] sm:$0x1] }
 0xb90   :  { %v4711_v43 = vsel %vm177_vm2, %v4710_v5, %v4709_v17  ;;  %v5041_v17 = vrot.slane %v4912_v54, 6  ;;  %4976 = vperm.xlu2 %5518, %v9756_v53  }
 0xb94   :  { %v4578_v16 = vpop.permute.xlu1 %4577 }
 0xb95   :  { %v4712_v55 = vrot.slane %v4578_v16, 4 }
 0xb97   :  { %v4713_v36 = vsel %vm180_vm3, %v4712_v55, %v4711_v43 }
 0xb98   :  { %v4715_v26 = vsel %vm183_vm4, %v4714_v18, %v4713_v36  ;;  %v5049_v18 = vrot.slane %v4916_v13, 2  ;;  %4979 = vperm.xlu2 %5518, %v9740_v46  }
 0xb99   :  { %v4717_v16 = vsel %vm186_vm5, %v4716_v49, %v4715_v26  ;;  %v4998_v26 = vrot.slane %v9692_v1, 7  ;;  %v5002_v49 = vrot.slane %v9714_v11, 5  ;;  %v4877_v11 = vld [vmem:[%s10112_s0 + $0xe1] sm:$0x1] }
 0xb9b   :  { %v4824_v5 = vpop.permute.xlu0 %4823 }
 0xb9c   :  { %v9687_v58 = vpop.permute.xlu1 %4586 }
 0xb9d   :  { %v4718_v32 = vrot.slane %v9687_v58, 1  ;;  %v4796_v58 = vrot.slane %v4664_v51, 2 }
 0xba4   :  { %v4615_v6 = vpop.permute.xlu1 %4614 }
 0xba5   :  { %v4748_v60 = vrot.slane %v4615_v6, 6  ;;  %v4719_v6 = vsel %vm189_vm6, %v4718_v32, %v4717_v16 }
 0xba6   :  { %v4829_v3 = vsel %vm4828_vm8, %v9676_v33, %v4719_v6  ;;  %vm5147_vm8 = vcmask 515072  }
 0xba7   :  { %v4749_v24 = vsel %vm174_vm1, %v4748_v60, %v4747_v56  ;;  %v4915_v60 = vld [vmem:[%s10114_s2 + $0xbe] sm:$0x1] }
 0xba8   :  { %v4751_v30 = vsel %vm177_vm2, %v4750_v40, %v4749_v24  ;;  %v4917_v56 = vld [vmem:[%s10114_s2 + $0xfe] sm:$0x1]  ;;  %v5043_v24 = vrot.slane %v4913_v59, 5  ;;  %v5045_v40 = vrot.slane %v4914_v27, 4 }
 0xba9   :  { %v4753_v4 = vsel %vm180_vm3, %v4752_v38, %v4751_v30  ;;  %v5051_v38 = vrot.slane %v4917_v56, 1  ;;  %v5209_v56 = vld [vmem:[%s10115_s3 + $0x40] sm:$0x1] }
 0xbac   :  { %v4627_v50 = vpop.permute.xlu1 %4626 }
 0xbad   :  { %v4754_v8 = vrot.slane %v4627_v50, 3 }
 0xbaf   :  { %v4755_v10 = vsel %vm183_vm4, %v4754_v8, %v4753_v4  ;;  %v4874_v4 = vld [vmem:[%s10112_s0 + $0x81] sm:$0x1] }
 0xbb0   :  { %v4757_v50 = vsel %vm186_vm5, %v4756_v15, %v4755_v10  ;;  %v5004_v53 = vrot.slane %v4874_v4, 4  ;;  %v5008_v15 = vrot.slane %v9709_v7, 2  ;;  %v5010_v10 = vrot.slane %v4877_v11, 1  ;;  %v9861_v7 = vld [vmem:[%s10112_s0 + $0xbe] sm:$0x1] }
 0xbb1   :  { %v4784_v44 = vpop.permute.xlu2 %4783 }
 0xbb5   :  { %v4646_v29 = vpop.permute.xlu1 %4645 }
 0xbb6   :  { %v4787_v21 = vsel %vm171_vm0, %v4786_v61, %v4646_v29  ;;  %v5039_v61 = vrot.slane %v4911_v9, 7  ;;  %v4997_v9 = vld [vmem:[%s10115_s3 + $0xe1] sm:$0x1] }
 0xbb7   :  { %v4789_v37 = vsel %vm174_vm1, %v4788_v28, %v4787_v21  ;;  %v5131_v27 = vrot.slane %v4997_v9, 1 }
 0xbb8   :  { %v5040_v21 = vsel %vm171_vm0, %v5039_v61, %v4910_v41  ;;  %v4958_v61 = vld [vmem:[%s10113_s1 + $0x1e] sm:$0x1] }
 0xbb9   :  { %v5042_v28 = vsel %vm174_vm1, %v5041_v17, %v5040_v21  ;;  %v4960_v17 = vld [vmem:[%s10113_s1 + $0x5e] sm:$0x1] }
 0xbba   :  { %v5044_v8 = vsel %vm177_vm2, %v5043_v24, %v5042_v28  ;;  %v5213_v28 = vld [vmem:[%s10115_s3 + $0xc0] sm:$0x1] }
 0xbbb   :  { %v5046_v51 = vsel %vm180_vm3, %v5045_v40, %v5044_v8 }
 0xbbd   :  { %v4655_v31 = vpop.permute.xlu1 %4654 }
 0xbbe   :  { %v4790_v42 = vrot.slane %v4655_v31, 5  ;;  %v4759_v31 = vsel %vm189_vm6, %v4758_v0, %v4757_v50  ;;  %v5006_v0 = vrot.slane %v9727_v12, 3  ;;  %v4991_v12 = vld [vmem:[%s10115_s3 + $0x21] sm:$0x1] }
 0xbbf   :  { %v4996_v50 = vld [vmem:[%s10115_s3 + $0xc1] sm:$0x1] }
 0xbc0   :  { %v4791_v22 = vsel %vm177_vm2, %v4790_v42, %v4789_v37  ;;  %v5047_v42 = vrot.slane %v4915_v60, 3  ;;  %v9896_v60 = vld [vmem:[%s10112_s0 + $0xde] sm:$0x1] }
 0xbc1   :  { %v4793_v14 = vsel %vm180_vm3, %v4792_v47, %v4791_v22 }
 0xbc5   :  { %v4661_v39 = vpop.permute.xlu1 %4660 }
 0xbc6   :  { %v4794_v23 = vrot.slane %v4661_v39, 3  ;;  %v5048_v39 = vsel %vm183_vm4, %v5047_v42, %v5046_v51  ;;  %v5211_v42 = vld [vmem:[%s10115_s3 + $0x80] sm:$0x1] }
 0xbc7   :  { %v5050_v32 = vsel %vm186_vm5, %v5049_v18, %v5048_v39  ;;  %v5081_v18 = vrot.slane %v4960_v17, 6  ;;  %v5200_v39 = vld [vmem:[%s10113_s1 + $0x3f] sm:$0x1] }
 0xbc8   :  { %v4795_v34 = vsel %vm183_vm4, %v4794_v23, %v4793_v14  ;;  %v5052_v45 = vsel %vm189_vm6, %v5051_v38, %v5050_v32  ;;  %v4999_v23 = vsel %vm171_vm0, %v4998_v26, %v9697_v57  ;;  %v4993_v14 = vld [vmem:[%s10115_s3 + $0x61] sm:$0x1]  ;;  %v5298_v38 = vrot.slane %v5209_v56, 6 }
 0xbc9   :  { %v4797_v29 = vsel %vm186_vm5, %v4796_v58, %v4795_v34  ;;  %5053 = vrot.lane.b32.xlu0 %v5052_v45, %s5554_s18  ;;  %v4990_v58 = vld [vmem:[%s10115_s3 + $0x1] sm:$0x1]  ;;  %v5302_v26 = vrot.slane %v5211_v42, 4  ;;  %v5191_v45 = vld [vmem:[%s10114_s2 + $0x1f] sm:$0x1] }
 0xbca   :  { %v4799_v62 = vsel %vm189_vm6, %v4798_v25, %v4797_v29  ;;  %v4994_v34 = vld [vmem:[%s10115_s3 + $0x81] sm:$0x1]  ;;  %v5123_v29 = vrot.slane %v4993_v14, 5  ;;  %v5198_v14 = vld [vmem:[%s10114_s2 + $0xff] sm:$0x1] }
 0xbcd   :  { %v4744_v19 = vpop.permute.xlu1 %4743 }
 0xbce   :  { %v4831_v33 = vsel %vm4830_vm9, %v4829_v3, %v4744_v19  ;;  %v5125_v3 = vrot.slane %v4994_v34, 4  ;;  %v5201_v34 = vld [vmem:[%s10113_s1 + $0x5f] sm:$0x1]  ;;  %vm5151_vm9 = vcmask 769024  }
 0xbcf   :  { %v4833_v55 = vsel %vm4832_vm10, %v4831_v33, %v4759_v31  ;;  %v4959_v33 = vld [vmem:[%s10113_s1 + $0x3e] sm:$0x1]  ;;  %vm5153_vm10 = vcmask 1006592  }
 0xbd0   :  { %v4835_v43 = vsel %vm4834_vm11, %v4833_v55, %v4784_v44  ;;  %v5129_v44 = vrot.slane %v4996_v50, 2  ;;  %v5079_v24 = vrot.slane %v4959_v33, 7  ;;  %v5202_v33 = vld [vmem:[%s10113_s1 + $0x7f] sm:$0x1]  ;;  %vm5313_vm11 = vcmask 252928  }
 0xbd1   :  { %v4837_v36 = vsel %vm4836_vm12, %v4835_v43, %v4799_v62  ;;  %v5207_v43 = vld [vmem:[%s10115_s3] sm:$0x1]  ;;  %vm5317_vm12 = vcmask 760832  }
 0xbd2   :  { %v4839_v30 = vsel %vm4838_vm13, %v4837_v36, %v4824_v5  ;;  %v5208_v5 = vld [vmem:[%s10115_s3 + $0x20] sm:$0x1] }
 0xbd3   :  { %v9821_v37 = vsel %vm4840_vm14, %v4839_v30, %v9673_v20  ;;  %v4872_v20 = vld [vmem:[%s10112_s0 + $0x41] sm:$0x1]  ;;  %v5210_v62 = vld [vmem:[%s10115_s3 + $0x60] sm:$0x1]  ;;  %v5296_v21 = vrot.slane %v5208_v5, 7 }
 0xbd4   :  { %4843 = vrot.lane.b32.xlu1 %v9821_v37, %s5558_s27  ;;  %v5000_v22 = vrot.slane %v4872_v20, 6  ;;  %v5212_v36 = vld [vmem:[%s10115_s3 + $0xa0] sm:$0x1]  ;;  %v5300_v51 = vrot.slane %v5210_v62, 5  ;;  %v4965_v62 = vld [vmem:[%s10113_s1 + $0xfe] sm:$0x1] }
 0xbd5   :  { %v5214_v30 = vld [vmem:[%s10115_s3 + $0xe0] sm:$0x1]  ;;  %v5297_v8 = vsel %vm171_vm0, %v5296_v21, %v5207_v43  ;;  %v5304_v32 = vrot.slane %v5212_v36, 3 }
 0xbd6   :  { %v5001_v1 = vsel %vm174_vm1, %v5000_v22, %v4999_v23  ;;  %v4962_v22 = vld [vmem:[%s10113_s1 + $0x9e] sm:$0x1]  ;;  %v5080_v23 = vsel %vm171_vm0, %v5079_v24, %v4958_v61  ;;  %v5203_v24 = vld [vmem:[%s10113_s1 + $0x9f] sm:$0x1] }
 0xbd7   :  { %v5003_v47 = vsel %vm177_vm2, %v5002_v49, %v5001_v1  ;;  %v5299_v49 = vsel %vm174_vm1, %v5298_v38, %v5297_v8  ;;  %v5306_v1 = vrot.slane %v5213_v28, 2  ;;  %v4964_v61 = vld [vmem:[%s10113_s1 + $0xde] sm:$0x1]  ;;  %v5204_v28 = vld [vmem:[%s10113_s1 + $0xbf] sm:$0x1] }
 0xbd8   :  { %v5005_v57 = vsel %vm180_vm3, %v5004_v53, %v5003_v47  ;;  %v5194_v53 = vld [vmem:[%s10114_s2 + $0x7f] sm:$0x1]  ;;  %v5089_v21 = vrot.slane %v4964_v61, 2 }
 0xbd9   :  { %v5007_v16 = vsel %vm183_vm4, %v5006_v0, %v5005_v57  ;;  %v5301_v0 = vsel %vm177_vm2, %v5300_v51, %v5299_v49  ;;  %v5195_v57 = vld [vmem:[%s10114_s2 + $0x9f] sm:$0x1] }
 0xbda   :  { %v5009_v25 = vsel %vm186_vm5, %v5008_v15, %v5007_v16  ;;  %v5308_v15 = vrot.slane %v5214_v30, 1  ;;  %v5197_v16 = vld [vmem:[%s10114_s2 + $0xdf] sm:$0x1]  ;;  %v5091_v30 = vrot.slane %v4965_v62, 1 }
 0xbdb   :  { %v9853_v46 = vsel %vm189_vm6, %v5010_v10, %v5009_v25  ;;  %v5303_v10 = vsel %vm180_vm3, %v5302_v26, %v5301_v0  ;;  %v5205_v51 = vld [vmem:[%s10113_s1 + $0xdf] sm:$0x1] }
 0xbdc   :  { %4888 = vperm.xlu1 %5517, %v4872_v20   ;;  %5012 = vrot.lane.b32.xlu2 %v9853_v46, %s5585_s25  ;;  %v5192_v20 = vld [vmem:[%s10114_s2 + $0x3f] sm:$0x1] }
 0xbdd   :  { %v5246_v25 = vrot.slane %v5192_v20, 7 }
 0xbe4   :  { %4896 = vperm.xlu1 %5517, %v4874_v4   ;;  %4988 = vperm.xlu2 %5518, %v9761_v2   ;;  %v4992_v2 = vld [vmem:[%s10115_s3 + $0x41] sm:$0x1]  ;;  %v5193_v4 = vld [vmem:[%s10114_s2 + $0x5f] sm:$0x1] }
 0xbe5   :  { %v5121_v6 = vrot.slane %v4992_v2, 6  ;;  %v5250_v2 = vrot.slane %v5194_v53, 5  ;;  %v10037_v53 = vpop.permute.xlu0 %4973 }
 0xbec   :  { %4908 = vperm.xlu1 %5517, %v4877_v11   ;;  %v5196_v11 = vld [vmem:[%s10114_s2 + $0xbf] sm:$0x1] }
 0xbed   :  { %v5254_v9 = vrot.slane %v5196_v11, 3 }
 0xbf4   :  { %4936 = vperm.xlu1 %5517, %v9684_v48   ;;  %v5119_v48 = vrot.slane %v4991_v12, 7  ;;  %v5248_v12 = vrot.slane %v5193_v4, 6 }
 0xbf6   :  { %v5120_v41 = vsel %vm171_vm0, %v5119_v48, %v4990_v58  ;;  %v5082_v48 = vsel %vm174_vm1, %v5081_v18, %v5080_v23  ;;  %v5305_v58 = vsel %vm183_vm4, %v5304_v32, %v5303_v10  ;;  %v5277_v18 = vrot.slane %v5203_v24, 4 }
 0xbf7   :  { %v5122_v54 = vsel %vm174_vm1, %v5121_v6, %v5120_v41  ;;  %v5252_v6 = vrot.slane %v5195_v57, 4  ;;  %v5307_v50 = vsel %vm186_vm5, %v5306_v1, %v5305_v58  ;;  %v5247_v41 = vsel %vm171_vm0, %v5246_v25, %v5191_v45  ;;  %v4881_v1 = vpop.permute.xlu2 %4880 }
 0xbf8   :  { %v5124_v59 = vsel %vm177_vm2, %v5123_v29, %v5122_v54  ;;  %v4963_v54 = vld [vmem:[%s10113_s1 + $0xbe] sm:$0x1]  ;;  %v5085_v29 = vrot.slane %v4962_v22, 4  ;;  %v5281_v45 = vrot.slane %v5205_v51, 2 }
 0xbf9   :  { %v5126_v31 = vsel %vm180_vm3, %v5125_v3, %v5124_v59  ;;  %v5309_v3 = vsel %vm189_vm6, %v5308_v15, %v5307_v50  ;;  %v5087_v17 = vrot.slane %v4963_v54, 3 }
 0xbfc   :  { %4948 = vperm.xlu1 %5517, %v9861_v7  }
 0xbff   :  { %v4893_v4 = vpop.permute.xlu2 %4892 }
 0xc04   :  { %5521 = vset.pattern.permute.xlu1 %v5583_v63 }
 0xc05   :  { %4967 = vperm.xlu1 %5521, %v9735_v35   ;;  %v4995_v35 = vld [vmem:[%s10115_s3 + $0xa1] sm:$0x1]  ;;  %s5588_s3 = smov 128  }
 0xc06   :  { %v5127_v19 = vrot.slane %v4995_v35, 3  ;;  %v5271_v35 = vrot.slane %v5200_v39, 7  ;;  %v5279_v39 = vrot.slane %v5204_v28, 3 }
 0xc08   :  { %v5128_v13 = vsel %vm183_vm4, %v5127_v19, %v5126_v31  ;;  %v5249_v19 = vsel %vm174_vm1, %v5248_v12, %v5247_v41  ;;  %v5273_v31 = vrot.slane %v5201_v34, 6  ;;  %v4885_v12 = vpop.permute.xlu0 %4884 }
 0xc09   :  { %v5130_v55 = vsel %vm186_vm5, %v5129_v44, %v5128_v13  ;;  %v5256_v44 = vrot.slane %v5197_v16, 2 }
 0xc0a   :  { %v5132_v40 = vsel %vm189_vm6, %v5131_v27, %v5130_v55  ;;  %v5258_v27 = vrot.slane %v5198_v14, 1 }
 0xc0b   :  { %5133 = vrot.lane.b32.xlu0 %v5132_v40, %s5553_s15  ;;  %v5275_v40 = vrot.slane %v5202_v33, 5 }
 0xc0d   :  { %5522 = vset.pattern.permute.xlu1 %v5584_v52  ;;  %v4961_v52 = vld [vmem:[%s10113_s1 + $0x7e] sm:$0x1] }
 0xc0e   :  { %4952 = vperm.xlu1 %5522, %v9896_v60   ;;  %v5083_v47 = vrot.slane %v4961_v52, 5 }
 0xc10   :  { %v5084_v59 = vsel %vm177_vm2, %v5083_v47, %v5082_v48  ;;  %v10039_v47 = vpop.permute.xlu2 %4900  ;;  %v5016_v48 = vrot.slane %v4885_v12, 7 }
 0xc11   :  { %v5086_v56 = vsel %vm180_vm3, %v5085_v29, %v5084_v59 }
 0xc12   :  { %v5088_v36 = vsel %vm183_vm4, %v5087_v17, %v5086_v56 }
 0xc13   :  { %5310 = vrot.lane.b32.xlu0 %v5309_v3, %s5553_s15  ;;  %v5090_v38 = vsel %vm186_vm5, %v5089_v21, %v5088_v36  ;;  %v5183_v21 = vld [vmem:[%s10112_s0] sm:$0x1] }
 0xc14   :  { %v5092_v32 = vsel %vm189_vm6, %v5091_v30, %v5090_v38 }
 0xc16   :  { %5523 = vset.pattern.permute.xlu1 %v5583_v63  ;;  %v5199_v63 = vld [vmem:[%s10113_s1 + $0x1f] sm:$0x1] }
 0xc17   :  { %4982 = vperm.xlu1 %5523, %v9861_v7   ;;  %v5251_v7 = vsel %vm177_vm2, %v5250_v2, %v5249_v19  ;;  %v5272_v55 = vsel %vm171_vm0, %v5271_v35, %v5199_v63  ;;  %v5017_v35 = vsel %vm171_vm0, %v5016_v48, %v4881_v1  ;;  %v4905_v19 = vpop.permute.xlu0 %4904  ;;  %v5188_v48 = vld [vmem:[%s10112_s0 + $0xa0] sm:$0x1] }
 0xc18   :  { %v5253_v13 = vsel %vm180_vm3, %v5252_v6, %v5251_v7  ;;  %v5274_v42 = vsel %vm174_vm1, %v5273_v31, %v5272_v55  ;;  %v4929_v14 = vpop.permute.xlu2 %4928  ;;  %v5184_v55 = vld [vmem:[%s10112_s0 + $0x20] sm:$0x1]  ;;  %v5026_v51 = vrot.slane %v4905_v19, 2 }
 0xc19   :  { %v5255_v5 = vsel %vm183_vm4, %v5254_v9, %v5253_v13  ;;  %v5276_v8 = vsel %vm177_vm2, %v5275_v40, %v5274_v42  ;;  %v5185_v40 = vld [vmem:[%s10112_s0 + $0x40] sm:$0x1] }
 0xc1a   :  { %v5257_v52 = vsel %vm186_vm5, %v5256_v44, %v5255_v5  ;;  %v5278_v26 = vsel %vm180_vm3, %v5277_v18, %v5276_v8  ;;  %v5024_v18 = vrot.slane %v10039_v47, 3  ;;  %v5186_v8 = vld [vmem:[%s10112_s0 + $0x60] sm:$0x1]  ;;  %v5225_v38 = vrot.slane %v5185_v40, 6 }
 0xc1b   :  { %v5259_v43 = vsel %vm189_vm6, %v5258_v27, %v5257_v52  ;;  %v5280_v20 = vsel %vm183_vm4, %v5279_v39, %v5278_v26  ;;  %v5227_v47 = vrot.slane %v5186_v8, 5 }
 0xc1c   :  { %5260 = vrot.lane.b32.xlu2 %v5259_v43, %s5554_s18  ;;  %v5282_v23 = vsel %vm186_vm5, %v5281_v45, %v5280_v20  ;;  %v5223_v43 = vrot.slane %v5184_v55, 7 }
 0xc1f   :  { %4985 = vperm.xlu1 %5523, %v9896_v60   ;;  %v5206_v60 = vld [vmem:[%s10113_s1 + $0xff] sm:$0x1]  ;;  %v4933_v7 = vpop.permute.xlu0 %4932 }
 0xc20   :  { %v5283_v22 = vrot.slane %v5206_v60, 1  ;;  %v4941_v54 = vpop.permute.xlu2 %4940  ;;  %v5056_v5 = vrot.slane %v4933_v7, 7  ;;  %v5098_v60 = vrot.slane %v10037_v53, 6 }
 0xc21   :  { %v5060_v39 = vrot.slane %v4941_v54, 5  ;;  %v5231_v54 = vrot.slane %v5188_v48, 3 }
 0xc22   :  { %v5284_v49 = vsel %vm189_vm6, %v5283_v22, %v5282_v23  ;;  %v5057_v42 = vsel %vm171_vm0, %v5056_v5, %v4929_v14 }
 0xc24   :  { %5136 = vrot.lane.b32.xlu2 %v9853_v46, %s5586_s14 }
 0xc27   :  { %5093 = vrot.lane.b32.xlu1 %v5092_v32, %s5555_s19  ;;  %v4945_v31 = vpop.permute.xlu0 %4944  ;;  %v5224_v32 = vsel %vm171_vm0, %v5223_v43, %v5183_v21 }
 0xc28   :  { %v4971_v63 = vpop.permute.xlu2 %4970  ;;  %v5062_v45 = vrot.slane %v4945_v31, 4 }
 0xc29   :  { %v5096_v36 = vrot.slane %v4971_v63, 7 }
 0xc2f   :  { %5285 = vrot.lane.b32.xlu1 %v5284_v49, %s5555_s19  ;;  %v4957_v17 = vpop.permute.xlu0 %4956 }
 0xc30   :  { %v4977_v44 = vpop.permute.xlu2 %4976 }
 0xc31   :  { %v5100_v53 = vrot.slane %v4977_v44, 5 }
 0xc38   :  { %v10046_v27 = vpop.permute.xlu2 %4979 }
 0xc3b   :  { %v5054_v23 = vpop.permute.xlu0 %5053 }
 0xc40   :  { %v5013_v13 = vpop.permute.xlu2 %5012 }
 0xc46   :  { %v4844_v0 = vpop.permute.xlu1 %4843 }
 0xc47   :  { %v4846_v15 = vsel %vm347_vm15, %v9821_v37, %v4844_v0  ;;  %v5020_v37 = vrot.slane %v4893_v4, 5  ;;  %v5187_v4 = vld [vmem:[%s10112_s0 + $0x80] sm:$0x1] }
 0xc48   :  { %v4848_v57 = vrot.slane %v4846_v15, 1  ;;  %v4849_v11 = vrot.slane %v4846_v15, 2  ;;  %v4850_v10 = vrot.slane %v4846_v15, 3  ;;  %4862 = vst [vmem:[#allocation2 + $0xd] sm:$0x1] %v4846_v15  ;;  %v4851_v16 = vrot.slane %v4846_v15, 4  ;;  %v10051_v24 = vpop.permute.xlu2 %4988 }
 0xc49   :  { %v4852_v25 = vrot.slane %v4846_v15, 5  ;;  %v4853_v2 = vrot.slane %v4846_v15, 6  ;;  %v4854_v58 = vrot.slane %v4846_v15, 7 }
 0xc4a   :  { %4863 = vst [vmem:[#allocation2 + $0x1d] sm:$0x1] %v4848_v57  ;;  %v5226_v57 = vsel %vm174_vm1, %v5225_v38, %v5224_v32 }
 0xc4b   :  { %4864 = vst [vmem:[#allocation2 + $0x2d] sm:$0x1] %v4849_v11 }
 0xc4c   :  { %4865 = vst [vmem:[#allocation2 + $0x3d] sm:$0x1] %v4850_v10 }
 0xc4d   :  { %4866 = vst [vmem:[#allocation2 + $0x4d] sm:$0x1] %v4851_v16 }
 0xc4e   :  { %4867 = vst [vmem:[#allocation2 + $0x5d] sm:$0x1] %v4852_v25  ;;  %v4889_v6 = vpop.permute.xlu1 %4888  ;;  %v5140_v25 = vsel %vm5139_vm7, %v5013_v13, %v9853_v46  ;;  %v5108_v13 = vrot.slane %v10051_v24, 1 }
 0xc4f   :  { %4868 = vst [vmem:[#allocation2 + $0x6d] sm:$0x1] %v4853_v2  ;;  %v5018_v34 = vrot.slane %v4889_v6, 6 }
 0xc50   :  { %4869 = vst [vmem:[#allocation2 + $0x7d] sm:$0x1] %v4854_v58  ;;  %v5229_v58 = vrot.slane %v5187_v4, 4 }
 0xc51   :  { %v5019_v50 = vsel %vm174_vm1, %v5018_v34, %v5017_v35  ;;  %v5102_v35 = vrot.slane %v10046_v27, 4  ;;  %v5190_v27 = vld [vmem:[%s10112_s0 + $0xe0] sm:$0x1] }
 0xc52   :  { %v5021_v41 = vsel %vm177_vm2, %v5020_v37, %v5019_v50  ;;  %v5228_v37 = vsel %vm177_vm2, %v5227_v47, %v5226_v57  ;;  %v5235_v5 = vrot.slane %v5190_v27, 1 }
 0xc56   :  { %v4897_v9 = vpop.permute.xlu1 %4896 }
 0xc57   :  { %v5022_v56 = vrot.slane %v4897_v9, 4  ;;  %v5189_v9 = vld [vmem:[%s10112_s0 + $0xc0] sm:$0x1]  ;;  %s5587_s0 = smov [#allocation2]  }
 0xc59   :  { %v5023_v28 = vsel %vm180_vm3, %v5022_v56, %v5021_v41  ;;  %v5068_v41 = vrot.slane %v4957_v17, 1 }
 0xc5a   :  { %v5025_v20 = vsel %vm183_vm4, %v5024_v18, %v5023_v28 }
 0xc5b   :  { %v5027_v11 = vsel %vm186_vm5, %v5026_v51, %v5025_v20 }
 0xc5e   :  { %v4909_v29 = vpop.permute.xlu1 %4908 }
 0xc5f   :  { %v5028_v22 = vrot.slane %v4909_v29, 1 }
 0xc61   :  { %v5029_v16 = vsel %vm189_vm6, %v5028_v22, %v5027_v11 }
 0xc66   :  { %v4937_v3 = vpop.permute.xlu1 %4936 }
 0xc67   :  { %v5058_v52 = vrot.slane %v4937_v3, 6  ;;  %v5230_v3 = vsel %vm180_vm3, %v5229_v58, %v5228_v37 }
 0xc69   :  { %v5059_v30 = vsel %vm174_vm1, %v5058_v52, %v5057_v42 }
 0xc6a   :  { %v5061_v49 = vsel %vm177_vm2, %v5060_v39, %v5059_v30 }
 0xc6b   :  { %v5063_v12 = vsel %vm180_vm3, %v5062_v45, %v5061_v49 }
 0xc6e   :  { %v4949_v59 = vpop.permute.xlu1 %4948 }
 0xc6f   :  { %v5064_v1 = vrot.slane %v4949_v59, 3 }
 0xc71   :  { %v5065_v14 = vsel %vm183_vm4, %v5064_v1, %v5063_v12 }
 0xc76   :  { %v5261_v10 = vpop.permute.xlu2 %5260 }
 0xc77   :  { %v4968_v33 = vpop.permute.xlu1 %4967 }
 0xc78   :  { %v5097_v26 = vsel %vm171_vm0, %v5096_v36, %v4968_v33  ;;  %vm5141_vm0 = vcmask 244736   ;;  %v5233_v33 = vrot.slane %v5189_v9, 2 }
 0xc79   :  { %v5099_v0 = vsel %vm174_vm1, %v5098_v60, %v5097_v26  ;;  %vm5143_vm1 = vcmask 261120   ;;  %v5142_v29 = vsel %vm5141_vm0, %v5140_v25, %v5029_v16 }
 0xc7a   :  { %v5101_v6 = vsel %vm177_vm2, %v5100_v53, %v5099_v0  ;;  %vm5145_vm2 = vcmask 498688   ;;  %v5144_v31 = vsel %vm5143_vm1, %v5142_v29, %v5054_v23 }
 0xc7b   :  { %v5103_v63 = vsel %vm180_vm3, %v5102_v35, %v5101_v6  ;;  %vm5149_vm3 = vcmask 752640  }
 0xc7d   :  { %v5134_v59 = vpop.permute.xlu0 %5133 }
 0xc7e   :  { %v5137_v40 = vpop.permute.xlu2 %5136 }
 0xc80   :  { %v4953_v61 = vpop.permute.xlu1 %4952 }
 0xc81   :  { %v5066_v15 = vrot.slane %v4953_v61, 2  ;;  %v5232_v61 = vsel %vm183_vm4, %v5231_v54, %v5230_v3 }
 0xc82   :  { %v5234_v43 = vsel %vm186_vm5, %v5233_v33, %v5232_v61 }
 0xc83   :  { %v5067_v50 = vsel %vm186_vm5, %v5066_v15, %v5065_v14  ;;  %v5236_v36 = vsel %vm189_vm6, %v5235_v5, %v5234_v43 }
 0xc84   :  { %v5069_v44 = vsel %vm189_vm6, %v5068_v41, %v5067_v50  ;;  %v5314_v28 = vsel %vm5313_vm11, %v5236_v36, %v5261_v10 }
 0xc85   :  { %v5146_v17 = vsel %vm5145_vm2, %v5144_v31, %v5069_v44  ;;  %v5311_v24 = vpop.permute.xlu0 %5310 }
 0xc89   :  { %v4983_v62 = vpop.permute.xlu1 %4982 }
 0xc8a   :  { %v5104_v34 = vrot.slane %v4983_v62, 3 }
 0xc8c   :  { %v5105_v19 = vsel %vm183_vm4, %v5104_v34, %v5103_v63  ;;  %vm5315_vm4 = vcmask 506880  }
 0xc91   :  { %v4986_v2 = vpop.permute.xlu1 %4985 }
 0xc92   :  { %v5106_v46 = vrot.slane %v4986_v2, 2 }
 0xc94   :  { %v5107_v7 = vsel %vm186_vm5, %v5106_v46, %v5105_v19 }
 0xc95   :  { %v5109_v52 = vsel %vm189_vm6, %v5108_v13, %v5107_v7 }
 0xc99   :  { %v5094_v55 = vpop.permute.xlu1 %5093 }
 0xc9a   :  { %v5148_v56 = vsel %vm5147_vm8, %v5146_v17, %v5094_v55 }
 0xc9b   :  { %v5150_v62 = vsel %vm5149_vm3, %v5148_v56, %v5109_v52 }
 0xc9c   :  { %v5152_v21 = vsel %vm5151_vm9, %v5150_v62, %v5134_v59 }
 0xc9d   :  { %v5154_v42 = vsel %vm5153_vm10, %v5152_v21, %v5137_v40 }
 0xc9e   :  { %5156 = vrot.lane.b32.xlu1 %v5154_v42, %s5558_s27 }
 0xca1   :  { %v5286_v18 = vpop.permute.xlu1 %5285 }
 0xca2   :  { %v5316_v30 = vsel %vm5315_vm4, %v5314_v28, %v5286_v18 }
 0xca3   :  { %v5318_v8 = vsel %vm5317_vm12, %v5316_v30, %v5311_v24 }
 0xca4   :  { %5320 = vrot.lane.b32.xlu2 %v5318_v8, %s5558_s27  ;;  %s5351_s27 = sshll.u32 %s5587_s0, 4  ;;  %s5352_s27 = int_to_ptr.vmem [resolvable:$true] %s5351_s27 }
 0xcfe   :  { %v5321_v38 = vpop.permute.xlu2 %5320 }
 0xcff   :  { %v5323_v51 = vsel %vm347_vm15, %v5318_v8, %v5321_v38 }
 0xd00   :  { %v5325_v39 = vrot.slane %v5323_v51, 1  ;;  %v5326_v26 = vrot.slane %v5323_v51, 2  ;;  %v5327_v32 = vrot.slane %v5323_v51, 3  ;;  %5339 = vst [vmem:[#allocation2 + $0xf] sm:$0x1] %v5323_v51  ;;  %v5328_v60 = vrot.slane %v5323_v51, 4 }
 0xd01   :  { %v5329_v45 = vrot.slane %v5323_v51, 5  ;;  %v5330_v20 = vrot.slane %v5323_v51, 6  ;;  %v5331_v22 = vrot.slane %v5323_v51, 7 }
 0xd02   :  { %5340 = vst [vmem:[#allocation2 + $0x1f] sm:$0x1] %v5325_v39 }
 0xd03   :  { %5341 = vst [vmem:[#allocation2 + $0x2f] sm:$0x1] %v5326_v26 }
 0xd04   :  { %5342 = vst [vmem:[#allocation2 + $0x3f] sm:$0x1] %v5327_v32 }
 0xd05   :  { %5343 = vst [vmem:[#allocation2 + $0x4f] sm:$0x1] %v5328_v60 }
 0xd06   :  { %5344 = vst [vmem:[#allocation2 + $0x5f] sm:$0x1] %v5329_v45 }
 0xd07   :  { %5345 = vst [vmem:[#allocation2 + $0x6f] sm:$0x1] %v5330_v20 }
 0xd08   :  { %5346 = vst [vmem:[#allocation2 + $0x7f] sm:$0x1] %v5331_v22 }
 0xd10   :  { %v5157_v23 = vpop.permute.xlu1 %5156 }
 0xd11   :  { %v5159_v49 = vsel %vm347_vm15, %v5154_v42, %v5157_v23 }
 0xd12   :  { %v5161_v1 = vrot.slane %v5159_v49, 1  ;;  %v5162_v4 = vrot.slane %v5159_v49, 2  ;;  %v5163_v47 = vrot.slane %v5159_v49, 3  ;;  %5175 = vst [vmem:[#allocation2 + $0xe] sm:$0x1] %v5159_v49  ;;  %v5164_v0 = vrot.slane %v5159_v49, 4 }
 0xd13   :  { %v5165_v15 = vrot.slane %v5159_v49, 5  ;;  %v5166_v57 = vrot.slane %v5159_v49, 6  ;;  %v5167_v53 = vrot.slane %v5159_v49, 7 }
 0xd14   :  { %5176 = vst [vmem:[#allocation2 + $0x1e] sm:$0x1] %v5161_v1 }
 0xd15   :  { %5177 = vst [vmem:[#allocation2 + $0x2e] sm:$0x1] %v5162_v4 }
 0xd16   :  { %5178 = vst [vmem:[#allocation2 + $0x3e] sm:$0x1] %v5163_v47 }
 0xd17   :  { %5179 = vst [vmem:[#allocation2 + $0x4e] sm:$0x1] %v5164_v0 }
 0xd18   :  { %5180 = vst [vmem:[#allocation2 + $0x5e] sm:$0x1] %v5165_v15 }
 0xd19   :  { %5181 = vst [vmem:[#allocation2 + $0x6e] sm:$0x1] %v5166_v57 }
 0xd1a   :  { %5182 = vst [vmem:[#allocation2 + $0x7e] sm:$0x1] %v5167_v53 }
 0xd1b   :  { %5359 = dma.vmem_to_hbm [thread:$0]  %s5352_s27, 2048, %s5354_s7, [#allocation3], %s5588_s3, %s5588_s3, %s5589_s8  }
 0xd1c   :  { %5549 = dma.done.wait [#allocation3], 2048  }
 0xd1d   :  { %5550 = vsyncadd [#allocation3], 4294965248 }
 0xd1e   :  { %5364 = vsyncpa [#allocation3], 1 }

</bundles_post_ra>
